<compile_context>
chip_gen: v7x
topology: tpu7x:2x2x1
jax: 0.10.0
libtpu: 0.0.40
codegen_flags: <defaults>
</compile_context>

<pallas_src>
import jax
import jax.numpy as jnp
from jax import lax
from jax.experimental import pallas as pl
from jax.experimental.pallas import tpu as pltpu

L_IN = 561            # input sequence length (gives 1184 flatten features)
CONV_OUT_L = 37       # sequence length after the 4 conv+pool stages
CONV_OUT_C = 32
FLAT = CONV_OUT_L * CONV_OUT_C   # 1184
B_DEFAULT = 2
MAX_TILE_B = 8        # samples per grid step (batch tile)

# scratch row counts (>= rows written by the stages that use them)
_SCR16_ROWS = 576     # stage1 writes 563 rows, stage2 writes 284   (16 channels)
_SCR32_ROWS = 160     # stage3 writes 144 rows, stage4 writes 74    (32 channels)


# --------------------------------------------------------------------------
# One conv1d(k=2, pad=2) -> relu -> maxpool(2) stage for a single sample.
# Activations are held as (L, C): time on sublanes, channels on lanes.
# --------------------------------------------------------------------------
def _conv_relu_pool(h, w0, w1, b, scr):
    lin, cin = h.shape
    lc = lin + 3                  # conv output length with pad=2, k=2
    lp = lc // 2                  # pooled length (floor)

    zeros = jnp.zeros((2, cin), dtype=h.dtype)
    xp = jnp.concatenate([zeros, h, zeros], axis=0)       # (Lin+4, Cin)
    lhs0 = xp[0:lc, :]                                    # kernel tap k=0
    lhs1 = xp[1:lc + 1, :]                                # kernel tap k=1

    if cin == 1:
        # contraction dim of 1 -> broadcasted multiply instead of matmul
        y = lhs0 * w0 + lhs1 * w1 + b
    else:
        y = (jnp.dot(lhs0, w0, preferred_element_type=jnp.float32)
             + jnp.dot(lhs1, w1, preferred_element_type=jnp.float32)
             + b)                                         # (Lc, Cout)
    y = jnp.maximum(y, 0.0)                               # ReLU

    # max_pool1d(kernel=2, stride=2): out[t] = max(y[2t], y[2t+1]).
    m = jnp.maximum(y[0:lc - 1, :], y[1:lc, :])           # (Lc-1, Cout)
    scr[0:lc - 1, :] = m
    return scr[pl.ds(0, lp, stride=2), :]                 # (lp, Cout)


# --------------------------------------------------------------------------
# Fully fused kernel: conv stack + Linear(1184->256) + Linear(256->6) for a
# tile of samples.  Samples are unrolled with a small Python loop; the first
# Linear runs as 37 batched matmuls (M = tile size) so no in-kernel flatten
# or transpose of the (37, 32) feature map is needed.
# --------------------------------------------------------------------------
def har_kernel(x_ref,
               c1w0, c1w1, c1b, c2w0, c2w1, c2b,
               c3w0, c3w1, c3b, c4w0, c4w1, c4b,
               l1w, l1b, l2w, l2b,
               out_ref,
               scr16, scr32):
    tb = x_ref.shape[0]

    # Hoist weight loads out of the per-sample loop.
    W1 = (c1w0[...], c1w1[...], c1b[...])
    W2 = (c2w0[...], c2w1[...], c2b[...])
    W3 = (c3w0[...], c3w1[...], c3b[...])
    W4 = (c4w0[...], c4w1[...], c4b[...])
    bl1 = l1b[...]
    wl2, bl2 = l2w[...], l2b[...]

    feats = []
    for s in range(tb):
        h = x_ref[s]                                      # (561, 1)
        h = _conv_relu_pool(h, *W1, scr16)                # (282, 16)
        h = _conv_relu_pool(h, *W2, scr16)                # (142, 16)
        h = _conv_relu_pool(h, *W3, scr32)                # (72, 32)
        h = _conv_relu_pool(h, *W4, scr32)                # (37, 32)
        feats.append(h)

    # Linear(1184 -> 256) decomposed over the 37 time positions:
    #   h1[s, :] = b1 + sum_l feats[s][l, :] @ W1k[l]
    # where W1k (37, 32, 256) is the PyTorch weight pre-permuted on the host so
    # the channel-major flatten (index c*37+l) is honoured exactly.
    h1 = jnp.zeros((tb, 256), jnp.float32)
    for l in range(CONV_OUT_L):
        f_l = jnp.concatenate([feats[s][l:l + 1, :] for s in range(tb)],
                              axis=0)                     # (tb, 32)
        h1 = h1 + jnp.dot(f_l, l1w[l], preferred_element_type=jnp.float32)
    h1 = h1 + bl1                                         # (tb, 256)

    logits = jnp.dot(h1, wl2, preferred_element_type=jnp.float32) + bl2  # (tb, 6)
    out_ref[...] = logits.astype(out_ref.dtype)


# --------------------------------------------------------------------------
# Parameters (torch-layout shapes) and forward wrapper.
# --------------------------------------------------------------------------
def make_params(key):
    ks = jax.random.split(key, 12)

    def u(k, shape, fan_in):
        bound = 1.0 / (fan_in ** 0.5)
        return jax.random.uniform(k, shape, jnp.float32,
                                  minval=-bound, maxval=bound)

    return {
        "w_c1": u(ks[0], (16, 1, 2), 1 * 2),   "b_c1": u(ks[1], (16,), 1 * 2),
        "w_c2": u(ks[2], (16, 16, 2), 16 * 2), "b_c2": u(ks[3], (16,), 16 * 2),
        "w_c3": u(ks[4], (32, 16, 2), 16 * 2), "b_c3": u(ks[5], (32,), 16 * 2),
        "w_c4": u(ks[6], (32, 32, 2), 32 * 2), "b_c4": u(ks[7], (32,), 32 * 2),
        "w_l1": u(ks[8], (256, 1184), 1184),   "b_l1": u(ks[9], (256,), 1184),
        "w_l2": u(ks[10], (6, 256), 256),      "b_l2": u(ks[11], (6,), 256),
    }


def har_forward(x_ncl, p):
    """x_ncl: (B, 1, 561) float32 — same layout as the PyTorch module input."""
    batch = x_ncl.shape[0]
    # channel dim is 1, so this transpose is a free reshape (no data movement)
    x_blc = jnp.transpose(x_ncl, (0, 2, 1)).astype(jnp.float32)   # (B, 561, 1)

    tb = min(MAX_TILE_B, batch)
    nb = pl.cdiv(batch, tb)
    bpad = nb * tb
    if bpad != batch:
        x_blc = jnp.pad(x_blc, ((0, bpad - batch), (0, 0), (0, 0)))

    def conv_mats(w, b):
        # torch Conv1d weight (Cout, Cin, K=2) -> two (Cin, Cout) matmul operands
        return w[:, :, 0].T, w[:, :, 1].T, b.reshape(1, -1)

    params = []
    for name in ("c1", "c2", "c3", "c4"):
        params += list(conv_mats(p["w_" + name], p["b_" + name]))

    # Pre-permute the first Linear's weight to (L=37, C=32, out=256) so that
    #   W1k[l, c, o] == w_l1[o, c*37 + l]   (PyTorch channel-major flatten).
    w1k = (p["w_l1"].reshape(256, CONV_OUT_C, CONV_OUT_L)
           .transpose(2, 1, 0))                                   # (37, 32, 256)
    params += [w1k, p["b_l1"].reshape(1, -1),
               p["w_l2"].T, p["b_l2"].reshape(1, -1)]

    def full_spec(a):
        nd = a.ndim
        return pl.BlockSpec(a.shape, lambda b, _nd=nd: (0,) * _nd)

    in_specs = [pl.BlockSpec((tb, L_IN, 1), lambda b: (b, 0, 0))]
    in_specs += [full_spec(a) for a in params]

    out = pl.pallas_call(
        har_kernel,
        out_shape=jax.ShapeDtypeStruct((bpad, 6), jnp.float32),
        grid=(nb,),
        in_specs=in_specs,
        out_specs=pl.BlockSpec((tb, 6), lambda b: (b, 0)),
        scratch_shapes=[pltpu.VMEM((_SCR16_ROWS, 16), jnp.float32),
                        pltpu.VMEM((_SCR32_ROWS, 32), jnp.float32)],
        compiler_params=pltpu.CompilerParams(
            dimension_semantics=("parallel",)),
    )(x_blc, *params)
    return out[:batch]


# --------------------------------------------------------------------------
# Pure-JAX reference mirroring the PyTorch forward exactly (for validation).
# --------------------------------------------------------------------------
def har_reference(x_ncl, p):
    prec = jax.lax.Precision.HIGHEST

    def conv1d(x, w, b):
        y = lax.conv_general_dilated(
            x, w, window_strides=(1,), padding=[(2, 2)],
            dimension_numbers=("NCH", "OIH", "NCH"), precision=prec)
        return y + b[None, :, None]

    def pool(x):
        batch, ch, length = x.shape
        lp = length // 2
        return jnp.max(x[:, :, :2 * lp].reshape(batch, ch, lp, 2), axis=-1)

    h = pool(jnp.maximum(conv1d(x_ncl, p["w_c1"], p["b_c1"]), 0.0))
    h = pool(jnp.maximum(conv1d(h, p["w_c2"], p["b_c2"]), 0.0))
    h = pool(jnp.maximum(conv1d(h, p["w_c3"], p["b_c3"]), 0.0))
    h = pool(jnp.maximum(conv1d(h, p["w_c4"], p["b_c4"]), 0.0))
    flat = h.reshape(h.shape[0], -1)
    h1 = jnp.dot(flat, p["w_l1"].T, precision=prec) + p["b_l1"]
    return jnp.dot(h1, p["w_l2"].T, precision=prec) + p["b_l2"]


if __name__ == "__main__":
    key = jax.random.PRNGKey(0)
    pkey, xkey = jax.random.split(key)
    params = make_params(pkey)

    x = jax.random.normal(xkey, (B_DEFAULT, 1, L_IN), jnp.float32)

    out = har_forward(x, params)
    out = jax.block_until_ready(out)
    assert out.shape == (B_DEFAULT, 6)

    ref = har_reference(x, params)
    err = float(jnp.max(jnp.abs(out - ref)))
    scale = float(jnp.max(jnp.abs(ref)))
    assert err <= 5e-2 * scale + 1e-4, (err, scale)

    print("KERNEL_OK")
</pallas_src>

<mosaic_0001>
module attributes {stable_mosaic.version = 11 : i64} {
  func.func @har_kernel(%arg0: i32, %arg1: memref<2x561x1xf32, #tpu.memory_space<vmem>>, %arg2: memref<1x16xf32, #tpu.memory_space<vmem>>, %arg3: memref<1x16xf32, #tpu.memory_space<vmem>>, %arg4: memref<1x16xf32, #tpu.memory_space<vmem>>, %arg5: memref<16x16xf32, #tpu.memory_space<vmem>>, %arg6: memref<16x16xf32, #tpu.memory_space<vmem>>, %arg7: memref<1x16xf32, #tpu.memory_space<vmem>>, %arg8: memref<16x32xf32, #tpu.memory_space<vmem>>, %arg9: memref<16x32xf32, #tpu.memory_space<vmem>>, %arg10: memref<1x32xf32, #tpu.memory_space<vmem>>, %arg11: memref<32x32xf32, #tpu.memory_space<vmem>>, %arg12: memref<32x32xf32, #tpu.memory_space<vmem>>, %arg13: memref<1x32xf32, #tpu.memory_space<vmem>>, %arg14: memref<37x32x256xf32, #tpu.memory_space<vmem>>, %arg15: memref<1x256xf32, #tpu.memory_space<vmem>>, %arg16: memref<256x6xf32, #tpu.memory_space<vmem>>, %arg17: memref<1x6xf32, #tpu.memory_space<vmem>>, %arg18: memref<2x6xf32, #tpu.memory_space<vmem>>, %arg19: memref<576x16xf32, #tpu.memory_space<vmem>>, %arg20: memref<160x32xf32, #tpu.memory_space<vmem>>) attributes {dimension_semantics = [#tpu.dimension_semantics<parallel>], iteration_bounds = array<i64: 1>, scalar_prefetch = 0 : i64, scratch_operands = 2 : i64, tpu.core_type = #tpu.core_type<tc>, window_params = [{transform_indices = @transform_0, window_bounds = array<i64: 2, 561, 1>}, {pipeline_mode = #tpu.pipeline_mode<synchronous>, transform_indices = @transform_1, window_bounds = array<i64: 1, 16>}, {pipeline_mode = #tpu.pipeline_mode<synchronous>, transform_indices = @transform_2, window_bounds = array<i64: 1, 16>}, {pipeline_mode = #tpu.pipeline_mode<synchronous>, transform_indices = @transform_3, window_bounds = array<i64: 1, 16>}, {pipeline_mode = #tpu.pipeline_mode<synchronous>, transform_indices = @transform_4, window_bounds = array<i64: 16, 16>}, {pipeline_mode = #tpu.pipeline_mode<synchronous>, transform_indices = @transform_5, window_bounds = array<i64: 16, 16>}, {pipeline_mode = #tpu.pipeline_mode<synchronous>, transform_indices = @transform_6, window_bounds = array<i64: 1, 16>}, {pipeline_mode = #tpu.pipeline_mode<synchronous>, transform_indices = @transform_7, window_bounds = array<i64: 16, 32>}, {pipeline_mode = #tpu.pipeline_mode<synchronous>, transform_indices = @transform_8, window_bounds = array<i64: 16, 32>}, {pipeline_mode = #tpu.pipeline_mode<synchronous>, transform_indices = @transform_9, window_bounds = array<i64: 1, 32>}, {pipeline_mode = #tpu.pipeline_mode<synchronous>, transform_indices = @transform_10, window_bounds = array<i64: 32, 32>}, {pipeline_mode = #tpu.pipeline_mode<synchronous>, transform_indices = @transform_11, window_bounds = array<i64: 32, 32>}, {pipeline_mode = #tpu.pipeline_mode<synchronous>, transform_indices = @transform_12, window_bounds = array<i64: 1, 32>}, {pipeline_mode = #tpu.pipeline_mode<synchronous>, transform_indices = @transform_13, window_bounds = array<i64: 37, 32, 256>}, {pipeline_mode = #tpu.pipeline_mode<synchronous>, transform_indices = @transform_14, window_bounds = array<i64: 1, 256>}, {pipeline_mode = #tpu.pipeline_mode<synchronous>, transform_indices = @transform_15, window_bounds = array<i64: 256, 6>}, {pipeline_mode = #tpu.pipeline_mode<synchronous>, transform_indices = @transform_16, window_bounds = array<i64: 1, 6>}, {transform_indices = @transform_17, window_bounds = array<i64: 2, 6>}]} {
    %c0 = arith.constant 0 : index
    %c0_0 = arith.constant 0 : index
    %0 = vector.load %arg2[%c0, %c0_0] : memref<1x16xf32, #tpu.memory_space<vmem>>, vector<1x16xf32>
    %c0_1 = arith.constant 0 : index
    %c0_2 = arith.constant 0 : index
    %1 = vector.load %arg3[%c0_1, %c0_2] : memref<1x16xf32, #tpu.memory_space<vmem>>, vector<1x16xf32>
    %c0_3 = arith.constant 0 : index
    %c0_4 = arith.constant 0 : index
    %2 = vector.load %arg4[%c0_3, %c0_4] : memref<1x16xf32, #tpu.memory_space<vmem>>, vector<1x16xf32>
    %c0_5 = arith.constant 0 : index
    %c0_6 = arith.constant 0 : index
    %3 = vector.load %arg5[%c0_5, %c0_6] : memref<16x16xf32, #tpu.memory_space<vmem>>, vector<16x16xf32>
    %c0_7 = arith.constant 0 : index
    %c0_8 = arith.constant 0 : index
    %4 = vector.load %arg6[%c0_7, %c0_8] : memref<16x16xf32, #tpu.memory_space<vmem>>, vector<16x16xf32>
    %c0_9 = arith.constant 0 : index
    %c0_10 = arith.constant 0 : index
    %5 = vector.load %arg7[%c0_9, %c0_10] : memref<1x16xf32, #tpu.memory_space<vmem>>, vector<1x16xf32>
    %c0_11 = arith.constant 0 : index
    %c0_12 = arith.constant 0 : index
    %6 = vector.load %arg8[%c0_11, %c0_12] : memref<16x32xf32, #tpu.memory_space<vmem>>, vector<16x32xf32>
    %c0_13 = arith.constant 0 : index
    %c0_14 = arith.constant 0 : index
    %7 = vector.load %arg9[%c0_13, %c0_14] : memref<16x32xf32, #tpu.memory_space<vmem>>, vector<16x32xf32>
    %c0_15 = arith.constant 0 : index
    %c0_16 = arith.constant 0 : index
    %8 = vector.load %arg10[%c0_15, %c0_16] : memref<1x32xf32, #tpu.memory_space<vmem>>, vector<1x32xf32>
    %c0_17 = arith.constant 0 : index
    %c0_18 = arith.constant 0 : index
    %9 = vector.load %arg11[%c0_17, %c0_18] : memref<32x32xf32, #tpu.memory_space<vmem>>, vector<32x32xf32>
    %c0_19 = arith.constant 0 : index
    %c0_20 = arith.constant 0 : index
    %10 = vector.load %arg12[%c0_19, %c0_20] : memref<32x32xf32, #tpu.memory_space<vmem>>, vector<32x32xf32>
    %c0_21 = arith.constant 0 : index
    %c0_22 = arith.constant 0 : index
    %11 = vector.load %arg13[%c0_21, %c0_22] : memref<1x32xf32, #tpu.memory_space<vmem>>, vector<1x32xf32>
    %c0_23 = arith.constant 0 : index
    %c0_24 = arith.constant 0 : index
    %12 = vector.load %arg15[%c0_23, %c0_24] : memref<1x256xf32, #tpu.memory_space<vmem>>, vector<1x256xf32>
    %c0_25 = arith.constant 0 : index
    %c0_26 = arith.constant 0 : index
    %13 = vector.load %arg16[%c0_25, %c0_26] : memref<256x6xf32, #tpu.memory_space<vmem>>, vector<256x6xf32>
    %c0_27 = arith.constant 0 : index
    %c0_28 = arith.constant 0 : index
    %14 = vector.load %arg17[%c0_27, %c0_28] : memref<1x6xf32, #tpu.memory_space<vmem>>, vector<1x6xf32>
    %c0_29 = arith.constant 0 : index
    %c0_30 = arith.constant 0 : index
    %c0_31 = arith.constant 0 : index
    %15 = vector.load %arg1[%c0_29, %c0_30, %c0_31] : memref<2x561x1xf32, #tpu.memory_space<vmem>>, vector<1x561x1xf32>
    %16 = vector.shape_cast %15 : vector<1x561x1xf32> to vector<561x1xf32>
    %cst = arith.constant 0.000000e+00 : f32
    %17 = vector.broadcast %cst : f32 to vector<2x1xf32>
    %18 = tpu.concatenate %17, %16, %17 in 0 : vector<2x1xf32>, vector<561x1xf32>, vector<2x1xf32> -> vector<565x1xf32>
    %19 = vector.extract_strided_slice %18 {offsets = [0, 0], sizes = [564, 1], strides = [1, 1]} : vector<565x1xf32> to vector<564x1xf32>
    %20 = vector.extract_strided_slice %18 {offsets = [1, 0], sizes = [564, 1], strides = [1, 1]} : vector<565x1xf32> to vector<564x1xf32>
    %21 = vector.broadcast %19 : vector<564x1xf32> to vector<564x16xf32>
    %22 = vector.broadcast %0 : vector<1x16xf32> to vector<564x16xf32>
    %23 = arith.mulf %21, %22 : vector<564x16xf32>
    %24 = vector.broadcast %20 : vector<564x1xf32> to vector<564x16xf32>
    %25 = vector.broadcast %1 : vector<1x16xf32> to vector<564x16xf32>
    %26 = arith.mulf %24, %25 : vector<564x16xf32>
    %27 = arith.addf %23, %26 : vector<564x16xf32>
    %28 = vector.broadcast %2 : vector<1x16xf32> to vector<564x16xf32>
    %29 = arith.addf %27, %28 : vector<564x16xf32>
    %cst_32 = arith.constant 0.000000e+00 : f32
    %30 = vector.broadcast %cst_32 : f32 to vector<564x16xf32>
    %31 = arith.maximumf %29, %30 : vector<564x16xf32>
    %32 = vector.extract_strided_slice %31 {offsets = [0, 0], sizes = [563, 16], strides = [1, 1]} : vector<564x16xf32> to vector<563x16xf32>
    %33 = vector.extract_strided_slice %31 {offsets = [1, 0], sizes = [563, 16], strides = [1, 1]} : vector<564x16xf32> to vector<563x16xf32>
    %34 = arith.maximumf %32, %33 : vector<563x16xf32>
    %c0_33 = arith.constant 0 : index
    %c0_34 = arith.constant 0 : index
    %35 = vector.load %arg19[%c0_33, %c0_34] : memref<576x16xf32, #tpu.memory_space<vmem>>, vector<563x16xf32>
    tpu.vector_store %arg19[%c0_33, %c0_34], %34 {strides = array<i32>} : memref<576x16xf32, #tpu.memory_space<vmem>>, vector<563x16xf32>,
    %c0_35 = arith.constant 0 : index
    %c0_36 = arith.constant 0 : index
    %36 = tpu.strided_load %arg19[%c0_35, %c0_36] {strides = array<i32: 2, 1>} : memref<576x16xf32, #tpu.memory_space<vmem>>, vector<282x16xf32>
    %cst_37 = arith.constant 0.000000e+00 : f32
    %37 = vector.broadcast %cst_37 : f32 to vector<2x16xf32>
    %38 = tpu.concatenate %37, %36, %37 in 0 : vector<2x16xf32>, vector<282x16xf32>, vector<2x16xf32> -> vector<286x16xf32>
    %39 = vector.extract_strided_slice %38 {offsets = [0, 0], sizes = [285, 16], strides = [1, 1]} : vector<286x16xf32> to vector<285x16xf32>
    %40 = vector.extract_strided_slice %38 {offsets = [1, 0], sizes = [285, 16], strides = [1, 1]} : vector<286x16xf32> to vector<285x16xf32>
    %cst_38 = arith.constant dense<0.000000e+00> : vector<285x16xf32>
    %41 = tpu.matmul %39, %3, %cst_38 {dimension_numbers = #tpu.dot_dimension_numbers<[1], [0], [0], [1], [0, 0, 1, 1], [], []>} : vector<285x16xf32>, vector<16x16xf32>, vector<285x16xf32> -> vector<285x16xf32>
    %cst_39 = arith.constant dense<0.000000e+00> : vector<285x16xf32>
    %42 = tpu.matmul %40, %4, %cst_39 {dimension_numbers = #tpu.dot_dimension_numbers<[1], [0], [0], [1], [0, 0, 1, 1], [], []>} : vector<285x16xf32>, vector<16x16xf32>, vector<285x16xf32> -> vector<285x16xf32>
    %43 = arith.addf %41, %42 : vector<285x16xf32>
    %44 = vector.broadcast %5 : vector<1x16xf32> to vector<285x16xf32>
    %45 = arith.addf %43, %44 : vector<285x16xf32>
    %cst_40 = arith.constant 0.000000e+00 : f32
    %46 = vector.broadcast %cst_40 : f32 to vector<285x16xf32>
    %47 = arith.maximumf %45, %46 : vector<285x16xf32>
    %48 = vector.extract_strided_slice %47 {offsets = [0, 0], sizes = [284, 16], strides = [1, 1]} : vector<285x16xf32> to vector<284x16xf32>
    %49 = vector.extract_strided_slice %47 {offsets = [1, 0], sizes = [284, 16], strides = [1, 1]} : vector<285x16xf32> to vector<284x16xf32>
    %50 = arith.maximumf %48, %49 : vector<284x16xf32>
    %c0_41 = arith.constant 0 : index
    %c0_42 = arith.constant 0 : index
    %51 = vector.load %arg19[%c0_41, %c0_42] : memref<576x16xf32, #tpu.memory_space<vmem>>, vector<284x16xf32>
    tpu.vector_store %arg19[%c0_41, %c0_42], %50 {strides = array<i32>} : memref<576x16xf32, #tpu.memory_space<vmem>>, vector<284x16xf32>,
    %c0_43 = arith.constant 0 : index
    %c0_44 = arith.constant 0 : index
    %52 = tpu.strided_load %arg19[%c0_43, %c0_44] {strides = array<i32: 2, 1>} : memref<576x16xf32, #tpu.memory_space<vmem>>, vector<142x16xf32>
    %cst_45 = arith.constant 0.000000e+00 : f32
    %53 = vector.broadcast %cst_45 : f32 to vector<2x16xf32>
    %54 = tpu.concatenate %53, %52, %53 in 0 : vector<2x16xf32>, vector<142x16xf32>, vector<2x16xf32> -> vector<146x16xf32>
    %55 = vector.extract_strided_slice %54 {offsets = [0, 0], sizes = [145, 16], strides = [1, 1]} : vector<146x16xf32> to vector<145x16xf32>
    %56 = vector.extract_strided_slice %54 {offsets = [1, 0], sizes = [145, 16], strides = [1, 1]} : vector<146x16xf32> to vector<145x16xf32>
    %cst_46 = arith.constant dense<0.000000e+00> : vector<145x32xf32>
    %57 = tpu.matmul %55, %6, %cst_46 {dimension_numbers = #tpu.dot_dimension_numbers<[1], [0], [0], [1], [0, 0, 1, 1], [], []>} : vector<145x16xf32>, vector<16x32xf32>, vector<145x32xf32> -> vector<145x32xf32>
    %cst_47 = arith.constant dense<0.000000e+00> : vector<145x32xf32>
    %58 = tpu.matmul %56, %7, %cst_47 {dimension_numbers = #tpu.dot_dimension_numbers<[1], [0], [0], [1], [0, 0, 1, 1], [], []>} : vector<145x16xf32>, vector<16x32xf32>, vector<145x32xf32> -> vector<145x32xf32>
    %59 = arith.addf %57, %58 : vector<145x32xf32>
    %60 = vector.broadcast %8 : vector<1x32xf32> to vector<145x32xf32>
    %61 = arith.addf %59, %60 : vector<145x32xf32>
    %cst_48 = arith.constant 0.000000e+00 : f32
    %62 = vector.broadcast %cst_48 : f32 to vector<145x32xf32>
    %63 = arith.maximumf %61, %62 : vector<145x32xf32>
    %64 = vector.extract_strided_slice %63 {offsets = [0, 0], sizes = [144, 32], strides = [1, 1]} : vector<145x32xf32> to vector<144x32xf32>
    %65 = vector.extract_strided_slice %63 {offsets = [1, 0], sizes = [144, 32], strides = [1, 1]} : vector<145x32xf32> to vector<144x32xf32>
    %66 = arith.maximumf %64, %65 : vector<144x32xf32>
    %c0_49 = arith.constant 0 : index
    %c0_50 = arith.constant 0 : index
    %67 = vector.load %arg20[%c0_49, %c0_50] : memref<160x32xf32, #tpu.memory_space<vmem>>, vector<144x32xf32>
    tpu.vector_store %arg20[%c0_49, %c0_50], %66 {strides = array<i32>} : memref<160x32xf32, #tpu.memory_space<vmem>>, vector<144x32xf32>,
    %c0_51 = arith.constant 0 : index
    %c0_52 = arith.constant 0 : index
    %68 = tpu.strided_load %arg20[%c0_51, %c0_52] {strides = array<i32: 2, 1>} : memref<160x32xf32, #tpu.memory_space<vmem>>, vector<72x32xf32>
    %cst_53 = arith.constant 0.000000e+00 : f32
    %69 = vector.broadcast %cst_53 : f32 to vector<2x32xf32>
    %70 = tpu.concatenate %69, %68, %69 in 0 : vector<2x32xf32>, vector<72x32xf32>, vector<2x32xf32> -> vector<76x32xf32>
    %71 = vector.extract_strided_slice %70 {offsets = [0, 0], sizes = [75, 32], strides = [1, 1]} : vector<76x32xf32> to vector<75x32xf32>
    %72 = vector.extract_strided_slice %70 {offsets = [1, 0], sizes = [75, 32], strides = [1, 1]} : vector<76x32xf32> to vector<75x32xf32>
    %cst_54 = arith.constant dense<0.000000e+00> : vector<75x32xf32>
    %73 = tpu.matmul %71, %9, %cst_54 {dimension_numbers = #tpu.dot_dimension_numbers<[1], [0], [0], [1], [0, 0, 1, 1], [], []>} : vector<75x32xf32>, vector<32x32xf32>, vector<75x32xf32> -> vector<75x32xf32>
    %cst_55 = arith.constant dense<0.000000e+00> : vector<75x32xf32>
    %74 = tpu.matmul %72, %10, %cst_55 {dimension_numbers = #tpu.dot_dimension_numbers<[1], [0], [0], [1], [0, 0, 1, 1], [], []>} : vector<75x32xf32>, vector<32x32xf32>, vector<75x32xf32> -> vector<75x32xf32>
    %75 = arith.addf %73, %74 : vector<75x32xf32>
    %76 = vector.broadcast %11 : vector<1x32xf32> to vector<75x32xf32>
    %77 = arith.addf %75, %76 : vector<75x32xf32>
    %cst_56 = arith.constant 0.000000e+00 : f32
    %78 = vector.broadcast %cst_56 : f32 to vector<75x32xf32>
    %79 = arith.maximumf %77, %78 : vector<75x32xf32>
    %80 = vector.extract_strided_slice %79 {offsets = [0, 0], sizes = [74, 32], strides = [1, 1]} : vector<75x32xf32> to vector<74x32xf32>
    %81 = vector.extract_strided_slice %79 {offsets = [1, 0], sizes = [74, 32], strides = [1, 1]} : vector<75x32xf32> to vector<74x32xf32>
    %82 = arith.maximumf %80, %81 : vector<74x32xf32>
    %c0_57 = arith.constant 0 : index
    %c0_58 = arith.constant 0 : index
    %83 = vector.load %arg20[%c0_57, %c0_58] : memref<160x32xf32, #tpu.memory_space<vmem>>, vector<74x32xf32>
    tpu.vector_store %arg20[%c0_57, %c0_58], %82 {strides = array<i32>} : memref<160x32xf32, #tpu.memory_space<vmem>>, vector<74x32xf32>,
    %c0_59 = arith.constant 0 : index
    %c0_60 = arith.constant 0 : index
    %84 = tpu.strided_load %arg20[%c0_59, %c0_60] {strides = array<i32: 2, 1>} : memref<160x32xf32, #tpu.memory_space<vmem>>, vector<37x32xf32>
    %c1 = arith.constant 1 : index
    %c0_61 = arith.constant 0 : index
    %c0_62 = arith.constant 0 : index
    %85 = vector.load %arg1[%c1, %c0_61, %c0_62] : memref<2x561x1xf32, #tpu.memory_space<vmem>>, vector<1x561x1xf32>
    %86 = vector.shape_cast %85 : vector<1x561x1xf32> to vector<561x1xf32>
    %cst_63 = arith.constant 0.000000e+00 : f32
    %87 = vector.broadcast %cst_63 : f32 to vector<2x1xf32>
    %88 = tpu.concatenate %87, %86, %87 in 0 : vector<2x1xf32>, vector<561x1xf32>, vector<2x1xf32> -> vector<565x1xf32>
    %89 = vector.extract_strided_slice %88 {offsets = [0, 0], sizes = [564, 1], strides = [1, 1]} : vector<565x1xf32> to vector<564x1xf32>
    %90 = vector.extract_strided_slice %88 {offsets = [1, 0], sizes = [564, 1], strides = [1, 1]} : vector<565x1xf32> to vector<564x1xf32>
    %91 = vector.broadcast %89 : vector<564x1xf32> to vector<564x16xf32>
    %92 = vector.broadcast %0 : vector<1x16xf32> to vector<564x16xf32>
    %93 = arith.mulf %91, %92 : vector<564x16xf32>
    %94 = vector.broadcast %90 : vector<564x1xf32> to vector<564x16xf32>
    %95 = vector.broadcast %1 : vector<1x16xf32> to vector<564x16xf32>
    %96 = arith.mulf %94, %95 : vector<564x16xf32>
    %97 = arith.addf %93, %96 : vector<564x16xf32>
    %98 = vector.broadcast %2 : vector<1x16xf32> to vector<564x16xf32>
    %99 = arith.addf %97, %98 : vector<564x16xf32>
    %cst_64 = arith.constant 0.000000e+00 : f32
    %100 = vector.broadcast %cst_64 : f32 to vector<564x16xf32>
    %101 = arith.maximumf %99, %100 : vector<564x16xf32>
    %102 = vector.extract_strided_slice %101 {offsets = [0, 0], sizes = [563, 16], strides = [1, 1]} : vector<564x16xf32> to vector<563x16xf32>
    %103 = vector.extract_strided_slice %101 {offsets = [1, 0], sizes = [563, 16], strides = [1, 1]} : vector<564x16xf32> to vector<563x16xf32>
    %104 = arith.maximumf %102, %103 : vector<563x16xf32>
    %c0_65 = arith.constant 0 : index
    %c0_66 = arith.constant 0 : index
    %105 = vector.load %arg19[%c0_65, %c0_66] : memref<576x16xf32, #tpu.memory_space<vmem>>, vector<563x16xf32>
    tpu.vector_store %arg19[%c0_65, %c0_66], %104 {strides = array<i32>} : memref<576x16xf32, #tpu.memory_space<vmem>>, vector<563x16xf32>,
    %c0_67 = arith.constant 0 : index
    %c0_68 = arith.constant 0 : index
    %106 = tpu.strided_load %arg19[%c0_67, %c0_68] {strides = array<i32: 2, 1>} : memref<576x16xf32, #tpu.memory_space<vmem>>, vector<282x16xf32>
    %cst_69 = arith.constant 0.000000e+00 : f32
    %107 = vector.broadcast %cst_69 : f32 to vector<2x16xf32>
    %108 = tpu.concatenate %107, %106, %107 in 0 : vector<2x16xf32>, vector<282x16xf32>, vector<2x16xf32> -> vector<286x16xf32>
    %109 = vector.extract_strided_slice %108 {offsets = [0, 0], sizes = [285, 16], strides = [1, 1]} : vector<286x16xf32> to vector<285x16xf32>
    %110 = vector.extract_strided_slice %108 {offsets = [1, 0], sizes = [285, 16], strides = [1, 1]} : vector<286x16xf32> to vector<285x16xf32>
    %cst_70 = arith.constant dense<0.000000e+00> : vector<285x16xf32>
    %111 = tpu.matmul %109, %3, %cst_70 {dimension_numbers = #tpu.dot_dimension_numbers<[1], [0], [0], [1], [0, 0, 1, 1], [], []>} : vector<285x16xf32>, vector<16x16xf32>, vector<285x16xf32> -> vector<285x16xf32>
    %cst_71 = arith.constant dense<0.000000e+00> : vector<285x16xf32>
    %112 = tpu.matmul %110, %4, %cst_71 {dimension_numbers = #tpu.dot_dimension_numbers<[1], [0], [0], [1], [0, 0, 1, 1], [], []>} : vector<285x16xf32>, vector<16x16xf32>, vector<285x16xf32> -> vector<285x16xf32>
    %113 = arith.addf %111, %112 : vector<285x16xf32>
    %114 = vector.broadcast %5 : vector<1x16xf32> to vector<285x16xf32>
    %115 = arith.addf %113, %114 : vector<285x16xf32>
    %cst_72 = arith.constant 0.000000e+00 : f32
    %116 = vector.broadcast %cst_72 : f32 to vector<285x16xf32>
    %117 = arith.maximumf %115, %116 : vector<285x16xf32>
    %118 = vector.extract_strided_slice %117 {offsets = [0, 0], sizes = [284, 16], strides = [1, 1]} : vector<285x16xf32> to vector<284x16xf32>
    %119 = vector.extract_strided_slice %117 {offsets = [1, 0], sizes = [284, 16], strides = [1, 1]} : vector<285x16xf32> to vector<284x16xf32>
    %120 = arith.maximumf %118, %119 : vector<284x16xf32>
    %c0_73 = arith.constant 0 : index
    %c0_74 = arith.constant 0 : index
    %121 = vector.load %arg19[%c0_73, %c0_74] : memref<576x16xf32, #tpu.memory_space<vmem>>, vector<284x16xf32>
    tpu.vector_store %arg19[%c0_73, %c0_74], %120 {strides = array<i32>} : memref<576x16xf32, #tpu.memory_space<vmem>>, vector<284x16xf32>,
    %c0_75 = arith.constant 0 : index
    %c0_76 = arith.constant 0 : index
    %122 = tpu.strided_load %arg19[%c0_75, %c0_76] {strides = array<i32: 2, 1>} : memref<576x16xf32, #tpu.memory_space<vmem>>, vector<142x16xf32>
    %cst_77 = arith.constant 0.000000e+00 : f32
    %123 = vector.broadcast %cst_77 : f32 to vector<2x16xf32>
    %124 = tpu.concatenate %123, %122, %123 in 0 : vector<2x16xf32>, vector<142x16xf32>, vector<2x16xf32> -> vector<146x16xf32>
    %125 = vector.extract_strided_slice %124 {offsets = [0, 0], sizes = [145, 16], strides = [1, 1]} : vector<146x16xf32> to vector<145x16xf32>
    %126 = vector.extract_strided_slice %124 {offsets = [1, 0], sizes = [145, 16], strides = [1, 1]} : vector<146x16xf32> to vector<145x16xf32>
    %cst_78 = arith.constant dense<0.000000e+00> : vector<145x32xf32>
    %127 = tpu.matmul %125, %6, %cst_78 {dimension_numbers = #tpu.dot_dimension_numbers<[1], [0], [0], [1], [0, 0, 1, 1], [], []>} : vector<145x16xf32>, vector<16x32xf32>, vector<145x32xf32> -> vector<145x32xf32>
    %cst_79 = arith.constant dense<0.000000e+00> : vector<145x32xf32>
    %128 = tpu.matmul %126, %7, %cst_79 {dimension_numbers = #tpu.dot_dimension_numbers<[1], [0], [0], [1], [0, 0, 1, 1], [], []>} : vector<145x16xf32>, vector<16x32xf32>, vector<145x32xf32> -> vector<145x32xf32>
    %129 = arith.addf %127, %128 : vector<145x32xf32>
    %130 = vector.broadcast %8 : vector<1x32xf32> to vector<145x32xf32>
    %131 = arith.addf %129, %130 : vector<145x32xf32>
    %cst_80 = arith.constant 0.000000e+00 : f32
    %132 = vector.broadcast %cst_80 : f32 to vector<145x32xf32>
    %133 = arith.maximumf %131, %132 : vector<145x32xf32>
    %134 = vector.extract_strided_slice %133 {offsets = [0, 0], sizes = [144, 32], strides = [1, 1]} : vector<145x32xf32> to vector<144x32xf32>
    %135 = vector.extract_strided_slice %133 {offsets = [1, 0], sizes = [144, 32], strides = [1, 1]} : vector<145x32xf32> to vector<144x32xf32>
    %136 = arith.maximumf %134, %135 : vector<144x32xf32>
    %c0_81 = arith.constant 0 : index
    %c0_82 = arith.constant 0 : index
    %137 = vector.load %arg20[%c0_81, %c0_82] : memref<160x32xf32, #tpu.memory_space<vmem>>, vector<144x32xf32>
    tpu.vector_store %arg20[%c0_81, %c0_82], %136 {strides = array<i32>} : memref<160x32xf32, #tpu.memory_space<vmem>>, vector<144x32xf32>,
    %c0_83 = arith.constant 0 : index
    %c0_84 = arith.constant 0 : index
    %138 = tpu.strided_load %arg20[%c0_83, %c0_84] {strides = array<i32: 2, 1>} : memref<160x32xf32, #tpu.memory_space<vmem>>, vector<72x32xf32>
    %cst_85 = arith.constant 0.000000e+00 : f32
    %139 = vector.broadcast %cst_85 : f32 to vector<2x32xf32>
    %140 = tpu.concatenate %139, %138, %139 in 0 : vector<2x32xf32>, vector<72x32xf32>, vector<2x32xf32> -> vector<76x32xf32>
    %141 = vector.extract_strided_slice %140 {offsets = [0, 0], sizes = [75, 32], strides = [1, 1]} : vector<76x32xf32> to vector<75x32xf32>
    %142 = vector.extract_strided_slice %140 {offsets = [1, 0], sizes = [75, 32], strides = [1, 1]} : vector<76x32xf32> to vector<75x32xf32>
    %cst_86 = arith.constant dense<0.000000e+00> : vector<75x32xf32>
    %143 = tpu.matmul %141, %9, %cst_86 {dimension_numbers = #tpu.dot_dimension_numbers<[1], [0], [0], [1], [0, 0, 1, 1], [], []>} : vector<75x32xf32>, vector<32x32xf32>, vector<75x32xf32> -> vector<75x32xf32>
    %cst_87 = arith.constant dense<0.000000e+00> : vector<75x32xf32>
    %144 = tpu.matmul %142, %10, %cst_87 {dimension_numbers = #tpu.dot_dimension_numbers<[1], [0], [0], [1], [0, 0, 1, 1], [], []>} : vector<75x32xf32>, vector<32x32xf32>, vector<75x32xf32> -> vector<75x32xf32>
    %145 = arith.addf %143, %144 : vector<75x32xf32>
    %146 = vector.broadcast %11 : vector<1x32xf32> to vector<75x32xf32>
    %147 = arith.addf %145, %146 : vector<75x32xf32>
    %cst_88 = arith.constant 0.000000e+00 : f32
    %148 = vector.broadcast %cst_88 : f32 to vector<75x32xf32>
    %149 = arith.maximumf %147, %148 : vector<75x32xf32>
    %150 = vector.extract_strided_slice %149 {offsets = [0, 0], sizes = [74, 32], strides = [1, 1]} : vector<75x32xf32> to vector<74x32xf32>
    %151 = vector.extract_strided_slice %149 {offsets = [1, 0], sizes = [74, 32], strides = [1, 1]} : vector<75x32xf32> to vector<74x32xf32>
    %152 = arith.maximumf %150, %151 : vector<74x32xf32>
    %c0_89 = arith.constant 0 : index
    %c0_90 = arith.constant 0 : index
    %153 = vector.load %arg20[%c0_89, %c0_90] : memref<160x32xf32, #tpu.memory_space<vmem>>, vector<74x32xf32>
    tpu.vector_store %arg20[%c0_89, %c0_90], %152 {strides = array<i32>} : memref<160x32xf32, #tpu.memory_space<vmem>>, vector<74x32xf32>,
    %c0_91 = arith.constant 0 : index
    %c0_92 = arith.constant 0 : index
    %154 = tpu.strided_load %arg20[%c0_91, %c0_92] {strides = array<i32: 2, 1>} : memref<160x32xf32, #tpu.memory_space<vmem>>, vector<37x32xf32>
    %cst_93 = arith.constant 0.000000e+00 : f32
    %155 = vector.broadcast %cst_93 : f32 to vector<2x256xf32>
    %156 = vector.extract_strided_slice %84 {offsets = [0, 0], sizes = [1, 32], strides = [1, 1]} : vector<37x32xf32> to vector<1x32xf32>
    %157 = vector.extract_strided_slice %154 {offsets = [0, 0], sizes = [1, 32], strides = [1, 1]} : vector<37x32xf32> to vector<1x32xf32>
    %158 = tpu.concatenate %156, %157 in 0 : vector<1x32xf32>, vector<1x32xf32> -> vector<2x32xf32>
    %c0_94 = arith.constant 0 : index
    %c0_95 = arith.constant 0 : index
    %c0_96 = arith.constant 0 : index
    %159 = vector.load %arg14[%c0_94, %c0_95, %c0_96] : memref<37x32x256xf32, #tpu.memory_space<vmem>>, vector<1x32x256xf32>
    %160 = vector.shape_cast %159 : vector<1x32x256xf32> to vector<32x256xf32>
    %cst_97 = arith.constant dense<0.000000e+00> : vector<2x256xf32>
    %161 = tpu.matmul %158, %160, %cst_97 {dimension_numbers = #tpu.dot_dimension_numbers<[1], [0], [0], [1], [0, 0, 1, 1], [], []>} : vector<2x32xf32>, vector<32x256xf32>, vector<2x256xf32> -> vector<2x256xf32>
    %162 = arith.addf %155, %161 : vector<2x256xf32>
    %163 = vector.extract_strided_slice %84 {offsets = [1, 0], sizes = [1, 32], strides = [1, 1]} : vector<37x32xf32> to vector<1x32xf32>
    %164 = vector.extract_strided_slice %154 {offsets = [1, 0], sizes = [1, 32], strides = [1, 1]} : vector<37x32xf32> to vector<1x32xf32>
    %165 = tpu.concatenate %163, %164 in 0 : vector<1x32xf32>, vector<1x32xf32> -> vector<2x32xf32>
    %c1_98 = arith.constant 1 : index
    %c0_99 = arith.constant 0 : index
    %c0_100 = arith.constant 0 : index
    %166 = vector.load %arg14[%c1_98, %c0_99, %c0_100] : memref<37x32x256xf32, #tpu.memory_space<vmem>>, vector<1x32x256xf32>
    %167 = vector.shape_cast %166 : vector<1x32x256xf32> to vector<32x256xf32>
    %cst_101 = arith.constant dense<0.000000e+00> : vector<2x256xf32>
    %168 = tpu.matmul %165, %167, %cst_101 {dimension_numbers = #tpu.dot_dimension_numbers<[1], [0], [0], [1], [0, 0, 1, 1], [], []>} : vector<2x32xf32>, vector<32x256xf32>, vector<2x256xf32> -> vector<2x256xf32>
    %169 = arith.addf %162, %168 : vector<2x256xf32>
    %170 = vector.extract_strided_slice %84 {offsets = [2, 0], sizes = [1, 32], strides = [1, 1]} : vector<37x32xf32> to vector<1x32xf32>
    %171 = vector.extract_strided_slice %154 {offsets = [2, 0], sizes = [1, 32], strides = [1, 1]} : vector<37x32xf32> to vector<1x32xf32>
    %172 = tpu.concatenate %170, %171 in 0 : vector<1x32xf32>, vector<1x32xf32> -> vector<2x32xf32>
    %c2 = arith.constant 2 : index
    %c0_102 = arith.constant 0 : index
    %c0_103 = arith.constant 0 : index
    %173 = vector.load %arg14[%c2, %c0_102, %c0_103] : memref<37x32x256xf32, #tpu.memory_space<vmem>>, vector<1x32x256xf32>
    %174 = vector.shape_cast %173 : vector<1x32x256xf32> to vector<32x256xf32>
    %cst_104 = arith.constant dense<0.000000e+00> : vector<2x256xf32>
    %175 = tpu.matmul %172, %174, %cst_104 {dimension_numbers = #tpu.dot_dimension_numbers<[1], [0], [0], [1], [0, 0, 1, 1], [], []>} : vector<2x32xf32>, vector<32x256xf32>, vector<2x256xf32> -> vector<2x256xf32>
    %176 = arith.addf %169, %175 : vector<2x256xf32>
    %177 = vector.extract_strided_slice %84 {offsets = [3, 0], sizes = [1, 32], strides = [1, 1]} : vector<37x32xf32> to vector<1x32xf32>
    %178 = vector.extract_strided_slice %154 {offsets = [3, 0], sizes = [1, 32], strides = [1, 1]} : vector<37x32xf32> to vector<1x32xf32>
    %179 = tpu.concatenate %177, %178 in 0 : vector<1x32xf32>, vector<1x32xf32> -> vector<2x32xf32>
    %c3 = arith.constant 3 : index
    %c0_105 = arith.constant 0 : index
    %c0_106 = arith.constant 0 : index
    %180 = vector.load %arg14[%c3, %c0_105, %c0_106] : memref<37x32x256xf32, #tpu.memory_space<vmem>>, vector<1x32x256xf32>
    %181 = vector.shape_cast %180 : vector<1x32x256xf32> to vector<32x256xf32>
    %cst_107 = arith.constant dense<0.000000e+00> : vector<2x256xf32>
    %182 = tpu.matmul %179, %181, %cst_107 {dimension_numbers = #tpu.dot_dimension_numbers<[1], [0], [0], [1], [0, 0, 1, 1], [], []>} : vector<2x32xf32>, vector<32x256xf32>, vector<2x256xf32> -> vector<2x256xf32>
    %183 = arith.addf %176, %182 : vector<2x256xf32>
    %184 = vector.extract_strided_slice %84 {offsets = [4, 0], sizes = [1, 32], strides = [1, 1]} : vector<37x32xf32> to vector<1x32xf32>
    %185 = vector.extract_strided_slice %154 {offsets = [4, 0], sizes = [1, 32], strides = [1, 1]} : vector<37x32xf32> to vector<1x32xf32>
    %186 = tpu.concatenate %184, %185 in 0 : vector<1x32xf32>, vector<1x32xf32> -> vector<2x32xf32>
    %c4 = arith.constant 4 : index
    %c0_108 = arith.constant 0 : index
    %c0_109 = arith.constant 0 : index
    %187 = vector.load %arg14[%c4, %c0_108, %c0_109] : memref<37x32x256xf32, #tpu.memory_space<vmem>>, vector<1x32x256xf32>
    %188 = vector.shape_cast %187 : vector<1x32x256xf32> to vector<32x256xf32>
    %cst_110 = arith.constant dense<0.000000e+00> : vector<2x256xf32>
    %189 = tpu.matmul %186, %188, %cst_110 {dimension_numbers = #tpu.dot_dimension_numbers<[1], [0], [0], [1], [0, 0, 1, 1], [], []>} : vector<2x32xf32>, vector<32x256xf32>, vector<2x256xf32> -> vector<2x256xf32>
    %190 = arith.addf %183, %189 : vector<2x256xf32>
    %191 = vector.extract_strided_slice %84 {offsets = [5, 0], sizes = [1, 32], strides = [1, 1]} : vector<37x32xf32> to vector<1x32xf32>
    %192 = vector.extract_strided_slice %154 {offsets = [5, 0], sizes = [1, 32], strides = [1, 1]} : vector<37x32xf32> to vector<1x32xf32>
    %193 = tpu.concatenate %191, %192 in 0 : vector<1x32xf32>, vector<1x32xf32> -> vector<2x32xf32>
    %c5 = arith.constant 5 : index
    %c0_111 = arith.constant 0 : index
    %c0_112 = arith.constant 0 : index
    %194 = vector.load %arg14[%c5, %c0_111, %c0_112] : memref<37x32x256xf32, #tpu.memory_space<vmem>>, vector<1x32x256xf32>
    %195 = vector.shape_cast %194 : vector<1x32x256xf32> to vector<32x256xf32>
    %cst_113 = arith.constant dense<0.000000e+00> : vector<2x256xf32>
    %196 = tpu.matmul %193, %195, %cst_113 {dimension_numbers = #tpu.dot_dimension_numbers<[1], [0], [0], [1], [0, 0, 1, 1], [], []>} : vector<2x32xf32>, vector<32x256xf32>, vector<2x256xf32> -> vector<2x256xf32>
    %197 = arith.addf %190, %196 : vector<2x256xf32>
    %198 = vector.extract_strided_slice %84 {offsets = [6, 0], sizes = [1, 32], strides = [1, 1]} : vector<37x32xf32> to vector<1x32xf32>
    %199 = vector.extract_strided_slice %154 {offsets = [6, 0], sizes = [1, 32], strides = [1, 1]} : vector<37x32xf32> to vector<1x32xf32>
    %200 = tpu.concatenate %198, %199 in 0 : vector<1x32xf32>, vector<1x32xf32> -> vector<2x32xf32>
    %c6 = arith.constant 6 : index
    %c0_114 = arith.constant 0 : index
    %c0_115 = arith.constant 0 : index
    %201 = vector.load %arg14[%c6, %c0_114, %c0_115] : memref<37x32x256xf32, #tpu.memory_space<vmem>>, vector<1x32x256xf32>
    %202 = vector.shape_cast %201 : vector<1x32x256xf32> to vector<32x256xf32>
    %cst_116 = arith.constant dense<0.000000e+00> : vector<2x256xf32>
    %203 = tpu.matmul %200, %202, %cst_116 {dimension_numbers = #tpu.dot_dimension_numbers<[1], [0], [0], [1], [0, 0, 1, 1], [], []>} : vector<2x32xf32>, vector<32x256xf32>, vector<2x256xf32> -> vector<2x256xf32>
    %204 = arith.addf %197, %203 : vector<2x256xf32>
    %205 = vector.extract_strided_slice %84 {offsets = [7, 0], sizes = [1, 32], strides = [1, 1]} : vector<37x32xf32> to vector<1x32xf32>
    %206 = vector.extract_strided_slice %154 {offsets = [7, 0], sizes = [1, 32], strides = [1, 1]} : vector<37x32xf32> to vector<1x32xf32>
    %207 = tpu.concatenate %205, %206 in 0 : vector<1x32xf32>, vector<1x32xf32> -> vector<2x32xf32>
    %c7 = arith.constant 7 : index
    %c0_117 = arith.constant 0 : index
    %c0_118 = arith.constant 0 : index
    %208 = vector.load %arg14[%c7, %c0_117, %c0_118] : memref<37x32x256xf32, #tpu.memory_space<vmem>>, vector<1x32x256xf32>
    %209 = vector.shape_cast %208 : vector<1x32x256xf32> to vector<32x256xf32>
    %cst_119 = arith.constant dense<0.000000e+00> : vector<2x256xf32>
    %210 = tpu.matmul %207, %209, %cst_119 {dimension_numbers = #tpu.dot_dimension_numbers<[1], [0], [0], [1], [0, 0, 1, 1], [], []>} : vector<2x32xf32>, vector<32x256xf32>, vector<2x256xf32> -> vector<2x256xf32>
    %211 = arith.addf %204, %210 : vector<2x256xf32>
    %212 = vector.extract_strided_slice %84 {offsets = [8, 0], sizes = [1, 32], strides = [1, 1]} : vector<37x32xf32> to vector<1x32xf32>
    %213 = vector.extract_strided_slice %154 {offsets = [8, 0], sizes = [1, 32], strides = [1, 1]} : vector<37x32xf32> to vector<1x32xf32>
    %214 = tpu.concatenate %212, %213 in 0 : vector<1x32xf32>, vector<1x32xf32> -> vector<2x32xf32>
    %c8 = arith.constant 8 : index
    %c0_120 = arith.constant 0 : index
    %c0_121 = arith.constant 0 : index
    %215 = vector.load %arg14[%c8, %c0_120, %c0_121] : memref<37x32x256xf32, #tpu.memory_space<vmem>>, vector<1x32x256xf32>
    %216 = vector.shape_cast %215 : vector<1x32x256xf32> to vector<32x256xf32>
    %cst_122 = arith.constant dense<0.000000e+00> : vector<2x256xf32>
    %217 = tpu.matmul %214, %216, %cst_122 {dimension_numbers = #tpu.dot_dimension_numbers<[1], [0], [0], [1], [0, 0, 1, 1], [], []>} : vector<2x32xf32>, vector<32x256xf32>, vector<2x256xf32> -> vector<2x256xf32>
    %218 = arith.addf %211, %217 : vector<2x256xf32>
    %219 = vector.extract_strided_slice %84 {offsets = [9, 0], sizes = [1, 32], strides = [1, 1]} : vector<37x32xf32> to vector<1x32xf32>
    %220 = vector.extract_strided_slice %154 {offsets = [9, 0], sizes = [1, 32], strides = [1, 1]} : vector<37x32xf32> to vector<1x32xf32>
    %221 = tpu.concatenate %219, %220 in 0 : vector<1x32xf32>, vector<1x32xf32> -> vector<2x32xf32>
    %c9 = arith.constant 9 : index
    %c0_123 = arith.constant 0 : index
    %c0_124 = arith.constant 0 : index
    %222 = vector.load %arg14[%c9, %c0_123, %c0_124] : memref<37x32x256xf32, #tpu.memory_space<vmem>>, vector<1x32x256xf32>
    %223 = vector.shape_cast %222 : vector<1x32x256xf32> to vector<32x256xf32>
    %cst_125 = arith.constant dense<0.000000e+00> : vector<2x256xf32>
    %224 = tpu.matmul %221, %223, %cst_125 {dimension_numbers = #tpu.dot_dimension_numbers<[1], [0], [0], [1], [0, 0, 1, 1], [], []>} : vector<2x32xf32>, vector<32x256xf32>, vector<2x256xf32> -> vector<2x256xf32>
    %225 = arith.addf %218, %224 : vector<2x256xf32>
    %226 = vector.extract_strided_slice %84 {offsets = [10, 0], sizes = [1, 32], strides = [1, 1]} : vector<37x32xf32> to vector<1x32xf32>
    %227 = vector.extract_strided_slice %154 {offsets = [10, 0], sizes = [1, 32], strides = [1, 1]} : vector<37x32xf32> to vector<1x32xf32>
    %228 = tpu.concatenate %226, %227 in 0 : vector<1x32xf32>, vector<1x32xf32> -> vector<2x32xf32>
    %c10 = arith.constant 10 : index
    %c0_126 = arith.constant 0 : index
    %c0_127 = arith.constant 0 : index
    %229 = vector.load %arg14[%c10, %c0_126, %c0_127] : memref<37x32x256xf32, #tpu.memory_space<vmem>>, vector<1x32x256xf32>
    %230 = vector.shape_cast %229 : vector<1x32x256xf32> to vector<32x256xf32>
    %cst_128 = arith.constant dense<0.000000e+00> : vector<2x256xf32>
    %231 = tpu.matmul %228, %230, %cst_128 {dimension_numbers = #tpu.dot_dimension_numbers<[1], [0], [0], [1], [0, 0, 1, 1], [], []>} : vector<2x32xf32>, vector<32x256xf32>, vector<2x256xf32> -> vector<2x256xf32>
    %232 = arith.addf %225, %231 : vector<2x256xf32>
    %233 = vector.extract_strided_slice %84 {offsets = [11, 0], sizes = [1, 32], strides = [1, 1]} : vector<37x32xf32> to vector<1x32xf32>
    %234 = vector.extract_strided_slice %154 {offsets = [11, 0], sizes = [1, 32], strides = [1, 1]} : vector<37x32xf32> to vector<1x32xf32>
    %235 = tpu.concatenate %233, %234 in 0 : vector<1x32xf32>, vector<1x32xf32> -> vector<2x32xf32>
    %c11 = arith.constant 11 : index
    %c0_129 = arith.constant 0 : index
    %c0_130 = arith.constant 0 : index
    %236 = vector.load %arg14[%c11, %c0_129, %c0_130] : memref<37x32x256xf32, #tpu.memory_space<vmem>>, vector<1x32x256xf32>
    %237 = vector.shape_cast %236 : vector<1x32x256xf32> to vector<32x256xf32>
    %cst_131 = arith.constant dense<0.000000e+00> : vector<2x256xf32>
    %238 = tpu.matmul %235, %237, %cst_131 {dimension_numbers = #tpu.dot_dimension_numbers<[1], [0], [0], [1], [0, 0, 1, 1], [], []>} : vector<2x32xf32>, vector<32x256xf32>, vector<2x256xf32> -> vector<2x256xf32>
    %239 = arith.addf %232, %238 : vector<2x256xf32>
    %240 = vector.extract_strided_slice %84 {offsets = [12, 0], sizes = [1, 32], strides = [1, 1]} : vector<37x32xf32> to vector<1x32xf32>
    %241 = vector.extract_strided_slice %154 {offsets = [12, 0], sizes = [1, 32], strides = [1, 1]} : vector<37x32xf32> to vector<1x32xf32>
    %242 = tpu.concatenate %240, %241 in 0 : vector<1x32xf32>, vector<1x32xf32> -> vector<2x32xf32>
    %c12 = arith.constant 12 : index
    %c0_132 = arith.constant 0 : index
    %c0_133 = arith.constant 0 : index
    %243 = vector.load %arg14[%c12, %c0_132, %c0_133] : memref<37x32x256xf32, #tpu.memory_space<vmem>>, vector<1x32x256xf32>
    %244 = vector.shape_cast %243 : vector<1x32x256xf32> to vector<32x256xf32>
    %cst_134 = arith.constant dense<0.000000e+00> : vector<2x256xf32>
    %245 = tpu.matmul %242, %244, %cst_134 {dimension_numbers = #tpu.dot_dimension_numbers<[1], [0], [0], [1], [0, 0, 1, 1], [], []>} : vector<2x32xf32>, vector<32x256xf32>, vector<2x256xf32> -> vector<2x256xf32>
    %246 = arith.addf %239, %245 : vector<2x256xf32>
    %247 = vector.extract_strided_slice %84 {offsets = [13, 0], sizes = [1, 32], strides = [1, 1]} : vector<37x32xf32> to vector<1x32xf32>
    %248 = vector.extract_strided_slice %154 {offsets = [13, 0], sizes = [1, 32], strides = [1, 1]} : vector<37x32xf32> to vector<1x32xf32>
    %249 = tpu.concatenate %247, %248 in 0 : vector<1x32xf32>, vector<1x32xf32> -> vector<2x32xf32>
    %c13 = arith.constant 13 : index
    %c0_135 = arith.constant 0 : index
    %c0_136 = arith.constant 0 : index
    %250 = vector.load %arg14[%c13, %c0_135, %c0_136] : memref<37x32x256xf32, #tpu.memory_space<vmem>>, vector<1x32x256xf32>
    %251 = vector.shape_cast %250 : vector<1x32x256xf32> to vector<32x256xf32>
    %cst_137 = arith.constant dense<0.000000e+00> : vector<2x256xf32>
    %252 = tpu.matmul %249, %251, %cst_137 {dimension_numbers = #tpu.dot_dimension_numbers<[1], [0], [0], [1], [0, 0, 1, 1], [], []>} : vector<2x32xf32>, vector<32x256xf32>, vector<2x256xf32> -> vector<2x256xf32>
    %253 = arith.addf %246, %252 : vector<2x256xf32>
    %254 = vector.extract_strided_slice %84 {offsets = [14, 0], sizes = [1, 32], strides = [1, 1]} : vector<37x32xf32> to vector<1x32xf32>
    %255 = vector.extract_strided_slice %154 {offsets = [14, 0], sizes = [1, 32], strides = [1, 1]} : vector<37x32xf32> to vector<1x32xf32>
    %256 = tpu.concatenate %254, %255 in 0 : vector<1x32xf32>, vector<1x32xf32> -> vector<2x32xf32>
    %c14 = arith.constant 14 : index
    %c0_138 = arith.constant 0 : index
    %c0_139 = arith.constant 0 : index
    %257 = vector.load %arg14[%c14, %c0_138, %c0_139] : memref<37x32x256xf32, #tpu.memory_space<vmem>>, vector<1x32x256xf32>
    %258 = vector.shape_cast %257 : vector<1x32x256xf32> to vector<32x256xf32>
    %cst_140 = arith.constant dense<0.000000e+00> : vector<2x256xf32>
    %259 = tpu.matmul %256, %258, %cst_140 {dimension_numbers = #tpu.dot_dimension_numbers<[1], [0], [0], [1], [0, 0, 1, 1], [], []>} : vector<2x32xf32>, vector<32x256xf32>, vector<2x256xf32> -> vector<2x256xf32>
    %260 = arith.addf %253, %259 : vector<2x256xf32>
    %261 = vector.extract_strided_slice %84 {offsets = [15, 0], sizes = [1, 32], strides = [1, 1]} : vector<37x32xf32> to vector<1x32xf32>
    %262 = vector.extract_strided_slice %154 {offsets = [15, 0], sizes = [1, 32], strides = [1, 1]} : vector<37x32xf32> to vector<1x32xf32>
    %263 = tpu.concatenate %261, %262 in 0 : vector<1x32xf32>, vector<1x32xf32> -> vector<2x32xf32>
    %c15 = arith.constant 15 : index
    %c0_141 = arith.constant 0 : index
    %c0_142 = arith.constant 0 : index
    %264 = vector.load %arg14[%c15, %c0_141, %c0_142] : memref<37x32x256xf32, #tpu.memory_space<vmem>>, vector<1x32x256xf32>
    %265 = vector.shape_cast %264 : vector<1x32x256xf32> to vector<32x256xf32>
    %cst_143 = arith.constant dense<0.000000e+00> : vector<2x256xf32>
    %266 = tpu.matmul %263, %265, %cst_143 {dimension_numbers = #tpu.dot_dimension_numbers<[1], [0], [0], [1], [0, 0, 1, 1], [], []>} : vector<2x32xf32>, vector<32x256xf32>, vector<2x256xf32> -> vector<2x256xf32>
    %267 = arith.addf %260, %266 : vector<2x256xf32>
    %268 = vector.extract_strided_slice %84 {offsets = [16, 0], sizes = [1, 32], strides = [1, 1]} : vector<37x32xf32> to vector<1x32xf32>
    %269 = vector.extract_strided_slice %154 {offsets = [16, 0], sizes = [1, 32], strides = [1, 1]} : vector<37x32xf32> to vector<1x32xf32>
    %270 = tpu.concatenate %268, %269 in 0 : vector<1x32xf32>, vector<1x32xf32> -> vector<2x32xf32>
    %c16 = arith.constant 16 : index
    %c0_144 = arith.constant 0 : index
    %c0_145 = arith.constant 0 : index
    %271 = vector.load %arg14[%c16, %c0_144, %c0_145] : memref<37x32x256xf32, #tpu.memory_space<vmem>>, vector<1x32x256xf32>
    %272 = vector.shape_cast %271 : vector<1x32x256xf32> to vector<32x256xf32>
    %cst_146 = arith.constant dense<0.000000e+00> : vector<2x256xf32>
    %273 = tpu.matmul %270, %272, %cst_146 {dimension_numbers = #tpu.dot_dimension_numbers<[1], [0], [0], [1], [0, 0, 1, 1], [], []>} : vector<2x32xf32>, vector<32x256xf32>, vector<2x256xf32> -> vector<2x256xf32>
    %274 = arith.addf %267, %273 : vector<2x256xf32>
    %275 = vector.extract_strided_slice %84 {offsets = [17, 0], sizes = [1, 32], strides = [1, 1]} : vector<37x32xf32> to vector<1x32xf32>
    %276 = vector.extract_strided_slice %154 {offsets = [17, 0], sizes = [1, 32], strides = [1, 1]} : vector<37x32xf32> to vector<1x32xf32>
    %277 = tpu.concatenate %275, %276 in 0 : vector<1x32xf32>, vector<1x32xf32> -> vector<2x32xf32>
    %c17 = arith.constant 17 : index
    %c0_147 = arith.constant 0 : index
    %c0_148 = arith.constant 0 : index
    %278 = vector.load %arg14[%c17, %c0_147, %c0_148] : memref<37x32x256xf32, #tpu.memory_space<vmem>>, vector<1x32x256xf32>
    %279 = vector.shape_cast %278 : vector<1x32x256xf32> to vector<32x256xf32>
    %cst_149 = arith.constant dense<0.000000e+00> : vector<2x256xf32>
    %280 = tpu.matmul %277, %279, %cst_149 {dimension_numbers = #tpu.dot_dimension_numbers<[1], [0], [0], [1], [0, 0, 1, 1], [], []>} : vector<2x32xf32>, vector<32x256xf32>, vector<2x256xf32> -> vector<2x256xf32>
    %281 = arith.addf %274, %280 : vector<2x256xf32>
    %282 = vector.extract_strided_slice %84 {offsets = [18, 0], sizes = [1, 32], strides = [1, 1]} : vector<37x32xf32> to vector<1x32xf32>
    %283 = vector.extract_strided_slice %154 {offsets = [18, 0], sizes = [1, 32], strides = [1, 1]} : vector<37x32xf32> to vector<1x32xf32>
    %284 = tpu.concatenate %282, %283 in 0 : vector<1x32xf32>, vector<1x32xf32> -> vector<2x32xf32>
    %c18 = arith.constant 18 : index
    %c0_150 = arith.constant 0 : index
    %c0_151 = arith.constant 0 : index
    %285 = vector.load %arg14[%c18, %c0_150, %c0_151] : memref<37x32x256xf32, #tpu.memory_space<vmem>>, vector<1x32x256xf32>
    %286 = vector.shape_cast %285 : vector<1x32x256xf32> to vector<32x256xf32>
    %cst_152 = arith.constant dense<0.000000e+00> : vector<2x256xf32>
    %287 = tpu.matmul %284, %286, %cst_152 {dimension_numbers = #tpu.dot_dimension_numbers<[1], [0], [0], [1], [0, 0, 1, 1], [], []>} : vector<2x32xf32>, vector<32x256xf32>, vector<2x256xf32> -> vector<2x256xf32>
    %288 = arith.addf %281, %287 : vector<2x256xf32>
    %289 = vector.extract_strided_slice %84 {offsets = [19, 0], sizes = [1, 32], strides = [1, 1]} : vector<37x32xf32> to vector<1x32xf32>
    %290 = vector.extract_strided_slice %154 {offsets = [19, 0], sizes = [1, 32], strides = [1, 1]} : vector<37x32xf32> to vector<1x32xf32>
    %291 = tpu.concatenate %289, %290 in 0 : vector<1x32xf32>, vector<1x32xf32> -> vector<2x32xf32>
    %c19 = arith.constant 19 : index
    %c0_153 = arith.constant 0 : index
    %c0_154 = arith.constant 0 : index
    %292 = vector.load %arg14[%c19, %c0_153, %c0_154] : memref<37x32x256xf32, #tpu.memory_space<vmem>>, vector<1x32x256xf32>
    %293 = vector.shape_cast %292 : vector<1x32x256xf32> to vector<32x256xf32>
    %cst_155 = arith.constant dense<0.000000e+00> : vector<2x256xf32>
    %294 = tpu.matmul %291, %293, %cst_155 {dimension_numbers = #tpu.dot_dimension_numbers<[1], [0], [0], [1], [0, 0, 1, 1], [], []>} : vector<2x32xf32>, vector<32x256xf32>, vector<2x256xf32> -> vector<2x256xf32>
    %295 = arith.addf %288, %294 : vector<2x256xf32>
    %296 = vector.extract_strided_slice %84 {offsets = [20, 0], sizes = [1, 32], strides = [1, 1]} : vector<37x32xf32> to vector<1x32xf32>
    %297 = vector.extract_strided_slice %154 {offsets = [20, 0], sizes = [1, 32], strides = [1, 1]} : vector<37x32xf32> to vector<1x32xf32>
    %298 = tpu.concatenate %296, %297 in 0 : vector<1x32xf32>, vector<1x32xf32> -> vector<2x32xf32>
    %c20 = arith.constant 20 : index
    %c0_156 = arith.constant 0 : index
    %c0_157 = arith.constant 0 : index
    %299 = vector.load %arg14[%c20, %c0_156, %c0_157] : memref<37x32x256xf32, #tpu.memory_space<vmem>>, vector<1x32x256xf32>
    %300 = vector.shape_cast %299 : vector<1x32x256xf32> to vector<32x256xf32>
    %cst_158 = arith.constant dense<0.000000e+00> : vector<2x256xf32>
    %301 = tpu.matmul %298, %300, %cst_158 {dimension_numbers = #tpu.dot_dimension_numbers<[1], [0], [0], [1], [0, 0, 1, 1], [], []>} : vector<2x32xf32>, vector<32x256xf32>, vector<2x256xf32> -> vector<2x256xf32>
    %302 = arith.addf %295, %301 : vector<2x256xf32>
    %303 = vector.extract_strided_slice %84 {offsets = [21, 0], sizes = [1, 32], strides = [1, 1]} : vector<37x32xf32> to vector<1x32xf32>
    %304 = vector.extract_strided_slice %154 {offsets = [21, 0], sizes = [1, 32], strides = [1, 1]} : vector<37x32xf32> to vector<1x32xf32>
    %305 = tpu.concatenate %303, %304 in 0 : vector<1x32xf32>, vector<1x32xf32> -> vector<2x32xf32>
    %c21 = arith.constant 21 : index
    %c0_159 = arith.constant 0 : index
    %c0_160 = arith.constant 0 : index
    %306 = vector.load %arg14[%c21, %c0_159, %c0_160] : memref<37x32x256xf32, #tpu.memory_space<vmem>>, vector<1x32x256xf32>
    %307 = vector.shape_cast %306 : vector<1x32x256xf32> to vector<32x256xf32>
    %cst_161 = arith.constant dense<0.000000e+00> : vector<2x256xf32>
    %308 = tpu.matmul %305, %307, %cst_161 {dimension_numbers = #tpu.dot_dimension_numbers<[1], [0], [0], [1], [0, 0, 1, 1], [], []>} : vector<2x32xf32>, vector<32x256xf32>, vector<2x256xf32> -> vector<2x256xf32>
    %309 = arith.addf %302, %308 : vector<2x256xf32>
    %310 = vector.extract_strided_slice %84 {offsets = [22, 0], sizes = [1, 32], strides = [1, 1]} : vector<37x32xf32> to vector<1x32xf32>
    %311 = vector.extract_strided_slice %154 {offsets = [22, 0], sizes = [1, 32], strides = [1, 1]} : vector<37x32xf32> to vector<1x32xf32>
    %312 = tpu.concatenate %310, %311 in 0 : vector<1x32xf32>, vector<1x32xf32> -> vector<2x32xf32>
    %c22 = arith.constant 22 : index
    %c0_162 = arith.constant 0 : index
    %c0_163 = arith.constant 0 : index
    %313 = vector.load %arg14[%c22, %c0_162, %c0_163] : memref<37x32x256xf32, #tpu.memory_space<vmem>>, vector<1x32x256xf32>
    %314 = vector.shape_cast %313 : vector<1x32x256xf32> to vector<32x256xf32>
    %cst_164 = arith.constant dense<0.000000e+00> : vector<2x256xf32>
    %315 = tpu.matmul %312, %314, %cst_164 {dimension_numbers = #tpu.dot_dimension_numbers<[1], [0], [0], [1], [0, 0, 1, 1], [], []>} : vector<2x32xf32>, vector<32x256xf32>, vector<2x256xf32> -> vector<2x256xf32>
    %316 = arith.addf %309, %315 : vector<2x256xf32>
    %317 = vector.extract_strided_slice %84 {offsets = [23, 0], sizes = [1, 32], strides = [1, 1]} : vector<37x32xf32> to vector<1x32xf32>
    %318 = vector.extract_strided_slice %154 {offsets = [23, 0], sizes = [1, 32], strides = [1, 1]} : vector<37x32xf32> to vector<1x32xf32>
    %319 = tpu.concatenate %317, %318 in 0 : vector<1x32xf32>, vector<1x32xf32> -> vector<2x32xf32>
    %c23 = arith.constant 23 : index
    %c0_165 = arith.constant 0 : index
    %c0_166 = arith.constant 0 : index
    %320 = vector.load %arg14[%c23, %c0_165, %c0_166] : memref<37x32x256xf32, #tpu.memory_space<vmem>>, vector<1x32x256xf32>
    %321 = vector.shape_cast %320 : vector<1x32x256xf32> to vector<32x256xf32>
    %cst_167 = arith.constant dense<0.000000e+00> : vector<2x256xf32>
    %322 = tpu.matmul %319, %321, %cst_167 {dimension_numbers = #tpu.dot_dimension_numbers<[1], [0], [0], [1], [0, 0, 1, 1], [], []>} : vector<2x32xf32>, vector<32x256xf32>, vector<2x256xf32> -> vector<2x256xf32>
    %323 = arith.addf %316, %322 : vector<2x256xf32>
    %324 = vector.extract_strided_slice %84 {offsets = [24, 0], sizes = [1, 32], strides = [1, 1]} : vector<37x32xf32> to vector<1x32xf32>
    %325 = vector.extract_strided_slice %154 {offsets = [24, 0], sizes = [1, 32], strides = [1, 1]} : vector<37x32xf32> to vector<1x32xf32>
    %326 = tpu.concatenate %324, %325 in 0 : vector<1x32xf32>, vector<1x32xf32> -> vector<2x32xf32>
    %c24 = arith.constant 24 : index
    %c0_168 = arith.constant 0 : index
    %c0_169 = arith.constant 0 : index
    %327 = vector.load %arg14[%c24, %c0_168, %c0_169] : memref<37x32x256xf32, #tpu.memory_space<vmem>>, vector<1x32x256xf32>
    %328 = vector.shape_cast %327 : vector<1x32x256xf32> to vector<32x256xf32>
    %cst_170 = arith.constant dense<0.000000e+00> : vector<2x256xf32>
    %329 = tpu.matmul %326, %328, %cst_170 {dimension_numbers = #tpu.dot_dimension_numbers<[1], [0], [0], [1], [0, 0, 1, 1], [], []>} : vector<2x32xf32>, vector<32x256xf32>, vector<2x256xf32> -> vector<2x256xf32>
    %330 = arith.addf %323, %329 : vector<2x256xf32>
    %331 = vector.extract_strided_slice %84 {offsets = [25, 0], sizes = [1, 32], strides = [1, 1]} : vector<37x32xf32> to vector<1x32xf32>
    %332 = vector.extract_strided_slice %154 {offsets = [25, 0], sizes = [1, 32], strides = [1, 1]} : vector<37x32xf32> to vector<1x32xf32>
    %333 = tpu.concatenate %331, %332 in 0 : vector<1x32xf32>, vector<1x32xf32> -> vector<2x32xf32>
    %c25 = arith.constant 25 : index
    %c0_171 = arith.constant 0 : index
    %c0_172 = arith.constant 0 : index
    %334 = vector.load %arg14[%c25, %c0_171, %c0_172] : memref<37x32x256xf32, #tpu.memory_space<vmem>>, vector<1x32x256xf32>
    %335 = vector.shape_cast %334 : vector<1x32x256xf32> to vector<32x256xf32>
    %cst_173 = arith.constant dense<0.000000e+00> : vector<2x256xf32>
    %336 = tpu.matmul %333, %335, %cst_173 {dimension_numbers = #tpu.dot_dimension_numbers<[1], [0], [0], [1], [0, 0, 1, 1], [], []>} : vector<2x32xf32>, vector<32x256xf32>, vector<2x256xf32> -> vector<2x256xf32>
    %337 = arith.addf %330, %336 : vector<2x256xf32>
    %338 = vector.extract_strided_slice %84 {offsets = [26, 0], sizes = [1, 32], strides = [1, 1]} : vector<37x32xf32> to vector<1x32xf32>
    %339 = vector.extract_strided_slice %154 {offsets = [26, 0], sizes = [1, 32], strides = [1, 1]} : vector<37x32xf32> to vector<1x32xf32>
    %340 = tpu.concatenate %338, %339 in 0 : vector<1x32xf32>, vector<1x32xf32> -> vector<2x32xf32>
    %c26 = arith.constant 26 : index
    %c0_174 = arith.constant 0 : index
    %c0_175 = arith.constant 0 : index
    %341 = vector.load %arg14[%c26, %c0_174, %c0_175] : memref<37x32x256xf32, #tpu.memory_space<vmem>>, vector<1x32x256xf32>
    %342 = vector.shape_cast %341 : vector<1x32x256xf32> to vector<32x256xf32>
    %cst_176 = arith.constant dense<0.000000e+00> : vector<2x256xf32>
    %343 = tpu.matmul %340, %342, %cst_176 {dimension_numbers = #tpu.dot_dimension_numbers<[1], [0], [0], [1], [0, 0, 1, 1], [], []>} : vector<2x32xf32>, vector<32x256xf32>, vector<2x256xf32> -> vector<2x256xf32>
    %344 = arith.addf %337, %343 : vector<2x256xf32>
    %345 = vector.extract_strided_slice %84 {offsets = [27, 0], sizes = [1, 32], strides = [1, 1]} : vector<37x32xf32> to vector<1x32xf32>
    %346 = vector.extract_strided_slice %154 {offsets = [27, 0], sizes = [1, 32], strides = [1, 1]} : vector<37x32xf32> to vector<1x32xf32>
    %347 = tpu.concatenate %345, %346 in 0 : vector<1x32xf32>, vector<1x32xf32> -> vector<2x32xf32>
    %c27 = arith.constant 27 : index
    %c0_177 = arith.constant 0 : index
    %c0_178 = arith.constant 0 : index
    %348 = vector.load %arg14[%c27, %c0_177, %c0_178] : memref<37x32x256xf32, #tpu.memory_space<vmem>>, vector<1x32x256xf32>
    %349 = vector.shape_cast %348 : vector<1x32x256xf32> to vector<32x256xf32>
    %cst_179 = arith.constant dense<0.000000e+00> : vector<2x256xf32>
    %350 = tpu.matmul %347, %349, %cst_179 {dimension_numbers = #tpu.dot_dimension_numbers<[1], [0], [0], [1], [0, 0, 1, 1], [], []>} : vector<2x32xf32>, vector<32x256xf32>, vector<2x256xf32> -> vector<2x256xf32>
    %351 = arith.addf %344, %350 : vector<2x256xf32>
    %352 = vector.extract_strided_slice %84 {offsets = [28, 0], sizes = [1, 32], strides = [1, 1]} : vector<37x32xf32> to vector<1x32xf32>
    %353 = vector.extract_strided_slice %154 {offsets = [28, 0], sizes = [1, 32], strides = [1, 1]} : vector<37x32xf32> to vector<1x32xf32>
    %354 = tpu.concatenate %352, %353 in 0 : vector<1x32xf32>, vector<1x32xf32> -> vector<2x32xf32>
    %c28 = arith.constant 28 : index
    %c0_180 = arith.constant 0 : index
    %c0_181 = arith.constant 0 : index
    %355 = vector.load %arg14[%c28, %c0_180, %c0_181] : memref<37x32x256xf32, #tpu.memory_space<vmem>>, vector<1x32x256xf32>
    %356 = vector.shape_cast %355 : vector<1x32x256xf32> to vector<32x256xf32>
    %cst_182 = arith.constant dense<0.000000e+00> : vector<2x256xf32>
    %357 = tpu.matmul %354, %356, %cst_182 {dimension_numbers = #tpu.dot_dimension_numbers<[1], [0], [0], [1], [0, 0, 1, 1], [], []>} : vector<2x32xf32>, vector<32x256xf32>, vector<2x256xf32> -> vector<2x256xf32>
    %358 = arith.addf %351, %357 : vector<2x256xf32>
    %359 = vector.extract_strided_slice %84 {offsets = [29, 0], sizes = [1, 32], strides = [1, 1]} : vector<37x32xf32> to vector<1x32xf32>
    %360 = vector.extract_strided_slice %154 {offsets = [29, 0], sizes = [1, 32], strides = [1, 1]} : vector<37x32xf32> to vector<1x32xf32>
    %361 = tpu.concatenate %359, %360 in 0 : vector<1x32xf32>, vector<1x32xf32> -> vector<2x32xf32>
    %c29 = arith.constant 29 : index
    %c0_183 = arith.constant 0 : index
    %c0_184 = arith.constant 0 : index
    %362 = vector.load %arg14[%c29, %c0_183, %c0_184] : memref<37x32x256xf32, #tpu.memory_space<vmem>>, vector<1x32x256xf32>
    %363 = vector.shape_cast %362 : vector<1x32x256xf32> to vector<32x256xf32>
    %cst_185 = arith.constant dense<0.000000e+00> : vector<2x256xf32>
    %364 = tpu.matmul %361, %363, %cst_185 {dimension_numbers = #tpu.dot_dimension_numbers<[1], [0], [0], [1], [0, 0, 1, 1], [], []>} : vector<2x32xf32>, vector<32x256xf32>, vector<2x256xf32> -> vector<2x256xf32>
    %365 = arith.addf %358, %364 : vector<2x256xf32>
    %366 = vector.extract_strided_slice %84 {offsets = [30, 0], sizes = [1, 32], strides = [1, 1]} : vector<37x32xf32> to vector<1x32xf32>
    %367 = vector.extract_strided_slice %154 {offsets = [30, 0], sizes = [1, 32], strides = [1, 1]} : vector<37x32xf32> to vector<1x32xf32>
    %368 = tpu.concatenate %366, %367 in 0 : vector<1x32xf32>, vector<1x32xf32> -> vector<2x32xf32>
    %c30 = arith.constant 30 : index
    %c0_186 = arith.constant 0 : index
    %c0_187 = arith.constant 0 : index
    %369 = vector.load %arg14[%c30, %c0_186, %c0_187] : memref<37x32x256xf32, #tpu.memory_space<vmem>>, vector<1x32x256xf32>
    %370 = vector.shape_cast %369 : vector<1x32x256xf32> to vector<32x256xf32>
    %cst_188 = arith.constant dense<0.000000e+00> : vector<2x256xf32>
    %371 = tpu.matmul %368, %370, %cst_188 {dimension_numbers = #tpu.dot_dimension_numbers<[1], [0], [0], [1], [0, 0, 1, 1], [], []>} : vector<2x32xf32>, vector<32x256xf32>, vector<2x256xf32> -> vector<2x256xf32>
    %372 = arith.addf %365, %371 : vector<2x256xf32>
    %373 = vector.extract_strided_slice %84 {offsets = [31, 0], sizes = [1, 32], strides = [1, 1]} : vector<37x32xf32> to vector<1x32xf32>
    %374 = vector.extract_strided_slice %154 {offsets = [31, 0], sizes = [1, 32], strides = [1, 1]} : vector<37x32xf32> to vector<1x32xf32>
    %375 = tpu.concatenate %373, %374 in 0 : vector<1x32xf32>, vector<1x32xf32> -> vector<2x32xf32>
    %c31 = arith.constant 31 : index
    %c0_189 = arith.constant 0 : index
    %c0_190 = arith.constant 0 : index
    %376 = vector.load %arg14[%c31, %c0_189, %c0_190] : memref<37x32x256xf32, #tpu.memory_space<vmem>>, vector<1x32x256xf32>
    %377 = vector.shape_cast %376 : vector<1x32x256xf32> to vector<32x256xf32>
    %cst_191 = arith.constant dense<0.000000e+00> : vector<2x256xf32>
    %378 = tpu.matmul %375, %377, %cst_191 {dimension_numbers = #tpu.dot_dimension_numbers<[1], [0], [0], [1], [0, 0, 1, 1], [], []>} : vector<2x32xf32>, vector<32x256xf32>, vector<2x256xf32> -> vector<2x256xf32>
    %379 = arith.addf %372, %378 : vector<2x256xf32>
    %380 = vector.extract_strided_slice %84 {offsets = [32, 0], sizes = [1, 32], strides = [1, 1]} : vector<37x32xf32> to vector<1x32xf32>
    %381 = vector.extract_strided_slice %154 {offsets = [32, 0], sizes = [1, 32], strides = [1, 1]} : vector<37x32xf32> to vector<1x32xf32>
    %382 = tpu.concatenate %380, %381 in 0 : vector<1x32xf32>, vector<1x32xf32> -> vector<2x32xf32>
    %c32 = arith.constant 32 : index
    %c0_192 = arith.constant 0 : index
    %c0_193 = arith.constant 0 : index
    %383 = vector.load %arg14[%c32, %c0_192, %c0_193] : memref<37x32x256xf32, #tpu.memory_space<vmem>>, vector<1x32x256xf32>
    %384 = vector.shape_cast %383 : vector<1x32x256xf32> to vector<32x256xf32>
    %cst_194 = arith.constant dense<0.000000e+00> : vector<2x256xf32>
    %385 = tpu.matmul %382, %384, %cst_194 {dimension_numbers = #tpu.dot_dimension_numbers<[1], [0], [0], [1], [0, 0, 1, 1], [], []>} : vector<2x32xf32>, vector<32x256xf32>, vector<2x256xf32> -> vector<2x256xf32>
    %386 = arith.addf %379, %385 : vector<2x256xf32>
    %387 = vector.extract_strided_slice %84 {offsets = [33, 0], sizes = [1, 32], strides = [1, 1]} : vector<37x32xf32> to vector<1x32xf32>
    %388 = vector.extract_strided_slice %154 {offsets = [33, 0], sizes = [1, 32], strides = [1, 1]} : vector<37x32xf32> to vector<1x32xf32>
    %389 = tpu.concatenate %387, %388 in 0 : vector<1x32xf32>, vector<1x32xf32> -> vector<2x32xf32>
    %c33 = arith.constant 33 : index
    %c0_195 = arith.constant 0 : index
    %c0_196 = arith.constant 0 : index
    %390 = vector.load %arg14[%c33, %c0_195, %c0_196] : memref<37x32x256xf32, #tpu.memory_space<vmem>>, vector<1x32x256xf32>
    %391 = vector.shape_cast %390 : vector<1x32x256xf32> to vector<32x256xf32>
    %cst_197 = arith.constant dense<0.000000e+00> : vector<2x256xf32>
    %392 = tpu.matmul %389, %391, %cst_197 {dimension_numbers = #tpu.dot_dimension_numbers<[1], [0], [0], [1], [0, 0, 1, 1], [], []>} : vector<2x32xf32>, vector<32x256xf32>, vector<2x256xf32> -> vector<2x256xf32>
    %393 = arith.addf %386, %392 : vector<2x256xf32>
    %394 = vector.extract_strided_slice %84 {offsets = [34, 0], sizes = [1, 32], strides = [1, 1]} : vector<37x32xf32> to vector<1x32xf32>
    %395 = vector.extract_strided_slice %154 {offsets = [34, 0], sizes = [1, 32], strides = [1, 1]} : vector<37x32xf32> to vector<1x32xf32>
    %396 = tpu.concatenate %394, %395 in 0 : vector<1x32xf32>, vector<1x32xf32> -> vector<2x32xf32>
    %c34 = arith.constant 34 : index
    %c0_198 = arith.constant 0 : index
    %c0_199 = arith.constant 0 : index
    %397 = vector.load %arg14[%c34, %c0_198, %c0_199] : memref<37x32x256xf32, #tpu.memory_space<vmem>>, vector<1x32x256xf32>
    %398 = vector.shape_cast %397 : vector<1x32x256xf32> to vector<32x256xf32>
    %cst_200 = arith.constant dense<0.000000e+00> : vector<2x256xf32>
    %399 = tpu.matmul %396, %398, %cst_200 {dimension_numbers = #tpu.dot_dimension_numbers<[1], [0], [0], [1], [0, 0, 1, 1], [], []>} : vector<2x32xf32>, vector<32x256xf32>, vector<2x256xf32> -> vector<2x256xf32>
    %400 = arith.addf %393, %399 : vector<2x256xf32>
    %401 = vector.extract_strided_slice %84 {offsets = [35, 0], sizes = [1, 32], strides = [1, 1]} : vector<37x32xf32> to vector<1x32xf32>
    %402 = vector.extract_strided_slice %154 {offsets = [35, 0], sizes = [1, 32], strides = [1, 1]} : vector<37x32xf32> to vector<1x32xf32>
    %403 = tpu.concatenate %401, %402 in 0 : vector<1x32xf32>, vector<1x32xf32> -> vector<2x32xf32>
    %c35 = arith.constant 35 : index
    %c0_201 = arith.constant 0 : index
    %c0_202 = arith.constant 0 : index
    %404 = vector.load %arg14[%c35, %c0_201, %c0_202] : memref<37x32x256xf32, #tpu.memory_space<vmem>>, vector<1x32x256xf32>
    %405 = vector.shape_cast %404 : vector<1x32x256xf32> to vector<32x256xf32>
    %cst_203 = arith.constant dense<0.000000e+00> : vector<2x256xf32>
    %406 = tpu.matmul %403, %405, %cst_203 {dimension_numbers = #tpu.dot_dimension_numbers<[1], [0], [0], [1], [0, 0, 1, 1], [], []>} : vector<2x32xf32>, vector<32x256xf32>, vector<2x256xf32> -> vector<2x256xf32>
    %407 = arith.addf %400, %406 : vector<2x256xf32>
    %408 = vector.extract_strided_slice %84 {offsets = [36, 0], sizes = [1, 32], strides = [1, 1]} : vector<37x32xf32> to vector<1x32xf32>
    %409 = vector.extract_strided_slice %154 {offsets = [36, 0], sizes = [1, 32], strides = [1, 1]} : vector<37x32xf32> to vector<1x32xf32>
    %410 = tpu.concatenate %408, %409 in 0 : vector<1x32xf32>, vector<1x32xf32> -> vector<2x32xf32>
    %c36 = arith.constant 36 : index
    %c0_204 = arith.constant 0 : index
    %c0_205 = arith.constant 0 : index
    %411 = vector.load %arg14[%c36, %c0_204, %c0_205] : memref<37x32x256xf32, #tpu.memory_space<vmem>>, vector<1x32x256xf32>
    %412 = vector.shape_cast %411 : vector<1x32x256xf32> to vector<32x256xf32>
    %cst_206 = arith.constant dense<0.000000e+00> : vector<2x256xf32>
    %413 = tpu.matmul %410, %412, %cst_206 {dimension_numbers = #tpu.dot_dimension_numbers<[1], [0], [0], [1], [0, 0, 1, 1], [], []>} : vector<2x32xf32>, vector<32x256xf32>, vector<2x256xf32> -> vector<2x256xf32>
    %414 = arith.addf %407, %413 : vector<2x256xf32>
    %415 = vector.broadcast %12 : vector<1x256xf32> to vector<2x256xf32>
    %416 = arith.addf %414, %415 : vector<2x256xf32>
    %cst_207 = arith.constant dense<0.000000e+00> : vector<2x6xf32>
    %417 = tpu.matmul %416, %13, %cst_207 {dimension_numbers = #tpu.dot_dimension_numbers<[1], [0], [0], [1], [0, 0, 1, 1], [], []>} : vector<2x256xf32>, vector<256x6xf32>, vector<2x6xf32> -> vector<2x6xf32>
    %418 = vector.broadcast %14 : vector<1x6xf32> to vector<2x6xf32>
    %419 = arith.addf %417, %418 : vector<2x6xf32>
    %c0_208 = arith.constant 0 : index
    %c0_209 = arith.constant 0 : index
    %420 = vector.load %arg18[%c0_208, %c0_209] : memref<2x6xf32, #tpu.memory_space<vmem>>, vector<2x6xf32>
    tpu.vector_store %arg18[%c0_208, %c0_209], %419 {strides = array<i32>} : memref<2x6xf32, #tpu.memory_space<vmem>>, vector<2x6xf32>,
    return
  }
  func.func @transform_0(%arg0: i32) -> (i32, i32, i32) {
    %c0_i32 = arith.constant 0 : i32
    %c0_i32_0 = arith.constant 0 : i32
    %c0_i32_1 = arith.constant 0 : i32
    return %arg0, %c0_i32, %c0_i32_0 : i32, i32, i32
  }
  func.func @transform_1(%arg0: i32) -> (i32, i32) {
    %c0_i32 = arith.constant 0 : i32
    %c0_i32_0 = arith.constant 0 : i32
    %c0_i32_1 = arith.constant 0 : i32
    return %c0_i32, %c0_i32_0 : i32, i32
  }
  func.func @transform_2(%arg0: i32) -> (i32, i32) {
    %c0_i32 = arith.constant 0 : i32
    %c0_i32_0 = arith.constant 0 : i32
    %c0_i32_1 = arith.constant 0 : i32
    return %c0_i32, %c0_i32_0 : i32, i32
  }
  func.func @transform_3(%arg0: i32) -> (i32, i32) {
    %c0_i32 = arith.constant 0 : i32
    %c0_i32_0 = arith.constant 0 : i32
    %c0_i32_1 = arith.constant 0 : i32
    return %c0_i32, %c0_i32_0 : i32, i32
  }
  func.func @transform_4(%arg0: i32) -> (i32, i32) {
    %c0_i32 = arith.constant 0 : i32
    %c0_i32_0 = arith.constant 0 : i32
    %c0_i32_1 = arith.constant 0 : i32
    return %c0_i32, %c0_i32_0 : i32, i32
  }
  func.func @transform_5(%arg0: i32) -> (i32, i32) {
    %c0_i32 = arith.constant 0 : i32
    %c0_i32_0 = arith.constant 0 : i32
    %c0_i32_1 = arith.constant 0 : i32
    return %c0_i32, %c0_i32_0 : i32, i32
  }
  func.func @transform_6(%arg0: i32) -> (i32, i32) {
    %c0_i32 = arith.constant 0 : i32
    %c0_i32_0 = arith.constant 0 : i32
    %c0_i32_1 = arith.constant 0 : i32
    return %c0_i32, %c0_i32_0 : i32, i32
  }
  func.func @transform_7(%arg0: i32) -> (i32, i32) {
    %c0_i32 = arith.constant 0 : i32
    %c0_i32_0 = arith.constant 0 : i32
    %c0_i32_1 = arith.constant 0 : i32
    return %c0_i32, %c0_i32_0 : i32, i32
  }
  func.func @transform_8(%arg0: i32) -> (i32, i32) {
    %c0_i32 = arith.constant 0 : i32
    %c0_i32_0 = arith.constant 0 : i32
    %c0_i32_1 = arith.constant 0 : i32
    return %c0_i32, %c0_i32_0 : i32, i32
  }
  func.func @transform_9(%arg0: i32) -> (i32, i32) {
    %c0_i32 = arith.constant 0 : i32
    %c0_i32_0 = arith.constant 0 : i32
    %c0_i32_1 = arith.constant 0 : i32
    return %c0_i32, %c0_i32_0 : i32, i32
  }
  func.func @transform_10(%arg0: i32) -> (i32, i32) {
    %c0_i32 = arith.constant 0 : i32
    %c0_i32_0 = arith.constant 0 : i32
    %c0_i32_1 = arith.constant 0 : i32
    return %c0_i32, %c0_i32_0 : i32, i32
  }
  func.func @transform_11(%arg0: i32) -> (i32, i32) {
    %c0_i32 = arith.constant 0 : i32
    %c0_i32_0 = arith.constant 0 : i32
    %c0_i32_1 = arith.constant 0 : i32
    return %c0_i32, %c0_i32_0 : i32, i32
  }
  func.func @transform_12(%arg0: i32) -> (i32, i32) {
    %c0_i32 = arith.constant 0 : i32
    %c0_i32_0 = arith.constant 0 : i32
    %c0_i32_1 = arith.constant 0 : i32
    return %c0_i32, %c0_i32_0 : i32, i32
  }
  func.func @transform_13(%arg0: i32) -> (i32, i32, i32) {
    %c0_i32 = arith.constant 0 : i32
    %c0_i32_0 = arith.constant 0 : i32
    %c0_i32_1 = arith.constant 0 : i32
    %c0_i32_2 = arith.constant 0 : i32
    return %c0_i32, %c0_i32_0, %c0_i32_1 : i32, i32, i32
  }
  func.func @transform_14(%arg0: i32) -> (i32, i32) {
    %c0_i32 = arith.constant 0 : i32
    %c0_i32_0 = arith.constant 0 : i32
    %c0_i32_1 = arith.constant 0 : i32
    return %c0_i32, %c0_i32_0 : i32, i32
  }
  func.func @transform_15(%arg0: i32) -> (i32, i32) {
    %c0_i32 = arith.constant 0 : i32
    %c0_i32_0 = arith.constant 0 : i32
    %c0_i32_1 = arith.constant 0 : i32
    return %c0_i32, %c0_i32_0 : i32, i32
  }
  func.func @transform_16(%arg0: i32) -> (i32, i32) {
    %c0_i32 = arith.constant 0 : i32
    %c0_i32_0 = arith.constant 0 : i32
    %c0_i32_1 = arith.constant 0 : i32
    return %c0_i32, %c0_i32_0 : i32, i32
  }
  func.func @transform_17(%arg0: i32) -> (i32, i32) {
    %c0_i32 = arith.constant 0 : i32
    %c0_i32_0 = arith.constant 0 : i32
    return %arg0, %c0_i32 : i32, i32
  }
}

</mosaic_0001>

<bundles_post_ra>
// kernel: tpu_custom_call.1
= control target key start
LH: loop header
LB: loop body
LE: loop exit
PB: predicated region body
PF: predicated region fallthrough
CT: control target
= control target key end

     0   :  { %s19002_s0 = inlined_call_operand.vmem [shape: f32[2,561,1], index: 0, kind: input, shape index: {}]   ;;  %s19003_s1 = inlined_call_operand.hbm [shape: f32[1,16], index: 1, kind: input, shape index: {}]   ;;  %s19004_s2 = inlined_call_operand.hbm [shape: f32[1,16], index: 2, kind: input, shape index: {}]   ;;  %s19005_s3 = inlined_call_operand.hbm [shape: f32[1,16], index: 3, kind: input, shape index: {}]   ;;  %s19006_s4 = inlined_call_operand.hbm [shape: f32[16,16], index: 4, kind: input, shape index: {}]   ;;  %s19007_s5 = inlined_call_operand.hbm [shape: f32[16,16], index: 5, kind: input, shape index: {}]   ;;  %s19008_s6 = inlined_call_operand.hbm [shape: f32[1,16], index: 6, kind: input, shape index: {}]   ;;  %s19009_s7 = inlined_call_operand.hbm [shape: f32[16,32], index: 7, kind: input, shape index: {}]   ;;  %s19010_s8 = inlined_call_operand.hbm [shape: f32[16,32], index: 8, kind: input, shape index: {}]   ;;  %s19011_s9 = inlined_call_operand.hbm [shape: f32[1,32], index: 9, kind: input, shape index: {}]   ;;  %s19012_s10 = inlined_call_operand.hbm [shape: f32[32,32], index: 10, kind: input, shape index: {}]   ;;  %s19013_s11 = inlined_call_operand.hbm [shape: f32[32,32], index: 11, kind: input, shape index: {}]   ;;  %s19014_s12 = inlined_call_operand.hbm [shape: f32[1,32], index: 12, kind: input, shape index: {}]   ;;  %s19015_s13 = inlined_call_operand.hbm [shape: f32[37,32,256], index: 13, kind: input, shape index: {}]   ;;  %s19016_s14 = inlined_call_operand.hbm [shape: f32[1,256], index: 14, kind: input, shape index: {}]   ;;  %s19017_s15 = inlined_call_operand.vmem [shape: f32[256,6], index: 15, kind: input, shape index: {}]   ;;  %s19018_s16 = inlined_call_operand.hbm [shape: f32[1,6], index: 16, kind: input, shape index: {}]   ;;  %s19019_s17 = inlined_call_operand.hbm [shape: f32[2,6], index: 17, kind: output, shape index: {}]  }
   0x1   :  { %19057 = sst [smem:[#allocation92_spill]] %s19002_s0 }
   0x2   :  { %19058 = sst [smem:[#allocation93_spill]] %s19003_s1 }
   0x3   :  { %22 = vsyncpa [#allocation5], 0 }
   0x4   :  { %23 = vsyncpa [#allocation8], 0 }
   0x5   :  { %24 = vsyncpa [#allocation11], 0 }
   0x6   :  { %25 = vsyncpa [#allocation14], 0 }
   0x7   :  { %26 = vsyncpa [#allocation17], 0 }
   0x8   :  { %27 = vsyncpa [#allocation20], 0 }
   0x9   :  { %28 = vsyncpa [#allocation23], 0 }
   0xa   :  { %29 = vsyncpa [#allocation26], 0 }
   0xb   :  { %30 = vsyncpa [#allocation6], 0  ;;  %s13739_s24 = smov [#allocation7]   ;;  %s13740_s26 = smov [#allocation10]  }
   0xc   :  { %s49_s25 = sshll.u32 %s13739_s24, 4  ;;  %s68_s27 = sshll.u32 %s13740_s26, 4  ;;  %s50_s25 = int_to_ptr.vmem [resolvable:$true] %s49_s25  ;;  %s13853_s27 = int_to_ptr.vmem [resolvable:$true] %s68_s27 }
   0xd   :  { %s13369_s0 = scalar_lea.hbm %s19004_s2, 16 }
   0xe   :  { %p13370_p0 = scmp.ne.s32.totalorder %s19004_s2, %s13369_s0  ;;  %p13373_p1 = scmp.lt.u32.totalorder %s13369_s0, %s19004_s2 }
  0x10   :  { %p13375_p2 = pnand %p13373_p1, %p13370_p0 }
  0x12   :  { %13378 = shalt.err (!%p13375_p2)
}
  0x13   :  { %s13379_s20 = scalar_lea.vmem %s50_s25, 16  ;;  %s13383_s21 = scalar_lea.vmem %s50_s25, 32 }
  0x14   :  { %p13380_p3 = scmp.ne.s32.totalorder %s50_s25, %s13379_s20  ;;  %p13384_p4 = scmp.lt.s32.totalorder %s50_s25, %s50_s25 }
  0x15   :  { %p13385_p5 = scmp.lt.s32.totalorder %s13383_s21, %s13379_s20 }
  0x17   :  { %p13386_p6 = por %p13385_p5, %p13384_p4 }
  0x19   :  { %p13387_p7 = pnand %p13386_p6, %p13380_p3 }
  0x1b   :  { %13390 = shalt.err (!%p13387_p7)
}
  0x1c   :  { %52 = dma.hbm_to_vmem [thread:$0]  %s19004_s2, 16, %s50_s25, [#allocation8]  }
  0x1d   :  { %s13391_s28 = scalar_lea.hbm %s19006_s4, 256 }
  0x1e   :  { %p13392_p8 = scmp.ne.s32.totalorder %s19006_s4, %s13391_s28  ;;  %p13395_p9 = scmp.lt.u32.totalorder %s13391_s28, %s19006_s4 }
  0x20   :  { %p13397_p10 = pnand %p13395_p9, %p13392_p8 }
  0x22   :  { %13400 = shalt.err (!%p13397_p10)
}
  0x23   :  { %s13401_s19 = scalar_lea.vmem %s13853_s27, 256  ;;  %p13406_p12 = scmp.lt.s32.totalorder %s13853_s27, %s13853_s27 }
  0x24   :  { %p13402_p11 = scmp.ne.s32.totalorder %s13853_s27, %s13401_s19  ;;  %p13407_p13 = scmp.lt.s32.totalorder %s13401_s19, %s13401_s19 }
  0x26   :  { %p13408_p0 = por %p13407_p13, %p13406_p12 }
  0x28   :  { %p13409_p1 = pnand %p13408_p0, %p13402_p11 }
  0x2a   :  { %13412 = shalt.err (!%p13409_p1)
}
  0x2b   :  { %s13741_s2 = smov 128   ;;  %s13742_s25 = smov 8  }
  0x2c   :  { %74 = dma.hbm_to_vmem [thread:$0]  %s19006_s4, 256, %s13853_s27, [#allocation11], %s13741_s2, %s13741_s2, %s13742_s25  }
  0x2d   :  { %s13743_s21 = smov [#allocation13]   ;;  %s13744_s23 = smov [#allocation16]  }
  0x2e   :  { %s93_s22 = sshll.u32 %s13743_s21, 4  ;;  %s114_s24 = sshll.u32 %s13744_s23, 4  ;;  %s94_s22 = int_to_ptr.vmem [resolvable:$true] %s93_s22  ;;  %s13887_s24 = int_to_ptr.vmem [resolvable:$true] %s114_s24 }
  0x2f   :  { %s13413_s29 = scalar_lea.hbm %s19008_s6, 16 }
  0x30   :  { %p13414_p2 = scmp.ne.s32.totalorder %s19008_s6, %s13413_s29  ;;  %p13417_p3 = scmp.lt.u32.totalorder %s13413_s29, %s19008_s6 }
  0x32   :  { %p13419_p4 = pnand %p13417_p3, %p13414_p2 }
  0x34   :  { %13422 = shalt.err (!%p13419_p4)
}
  0x35   :  { %s13423_s4 = scalar_lea.vmem %s94_s22, 16  ;;  %s13427_s27 = scalar_lea.vmem %s94_s22, 32 }
  0x36   :  { %p13424_p5 = scmp.ne.s32.totalorder %s94_s22, %s13423_s4  ;;  %p13428_p6 = scmp.lt.s32.totalorder %s94_s22, %s94_s22 }
  0x37   :  { %p13429_p7 = scmp.lt.s32.totalorder %s13427_s27, %s13423_s4 }
  0x39   :  { %p13430_p8 = por %p13429_p7, %p13428_p6 }
  0x3b   :  { %p13431_p9 = pnand %p13430_p8, %p13424_p5 }
  0x3d   :  { %13434 = shalt.err (!%p13431_p9)
}
  0x3e   :  { %96 = dma.hbm_to_vmem [thread:$0]  %s19008_s6, 16, %s94_s22, [#allocation14]  }
  0x3f   :  { %s13435_s26 = scalar_lea.hbm %s19010_s8, 256 }
  0x40   :  { %p13436_p10 = scmp.ne.s32.totalorder %s19010_s8, %s13435_s26  ;;  %p13439_p11 = scmp.lt.u32.totalorder %s13435_s26, %s19010_s8 }
  0x42   :  { %p13441_p12 = pnand %p13439_p11, %p13436_p10 }
  0x44   :  { %13444 = shalt.err (!%p13441_p12)
}
  0x45   :  { %s13445_s18 = scalar_lea.vmem %s13887_s24, 256  ;;  %p13450_p0 = scmp.lt.s32.totalorder %s13887_s24, %s13887_s24 }
  0x46   :  { %p13446_p13 = scmp.ne.s32.totalorder %s13887_s24, %s13445_s18  ;;  %p13451_p1 = scmp.lt.s32.totalorder %s13445_s18, %s13445_s18 }
  0x48   :  { %p13452_p2 = por %p13451_p1, %p13450_p0 }
  0x4a   :  { %p13453_p3 = pnand %p13452_p2, %p13446_p13 }
  0x4c   :  { %13456 = shalt.err (!%p13453_p3)
}
  0x4d   :  { %120 = dma.hbm_to_vmem [thread:$0]  %s19010_s8, 256, %s13887_s24, [#allocation17], %s13741_s2, %s13741_s2, %s13742_s25  }
  0x4e   :  { %s13745_s19 = smov [#allocation19]   ;;  %s13746_s27 = smov [#allocation22]  }
  0x4f   :  { %s136_s4 = sshll.u32 %s13745_s19, 4  ;;  %s161_s1 = sshll.u32 %s13746_s27, 4  ;;  %s137_s4 = int_to_ptr.vmem [resolvable:$true] %s136_s4  ;;  %s162_s1 = int_to_ptr.vmem [resolvable:$true] %s161_s1 }
  0x50   :  { %s13457_s23 = scalar_lea.hbm %s19012_s10, 512 }
  0x51   :  { %p13458_p4 = scmp.ne.s32.totalorder %s19012_s10, %s13457_s23  ;;  %p13461_p5 = scmp.lt.u32.totalorder %s13457_s23, %s19012_s10 }
  0x53   :  { %p13463_p6 = pnand %p13461_p5, %p13458_p4 }
  0x55   :  { %13466 = shalt.err (!%p13463_p6)
}
  0x56   :  { %s13467_s8 = scalar_lea.vmem %s137_s4, 512  ;;  %p13472_p8 = scmp.lt.s32.totalorder %s137_s4, %s137_s4 }
  0x57   :  { %p13468_p7 = scmp.ne.s32.totalorder %s137_s4, %s13467_s8  ;;  %p13473_p9 = scmp.lt.s32.totalorder %s13467_s8, %s13467_s8 }
  0x59   :  { %p13474_p10 = por %p13473_p9, %p13472_p8 }
  0x5b   :  { %p13475_p11 = pnand %p13474_p10, %p13468_p7 }
  0x5d   :  { %13478 = shalt.err (!%p13475_p11)
}
  0x5e   :  { %142 = dma.hbm_to_vmem [thread:$0]  %s19012_s10, 512, %s137_s4, [#allocation20], %s13741_s2, %s13741_s2, %s13742_s25  }
  0x5f   :  { %s13479_s22 = scalar_lea.hbm %s19014_s12, 16 }
  0x60   :  { %p13480_p12 = scmp.ne.s32.totalorder %s19014_s12, %s13479_s22  ;;  %p13483_p13 = scmp.lt.u32.totalorder %s13479_s22, %s19014_s12 }
  0x62   :  { %p13485_p0 = pnand %p13483_p13, %p13480_p12 }
  0x64   :  { %13488 = shalt.err (!%p13485_p0)
}
  0x65   :  { %s13489_s23 = scalar_lea.vmem %s162_s1, 16  ;;  %s13493_s26 = scalar_lea.vmem %s162_s1, 32 }
  0x66   :  { %p13490_p1 = scmp.ne.s32.totalorder %s162_s1, %s13489_s23  ;;  %p13494_p2 = scmp.lt.s32.totalorder %s162_s1, %s162_s1 }
  0x67   :  { %p13495_p3 = scmp.lt.s32.totalorder %s13493_s26, %s13489_s23 }
  0x69   :  { %p13496_p4 = por %p13495_p3, %p13494_p2 }
  0x6b   :  { %p13497_p5 = pnand %p13496_p4, %p13490_p1 }
  0x6d   :  { %13500 = shalt.err (!%p13497_p5)
}
  0x6e   :  { %164 = dma.hbm_to_vmem [thread:$0]  %s19014_s12, 16, %s162_s1, [#allocation23]  }
  0x6f   :  { %s13747_s28 = smov [#allocation25]   ;;  %s13748_s0 = smov [#allocation4]  }
  0x70   :  { %s183_s29 = sshll.u32 %s13747_s28, 4  ;;  %s39_s8 = sshll.u32 %s13748_s0, 4  ;;  %s184_s29 = int_to_ptr.vmem [resolvable:$true] %s183_s29  ;;  %s40_s8 = int_to_ptr.vmem [resolvable:$true] %s39_s8 }
  0x71   :  { %s13501_s18 = scalar_lea.hbm %s19016_s14, 32 }
  0x72   :  { %p13502_p6 = scmp.ne.s32.totalorder %s19016_s14, %s13501_s18  ;;  %p13505_p7 = scmp.lt.u32.totalorder %s13501_s18, %s19016_s14 }
  0x74   :  { %p13507_p8 = pnand %p13505_p7, %p13502_p6 }
  0x76   :  { %13510 = shalt.err (!%p13507_p8)
}
  0x77   :  { %s13511_s12 = scalar_lea.vmem %s184_s29, 32  ;;  %p13516_p10 = scmp.lt.s32.totalorder %s184_s29, %s184_s29 }
  0x78   :  { %p13512_p9 = scmp.ne.s32.totalorder %s184_s29, %s13511_s12  ;;  %p13517_p11 = scmp.lt.s32.totalorder %s13511_s12, %s13511_s12 }
  0x7a   :  { %p13518_p12 = por %p13517_p11, %p13516_p10 }
  0x7c   :  { %p13519_p13 = pnand %p13518_p12, %p13512_p9 }
  0x7e   :  { %13522 = shalt.err (!%p13519_p13)
}
  0x7f   :  { %186 = dma.hbm_to_vmem [thread:$0]  %s19016_s14, 32, %s184_s29, [#allocation26]  }
  0x80   :  { %s19059_s26 = sld [smem:[#allocation93_spill]] }
  0x86   :  { %s13523_s10 = scalar_lea.hbm %s19059_s26, 16 }
  0x87   :  { %p13524_p0 = scmp.ne.s32.totalorder %s19059_s26, %s13523_s10  ;;  %p13527_p1 = scmp.lt.u32.totalorder %s13523_s10, %s19059_s26 }
  0x89   :  { %p13529_p2 = pnand %p13527_p1, %p13524_p0 }
  0x8b   :  { %13532 = shalt.err (!%p13529_p2)
}
  0x8c   :  { %s13533_s30 = scalar_lea.vmem %s40_s8, 16  ;;  %s13537_s18 = scalar_lea.vmem %s40_s8, 32 }
  0x8d   :  { %p13534_p3 = scmp.ne.s32.totalorder %s40_s8, %s13533_s30  ;;  %p13538_p4 = scmp.lt.s32.totalorder %s40_s8, %s40_s8 }
  0x8e   :  { %p13539_p5 = scmp.lt.s32.totalorder %s13537_s18, %s13533_s30 }
  0x90   :  { %p13540_p6 = por %p13539_p5, %p13538_p4 }
  0x92   :  { %p13541_p7 = pnand %p13540_p6, %p13534_p3 }
  0x94   :  { %13544 = shalt.err (!%p13541_p7)
}
  0x95   :  { %42 = dma.hbm_to_vmem [thread:$0]  %s19059_s26, 16, %s40_s8, [#allocation5]  }
  0x96   :  { %s13749_s6 = smov [#allocation9]   ;;  %s13750_s19 = smov [#allocation12]  }
  0x97   :  { %s59_s22 = sshll.u32 %s13749_s6, 4  ;;  %s80_s27 = sshll.u32 %s13750_s19, 4  ;;  %s60_s22 = int_to_ptr.vmem [resolvable:$true] %s59_s22  ;;  %s13972_s27 = int_to_ptr.vmem [resolvable:$true] %s80_s27 }
  0x98   :  { %s13545_s20 = scalar_lea.hbm %s19005_s3, 16 }
  0x99   :  { %p13546_p8 = scmp.ne.s32.totalorder %s19005_s3, %s13545_s20  ;;  %p13549_p9 = scmp.lt.u32.totalorder %s13545_s20, %s19005_s3 }
  0x9b   :  { %p13551_p10 = pnand %p13549_p9, %p13546_p8 }
  0x9d   :  { %13554 = shalt.err (!%p13551_p10)
}
  0x9e   :  { %s13555_s8 = scalar_lea.vmem %s60_s22, 16  ;;  %s13559_s26 = scalar_lea.vmem %s60_s22, 32 }
  0x9f   :  { %p13556_p11 = scmp.ne.s32.totalorder %s60_s22, %s13555_s8  ;;  %p13560_p12 = scmp.lt.s32.totalorder %s60_s22, %s60_s22 }
  0xa0   :  { %p13561_p13 = scmp.lt.s32.totalorder %s13559_s26, %s13555_s8 }
  0xa2   :  { %p13562_p0 = por %p13561_p13, %p13560_p12 }
  0xa4   :  { %p13563_p1 = pnand %p13562_p0, %p13556_p11 }
  0xa6   :  { %13566 = shalt.err (!%p13563_p1)
}
  0xa7   :  { %62 = dma.hbm_to_vmem [thread:$0]  %s19005_s3, 16, %s60_s22, [#allocation8]  }
  0xa8   :  { %s13567_s18 = scalar_lea.hbm %s19007_s5, 256 }
  0xa9   :  { %p13568_p2 = scmp.ne.s32.totalorder %s19007_s5, %s13567_s18  ;;  %p13571_p3 = scmp.lt.u32.totalorder %s13567_s18, %s19007_s5 }
  0xab   :  { %p13573_p4 = pnand %p13571_p3, %p13568_p2 }
  0xad   :  { %13576 = shalt.err (!%p13573_p4)
}
  0xae   :  { %s13577_s12 = scalar_lea.vmem %s13972_s27, 256  ;;  %p13582_p6 = scmp.lt.s32.totalorder %s13972_s27, %s13972_s27 }
  0xaf   :  { %p13578_p5 = scmp.ne.s32.totalorder %s13972_s27, %s13577_s12  ;;  %p13583_p7 = scmp.lt.s32.totalorder %s13577_s12, %s13577_s12 }
  0xb1   :  { %p13584_p8 = por %p13583_p7, %p13582_p6 }
  0xb3   :  { %p13585_p9 = pnand %p13584_p8, %p13578_p5 }
  0xb5   :  { %13588 = shalt.err (!%p13585_p9)
}
  0xb6   :  { %86 = dma.hbm_to_vmem [thread:$0]  %s19007_s5, 256, %s13972_s27, [#allocation11], %s13741_s2, %s13741_s2, %s13742_s25  }
  0xb7   :  { %s13751_s1 = smov [#allocation15]   ;;  %s13752_s21 = smov [#allocation18]  }
  0xb8   :  { %s102_s20 = sshll.u32 %s13751_s1, 4  ;;  %s127_s23 = sshll.u32 %s13752_s21, 4  ;;  %s103_s20 = int_to_ptr.vmem [resolvable:$true] %s102_s20  ;;  %s128_s23 = int_to_ptr.vmem [resolvable:$true] %s127_s23 }
  0xb9   :  { %s13589_s8 = scalar_lea.hbm %s19009_s7, 256 }
  0xba   :  { %p13590_p10 = scmp.ne.s32.totalorder %s19009_s7, %s13589_s8  ;;  %p13593_p11 = scmp.lt.u32.totalorder %s13589_s8, %s19009_s7 }
  0xbc   :  { %p13595_p12 = pnand %p13593_p11, %p13590_p10 }
  0xbe   :  { %13598 = shalt.err (!%p13595_p12)
}
  0xbf   :  { %s13599_s5 = scalar_lea.vmem %s103_s20, 256  ;;  %p13604_p0 = scmp.lt.s32.totalorder %s103_s20, %s103_s20 }
  0xc0   :  { %p13600_p13 = scmp.ne.s32.totalorder %s103_s20, %s13599_s5  ;;  %p13605_p1 = scmp.lt.s32.totalorder %s13599_s5, %s13599_s5 }
  0xc2   :  { %p13606_p2 = por %p13605_p1, %p13604_p0 }
  0xc4   :  { %p13607_p3 = pnand %p13606_p2, %p13600_p13 }
  0xc6   :  { %13610 = shalt.err (!%p13607_p3)
}
  0xc7   :  { %108 = dma.hbm_to_vmem [thread:$0]  %s19009_s7, 256, %s103_s20, [#allocation14], %s13741_s2, %s13741_s2, %s13742_s25  }
  0xc8   :  { %s13611_s29 = scalar_lea.hbm %s19011_s9, 16 }
  0xc9   :  { %p13612_p4 = scmp.ne.s32.totalorder %s19011_s9, %s13611_s29  ;;  %p13615_p5 = scmp.lt.u32.totalorder %s13611_s29, %s19011_s9 }
  0xcb   :  { %p13617_p6 = pnand %p13615_p5, %p13612_p4 }
  0xcd   :  { %13620 = shalt.err (!%p13617_p6)
}
  0xce   :  { %s13621_s22 = scalar_lea.vmem %s128_s23, 16  ;;  %s13625_s1 = scalar_lea.vmem %s128_s23, 32 }
  0xcf   :  { %p13622_p7 = scmp.ne.s32.totalorder %s128_s23, %s13621_s22  ;;  %p13626_p8 = scmp.lt.s32.totalorder %s128_s23, %s128_s23 }
  0xd0   :  { %p13627_p9 = scmp.lt.s32.totalorder %s13625_s1, %s13621_s22 }
  0xd2   :  { %p13628_p10 = por %p13627_p9, %p13626_p8 }
  0xd4   :  { %p13629_p11 = pnand %p13628_p10, %p13622_p7 }
  0xd6   :  { %13632 = shalt.err (!%p13629_p11)
}
  0xd7   :  { %130 = dma.hbm_to_vmem [thread:$0]  %s19011_s9, 16, %s128_s23, [#allocation17]  }
  0xd8   :  { %s13753_s21 = smov [#allocation21]   ;;  %s13754_s4 = smov [#allocation24]  }
  0xd9   :  { %s148_s10 = sshll.u32 %s13753_s21, 4  ;;  %s170_s8 = sshll.u32 %s13754_s4, 4  ;;  %s149_s10 = int_to_ptr.vmem [resolvable:$true] %s148_s10  ;;  %s14033_s8 = int_to_ptr.vmem [resolvable:$true] %s170_s8 }
  0xda   :  { %s13633_s0 = scalar_lea.hbm %s19013_s11, 512 }
  0xdb   :  { %p13634_p12 = scmp.ne.s32.totalorder %s19013_s11, %s13633_s0  ;;  %p13637_p13 = scmp.lt.u32.totalorder %s13633_s0, %s19013_s11 }
  0xdd   :  { %p13639_p0 = pnand %p13637_p13, %p13634_p12 }
  0xdf   :  { %13642 = shalt.err (!%p13639_p0)
}
  0xe0   :  { %s13643_s9 = scalar_lea.vmem %s149_s10, 512  ;;  %p13648_p2 = scmp.lt.s32.totalorder %s149_s10, %s149_s10 }
  0xe1   :  { %p13644_p1 = scmp.ne.s32.totalorder %s149_s10, %s13643_s9  ;;  %p13649_p3 = scmp.lt.s32.totalorder %s13643_s9, %s13643_s9 }
  0xe3   :  { %p13650_p4 = por %p13649_p3, %p13648_p2 }
  0xe5   :  { %p13651_p5 = pnand %p13650_p4, %p13644_p1 }
  0xe7   :  { %13654 = shalt.err (!%p13651_p5)
}
  0xe8   :  { %154 = dma.hbm_to_vmem [thread:$0]  %s19013_s11, 512, %s149_s10, [#allocation20], %s13741_s2, %s13741_s2, %s13742_s25  }
  0xe9   :  { %s13655_s6 = scalar_lea.hbm %s19015_s13, 37888 }
  0xea   :  { %p13656_p6 = scmp.ne.s32.totalorder %s19015_s13, %s13655_s6  ;;  %p13659_p7 = scmp.lt.u32.totalorder %s13655_s6, %s19015_s13 }
  0xec   :  { %p13661_p8 = pnand %p13659_p7, %p13656_p6 }
  0xee   :  { %13664 = shalt.err (!%p13661_p8)
}
  0xef   :  { %s13665_s1 = scalar_lea.vmem %s14033_s8, 37888  ;;  %p13670_p10 = scmp.lt.s32.totalorder %s14033_s8, %s14033_s8 }
  0xf0   :  { %p13666_p9 = scmp.ne.s32.totalorder %s14033_s8, %s13665_s1  ;;  %p13671_p11 = scmp.lt.s32.totalorder %s13665_s1, %s13665_s1 }
  0xf2   :  { %p13672_p12 = por %p13671_p11, %p13670_p10 }
  0xf4   :  { %p13673_p13 = pnand %p13672_p12, %p13666_p9 }
  0xf6   :  { %13676 = shalt.err (!%p13673_p13)
}
  0xf7   :  { %s13755_s11 = smov 256   ;;  %s13756_s2 = smov 16  }
  0xf8   :  { %176 = dma.hbm_to_vmem [thread:$0]  %s19015_s13, 37888, %s14033_s8, [#allocation23], %s13755_s11, %s13755_s11, %s13756_s2  }
  0xf9   :  { %s13757_s20 = smov [#allocation27]   ;;  %s13677_s26 = scalar_lea.hbm %s19018_s16, 16 }
  0xfa   :  { %s195_s21 = sshll.u32 %s13757_s20, 4  ;;  %p13678_p0 = scmp.ne.s32.totalorder %s19018_s16, %s13677_s26  ;;  %s196_s21 = int_to_ptr.vmem [resolvable:$true] %s195_s21 }
  0xfb   :  { %p13681_p1 = scmp.lt.u32.totalorder %s13677_s26, %s19018_s16 }
  0xfd   :  { %p13683_p2 = pnand %p13681_p1, %p13678_p0 }
  0xff   :  { %13686 = shalt.err (!%p13683_p2)
}
 0x100   :  { %s13687_s27 = scalar_lea.vmem %s196_s21, 16  ;;  %s13691_s13 = scalar_lea.vmem %s196_s21, 32 }
 0x101   :  { %p13688_p3 = scmp.ne.s32.totalorder %s196_s21, %s13687_s27  ;;  %p13692_p4 = scmp.lt.s32.totalorder %s196_s21, %s196_s21 }
 0x102   :  { %p13693_p5 = scmp.lt.s32.totalorder %s13691_s13, %s13687_s27 }
 0x104   :  { %p13694_p6 = por %p13693_p5, %p13692_p4 }
 0x106   :  { %p13695_p7 = pnand %p13694_p6, %p13688_p3 }
 0x108   :  { %13698 = shalt.err (!%p13695_p7)
}
 0x109   :  { %198 = dma.hbm_to_vmem [thread:$0]  %s19018_s16, 16, %s196_s21, [#allocation26]  }
 0x10a   :  { %13721 = dma.done.wait [#allocation5], 16  }
 0x10b   :  { %13722 = vsyncadd [#allocation5], 4294967280 }
 0x10c   :  { %13723 = dma.done.wait [#allocation8], 32  }
 0x10d   :  { %13724 = vsyncadd [#allocation8], 4294967264 }
 0x10e   :  { %13725 = dma.done.wait [#allocation11], 512  }
 0x10f   :  { %13726 = vsyncadd [#allocation11], 4294966784 }
 0x110   :  { %13727 = dma.done.wait [#allocation14], 272  }
 0x111   :  { %13728 = vsyncadd [#allocation14], 4294967024 }
 0x112   :  { %13729 = dma.done.wait [#allocation17], 272  }
 0x113   :  { %13730 = vsyncadd [#allocation17], 4294967024 }
 0x114   :  { %13731 = dma.done.wait [#allocation20], 1024  }
 0x115   :  { %13732 = vsyncadd [#allocation20], 4294966272 }
 0x116   :  { %13733 = dma.done.wait [#allocation23], 37904  }
 0x117   :  { %13734 = vsyncadd [#allocation23], 4294929392 }
 0x118   :  { %13735 = dma.done.wait [#allocation26], 48  }
 0x119   :  { %13736 = vsyncadd [#allocation26], 4294967248  ;;  %v13758_v0 = vmov 0   ;;  %s19060_s23 = sld [smem:[#allocation92_spill]]  ;;  %vm442_vm0 = vcmask 1041408   ;;  %vm587_vm1 = vcmask 1042432  }
 0x11a   :  { %13353 = vset.pattern.permute.xlu1 %v13758_v0  ;;  %13352 = vset.pattern.permute.xlu0 %v13758_v0  ;;  %vm1100_vm2 = vcmask 1046528   ;;  %vm1886_vm3 = vcmask 130048   ;;  %vm1957_vm4 = vcmask 124928   ;;  %vm2140_vm5 = vcmask 1043456  }
 0x11b   :  { %vm13760_vm6 = vmmov 0   ;;  %vm3141_vm7 = vcmask 125952   ;;  %vm3787_vm8 = vcmask 261120   ;;  %vm4228_vm9 = vcmask 254976  }
 0x11c   :  { %vm8080_vm10 = vcmask 1040384   ;;  %vm11482_vm11 = vcmask 41984  }
 0x11f   :  { %v301_v1 = vld [vmem:[%s19060_s23 + $0x8] sm:$0xff]  ;;  %v302_v2 = vld [vmem:[%s19060_s23 + $0x10] sm:$0xff]  ;;  %v300_v3 = vld [vmem:[%s19060_s23] sm:$0xff] }
 0x120   :  { %v444_v4 = vrot.slane %v301_v1, 6  ;;  %v446_v5 = vrot.slane %v302_v2, 6  ;;  %v443_v6 = vrot.slane %v300_v3, 6  ;;  %v303_v7 = vld [vmem:[%s19060_s23 + $0x18] sm:$0xff]  ;;  %v304_v9 = vld [vmem:[%s19060_s23 + $0x20] sm:$0xff]  ;;  %v305_v10 = vld [vmem:[%s19060_s23 + $0x28] sm:$0xff] }
 0x121   :  { %v448_v8 = vrot.slane %v303_v7, 6  ;;  %v450_v15 = vrot.slane %v304_v9, 6  ;;  %v452_v16 = vrot.slane %v305_v10, 6  ;;  %v306_v17 = vld [vmem:[%s19060_s23 + $0x30] sm:$0xff]  ;;  %v307_v18 = vld [vmem:[%s19060_s23 + $0x38] sm:$0xff]  ;;  %v308_v23 = vld [vmem:[%s19060_s23 + $0x40] sm:$0xff] }
 0x122   :  { %v447_v11 = vsel %vm442_vm0, %v444_v4, %v446_v5  ;;  %v586_v12 = vsel %vm442_vm0, 0.0, %v443_v6  ;;  %v445_v14 = vsel %vm442_vm0, %v443_v6, %v444_v4  ;;  %v454_v21 = vrot.slane %v306_v17, 6  ;;  %v309_v24 = vld [vmem:[%s19060_s23 + $0x48] sm:$0xff]  ;;  %v310_v29 = vld [vmem:[%s19060_s23 + $0x50] sm:$0xff]  ;;  %v311_v30 = vld [vmem:[%s19060_s23 + $0x58] sm:$0xff] }
 0x123   :  { %599 = vperm.xlu1 %13353, %v447_v11   ;;  %591 = vperm.xlu0 %13352, %v586_v12   ;;  %v449_v13 = vsel %vm442_vm0, %v446_v5, %v448_v8  ;;  %v453_v19 = vsel %vm442_vm0, %v450_v15, %v452_v16  ;;  %v451_v20 = vsel %vm442_vm0, %v448_v8, %v450_v15  ;;  %v456_v22 = vrot.slane %v307_v18, 6  ;;  %v312_v35 = vld [vmem:[%s19060_s23 + $0x60] sm:$0xff]  ;;  %v313_v36 = vld [vmem:[%s19060_s23 + $0x68] sm:$0xff]  ;;  %v314_v41 = vld [vmem:[%s19060_s23 + $0x70] sm:$0xff] }
 0x124   :  { %v455_v26 = vsel %vm442_vm0, %v452_v16, %v454_v21  ;;  %v458_v27 = vrot.slane %v308_v23, 6  ;;  %v460_v28 = vrot.slane %v309_v24, 6  ;;  %v462_v33 = vrot.slane %v310_v29, 6  ;;  %v315_v42 = vld [vmem:[%s19060_s23 + $0x78] sm:$0xff]  ;;  %v316_v47 = vld [vmem:[%s19060_s23 + $0x80] sm:$0xff]  ;;  %v317_v48 = vld [vmem:[%s19060_s23 + $0x88] sm:$0xff] }
 0x125   :  { %v457_v25 = vsel %vm442_vm0, %v454_v21, %v456_v22  ;;  %v464_v34 = vrot.slane %v311_v30, 6  ;;  %v466_v39 = vrot.slane %v312_v35, 6  ;;  %v468_v40 = vrot.slane %v313_v36, 6  ;;  %v318_v53 = vld [vmem:[%s19060_s23 + $0x90] sm:$0xff]  ;;  %v319_v54 = vld [vmem:[%s19060_s23 + $0x98] sm:$0xff]  ;;  %v320_v59 = vld [vmem:[%s19060_s23 + $0xa0] sm:$0xff] }
 0x126   :  { %v461_v31 = vsel %vm442_vm0, %v458_v27, %v460_v28  ;;  %v459_v32 = vsel %vm442_vm0, %v456_v22, %v458_v27  ;;  %v463_v38 = vsel %vm442_vm0, %v460_v28, %v462_v33  ;;  %v470_v45 = vrot.slane %v314_v41, 6  ;;  %v321_v60 = vld [vmem:[%s19060_s23 + $0xa8] sm:$0xff]  ;;  %v322_v1 = vld [vmem:[%s19060_s23 + $0xb0] sm:$0xff]  ;;  %v323_v2 = vld [vmem:[%s19060_s23 + $0xb8] sm:$0xff] }
 0x127   :  { %603 = vperm.xlu1 %13353, %v449_v13   ;;  %595 = vperm.xlu0 %13352, %v445_v14   ;;  %v465_v37 = vsel %vm442_vm0, %v462_v33, %v464_v34  ;;  %v469_v43 = vsel %vm442_vm0, %v466_v39, %v468_v40  ;;  %v467_v44 = vsel %vm442_vm0, %v464_v34, %v466_v39  ;;  %v472_v46 = vrot.slane %v315_v42, 6  ;;  %v324_v7 = vld [vmem:[%s19060_s23 + $0xc0] sm:$0xff]  ;;  %v325_v8 = vld [vmem:[%s19060_s23 + $0xc8] sm:$0xff]  ;;  %v326_v13 = vld [vmem:[%s19060_s23 + $0xd0] sm:$0xff] }
 0x128   :  { %v471_v50 = vsel %vm442_vm0, %v468_v40, %v470_v45  ;;  %v474_v51 = vrot.slane %v316_v47, 6  ;;  %v476_v52 = vrot.slane %v317_v48, 6  ;;  %v478_v57 = vrot.slane %v318_v53, 6  ;;  %v327_v14 = vld [vmem:[%s19060_s23 + $0xd8] sm:$0xff]  ;;  %v328_v22 = vld [vmem:[%s19060_s23 + $0xe0] sm:$0xff]  ;;  %v329_v23 = vld [vmem:[%s19060_s23 + $0xe8] sm:$0xff] }
 0x129   :  { %v473_v49 = vsel %vm442_vm0, %v470_v45, %v472_v46  ;;  %v480_v58 = vrot.slane %v319_v54, 6  ;;  %v482_v63 = vrot.slane %v320_v59, 6  ;;  %v484_v0 = vrot.slane %v321_v60, 6  ;;  %v249_v16 = vld [vmem:[#allocation12] sm:$0xff]  ;;  %v250_v17 = vld [vmem:[#allocation12 + $0x8] sm:$0xff]  ;;  %v333_v35 = vld [vmem:[%s19060_s23 + $0x108] sm:$0xff] }
 0x12a   :  { %v477_v55 = vsel %vm442_vm0, %v474_v51, %v476_v52  ;;  %v475_v56 = vsel %vm442_vm0, %v472_v46, %v474_v51  ;;  %v479_v62 = vsel %vm442_vm0, %v476_v52, %v478_v57  ;;  %v486_v5 = vrot.slane %v322_v1, 6  ;;  %v330_v28 = vld [vmem:[%s19060_s23 + $0xf0] sm:$0xff]  ;;  %v331_v29 = vld [vmem:[%s19060_s23 + $0xf8] sm:$0xff]  ;;  %v332_v34 = vld [vmem:[%s19060_s23 + $0x100] sm:$0xff] }
 0x12b   :  { %611 = vperm.xlu1 %13353, %v453_v19   ;;  %607 = vperm.xlu0 %13352, %v451_v20   ;;  %v481_v61 = vsel %vm442_vm0, %v478_v57, %v480_v58  ;;  %v485_v3 = vsel %vm442_vm0, %v482_v63, %v484_v0  ;;  %v483_v4 = vsel %vm442_vm0, %v480_v58, %v482_v63  ;;  %v488_v6 = vrot.slane %v323_v2, 6  ;;  %v334_v40 = vld [vmem:[%s19060_s23 + $0x110] sm:$0xff]  ;;  %v335_v41 = vld [vmem:[%s19060_s23 + $0x118] sm:$0xff]  ;;  %v336_v46 = vld [vmem:[%s19060_s23 + $0x120] sm:$0xff] }
 0x12c   :  { %v487_v10 = vsel %vm442_vm0, %v484_v0, %v486_v5  ;;  %v490_v11 = vrot.slane %v324_v7, 6  ;;  %v492_v12 = vrot.slane %v325_v8, 6  ;;  %v494_v15 = vrot.slane %v326_v13, 6  ;;  %v337_v47 = vld [vmem:[%s19060_s23 + $0x128] sm:$0xff]  ;;  %v338_v52 = vld [vmem:[%s19060_s23 + $0x130] sm:$0xff]  ;;  %v339_v53 = vld [vmem:[%s19060_s23 + $0x138] sm:$0xff] }
 0x12d   :  { %v489_v9 = vsel %vm442_vm0, %v486_v5, %v488_v6  ;;  %v496_v20 = vrot.slane %v327_v14, 6  ;;  %v14189_v21 = vpack.c.bf16 %v250_v17, %v249_v16  ;;  %v500_v27 = vrot.slane %v329_v23, 6  ;;  %v340_v58 = vld [vmem:[%s19060_s23 + $0x140] sm:$0xff]  ;;  %v341_v59 = vld [vmem:[%s19060_s23 + $0x148] sm:$0xff]  ;;  %v342_v0 = vld [vmem:[%s19060_s23 + $0x150] sm:$0xff] }
 0x12e   :  { %v493_v18 = vsel %vm442_vm0, %v490_v11, %v492_v12  ;;  %v491_v19 = vsel %vm442_vm0, %v488_v6, %v490_v11  ;;  %v504_v33 = vrot.slane %v331_v29, 6  ;;  %v508_v39 = vrot.slane %v333_v35, 6  ;;  %v343_v1 = vld [vmem:[%s19060_s23 + $0x158] sm:$0xff]  ;;  %v344_v6 = vld [vmem:[%s19060_s23 + $0x160] sm:$0xff]  ;;  %v345_v7 = vld [vmem:[%s19060_s23 + $0x168] sm:$0xff] }
 0x12f   :  { %619 = vperm.xlu1 %13353, %v457_v25   ;;  %615 = vperm.xlu0 %13352, %v455_v26   ;;  %19061 = vst [vmem:[#allocation38_spill] sm:$0xff] %v14189_v21  ;;  %v497_v24 = vsel %vm442_vm0, %v494_v15, %v496_v20  ;;  %v495_v25 = vsel %vm442_vm0, %v492_v12, %v494_v15  ;;  %v498_v26 = vrot.slane %v328_v22, 6  ;;  %v512_v45 = vrot.slane %v335_v41, 6  ;;  %v346_v12 = vld [vmem:[%s19060_s23 + $0x170] sm:$0xff]  ;;  %v347_v13 = vld [vmem:[%s19060_s23 + $0x178] sm:$0xff]  ;;  %v247_v14 = vld [vmem:[#allocation10] sm:$0xff] }
 0x130   :  { %12775 = vmatprep.subr.bf16.mxu0 %v14189_v21  ;;  %13162 = vmatprep.subr.bf16.mxu1 %v14189_v21  ;;  %v516_v51 = vrot.slane %v337_v47, 6  ;;  %v520_v57 = vrot.slane %v339_v53, 6  ;;  %v524_v63 = vrot.slane %v341_v59, 6  ;;  %v528_v5 = vrot.slane %v343_v1, 6  ;;  %v248_v15 = vld [vmem:[#allocation10 + $0x8] sm:$0xff]  ;;  %v348_v22 = vld [vmem:[%s19060_s23 + $0x180] sm:$0xff] }
 0x131   :  { %12777 = vmatpush3.bf16.msra.mxu0 %v14189_v21  ;;  %13163 = vmatpush3.bf16.msra.mxu1 %v14189_v21  ;;  %v501_v30 = vsel %vm442_vm0, %v498_v26, %v500_v27  ;;  %v532_v11 = vrot.slane %v345_v7, 6  ;;  %v14273_v16 = vpack.c.bf16 %v248_v15, %v247_v14  ;;  %v349_v23 = vld [vmem:[%s19060_s23 + $0x188] sm:$0xff]  ;;  %v351_v29 = vld [vmem:[%s19060_s23 + $0x198] sm:$0xff]  ;;  %v366_v1 = vld [vmem:[%s19060_s23 + $0x210] sm:$0xff] }
 0x132   :  { %v353_v35 = vld [vmem:[%s19060_s23 + $0x1a8] sm:$0xff]  ;;  %v355_v41 = vld [vmem:[%s19060_s23 + $0x1b8] sm:$0xff]  ;;  %v368_v7 = vld [vmem:[%s19060_s23 + $0x220] sm:$0xff]  ;;  %v574_v15 = vrot.slane %v366_v1, 6 }
 0x133   :  { %627 = vperm.xlu1 %13353, %v461_v31   ;;  %623 = vperm.xlu0 %13352, %v459_v32   ;;  %v499_v31 = vsel %vm442_vm0, %v496_v20, %v498_v26  ;;  %v502_v32 = vrot.slane %v330_v28, 6  ;;  %19062 = vst [vmem:[#allocation39_spill] sm:$0xff] %v14273_v16  ;;  %v536_v20 = vrot.slane %v347_v13, 6  ;;  %v538_v26 = vrot.slane %v348_v22, 6  ;;  %v350_v28 = vld [vmem:[%s19060_s23 + $0x190] sm:$0xff]  ;;  %v357_v47 = vld [vmem:[%s19060_s23 + $0x1c8] sm:$0xff] }
 0x134   :  { %12779 = vmatprep.subr.bf16.mxu0 %v14273_v16  ;;  %v578_v22 = vrot.slane %v368_v7, 6 }
 0x135   :  { %v505_v36 = vsel %vm442_vm0, %v502_v32, %v504_v33 }
 0x137   :  { %635 = vperm.xlu1 %13353, %v465_v37   ;;  %631 = vperm.xlu0 %13352, %v463_v38   ;;  %v503_v37 = vsel %vm442_vm0, %v500_v27, %v502_v32  ;;  %v506_v38 = vrot.slane %v332_v34, 6  ;;  %v540_v27 = vrot.slane %v349_v23, 6  ;;  %v542_v32 = vrot.slane %v350_v28, 6  ;;  %v352_v34 = vld [vmem:[%s19060_s23 + $0x1a0] sm:$0xff] }
 0x139   :  { %v509_v42 = vsel %vm442_vm0, %v506_v38, %v508_v39 }
 0x13b   :  { %643 = vperm.xlu1 %13353, %v469_v43   ;;  %639 = vperm.xlu0 %13352, %v467_v44   ;;  %v507_v43 = vsel %vm442_vm0, %v504_v33, %v506_v38  ;;  %v510_v44 = vrot.slane %v334_v40, 6  ;;  %v544_v33 = vrot.slane %v351_v29, 6  ;;  %v546_v38 = vrot.slane %v352_v34, 6  ;;  %v354_v40 = vld [vmem:[%s19060_s23 + $0x1b0] sm:$0xff] }
 0x13d   :  { %v513_v48 = vsel %vm442_vm0, %v510_v44, %v512_v45 }
 0x13f   :  { %651 = vperm.xlu1 %13353, %v473_v49   ;;  %647 = vperm.xlu0 %13352, %v471_v50   ;;  %v511_v49 = vsel %vm442_vm0, %v508_v39, %v510_v44  ;;  %v514_v50 = vrot.slane %v336_v46, 6  ;;  %v548_v39 = vrot.slane %v353_v35, 6  ;;  %v550_v44 = vrot.slane %v354_v40, 6  ;;  %v356_v46 = vld [vmem:[%s19060_s23 + $0x1c0] sm:$0xff]  ;;  %v11647_v35 = vld [vmem:[%s19060_s23 + $0x268] sm:$0xff] }
 0x140   :  { %v554_v53 = vrot.slane %v356_v46, 6 }
 0x141   :  { %v517_v54 = vsel %vm442_vm0, %v514_v50, %v516_v51  ;;  %v551_v59 = vsel %vm442_vm0, %v548_v39, %v550_v44 }
 0x143   :  { %659 = vperm.xlu1 %13353, %v477_v55   ;;  %655 = vperm.xlu0 %13352, %v475_v56   ;;  %v515_v55 = vsel %vm442_vm0, %v512_v45, %v514_v50  ;;  %v518_v56 = vrot.slane %v338_v52, 6  ;;  %v552_v45 = vrot.slane %v355_v41, 6  ;;  %v360_v50 = vld [vmem:[%s19060_s23 + $0x1e0] sm:$0xff]  ;;  %v362_v52 = vld [vmem:[%s19060_s23 + $0x1f0] sm:$0xff]  ;;  %v11649_v41 = vld [vmem:[%s19060_s23 + $0x278] sm:$0xff] }
 0x145   :  { %v521_v60 = vsel %vm442_vm0, %v518_v56, %v520_v57 }
 0x147   :  { %667 = vperm.xlu1 %13353, %v481_v61   ;;  %663 = vperm.xlu0 %13352, %v479_v62   ;;  %v519_v61 = vsel %vm442_vm0, %v516_v51, %v518_v56  ;;  %v522_v62 = vrot.slane %v340_v58, 6  ;;  %v361_v51 = vld [vmem:[%s19060_s23 + $0x1e8] sm:$0xff]  ;;  %v364_v56 = vld [vmem:[%s19060_s23 + $0x200] sm:$0xff]  ;;  %v553_v58 = vsel %vm442_vm0, %v550_v44, %v552_v45 }
 0x149   :  { %v525_v2 = vsel %vm442_vm0, %v522_v62, %v524_v63 }
 0x14b   :  { %675 = vperm.xlu1 %13353, %v485_v3   ;;  %671 = vperm.xlu0 %13352, %v483_v4   ;;  %v523_v3 = vsel %vm442_vm0, %v520_v57, %v522_v62  ;;  %v526_v4 = vrot.slane %v342_v0, 6  ;;  %v365_v57 = vld [vmem:[%s19060_s23 + $0x208] sm:$0xff]  ;;  %v370_v62 = vld [vmem:[%s19060_s23 + $0x230] sm:$0x1]  ;;  %v564_v0 = vrot.slane %v361_v51, 6 }
 0x14d   :  { %v529_v8 = vsel %vm442_vm0, %v526_v4, %v528_v5 }
 0x14f   :  { %683 = vperm.xlu1 %13353, %v489_v9   ;;  %679 = vperm.xlu0 %13352, %v487_v10   ;;  %v527_v9 = vsel %vm442_vm0, %v524_v63, %v526_v4  ;;  %v530_v10 = vrot.slane %v344_v6, 6  ;;  %v562_v63 = vrot.slane %v360_v50, 6  ;;  %v572_v6 = vrot.slane %v365_v57, 6 }
 0x150   :  { %v4393_v57 = vrot.slane %v11649_v41, 6 }
 0x151   :  { %v533_v17 = vsel %vm442_vm0, %v530_v10, %v532_v11 }
 0x153   :  { %691 = vperm.xlu1 %13353, %v493_v18   ;;  %687 = vperm.xlu0 %13352, %v491_v19   ;;  %v531_v18 = vsel %vm442_vm0, %v528_v5, %v530_v10  ;;  %v534_v19 = vrot.slane %v346_v12, 6  ;;  %v570_v5 = vrot.slane %v364_v56, 6  ;;  %v555_v10 = vsel %vm442_vm0, %v552_v45, %v554_v53 }
 0x154   :  { %v582_v12 = vrot.slane %v370_v62, 6 }
 0x155   :  { %v14386_v28 = vsel %vm442_vm0, %v570_v5, %v572_v6 }
 0x157   :  { %699 = vperm.xlu1 %13353, %v497_v24   ;;  %695 = vperm.xlu0 %13352, %v495_v25   ;;  %v537_v24 = vsel %vm442_vm0, %v534_v19, %v536_v20  ;;  %v535_v25 = vsel %vm442_vm0, %v532_v11, %v534_v19  ;;  %v11641_v11 = vld [vmem:[%s19060_s23 + $0x238] sm:$0xff]  ;;  %v14368_v19 = vsel %vm442_vm0, %v562_v63, %v564_v0 }
 0x158   :  { %v4378_v29 = vrot.slane %v11641_v11, 6 }
 0x15a   :  { %v14432_v50 = vsel %vm442_vm0, 0.0, %v4378_v29 }
 0x15b   :  { %707 = vperm.xlu1 %13353, %v501_v30   ;;  %703 = vperm.xlu0 %13352, %v499_v31   ;;  %v541_v30 = vsel %vm442_vm0, %v538_v26, %v540_v27  ;;  %v539_v31 = vsel %vm442_vm0, %v536_v20, %v538_v26 }
 0x15f   :  { %715 = vperm.xlu1 %13353, %v505_v36   ;;  %711 = vperm.xlu0 %13352, %v503_v37   ;;  %v545_v36 = vsel %vm442_vm0, %v542_v32, %v544_v33  ;;  %v543_v37 = vsel %vm442_vm0, %v540_v27, %v542_v32 }
 0x163   :  { %723 = vperm.xlu1 %13353, %v509_v42   ;;  %719 = vperm.xlu0 %13352, %v507_v43   ;;  %v549_v42 = vsel %vm442_vm0, %v546_v38, %v548_v39  ;;  %v547_v43 = vsel %vm442_vm0, %v544_v33, %v546_v38  ;;  %v14408_v38 = vsel %vm442_vm0, %v572_v6, %v574_v15 }
 0x167   :  { %731 = vperm.xlu1 %13353, %v513_v48   ;;  %727 = vperm.xlu0 %13352, %v511_v49   ;;  %v358_v48 = vld [vmem:[%s19060_s23 + $0x1d0] sm:$0xff]  ;;  %v359_v49 = vld [vmem:[%s19060_s23 + $0x1d8] sm:$0xff] }
 0x16b   :  { %739 = vperm.xlu1 %13353, %v517_v54   ;;  %735 = vperm.xlu0 %13352, %v515_v55   ;;  %v556_v54 = vrot.slane %v357_v47, 6  ;;  %v363_v55 = vld [vmem:[%s19060_s23 + $0x1f8] sm:$0xff] }
 0x16c   :  { %v568_v4 = vrot.slane %v363_v55, 6  ;;  %v11655_v55 = vld [vmem:[%s19060_s23 + $0x2a8] sm:$0xff] }
 0x16d   :  { %v4405_v7 = vrot.slane %v11655_v55, 6 }
 0x16e   :  { %v14395_v32 = vsel %vm442_vm0, %v568_v4, %v570_v5 }
 0x16f   :  { %747 = vperm.xlu1 %13353, %v521_v60   ;;  %743 = vperm.xlu0 %13352, %v519_v61   ;;  %v558_v60 = vrot.slane %v358_v48, 6  ;;  %v560_v61 = vrot.slane %v359_v49, 6  ;;  %v11652_v48 = vld [vmem:[%s19060_s23 + $0x290] sm:$0xff]  ;;  %v11653_v49 = vld [vmem:[%s19060_s23 + $0x298] sm:$0xff] }
 0x170   :  { %v4401_v1 = vrot.slane %v11653_v49, 6  ;;  %v11671_v49 = vld [vmem:[%s19060_s23 + $0x328] sm:$0xff] }
 0x171   :  { %v561_v13 = vsel %vm442_vm0, %v558_v60, %v560_v61  ;;  %v559_v14 = vsel %vm442_vm0, %v556_v54, %v558_v60  ;;  %v14371_v20 = vsel %vm442_vm0, %v560_v61, %v562_v63  ;;  %v11656_v60 = vld [vmem:[%s19060_s23 + $0x2b0] sm:$0xff]  ;;  %v11657_v61 = vld [vmem:[%s19060_s23 + $0x2b8] sm:$0xff] }
 0x173   :  { %755 = vperm.xlu1 %13353, %v525_v2   ;;  %751 = vperm.xlu0 %13352, %v523_v3   ;;  %v367_v2 = vld [vmem:[%s19060_s23 + $0x218] sm:$0xff]  ;;  %v566_v3 = vrot.slane %v362_v52, 6  ;;  %v4389_v52 = vrot.slane %v11647_v35, 6 }
 0x175   :  { %v14380_v26 = vsel %vm442_vm0, %v566_v3, %v568_v4  ;;  %v14383_v27 = vsel %vm442_vm0, %v564_v0, %v566_v3  ;;  %v4399_v0 = vrot.slane %v11652_v48, 6  ;;  %v11659_v3 = vld [vmem:[%s19060_s23 + $0x2c8] sm:$0xff]  ;;  %v11670_v48 = vld [vmem:[%s19060_s23 + $0x320] sm:$0xff] }
 0x177   :  { %763 = vperm.xlu1 %13353, %v529_v8   ;;  %759 = vperm.xlu0 %13352, %v527_v9   ;;  %v369_v8 = vld [vmem:[%s19060_s23 + $0x228] sm:$0xff]  ;;  %v557_v9 = vsel %vm442_vm0, %v554_v53, %v556_v54  ;;  %v11654_v54 = vld [vmem:[%s19060_s23 + $0x2a0] sm:$0xff] }
 0x178   :  { %v580_v23 = vrot.slane %v369_v8, 6  ;;  %v4403_v6 = vrot.slane %v11654_v54, 6  ;;  %v11660_v8 = vld [vmem:[%s19060_s23 + $0x2d0] sm:$0xff] }
 0x17a   :  { %v583_v33 = vsel %vm442_vm0, %v580_v23, %v582_v12  ;;  %v14420_v44 = vsel %vm442_vm0, %v578_v22, %v580_v23  ;;  %v4407_v12 = vrot.slane %v11656_v60, 6  ;;  %v4413_v23 = vrot.slane %v11659_v3, 6 }
 0x17b   :  { %771 = vperm.xlu1 %13353, %v533_v17   ;;  %767 = vperm.xlu0 %13352, %v531_v18   ;;  %v576_v17 = vrot.slane %v367_v2, 6  ;;  %v11642_v18 = vld [vmem:[%s19060_s23 + $0x240] sm:$0xff]  ;;  %v14435_v51 = vsel %vm587_vm1, %v583_v33, 0.0  ;;  %v11667_v33 = vld [vmem:[%s19060_s23 + $0x308] sm:$0xff]  ;;  %v14518_v35 = vsel %vm442_vm0, %v4403_v6, %v4405_v7  ;;  %v14524_v41 = vsel %vm442_vm0, %v4401_v1, %v4403_v6 }
 0x17c   :  { %v4379_v34 = vrot.slane %v11642_v18, 6  ;;  %v11658_v2 = vld [vmem:[%s19060_s23 + $0x2c0] sm:$0xff]  ;;  %v4429_v55 = vrot.slane %v11667_v33, 6  ;;  %v4437_v3 = vrot.slane %v11671_v49, 6  ;;  %v11675_v6 = vld [vmem:[%s19060_s23 + $0x348] sm:$0xff] }
 0x17d   :  { %v14423_v45 = vsel %vm442_vm0, %v576_v17, %v578_v22  ;;  %v4411_v22 = vrot.slane %v11658_v2, 6  ;;  %v4435_v2 = vrot.slane %v11670_v48, 6  ;;  %v14601_v33 = vld [vmem:[%s19060_s23 + $0x368] sm:$0xff] }
 0x17e   :  { %v14444_v56 = vsel %vm442_vm0, %v4378_v29, %v4379_v34  ;;  %v4415_v29 = vrot.slane %v11660_v8, 6  ;;  %v11677_v8 = vld [vmem:[%s19060_s23 + $0x358] sm:$0xff] }
 0x17f   :  { %779 = vperm.xlu1 %13353, %v537_v24   ;;  %775 = vperm.xlu0 %13352, %v535_v25   ;;  %v11643_v24 = vld [vmem:[%s19060_s23 + $0x248] sm:$0xff]  ;;  %v11644_v25 = vld [vmem:[%s19060_s23 + $0x250] sm:$0xff]  ;;  %v14612_v48 = vsel %vm442_vm0, %v4435_v2, %v4437_v3 }
 0x180   :  { %v4381_v39 = vrot.slane %v11643_v24, 6  ;;  %v4383_v40 = vrot.slane %v11644_v25, 6  ;;  %v11664_v24 = vld [vmem:[%s19060_s23 + $0x2f0] sm:$0xff]  ;;  %v11665_v25 = vld [vmem:[%s19060_s23 + $0x2f8] sm:$0xff] }
 0x182   :  { %v14453_v62 = vsel %vm442_vm0, %v4379_v34, %v4381_v39  ;;  %v14456_v63 = vsel %vm442_vm0, %v4381_v39, %v4383_v40 }
 0x183   :  { %787 = vperm.xlu1 %13353, %v541_v30   ;;  %783 = vperm.xlu0 %13352, %v539_v31   ;;  %v11645_v30 = vld [vmem:[%s19060_s23 + $0x258] sm:$0xff]  ;;  %v11646_v31 = vld [vmem:[%s19060_s23 + $0x260] sm:$0xff] }
 0x184   :  { %v4385_v46 = vrot.slane %v11645_v30, 6  ;;  %v4387_v47 = vrot.slane %v11646_v31, 6  ;;  %v11666_v31 = vld [vmem:[%s19060_s23 + $0x300] sm:$0xff] }
 0x185   :  { %v4427_v54 = vrot.slane %v11666_v31, 6 }
 0x186   :  { %v14465_v4 = vsel %vm442_vm0, %v4383_v40, %v4385_v46  ;;  %v14468_v5 = vsel %vm442_vm0, %v4385_v46, %v4387_v47  ;;  %v11668_v40 = vld [vmem:[%s19060_s23 + $0x310] sm:$0xff]  ;;  %v4425_v46 = vrot.slane %v11665_v25, 6 }
 0x187   :  { %795 = vperm.xlu1 %13353, %v545_v36   ;;  %791 = vperm.xlu0 %13352, %v543_v37   ;;  %v11648_v36 = vld [vmem:[%s19060_s23 + $0x270] sm:$0xff]  ;;  %v14405_v37 = vsel %vm442_vm0, %v574_v15, %v576_v17  ;;  %v11663_v15 = vld [vmem:[%s19060_s23 + $0x2e8] sm:$0xff]  ;;  %v4431_v60 = vrot.slane %v11668_v40, 6  ;;  %v4449_v40 = vrot.slane %v11677_v8, 6 }
 0x188   :  { %v4391_v53 = vrot.slane %v11648_v36, 6  ;;  %v4421_v39 = vrot.slane %v11663_v15, 6  ;;  %v14593_v31 = vsel %vm442_vm0, %v4425_v46, %v4427_v54 }
 0x18a   :  { %v14480_v11 = vsel %vm442_vm0, %v4389_v52, %v4391_v53  ;;  %v14491_v17 = vsel %vm442_vm0, %v4391_v53, %v4393_v57  ;;  %v14544_v53 = vsel %vm442_vm0, %v4411_v22, %v4413_v23 }
 0x18b   :  { %803 = vperm.xlu1 %13353, %v549_v42   ;;  %799 = vperm.xlu0 %13352, %v547_v43   ;;  %v11650_v42 = vld [vmem:[%s19060_s23 + $0x280] sm:$0xff]  ;;  %v11651_v43 = vld [vmem:[%s19060_s23 + $0x288] sm:$0xff] }
 0x18f   :  { %811 = vperm.xlu1 %13353, %v553_v58   ;;  %807 = vperm.xlu0 %13352, %v551_v59   ;;  %v4395_v58 = vrot.slane %v11650_v42, 6  ;;  %v4397_v59 = vrot.slane %v11651_v43, 6  ;;  %v4423_v43 = vrot.slane %v11664_v24, 6 }
 0x191   :  { %v14494_v18 = vsel %vm442_vm0, %v4395_v58, %v4397_v59  ;;  %v14515_v34 = vsel %vm442_vm0, %v4397_v59, %v4399_v0  ;;  %v14559_v59 = vsel %vm442_vm0, %v4413_v23, %v4415_v29  ;;  %v14582_v15 = vsel %vm442_vm0, %v4423_v43, %v4425_v46 }
 0x192   :  { %v14587_v25 = vsel %vm442_vm0, %v4421_v39, %v4423_v43 }
 0x193   :  { %819 = vperm.xlu1 %13353, %v557_v9   ;;  %815 = vperm.xlu0 %13352, %v555_v10   ;;  %v11661_v9 = vld [vmem:[%s19060_s23 + $0x2d8] sm:$0xff]  ;;  %v14477_v10 = vsel %vm442_vm0, %v4387_v47, %v4389_v52  ;;  %v14541_v52 = vsel %vm442_vm0, %v4405_v7, %v4407_v12  ;;  %v11676_v7 = vld [vmem:[%s19060_s23 + $0x350] sm:$0xff] }
 0x194   :  { %v4417_v30 = vrot.slane %v11661_v9, 6  ;;  %v11669_v47 = vld [vmem:[%s19060_s23 + $0x318] sm:$0xff] }
 0x197   :  { %827 = vperm.xlu1 %13353, %v561_v13   ;;  %823 = vperm.xlu0 %13352, %v559_v14   ;;  %v4409_v13 = vrot.slane %v11657_v61, 6  ;;  %v11662_v14 = vld [vmem:[%s19060_s23 + $0x2e0] sm:$0xff] }
 0x198   :  { %v4419_v36 = vrot.slane %v11662_v14, 6  ;;  %v11674_v61 = vld [vmem:[%s19060_s23 + $0x340] sm:$0xff] }
 0x199   :  { %v14527_v42 = vsel %vm442_vm0, %v4407_v12, %v4409_v13  ;;  %v14576_v12 = vld [vmem:[#allocation7] ss:$0 sm:$0xff] }
 0x19a   :  { %v14579_v14 = vsel %vm442_vm0, %v4417_v30, %v4419_v36 }
 0x19b   :  { %835 = vperm.xlu1 %13353, %v14368_v19   ;;  %831 = vperm.xlu0 %13352, %v14371_v20   ;;  %v14503_v19 = vsel %vm442_vm0, %v4393_v57, %v4395_v58  ;;  %v14506_v20 = vsel %vm442_vm0, %v4399_v0, %v4401_v1  ;;  %v11672_v57 = vld [vmem:[%s19060_s23 + $0x330] sm:$0xff]  ;;  %v11673_v58 = vld [vmem:[%s19060_s23 + $0x338] sm:$0xff]  ;;  %v14565_v0 = vsel %vm442_vm0, %v4419_v36, %v4421_v39  ;;  %v4433_v1 = vrot.slane %v11669_v47, 6 }
 0x19c   :  { %v4441_v23 = vrot.slane %v11673_v58, 6  ;;  %v4445_v36 = vrot.slane %v11675_v6, 6  ;;  %v4447_v39 = vrot.slane %v11676_v7, 6  ;;  %v14609_v47 = vsel %vm442_vm0, %v4429_v55, %v4431_v60  ;;  %v14621_v6 = vld [vmem:[#allocation4] ss:$0 sm:$0xff] }
 0x19d   :  { %v14606_v46 = vsel %vm442_vm0, %v4431_v60, %v4433_v1 }
 0x19f   :  { %843 = vperm.xlu1 %13353, %v14380_v26   ;;  %839 = vperm.xlu0 %13352, %v14383_v27   ;;  %v14553_v26 = vsel %vm442_vm0, %v4409_v13, %v4411_v22  ;;  %v14556_v27 = vsel %vm442_vm0, %v4415_v29, %v4417_v30  ;;  %v4439_v22 = vrot.slane %v11672_v57, 6  ;;  %v14590_v29 = vsel %vm442_vm0, %v4427_v54, %v4429_v55  ;;  %v11678_v30 = vld [vmem:[%s19060_s23 + $0x360] sm:$0xff] }
 0x1a0   :  { %v14615_v57 = vsel %vm442_vm0, %v4433_v1, %v4435_v2  ;;  %v4451_v58 = vrot.slane %v11678_v30, 6  ;;  %v14637_v30 = vsel %vm442_vm0, %v4447_v39, %v4449_v40 }
 0x1a1   :  { %v14627_v8 = vsel %vm442_vm0, %v4437_v3, %v4439_v22  ;;  %19067 = vst [vmem:[#allocation44_spill] sm:$0xff] %v14637_v30 }
 0x1a2   :  { %v600_v9 = vpop.permute.xlu1 %599  ;;  %v592_v13 = vpop.permute.xlu0 %591  ;;  %19064 = vst [vmem:[#allocation41_spill] sm:$0xff] %v14627_v8  ;;  %v14651_v30 = vsel %vm442_vm0, %v4449_v40, %v4451_v58 }
 0x1a3   :  { %v960_v24 = vmul.f32 %v14576_v12, %v600_v9  ;;  %851 = vperm.xlu1 %13353, %v14386_v28   ;;  %847 = vperm.xlu0 %13352, %v14395_v32   ;;  %v4443_v28 = vrot.slane %v11674_v61, 6  ;;  %v958_v43 = vmul.f32 %v14576_v12, %v592_v13  ;;  %v14618_v32 = vsel %vm442_vm0, %v4439_v22, %v4441_v23 }
 0x1a4   :  { %19063 = vst [vmem:[#allocation40_spill] sm:$0xff] %v14618_v32  ;;  %v883_v61 = vmul.f32 %v14621_v6, %v600_v9  ;;  %v881_v22 = vmul.f32 %v14621_v6, %v592_v13  ;;  %19071 = vst [vmem:[#allocation47_spill] sm:$0xff] %v14651_v30  ;;  %v14656_v9 = vld [vmem:[%s19060_s23 + $0x370] sm:$0xff] }
 0x1a5   :  { %v1104_v7 = vrot.slane %v960_v24, 1  ;;  %v14631_v1 = vsel %vm442_vm0, %v4443_v28, %v4445_v36  ;;  %v14634_v2 = vsel %vm442_vm0, %v4441_v23, %v4443_v28  ;;  %v14640_v24 = vsel %vm442_vm0, %v4445_v36, %v4447_v39  ;;  %v14658_v36 = vld [vmem:[#allocation9] ss:$0 sm:$0xff] }
 0x1a6   :  { %v604_v49 = vpop.permute.xlu1 %603  ;;  %v596_v54 = vpop.permute.xlu0 %595  ;;  %19065 = vst [vmem:[#allocation42_spill] sm:$0xff] %v14631_v1  ;;  %19066 = vst [vmem:[#allocation43_spill] sm:$0xff] %v14634_v2  ;;  %v19069_v23 = vrot.slane %v14601_v33, 6 }
 0x1a7   :  { %v961_v55 = vmul.f32 %v14576_v12, %v604_v49  ;;  %v959_v60 = vmul.f32 %v14576_v12, %v596_v54  ;;  %859 = vperm.xlu1 %13353, %v14405_v37   ;;  %855 = vperm.xlu0 %13352, %v14408_v38   ;;  %19068 = vst [vmem:[#allocation45_spill] sm:$0xff] %v14640_v24  ;;  %v1101_v37 = vrot.slane %v958_v43, 1 }
 0x1a8   :  { %v882_v38 = vmul.f32 %v14621_v6, %v596_v54  ;;  %v14648_v28 = vsel %vm442_vm0, %v4451_v58, %v19069_v23  ;;  %v884_v13 = vmul.f32 %v14621_v6, %v604_v49  ;;  %v14670_v49 = vld [vmem:[%s19060_s23 + $0x378] sm:$0xff] }
 0x1a9   :  { %v1106_v21 = vrot.slane %v961_v55, 1  ;;  %v1102_v3 = vrot.slane %v959_v60, 1  ;;  %19070 = vst [vmem:[#allocation46_spill] sm:$0xff] %v14648_v28  ;;  %19072 = vst [vmem:[#allocation48_spill] sm:$0xff] %v14670_v49 }
 0x1aa   :  { %v612_v8 = vpop.permute.xlu1 %611  ;;  %v608_v1 = vpop.permute.xlu0 %607 }
 0x1ab   :  { %v1107_v39 = vsel %vm1100_vm2, %v1104_v7, %v1106_v21  ;;  %v1103_v43 = vsel %vm1100_vm2, %v1101_v37, %v1102_v3  ;;  %v1105_v54 = vsel %vm1100_vm2, %v1102_v3, %v1104_v7  ;;  %867 = vperm.xlu1 %13353, %v14420_v44   ;;  %v963_v60 = vmul.f32 %v14576_v12, %v612_v8 }
 0x1ac   :  { %v1315_v55 = vadd.f32 %v1107_v39, %v883_v61  ;;  %v1313_v40 = vadd.f32 %v1103_v43, %v881_v22  ;;  %v1314_v58 = vadd.f32 %v1105_v54, %v882_v38  ;;  %863 = vperm.xlu0 %13352, %v14423_v45   ;;  %v886_v23 = vmul.f32 %v14621_v6, %v612_v8 }
 0x1ad   :  { %v885_v37 = vmul.f32 %v14621_v6, %v608_v1  ;;  %v962_v7 = vmul.f32 %v14576_v12, %v608_v1  ;;  %v1110_v22 = vrot.slane %v963_v60, 1 }
 0x1ae   :  { %v14677_v61 = vadd.f32 %v14658_v36, %v1315_v55  ;;  %v1390_v3 = vadd.f32 %v14658_v36, %v1313_v40  ;;  %v1391_v45 = vadd.f32 %v14658_v36, %v1314_v58  ;;  %v620_v38 = vpop.permute.xlu1 %619  ;;  %v616_v39 = vpop.permute.xlu0 %615 }
 0x1af   :  { %v1108_v43 = vrot.slane %v962_v7, 1  ;;  %v14682_v54 = vmul.f32 %v14621_v6, %v620_v38  ;;  %v14685_v8 = vmul.f32 %v14576_v12, %v620_v38  ;;  %4525 = vperm.xlu1 %13353, %v14432_v50   ;;  %v964_v58 = vmul.f32 %v14576_v12, %v616_v39 }
 0x1b0   :  { %v1463_v55 = vmax.f32 %v14677_v61, 0.0  ;;  %v1461_v44 = vmax.f32 %v1390_v3, 0.0  ;;  %v1462_v40 = vmax.f32 %v1391_v45, 0.0  ;;  %872 = vperm.xlu0 %13352, %v14435_v51   ;;  %v887_v38 = vmul.f32 %v14621_v6, %v616_v39 }
 0x1b1   :  { %v1109_v60 = vsel %vm1100_vm2, %v1106_v21, %v1108_v43  ;;  %v1111_v7 = vsel %vm1100_vm2, %v1108_v43, %v1110_v22  ;;  %v1114_v30 = vrot.slane %v14685_v8, 1  ;;  %v1112_v45 = vrot.slane %v964_v58, 1 }
 0x1b2   :  { %v1606_v28 = vrot.slane %v1463_v55, 1  ;;  %v1603_v50 = vrot.slane %v1461_v44, 1  ;;  %v1604_v24 = vrot.slane %v1462_v40, 1  ;;  %v1316_v1 = vadd.f32 %v1109_v60, %v884_v13  ;;  %v628_v2 = vpop.permute.xlu1 %627  ;;  %v624_v61 = vpop.permute.xlu0 %623 }
 0x1b3   :  { %v1317_v3 = vadd.f32 %v1111_v7, %v885_v37  ;;  %v14697_v32 = vmul.f32 %v14576_v12, %v628_v2  ;;  %4533 = vperm.xlu1 %13353, %v14453_v62   ;;  %v19073_v21 = vrot.slane %v14670_v49, 6  ;;  %v19074_v51 = vrot.slane %v14656_v9, 6 }
 0x1b4   :  { %v1605_v39 = vsel %vm1100_vm2, %v1603_v50, %v1604_v24  ;;  %v1607_v13 = vsel %vm1100_vm2, %v1604_v24, %v1606_v28  ;;  %v1393_v8 = vadd.f32 %v14658_v36, %v1316_v1  ;;  %v14711_v37 = vmul.f32 %v14621_v6, %v628_v2  ;;  %4529 = vperm.xlu0 %13352, %v14444_v56  }
 0x1b5   :  { %v14705_v43 = vsel %vm442_vm0, %v19074_v51, %v19073_v21  ;;  %v1815_v58 = vmax.f32 %v1461_v44, %v1605_v39  ;;  %v1816_v62 = vmax.f32 %v1462_v40, %v1607_v13  ;;  %v1394_v60 = vadd.f32 %v14658_v36, %v1317_v3 }
 0x1b6   :  { %19075 = vst [vmem:[#allocation49_spill] sm:$0xff] %v14705_v43  ;;  %v1113_v7 = vsel %vm1100_vm2, %v1110_v22, %v1112_v45  ;;  %v1464_v49 = vmax.f32 %v1393_v8, 0.0  ;;  %v1115_v21 = vsel %vm1100_vm2, %v1112_v45, %v1114_v30  ;;  %v889_v50 = vmul.f32 %v14621_v6, %v624_v61  ;;  %v636_v24 = vpop.permute.xlu1 %635  ;;  %v632_v43 = vpop.permute.xlu0 %631 }
 0x1b7   :  { %v1318_v51 = vadd.f32 %v1113_v7, %v886_v23  ;;  %1887 = vst.msk [vmem:[#allocation2] sm:$0xff] %vm1886_vm3, %v1815_v58  ;;  %1888 = vst.msk [vmem:[#allocation2 + $0x8] sm:$0xff] %vm1886_vm3, %v1816_v62  ;;  %v1465_v2 = vmax.f32 %v1394_v60, 0.0  ;;  %v1319_v56 = vadd.f32 %v1115_v21, %v887_v38  ;;  %v1118_v44 = vrot.slane %v14697_v32, 1  ;;  %4541 = vperm.xlu1 %13353, %v14465_v4  }
 0x1b8   :  { %v966_v1 = vmul.f32 %v14576_v12, %v624_v61  ;;  %v1608_v22 = vrot.slane %v1464_v49, 1  ;;  %v14725_v23 = vmul.f32 %v14621_v6, %v636_v24  ;;  %v14728_v3 = vmul.f32 %v14576_v12, %v636_v24  ;;  %4537 = vperm.xlu0 %13352, %v14456_v63  }
 0x1b9   :  { %v1395_v40 = vadd.f32 %v14658_v36, %v1318_v51  ;;  %v1610_v45 = vrot.slane %v1465_v2, 1  ;;  %v14732_v38 = vadd.f32 %v14658_v36, %v1319_v56  ;;  %v968_v61 = vmul.f32 %v14576_v12, %v632_v43 }
 0x1ba   :  { %v1116_v32 = vrot.slane %v966_v1, 1  ;;  %v1609_v4 = vsel %vm1100_vm2, %v1606_v28, %v1608_v22  ;;  %v1122_v13 = vrot.slane %v14728_v3, 1  ;;  %v891_v8 = vmul.f32 %v14621_v6, %v632_v43  ;;  %v644_v58 = vpop.permute.xlu1 %643  ;;  %v640_v62 = vpop.permute.xlu0 %639 }
 0x1bb   :  { %v1466_v39 = vmax.f32 %v1395_v40, 0.0  ;;  %v1611_v60 = vsel %vm1100_vm2, %v1608_v22, %v1610_v45  ;;  %v1817_v7 = vmax.f32 %v1463_v55, %v1609_v4  ;;  %v1467_v63 = vmax.f32 %v14732_v38, 0.0  ;;  %4549 = vperm.xlu1 %13353, %v14477_v10  }
 0x1bc   :  { %v1117_v21 = vsel %vm1100_vm2, %v1114_v30, %v1116_v32  ;;  %v1818_v51 = vmax.f32 %v1464_v49, %v1611_v60  ;;  %v1119_v28 = vsel %vm1100_vm2, %v1116_v32, %v1118_v44  ;;  %4545 = vperm.xlu0 %13352, %v14468_v5   ;;  %v1120_v22 = vrot.slane %v968_v61, 1 }
 0x1bd   :  { %v1612_v24 = vrot.slane %v1466_v39, 1  ;;  %v1320_v56 = vadd.f32 %v1117_v21, %v14682_v54  ;;  %1889 = vst.msk [vmem:[#allocation2 + $0x10] sm:$0xff] %vm1886_vm3, %v1817_v7  ;;  %v1614_v43 = vrot.slane %v1467_v63, 1  ;;  %v1321_v1 = vadd.f32 %v1119_v28, %v889_v50 }
 0x1be   :  { %v19076_v55 = vrot.slane %v14656_v9, 6  ;;  %v19077_v40 = vrot.slane %v14601_v33, 6  ;;  %1890 = vst.msk [vmem:[#allocation2 + $0x18] sm:$0xff] %vm1886_vm3, %v1818_v51  ;;  %v14757_v5 = vmul.f32 %v14621_v6, %v644_v58  ;;  %v971_v54 = vmul.f32 %v14576_v12, %v644_v58  ;;  %v652_v50 = vpop.permute.xlu1 %651  ;;  %v648_v3 = vpop.permute.xlu0 %647 }
 0x1bf   :  { %v1613_v10 = vsel %vm1100_vm2, %v1610_v45, %v1612_v24  ;;  %v1397_v49 = vadd.f32 %v14658_v36, %v1320_v56  ;;  %v1615_v9 = vsel %vm1100_vm2, %v1612_v24, %v1614_v43  ;;  %v1398_v33 = vadd.f32 %v14658_v36, %v1321_v1  ;;  %4557 = vperm.xlu1 %13353, %v14491_v17  }
 0x1c0   :  { %v14751_v30 = vsel %vm442_vm0, %v19077_v40, %v19076_v55  ;;  %v1819_v38 = vmax.f32 %v1465_v2, %v1613_v10  ;;  %v1121_v32 = vsel %vm1100_vm2, %v1118_v44, %v1120_v22  ;;  %v1820_v61 = vmax.f32 %v1466_v39, %v1615_v9  ;;  %4553 = vperm.xlu0 %13352, %v14480_v11  }
 0x1c1   :  { %v1468_v45 = vmax.f32 %v1397_v49, 0.0  ;;  %v1123_v4 = vsel %vm1100_vm2, %v1120_v22, %v1122_v13  ;;  %v1322_v60 = vadd.f32 %v1121_v32, %v14711_v37  ;;  %v1469_v58 = vmax.f32 %v1398_v33, 0.0 }
 0x1c2   :  { %1891 = vst.msk [vmem:[#allocation2 + $0x20] sm:$0xff] %vm1886_vm3, %v1819_v38  ;;  %v1323_v7 = vadd.f32 %v1123_v4, %v891_v8  ;;  %v893_v2 = vmul.f32 %v14621_v6, %v640_v62  ;;  %v970_v21 = vmul.f32 %v14576_v12, %v640_v62  ;;  %1892 = vst.msk [vmem:[#allocation2 + $0x28] sm:$0xff] %vm1886_vm3, %v1820_v61  ;;  %v1126_v39 = vrot.slane %v971_v54, 1  ;;  %v660_v37 = vpop.permute.xlu1 %659  ;;  %v656_v24 = vpop.permute.xlu0 %655 }
 0x1c3   :  { %v1616_v44 = vrot.slane %v1468_v45, 1  ;;  %v1399_v17 = vadd.f32 %v14658_v36, %v1322_v60  ;;  %v14773_v51 = vmul.f32 %v14576_v12, %v652_v50  ;;  %v1618_v11 = vrot.slane %v1469_v58, 1  ;;  %4565 = vperm.xlu1 %13353, %v14494_v18  }
 0x1c4   :  { %v14776_v28 = vadd.f32 %v14658_v36, %v1323_v7  ;;  %v1124_v8 = vrot.slane %v970_v21, 1  ;;  %v14779_v56 = vmul.f32 %v14621_v6, %v652_v50  ;;  %v972_v55 = vmul.f32 %v14576_v12, %v648_v3  ;;  %4561 = vperm.xlu0 %13352, %v14503_v19  }
 0x1c5   :  { %v1617_v62 = vsel %vm1100_vm2, %v1614_v43, %v1616_v44  ;;  %v1470_v1 = vmax.f32 %v1399_v17, 0.0  ;;  %v1130_v22 = vrot.slane %v14773_v51, 1  ;;  %v1619_v40 = vsel %vm1100_vm2, %v1616_v44, %v1618_v11 }
 0x1c6   :  { %v1821_v10 = vmax.f32 %v1467_v63, %v1617_v62  ;;  %v1471_v49 = vmax.f32 %v14776_v28, 0.0  ;;  %v1125_v54 = vsel %vm1100_vm2, %v1122_v13, %v1124_v8  ;;  %v1822_v50 = vmax.f32 %v1468_v45, %v1619_v40  ;;  %v668_v38 = vpop.permute.xlu1 %667  ;;  %v14791_v33 = vpop.permute.xlu0 %663 }
 0x1c7   :  { %v1620_v9 = vrot.slane %v1470_v1, 1  ;;  %v1127_v18 = vsel %vm1100_vm2, %v1124_v8, %v1126_v39  ;;  %v1324_v43 = vadd.f32 %v1125_v54, %v14725_v23  ;;  %v895_v61 = vmul.f32 %v14621_v6, %v648_v3  ;;  %4573 = vperm.xlu1 %13353, %v14506_v20  }
 0x1c8   :  { %1893 = vst.msk [vmem:[#allocation2 + $0x30] sm:$0xff] %vm1886_vm3, %v1821_v10  ;;  %v1622_v32 = vrot.slane %v1471_v49, 1  ;;  %v1325_v19 = vadd.f32 %v1127_v18, %v893_v2  ;;  %v1128_v63 = vrot.slane %v972_v55, 1  ;;  %1894 = vst.msk [vmem:[#allocation2 + $0x38] sm:$0xff] %vm1886_vm3, %v1822_v50  ;;  %v14800_v23 = vmul.f32 %v14621_v6, %v660_v37  ;;  %4569 = vperm.xlu0 %13352, %v14515_v34  }
 0x1c9   :  { %v1621_v13 = vsel %vm1100_vm2, %v1618_v11, %v1620_v9  ;;  %v1401_v45 = vadd.f32 %v14658_v36, %v1324_v43  ;;  %v975_v4 = vmul.f32 %v14576_v12, %v660_v37  ;;  %v974_v28 = vmul.f32 %v14576_v12, %v656_v24 }
 0x1ca   :  { %v1623_v60 = vsel %vm1100_vm2, %v1620_v9, %v1622_v32  ;;  %v1823_v7 = vmax.f32 %v1469_v58, %v1621_v13  ;;  %v1402_v3 = vadd.f32 %v14658_v36, %v1325_v19  ;;  %v1129_v20 = vsel %vm1100_vm2, %v1126_v39, %v1128_v63  ;;  %v14809_v51 = vpop.permute.xlu1 %675  ;;  %v14811_v11 = vpop.permute.xlu0 %671  ;;  %v1959_v9 = vld [vmem:[#allocation2] ss:$2 sm:$0xff] }
 0x1cb   :  { %v1824_v2 = vmax.f32 %v1470_v1, %v1623_v60  ;;  %v1472_v21 = vmax.f32 %v1401_v45, 0.0  ;;  %v1131_v44 = vsel %vm1100_vm2, %v1128_v63, %v1130_v22  ;;  %v1326_v17 = vadd.f32 %v1129_v20, %v14757_v5  ;;  %4581 = vperm.xlu1 %13353, %v14518_v35   ;;  %v14840_v63 = vld [vmem:[#allocation2 + $0x10] ss:$2 sm:$0xff] }
 0x1cc   :  { %1895 = vst.msk [vmem:[#allocation2 + $0x40] sm:$0xff] %vm1886_vm3, %v1823_v7  ;;  %v1473_v34 = vmax.f32 %v1402_v3, 0.0  ;;  %v1327_v37 = vadd.f32 %v1131_v44, %v895_v61  ;;  %v897_v58 = vmul.f32 %v14621_v6, %v656_v24  ;;  %v1134_v5 = vrot.slane %v975_v4, 1  ;;  %4577 = vperm.xlu0 %13352, %v14524_v41  }
 0x1cd   :  { %1896 = vst.msk [vmem:[#allocation2 + $0x48] sm:$0xff] %vm1886_vm3, %v1824_v2  ;;  %v1624_v39 = vrot.slane %v1472_v21, 1  ;;  %v1403_v8 = vadd.f32 %v14658_v36, %v1326_v17  ;;  %v14820_v62 = vmul.f32 %v14576_v12, %v668_v38  ;;  %v1132_v40 = vrot.slane %v974_v28, 1 }
 0x1ce   :  { %v1626_v1 = vrot.slane %v1473_v34, 1  ;;  %v14824_v55 = vadd.f32 %v14658_v36, %v1327_v37  ;;  %v14827_v24 = vmul.f32 %v14621_v6, %v668_v38  ;;  %v976_v50 = vmul.f32 %v14576_v12, %v14791_v33  ;;  %v14833_v18 = vpop.permute.xlu1 %683  ;;  %v14835_v41 = vpop.permute.xlu0 %679 }
 0x1cf   :  { %v1625_v35 = vsel %vm1100_vm2, %v1622_v32, %v1624_v39  ;;  %v1474_v10 = vmax.f32 %v1403_v8, 0.0  ;;  %v1138_v54 = vrot.slane %v14820_v62, 1  ;;  %v1133_v38 = vsel %vm1100_vm2, %v1130_v22, %v1132_v40  ;;  %4589 = vperm.xlu1 %13353, %v14527_v42  }
 0x1d0   :  { %v1627_v43 = vsel %vm1100_vm2, %v1624_v39, %v1626_v1  ;;  %v1825_v19 = vmax.f32 %v1471_v49, %v1625_v35  ;;  %v1475_v61 = vmax.f32 %v14824_v55, 0.0  ;;  %v1135_v45 = vsel %vm1100_vm2, %v1132_v40, %v1134_v5  ;;  %4585 = vperm.xlu0 %13352, %v14541_v52  }
 0x1d1   :  { %v1826_v32 = vmax.f32 %v1472_v21, %v1627_v43  ;;  %v1628_v13 = vrot.slane %v1474_v10, 1  ;;  %v1328_v4 = vadd.f32 %v1133_v38, %v14779_v56  ;;  %v1329_v49 = vadd.f32 %v1135_v45, %v897_v58 }
 0x1d2   :  { %1897 = vst.msk [vmem:[#allocation2 + $0x50] sm:$0xff] %vm1886_vm3, %v1825_v19  ;;  %v1630_v60 = vrot.slane %v1475_v61, 1  ;;  %v1136_v7 = vrot.slane %v976_v50, 1  ;;  %v2066_v3 = vrot.slane %v1959_v9, 6  ;;  %v899_v20 = vmul.f32 %v14621_v6, %v14791_v33  ;;  %v14856_v17 = vpop.permute.xlu1 %691  ;;  %v14863_v39 = vpop.permute.xlu0 %687  ;;  %v1963_v9 = vld [vmem:[#allocation2 + $0x20] ss:$2 sm:$0xff] }
 0x1d3   :  { %1898 = vst.msk [vmem:[#allocation2 + $0x58] sm:$0xff] %vm1886_vm3, %v1826_v32  ;;  %v1629_v22 = vsel %vm1100_vm2, %v1626_v1, %v1628_v13  ;;  %v1405_v42 = vadd.f32 %v14658_v36, %v1328_v4  ;;  %v2067_v2 = vrot.slane %v14840_v63, 6  ;;  %v1406_v21 = vadd.f32 %v14658_v36, %v1329_v49  ;;  %4597 = vperm.xlu1 %13353, %v14544_v53  }
 0x1d4   :  { %v1631_v56 = vsel %vm1100_vm2, %v1628_v13, %v1630_v60  ;;  %v1827_v52 = vmax.f32 %v1473_v34, %v1629_v22  ;;  %v1137_v44 = vsel %vm1100_vm2, %v1134_v5, %v1136_v7  ;;  %v1139_v28 = vsel %vm1100_vm2, %v1136_v7, %v1138_v54  ;;  %4593 = vperm.xlu0 %13352, %v14553_v26  }
 0x1d5   :  { %v1828_v37 = vmax.f32 %v1474_v10, %v1631_v56  ;;  %v1476_v58 = vmax.f32 %v1405_v42, 0.0  ;;  %v1330_v33 = vadd.f32 %v1137_v44, %v14800_v23  ;;  %v1477_v34 = vmax.f32 %v1406_v21, 0.0  ;;  %v14920_v21 = vld [vmem:[#allocation2 + $0x30] ss:$2 sm:$0xff] }
 0x1d6   :  { %1899 = vst.msk [vmem:[#allocation2 + $0x60] sm:$0xff] %vm1886_vm3, %v1827_v52  ;;  %v1331_v8 = vadd.f32 %v1139_v28, %v899_v20  ;;  %v14868_v5 = vsel %vm442_vm0, %v2066_v3, %v2067_v2  ;;  %v14871_v53 = vsel %vm442_vm0, 0.0, %v2066_v3  ;;  %v14882_v10 = vmul.f32 %v14621_v6, %v14809_v51  ;;  %v14895_v4 = vpop.permute.xlu1 %699  ;;  %v14897_v3 = vpop.permute.xlu0 %695 }
 0x1d7   :  { %1900 = vst.msk [vmem:[#allocation2 + $0x68] sm:$0xff] %vm1886_vm3, %v1828_v37  ;;  %v1632_v1 = vrot.slane %v1476_v58, 1  ;;  %v1407_v55 = vadd.f32 %v14658_v36, %v1330_v33  ;;  %v2144_v23 = vrot.slane %v14871_v53, 1  ;;  %v2145_v40 = vrot.slane %v14868_v5, 1  ;;  %4605 = vperm.xlu1 %13353, %v14556_v27  }
 0x1d8   :  { %v1634_v26 = vrot.slane %v1477_v34, 1  ;;  %v14878_v35 = vadd.f32 %v14658_v36, %v1331_v8  ;;  %v979_v50 = vmul.f32 %v14576_v12, %v14809_v51  ;;  %v978_v63 = vmul.f32 %v14576_v12, %v14811_v11  ;;  %4601 = vperm.xlu0 %13352, %v14559_v59  }
 0x1d9   :  { %v1633_v43 = vsel %vm1100_vm2, %v1630_v60, %v1632_v1  ;;  %v1478_v19 = vmax.f32 %v1407_v55, 0.0  ;;  %v2146_v38 = vsel %vm1100_vm2, %v2144_v23, %v2145_v40  ;;  %v2069_v7 = vrot.slane %v1963_v9, 6  ;;  %v14959_v9 = vld [vmem:[#allocation2 + $0x40] ss:$2 sm:$0xff] }
 0x1da   :  { %v1635_v32 = vsel %vm1100_vm2, %v1632_v1, %v1634_v26  ;;  %v1829_v13 = vmax.f32 %v1475_v61, %v1633_v43  ;;  %v1479_v45 = vmax.f32 %v14878_v35, 0.0  ;;  %12210 = vmatprep.mubr.msk.f32.mxu0 %vm1886_vm3, %v2146_v38  ;;  %v1142_v51 = vrot.slane %v979_v50, 1 }
 0x1db   :  { %v1830_v27 = vmax.f32 %v1476_v58, %v1635_v32  ;;  %v1636_v60 = vrot.slane %v1478_v19, 1  ;;  %v1140_v49 = vrot.slane %v978_v63, 1  ;;  %v901_v61 = vmul.f32 %v14621_v6, %v14811_v11  ;;  %4613 = vperm.xlu1 %13353, %v14565_v0  }
 0x1dc   :  { %1901 = vst.msk [vmem:[#allocation2 + $0x70] sm:$0xff] %vm1886_vm3, %v1829_v13  ;;  %v1638_v59 = vrot.slane %v1479_v45, 1  ;;  %v14906_v22 = vmul.f32 %v14621_v6, %v14833_v18  ;;  %v981_v42 = vmul.f32 %v14576_v12, %v14833_v18  ;;  %v14918_v11 = vsel %vm442_vm0, %v2067_v2, %v2069_v7  ;;  %4609 = vperm.xlu0 %13352, %v14579_v14  }
 0x1dd   :  { %1902 = vst.msk [vmem:[#allocation2 + $0x78] sm:$0xff] %vm1886_vm3, %v1830_v27  ;;  %v1637_v20 = vsel %vm1100_vm2, %v1634_v26, %v1636_v60  ;;  %v1141_v56 = vsel %vm1100_vm2, %v1138_v54, %v1140_v49  ;;  %v1143_v52 = vsel %vm1100_vm2, %v1140_v49, %v1142_v51  ;;  %v2147_v62 = vrot.slane %v14918_v11, 1 }
 0x1de   :  { %v1639_v18 = vsel %vm1100_vm2, %v1636_v60, %v1638_v59  ;;  %v1831_v0 = vmax.f32 %v1477_v34, %v1637_v20  ;;  %v1332_v44 = vadd.f32 %v1141_v56, %v14827_v24  ;;  %v1333_v37 = vadd.f32 %v1143_v52, %v901_v61  ;;  %v14936_v34 = vpop.permute.xlu1 %707 }
 0x1df   :  { %v1832_v58 = vmax.f32 %v1478_v19, %v1639_v18  ;;  %v1146_v28 = vrot.slane %v981_v42, 1  ;;  %v980_v54 = vmul.f32 %v14576_v12, %v14835_v41  ;;  %v903_v14 = vmul.f32 %v14621_v6, %v14835_v41  ;;  %4621 = vperm.xlu1 %13353, %v14582_v15   ;;  %v14949_v41 = vpop.permute.xlu0 %703 }
 0x1e0   :  { %1903 = vst.msk [vmem:[#allocation2 + $0x80] sm:$0xff] %vm1886_vm3, %v1831_v0  ;;  %v1409_v2 = vadd.f32 %v14658_v36, %v1332_v44  ;;  %v14931_v33 = vadd.f32 %v14658_v36, %v1333_v37  ;;  %v2071_v24 = vrot.slane %v14920_v21, 6  ;;  %v2148_v8 = vsel %vm1100_vm2, %v2145_v40, %v2147_v62  ;;  %4617 = vperm.xlu0 %13352, %v14587_v25   ;;  %v14987_v44 = vld [vmem:[#allocation2 + $0x50] ss:$2 sm:$0xff] }
 0x1e1   :  { %1904 = vst.msk [vmem:[#allocation2 + $0x88] sm:$0xff] %vm1886_vm3, %v1832_v58  ;;  %v1144_v1 = vrot.slane %v980_v54, 1  ;;  %v14943_v55 = vmul.f32 %v14621_v6, %v14856_v17  ;;  %v14947_v23 = vmul.f32 %v14576_v12, %v14856_v17  ;;  %12211 = vmatmul.mubr.msk.f32.vlgmr.msra.gmra.mrb[0].mxu0 %vm1886_vm3, %v2148_v8  ;;  %v982_v50 = vmul.f32 %v14576_v12, %v14863_v39 }
 0x1e2   :  { %v1480_v26 = vmax.f32 %v1409_v2, 0.0  ;;  %v1481_v15 = vmax.f32 %v14931_v33, 0.0  ;;  %v14955_v40 = vsel %vm442_vm0, %v2069_v7, %v2071_v24  ;;  %12781 = vmatpush3.bf16.msra.mxu0 %v14273_v16  ;;  %v2073_v49 = vrot.slane %v14959_v9, 6 }
 0x1e3   :  { %v1145_v17 = vsel %vm1100_vm2, %v1142_v51, %v1144_v1  ;;  %v1147_v43 = vsel %vm1100_vm2, %v1144_v1, %v1146_v28  ;;  %v2149_v19 = vrot.slane %v14955_v40, 1  ;;  %v1150_v25 = vrot.slane %v14947_v23, 1  ;;  %4629 = vperm.xlu1 %13353, %v14590_v29   ;;  %v14978_v29 = vpop.permute.xlu1 %715  ;;  %v14984_v52 = vpop.permute.xlu0 %711 }
 0x1e4   :  { %v1640_v38 = vrot.slane %v1480_v26, 1  ;;  %v1642_v63 = vrot.slane %v1481_v15, 1  ;;  %v1334_v32 = vadd.f32 %v1145_v17, %v14882_v10  ;;  %v1335_v13 = vadd.f32 %v1147_v43, %v903_v14  ;;  %4625 = vperm.xlu0 %13352, %v14593_v31  }
 0x1e5   :  { %v2150_v27 = vsel %vm1100_vm2, %v2147_v62, %v2149_v19  ;;  %v905_v51 = vmul.f32 %v14621_v6, %v14863_v39  ;;  %v1148_v60 = vrot.slane %v982_v50, 1  ;;  %v14993_v35 = vsel %vm442_vm0, %v2071_v24, %v2073_v49 }
 0x1e6   :  { %v1641_v7 = vsel %vm1100_vm2, %v1638_v59, %v1640_v38  ;;  %v1643_v61 = vsel %vm1100_vm2, %v1640_v38, %v1642_v63  ;;  %v1411_v42 = vadd.f32 %v14658_v36, %v1334_v32  ;;  %v1412_v10 = vadd.f32 %v14658_v36, %v1335_v13  ;;  %12213 = vmatprep.mubr.msk.f32.mxu0 %vm1886_vm3, %v2150_v27 }
 0x1e7   :  { %v1833_v39 = vmax.f32 %v1479_v45, %v1641_v7  ;;  %v1834_v20 = vmax.f32 %v1480_v26, %v1643_v61  ;;  %v1149_v56 = vsel %vm1100_vm2, %v1146_v28, %v1148_v60  ;;  %v1151_v31 = vsel %vm1100_vm2, %v1148_v60, %v1150_v25  ;;  %4637 = vperm.xlu1 %13353, %v14606_v46   ;;  %v15014_v1 = vpop.permute.xlu1 %723  ;;  %v15019_v17 = vpop.permute.xlu0 %719  ;;  %v19078_v60 = vld [vmem:[#allocation40_spill] sm:$0xff] }
 0x1e8   :  { %v1482_v59 = vmax.f32 %v1411_v42, 0.0  ;;  %v1483_v21 = vmax.f32 %v1412_v10, 0.0  ;;  %v1336_v18 = vadd.f32 %v1149_v56, %v14906_v22  ;;  %v1337_v0 = vadd.f32 %v1151_v31, %v905_v51  ;;  %4633 = vperm.xlu0 %13352, %v14609_v47   ;;  %v1971_v51 = vld [vmem:[#allocation2 + $0x60] ss:$2 sm:$0xff]  ;;  %v15050_v31 = vld [vmem:[#allocation2 + $0x70] ss:$2 sm:$0xff] }
 0x1e9   :  { %1905 = vst.msk [vmem:[#allocation2 + $0x90] sm:$0xff] %vm1886_vm3, %v1833_v39  ;;  %1906 = vst.msk [vmem:[#allocation2 + $0x98] sm:$0xff] %vm1886_vm3, %v1834_v20  ;;  %v14997_v45 = vmul.f32 %v14576_v12, %v14895_v4  ;;  %v907_v37 = vmul.f32 %v14621_v6, %v14897_v3  ;;  %v984_v22 = vmul.f32 %v14576_v12, %v14897_v3  ;;  %v2151_v54 = vrot.slane %v14993_v35, 1  ;;  %v19079_v42 = vld [vmem:[#allocation41_spill] sm:$0xff] }
 0x1ea   :  { %v1644_v46 = vrot.slane %v1482_v59, 1  ;;  %v1646_v58 = vrot.slane %v1483_v21, 1  ;;  %v1413_v62 = vadd.f32 %v14658_v36, %v1336_v18  ;;  %v15006_v28 = vadd.f32 %v14658_v36, %v1337_v0 }
 0x1eb   :  { %v1154_v2 = vrot.slane %v14997_v45, 1  ;;  %v1152_v33 = vrot.slane %v984_v22, 1  ;;  %v2075_v14 = vrot.slane %v14987_v44, 6  ;;  %4645 = vperm.xlu1 %13353, %v14612_v48   ;;  %v2152_v50 = vsel %vm1100_vm2, %v2149_v19, %v2151_v54  ;;  %v15064_v44 = vpop.permute.xlu0 %727  ;;  %v19082_v45 = vld [vmem:[#allocation44_spill] sm:$0xff] }
 0x1ec   :  { %v1645_v24 = vsel %vm1100_vm2, %v1642_v63, %v1644_v46  ;;  %v1647_v3 = vsel %vm1100_vm2, %v1644_v46, %v1646_v58  ;;  %v1484_v8 = vmax.f32 %v1413_v62, 0.0  ;;  %v1485_v47 = vmax.f32 %v15006_v28, 0.0  ;;  %4641 = vperm.xlu0 %13352, %v14615_v57   ;;  %12214 = vmatmul.mubr.msk.f32.gmra.mrb[2].mxu0 %vm1886_vm3, %v2152_v50  ;;  %v19080_v62 = vld [vmem:[#allocation42_spill] sm:$0xff] }
 0x1ed   :  { %v1835_v23 = vmax.f32 %v1481_v15, %v1645_v24  ;;  %v1836_v26 = vmax.f32 %v1482_v59, %v1647_v3  ;;  %v1153_v9 = vsel %vm1100_vm2, %v1150_v25, %v1152_v33  ;;  %v1155_v63 = vsel %vm1100_vm2, %v1152_v33, %v1154_v2  ;;  %v15052_v59 = vpop.permute.xlu1 %731  ;;  %v19081_v24 = vld [vmem:[#allocation43_spill] sm:$0xff] }
 0x1ee   :  { %v1648_v43 = vrot.slane %v1484_v8, 1  ;;  %v1650_v38 = vrot.slane %v1485_v47, 1  ;;  %v1338_v48 = vadd.f32 %v1153_v9, %v14943_v55  ;;  %v908_v15 = vmul.f32 %v14621_v6, %v14895_v4 }
 0x1ef   :  { %1907 = vst.msk [vmem:[#allocation2 + $0xa0] sm:$0xff] %vm1886_vm3, %v1835_v23  ;;  %1908 = vst.msk [vmem:[#allocation2 + $0xa8] sm:$0xff] %vm1886_vm3, %v1836_v26  ;;  %v1339_v19 = vadd.f32 %v1155_v63, %v907_v37  ;;  %v15032_v57 = vsel %vm442_vm0, %v2073_v49, %v2075_v14  ;;  %v987_v25 = vmul.f32 %v14576_v12, %v14936_v34  ;;  %4653 = vperm.xlu1 %13353, %v19078_v60  }
 0x1f0   :  { %v1649_v32 = vsel %vm1100_vm2, %v1646_v58, %v1648_v43  ;;  %v1651_v13 = vsel %vm1100_vm2, %v1648_v43, %v1650_v38  ;;  %v1415_v55 = vadd.f32 %v14658_v36, %v1338_v48  ;;  %v2153_v27 = vrot.slane %v15032_v57, 1  ;;  %4649 = vperm.xlu0 %13352, %v19079_v42  }
 0x1f1   :  { %v1837_v7 = vmax.f32 %v1483_v21, %v1649_v32  ;;  %v1838_v4 = vmax.f32 %v1484_v8, %v1651_v13  ;;  %v15042_v61 = vadd.f32 %v14658_v36, %v1339_v19  ;;  %v910_v49 = vmul.f32 %v14621_v6, %v14936_v34  ;;  %v15104_v32 = vld [vmem:[#allocation2 + $0x80] ss:$2 sm:$0xff]  ;;  %v15106_v13 = vpop.permute.xlu0 %735 }
 0x1f2   :  { %v1486_v10 = vmax.f32 %v1415_v55, 0.0  ;;  %v2154_v39 = vsel %vm1100_vm2, %v2151_v54, %v2153_v27  ;;  %v1158_v20 = vrot.slane %v987_v25, 1  ;;  %v986_v56 = vmul.f32 %v14576_v12, %v14949_v41  ;;  %v19083_v55 = vld [vmem:[#allocation45_spill] sm:$0xff] }
 0x1f3   :  { %1909 = vst.msk [vmem:[#allocation2 + $0xb0] sm:$0xff] %vm1886_vm3, %v1837_v7  ;;  %1910 = vst.msk [vmem:[#allocation2 + $0xb8] sm:$0xff] %vm1886_vm3, %v1838_v4  ;;  %v1487_v21 = vmax.f32 %v15042_v61, 0.0  ;;  %12216 = vmatprep.mubr.msk.f32.mxu0 %vm1886_vm3, %v2154_v39  ;;  %v909_v34 = vmul.f32 %v14621_v6, %v14949_v41  ;;  %v2077_v18 = vrot.slane %v1971_v51, 6  ;;  %v15062_v0 = vmul.f32 %v14576_v12, %v14978_v29 }
 0x1f4   :  { %v1652_v37 = vrot.slane %v1486_v10, 1  ;;  %v1156_v22 = vrot.slane %v986_v56, 1  ;;  %v15068_v46 = vmul.f32 %v14621_v6, %v14978_v29  ;;  %v988_v58 = vmul.f32 %v14576_v12, %v14984_v52  ;;  %4661 = vperm.xlu1 %13353, %v19080_v62   ;;  %4657 = vperm.xlu0 %13352, %v19081_v24   ;;  %v19085_v24 = vld [vmem:[#allocation47_spill] sm:$0xff] }
 0x1f5   :  { %v1654_v41 = vrot.slane %v1487_v21, 1  ;;  %v15076_v28 = vsel %vm442_vm0, %v2075_v14, %v2077_v18  ;;  %v1162_v54 = vrot.slane %v15062_v0, 1  ;;  %v2079_v33 = vrot.slane %v15050_v31, 6  ;;  %v19084_v31 = vld [vmem:[#allocation46_spill] sm:$0xff] }
 0x1f6   :  { %v1653_v29 = vsel %vm1100_vm2, %v1650_v38, %v1652_v37  ;;  %v1157_v3 = vsel %vm1100_vm2, %v1154_v2, %v1156_v22  ;;  %v1159_v8 = vsel %vm1100_vm2, %v1156_v22, %v1158_v20  ;;  %v2155_v23 = vrot.slane %v15076_v28, 1  ;;  %v15092_v38 = vpop.permute.xlu1 %739 }
 0x1f7   :  { %v1655_v26 = vsel %vm1100_vm2, %v1652_v37, %v1654_v41  ;;  %v1839_v14 = vmax.f32 %v1485_v47, %v1653_v29  ;;  %v1340_v50 = vadd.f32 %v1157_v3, %v908_v15  ;;  %v1341_v9 = vadd.f32 %v1159_v8, %v909_v34  ;;  %v15157_v3 = vpop.permute.xlu0 %743 }
 0x1f8   :  { %v1840_v43 = vmax.f32 %v1486_v10, %v1655_v26  ;;  %v2156_v63 = vsel %vm1100_vm2, %v2153_v27, %v2155_v23  ;;  %v1160_v48 = vrot.slane %v988_v58, 1  ;;  %v15090_v19 = vsel %vm442_vm0, %v2077_v18, %v2079_v33  ;;  %4669 = vperm.xlu1 %13353, %v19082_v45   ;;  %4665 = vperm.xlu0 %13352, %v19083_v55   ;;  %v19086_v26 = vld [vmem:[#allocation49_spill] sm:$0xff] }
 0x1f9   :  { %1911 = vst.msk [vmem:[#allocation2 + $0xc0] sm:$0xff] %vm1886_vm3, %v1839_v14  ;;  %v1417_v2 = vadd.f32 %v14658_v36, %v1340_v50  ;;  %v15098_v25 = vadd.f32 %v14658_v36, %v1341_v9  ;;  %12217 = vmatmul.mubr.msk.f32.gmra.mrb[4].mxu0 %vm1886_vm3, %v2156_v63  ;;  %v911_v47 = vmul.f32 %v14621_v6, %v14984_v52  ;;  %v2157_v15 = vrot.slane %v15090_v19, 1 }
 0x1fa   :  { %1912 = vst.msk [vmem:[#allocation2 + $0xc8] sm:$0xff] %vm1886_vm3, %v1840_v43  ;;  %v1161_v27 = vsel %vm1100_vm2, %v1158_v20, %v1160_v48  ;;  %v1163_v51 = vsel %vm1100_vm2, %v1160_v48, %v1162_v54  ;;  %12268 = vmatprep.mubr.msk.f32.mxu0 %vm1886_vm3, %v14871_v53  ;;  %v15116_v52 = vmul.f32 %v14621_v6, %v15014_v1  ;;  %v2081_v56 = vrot.slane %v15104_v32, 6  ;;  %v15151_v62 = vpop.permute.xlu1 %747  ;;  %v15177_v43 = vld [vmem:[#allocation7] ss:$0 sm:$0xff] }
 0x1fb   :  { %v15120_v60 = vmul.f32 %v14576_v12, %v15014_v1  ;;  %v1488_v7 = vmax.f32 %v1417_v2, 0.0  ;;  %v1489_v4 = vmax.f32 %v15098_v25, 0.0  ;;  %v1342_v42 = vadd.f32 %v1161_v27, %v910_v49  ;;  %v15197_v27 = vld [vmem:[#allocation4] ss:$0 sm:$0xff] }
 0x1fc   :  { %v1343_v10 = vadd.f32 %v1163_v51, %v911_v47  ;;  %v2158_v39 = vsel %vm1100_vm2, %v2155_v23, %v2157_v15  ;;  %v990_v53 = vmul.f32 %v14576_v12, %v15019_v17  ;;  %4677 = vperm.xlu1 %13353, %v19084_v31   ;;  %v913_v0 = vmul.f32 %v14621_v6, %v15019_v17 }
 0x1fd   :  { %v1166_v20 = vrot.slane %v15120_v60, 1  ;;  %v1656_v1 = vrot.slane %v1488_v7, 1  ;;  %v1658_v34 = vrot.slane %v1489_v4, 1  ;;  %v1419_v18 = vadd.f32 %v14658_v36, %v1342_v42  ;;  %12219 = vmatprep.mubr.msk.f32.mxu1 %vm1886_vm3, %v2158_v39  ;;  %12269 = vmatmul.mubr.msk.f32.vlgmr.msra.gmra.mrb[0].mxu0 %vm1886_vm3, %v14868_v5 }
 0x1fe   :  { %v15133_v49 = vadd.f32 %v14658_v36, %v1343_v10  ;;  %v1164_v37 = vrot.slane %v990_v53, 1  ;;  %12271 = vmatprep.mubr.msk.f32.mxu0 %vm1886_vm3, %v14918_v11  ;;  %v15145_v22 = vsel %vm442_vm0, %v2079_v33, %v2081_v56  ;;  %v15149_v58 = vmul.f32 %v14576_v12, %v15052_v59  ;;  %4673 = vperm.xlu0 %13352, %v19085_v24  }
 0x1ff   :  { %v1657_v5 = vsel %vm1100_vm2, %v1654_v41, %v1656_v1  ;;  %v1659_v17 = vsel %vm1100_vm2, %v1656_v1, %v1658_v34  ;;  %v1490_v29 = vmax.f32 %v1419_v18, 0.0  ;;  %v2159_v61 = vrot.slane %v15145_v22, 1  ;;  %v15235_v18 = vld [vmem:[#allocation9] ss:$0 sm:$0xff] }
 0x200   :  { %v1491_v11 = vmax.f32 %v15133_v49, 0.0  ;;  %v1841_v33 = vmax.f32 %v1487_v21, %v1657_v5  ;;  %v1842_v8 = vmax.f32 %v1488_v7, %v1659_v17  ;;  %v1165_v12 = vsel %vm1100_vm2, %v1162_v54, %v1164_v37  ;;  %4685 = vperm.xlu1 %13353, %v19086_v26   ;;  %v15203_v7 = vld [vmem:[#allocation2 + $0xa0] ss:$2 sm:$0xff] }
 0x201   :  { %v1167_v23 = vsel %vm1100_vm2, %v1164_v37, %v1166_v20  ;;  %v1660_v41 = vrot.slane %v1490_v29, 1  ;;  %v1344_v50 = vadd.f32 %v1165_v12, %v15068_v46  ;;  %12272 = vmatmul.mubr.msk.f32.gmra.mrb[2].mxu0 %vm1886_vm3, %v14955_v40  ;;  %v15174_v21 = vmul.f32 %v14621_v6, %v15052_v59  ;;  %v1977_v40 = vld [vmem:[#allocation2 + $0x90] ss:$2 sm:$0xff] }
 0x202   :  { %v1662_v14 = vrot.slane %v1491_v11, 1  ;;  %v1345_v9 = vadd.f32 %v1167_v23, %v913_v0  ;;  %1913 = vst.msk [vmem:[#allocation2 + $0xd0] sm:$0xff] %vm1886_vm3, %v1841_v33  ;;  %1914 = vst.msk [vmem:[#allocation2 + $0xd8] sm:$0xff] %vm1886_vm3, %v1842_v8  ;;  %v1170_v54 = vrot.slane %v15149_v58, 1  ;;  %v992_v46 = vmul.f32 %v15177_v43, %v15064_v44  ;;  %12274 = vmatprep.mubr.msk.f32.mxu0 %vm1886_vm3, %v14993_v35  ;;  %v15193_v35 = vpop.permute.xlu1 %755 }
 0x203   :  { %4681 = vperm.xlu0 %13352, %v14751_v30   ;;  %v1661_v63 = vsel %vm1100_vm2, %v1658_v34, %v1660_v41  ;;  %v1421_v6 = vadd.f32 %v14658_v36, %v1344_v50  ;;  %v2160_v25 = vsel %vm1100_vm2, %v2157_v15, %v2159_v61  ;;  %v2083_v51 = vrot.slane %v1977_v40, 6  ;;  %v15205_v15 = vpop.permute.xlu0 %751 }
 0x204   :  { %v1663_v48 = vsel %vm1100_vm2, %v1660_v41, %v1662_v14  ;;  %v15188_v59 = vadd.f32 %v14658_v36, %v1345_v9  ;;  %v1843_v45 = vmax.f32 %v1489_v4, %v1661_v63  ;;  %v1168_v47 = vrot.slane %v992_v46, 1  ;;  %12220 = vmatmul.mubr.msk.f32.vlgmr.msra.gmra.mrb[0].mxu1 %vm1886_vm3, %v2160_v25 }
 0x205   :  { %v1844_v2 = vmax.f32 %v1490_v29, %v1663_v48  ;;  %v1492_v55 = vmax.f32 %v1421_v6, 0.0  ;;  %v915_v36 = vmul.f32 %v15197_v27, %v15064_v44  ;;  %12275 = vmatmul.mubr.msk.f32.gmra.mrb[4].mxu0 %vm1886_vm3, %v15032_v57  ;;  %v15215_v44 = vmul.f32 %v15197_v27, %v15092_v38 }
 0x206   :  { %v1493_v30 = vmax.f32 %v15188_v59, 0.0  ;;  %1915 = vst.msk [vmem:[#allocation2 + $0xe0] sm:$0xff] %vm1886_vm3, %v1843_v45  ;;  %v1169_v4 = vsel %vm1100_vm2, %v1166_v20, %v1168_v47  ;;  %v1171_v42 = vsel %vm1100_vm2, %v1168_v47, %v1170_v54  ;;  %v15219_v57 = vmul.f32 %v15177_v43, %v15092_v38  ;;  %12277 = vmatprep.mubr.msk.f32.mxu0 %vm1886_vm3, %v15076_v28  ;;  %v15245_v58 = vpop.permute.xlu1 %763 }
 0x207   :  { %1916 = vst.msk [vmem:[#allocation2 + $0xe8] sm:$0xff] %vm1886_vm3, %v1844_v2  ;;  %v1664_v10 = vrot.slane %v1492_v55, 1  ;;  %v1346_v60 = vadd.f32 %v1169_v4, %v15116_v52  ;;  %v1347_v20 = vadd.f32 %v1171_v42, %v915_v36  ;;  %v2084_v53 = vsel %vm442_vm0, %v2081_v56, %v2083_v51  ;;  %v15289_v36 = vld [vmem:[#allocation2 + $0xc0] ss:$2 sm:$0xff] }
 0x208   :  { %v1666_v39 = vrot.slane %v1493_v30, 1  ;;  %v1174_v31 = vrot.slane %v15219_v57, 1  ;;  %v994_v38 = vmul.f32 %v15177_v43, %v15106_v13  ;;  %v2085_v1 = vrot.slane %v15203_v7, 6 }
 0x209   :  { %v1665_v28 = vsel %vm1100_vm2, %v1662_v14, %v1664_v10  ;;  %v1423_v52 = vadd.f32 %v15235_v18, %v1346_v60  ;;  %v15239_v49 = vadd.f32 %v15235_v18, %v1347_v20  ;;  %12278 = vmatmul.mubr.msk.f32.gmra.mrb[6].mxu0 %vm1886_vm3, %v15090_v19  ;;  %v2161_v0 = vrot.slane %v2084_v53, 1  ;;  %v15255_v19 = vpop.permute.xlu0 %759 }
 0x20a   :  { %v1667_v34 = vsel %vm1100_vm2, %v1664_v10, %v1666_v39  ;;  %v1845_v32 = vmax.f32 %v1491_v11, %v1665_v28  ;;  %v1172_v37 = vrot.slane %v994_v38, 1  ;;  %12280 = vmatprep.mubr.msk.f32.mxu0 %vm1886_vm3, %v15145_v22  ;;  %v917_v17 = vmul.f32 %v15197_v27, %v15106_v13  ;;  %v15284_v45 = vpop.permute.xlu1 %771 }
 0x20b   :  { %v1846_v56 = vmax.f32 %v1492_v55, %v1667_v34  ;;  %v1494_v24 = vmax.f32 %v1423_v52, 0.0  ;;  %v1495_v5 = vmax.f32 %v15239_v49, 0.0  ;;  %v15253_v29 = vsel %vm442_vm0, %v2083_v51, %v2085_v1 }
 0x20c   :  { %1917 = vst.msk [vmem:[#allocation2 + $0xf0] sm:$0xff] %vm1886_vm3, %v1845_v32  ;;  %v2162_v22 = vsel %vm1100_vm2, %v2159_v61, %v2161_v0  ;;  %v1173_v11 = vsel %vm1100_vm2, %v1170_v54, %v1172_v37  ;;  %v1175_v33 = vsel %vm1100_vm2, %v1172_v37, %v1174_v31  ;;  %v2163_v8 = vrot.slane %v15253_v29, 1  ;;  %v1981_v61 = vld [vmem:[#allocation2 + $0xb0] ss:$2 sm:$0xff] }
 0x20d   :  { %1918 = vst.msk [vmem:[#allocation2 + $0xf8] sm:$0xff] %vm1886_vm3, %v1846_v56  ;;  %v1668_v13 = vrot.slane %v1494_v24, 1  ;;  %v1670_v12 = vrot.slane %v1495_v5, 1  ;;  %12222 = vmatprep.mubr.msk.f32.mxu1 %vm1886_vm3, %v2162_v22  ;;  %v1348_v23 = vadd.f32 %v1173_v11, %v15174_v21  ;;  %v1349_v26 = vadd.f32 %v1175_v33, %v917_v17  ;;  %12281 = vmatmul.mubr.msk.f32.gmra.mrb[8].mxu0 %vm1886_vm3, %v2084_v53  ;;  %v15291_v51 = vpop.permute.xlu0 %767 }
 0x20e   :  { %v2164_v41 = vsel %vm1100_vm2, %v2161_v0, %v2163_v8  ;;  %v920_v14 = vmul.f32 %v15197_v27, %v15151_v62  ;;  %v997_v50 = vmul.f32 %v15177_v43, %v15151_v62  ;;  %v996_v9 = vmul.f32 %v15177_v43, %v15157_v3  ;;  %12283 = vmatprep.mubr.msk.f32.mxu0 %vm1886_vm3, %v15253_v29  ;;  %v15317_v49 = vpop.permute.xlu1 %779 }
 0x20f   :  { %v1669_v21 = vsel %vm1100_vm2, %v1666_v39, %v1668_v13  ;;  %v1671_v54 = vsel %vm1100_vm2, %v1668_v13, %v1670_v12  ;;  %v1425_v46 = vadd.f32 %v15235_v18, %v1348_v23  ;;  %v15279_v40 = vadd.f32 %v15235_v18, %v1349_v26  ;;  %12223 = vmatmul.mubr.msk.f32.gmra.mrb[2].mxu1 %vm1886_vm3, %v2164_v41  ;;  %v1985_v41 = vld [vmem:[#allocation2 + $0xd0] ss:$2 sm:$0xff] }
 0x210   :  { %v1847_v62 = vmax.f32 %v1493_v30, %v1669_v21  ;;  %v1848_v63 = vmax.f32 %v1494_v24, %v1671_v54  ;;  %v1178_v48 = vrot.slane %v997_v50, 1  ;;  %v1176_v6 = vrot.slane %v996_v9, 1 }
 0x211   :  { %v1496_v2 = vmax.f32 %v1425_v46, 0.0  ;;  %v1497_v25 = vmax.f32 %v15279_v40, 0.0  ;;  %v919_v47 = vmul.f32 %v15197_v27, %v15157_v3  ;;  %v2087_v55 = vrot.slane %v1981_v61, 6  ;;  %v15325_v24 = vpop.permute.xlu0 %775 }
 0x212   :  { %1919 = vst.msk [vmem:[#allocation2 + $0x100] sm:$0xff] %vm1886_vm3, %v1847_v62  ;;  %1920 = vst.msk [vmem:[#allocation2 + $0x108] sm:$0xff] %vm1886_vm3, %v1848_v63  ;;  %v1177_v59 = vsel %vm1100_vm2, %v1174_v31, %v1176_v6  ;;  %v1179_v30 = vsel %vm1100_vm2, %v1176_v6, %v1178_v48  ;;  %v15299_v4 = vmul.f32 %v15197_v27, %v15193_v35  ;;  %v2089_v31 = vrot.slane %v15289_v36, 6 }
 0x213   :  { %v999_v3 = vmul.f32 %v15177_v43, %v15193_v35  ;;  %v1672_v42 = vrot.slane %v1496_v2, 1  ;;  %v1674_v57 = vrot.slane %v1497_v25, 1  ;;  %v1350_v10 = vadd.f32 %v1177_v59, %v15215_v44 }
 0x214   :  { %v1351_v39 = vadd.f32 %v1179_v30, %v919_v47  ;;  %v2088_v60 = vsel %vm442_vm0, %v2085_v1, %v2087_v55  ;;  %v998_v53 = vmul.f32 %v15177_v43, %v15205_v15  ;;  %v921_v0 = vmul.f32 %v15197_v27, %v15205_v15 }
 0x215   :  { %v1182_v20 = vrot.slane %v999_v3, 1  ;;  %v1673_v38 = vsel %vm1100_vm2, %v1670_v12, %v1672_v42  ;;  %v1675_v28 = vsel %vm1100_vm2, %v1672_v42, %v1674_v57  ;;  %v1427_v35 = vadd.f32 %v15235_v18, %v1350_v10  ;;  %12284 = vmatmul.mubr.msk.f32.gmra.mrb[10].mxu0 %vm1886_vm3, %v2088_v60  ;;  %v15357_v47 = vpop.permute.xlu0 %783 }
 0x216   :  { %v15314_v34 = vadd.f32 %v15235_v18, %v1351_v39  ;;  %v1849_v7 = vmax.f32 %v1495_v5, %v1673_v38  ;;  %v1850_v44 = vmax.f32 %v1496_v2, %v1675_v28  ;;  %v2165_v1 = vrot.slane %v2088_v60, 1  ;;  %v15355_v2 = vld [vmem:[#allocation2 + $0xe0] ss:$2 sm:$0xff] }
 0x217   :  { %v1180_v52 = vrot.slane %v998_v53, 1  ;;  %v1498_v32 = vmax.f32 %v1427_v35, 0.0  ;;  %v15323_v37 = vsel %vm442_vm0, %v2087_v55, %v2089_v31  ;;  %v1001_v23 = vmul.f32 %v15177_v43, %v15245_v58 }
 0x218   :  { %v1499_v56 = vmax.f32 %v15314_v34, 0.0  ;;  %1921 = vst.msk [vmem:[#allocation2 + $0x110] sm:$0xff] %vm1886_vm3, %v1849_v7  ;;  %1922 = vst.msk [vmem:[#allocation2 + $0x118] sm:$0xff] %vm1886_vm3, %v1850_v44  ;;  %v2166_v5 = vsel %vm1100_vm2, %v2163_v8, %v2165_v1  ;;  %v2167_v22 = vrot.slane %v15323_v37, 1  ;;  %12286 = vmatprep.mubr.msk.f32.mxu0 %vm1886_vm3, %v15323_v37  ;;  %v924_v8 = vmul.f32 %v15197_v27, %v15245_v58  ;;  %v15350_v58 = vpop.permute.xlu1 %787 }
 0x219   :  { %v1181_v17 = vsel %vm1100_vm2, %v1178_v48, %v1180_v52  ;;  %v1183_v29 = vsel %vm1100_vm2, %v1180_v52, %v1182_v20  ;;  %v1676_v15 = vrot.slane %v1498_v32, 1  ;;  %12225 = vmatprep.mubr.msk.f32.mxu1 %vm1886_vm3, %v2166_v5  ;;  %v1000_v26 = vmul.f32 %v15177_v43, %v15255_v19 }
 0x21a   :  { %v1678_v11 = vrot.slane %v1499_v56, 1  ;;  %v1352_v33 = vadd.f32 %v1181_v17, %v920_v14  ;;  %v1353_v13 = vadd.f32 %v1183_v29, %v921_v0  ;;  %v2168_v12 = vsel %vm1100_vm2, %v2165_v1, %v2167_v22 }
 0x21b   :  { %v1677_v50 = vsel %vm1100_vm2, %v1674_v57, %v1676_v15  ;;  %12226 = vmatmul.mubr.msk.f32.gmra.mrb[4].mxu1 %vm1886_vm3, %v2168_v12  ;;  %v1186_v46 = vrot.slane %v1001_v23, 1  ;;  %v1184_v40 = vrot.slane %v1000_v26, 1  ;;  %v923_v48 = vmul.f32 %v15197_v27, %v15255_v19  ;;  %v1989_v12 = vld [vmem:[#allocation2 + $0xf0] ss:$2 sm:$0xff] }
 0x21c   :  { %v1679_v9 = vsel %vm1100_vm2, %v1676_v15, %v1678_v11  ;;  %v1429_v61 = vadd.f32 %v15235_v18, %v1352_v33  ;;  %v15347_v14 = vadd.f32 %v15235_v18, %v1353_v13  ;;  %v1851_v21 = vmax.f32 %v1497_v25, %v1677_v50  ;;  %v15381_v34 = vpop.permute.xlu1 %795 }
 0x21d   :  { %v1852_v54 = vmax.f32 %v1498_v32, %v1679_v9  ;;  %v2091_v6 = vrot.slane %v1985_v41, 6  ;;  %v1185_v25 = vsel %vm1100_vm2, %v1182_v20, %v1184_v40  ;;  %v1187_v55 = vsel %vm1100_vm2, %v1184_v40, %v1186_v46  ;;  %v15389_v32 = vpop.permute.xlu0 %791 }
 0x21e   :  { %v1500_v62 = vmax.f32 %v1429_v61, 0.0  ;;  %v1501_v63 = vmax.f32 %v15347_v14, 0.0  ;;  %1923 = vst.msk [vmem:[#allocation2 + $0x120] sm:$0xff] %vm1886_vm3, %v1851_v21  ;;  %v15365_v36 = vmul.f32 %v15197_v27, %v15284_v45  ;;  %v1003_v19 = vmul.f32 %v15177_v43, %v15284_v45 }
 0x21f   :  { %1924 = vst.msk [vmem:[#allocation2 + $0x128] sm:$0xff] %vm1886_vm3, %v1852_v54  ;;  %v1354_v3 = vadd.f32 %v1185_v25, %v15299_v4  ;;  %v1355_v42 = vadd.f32 %v1187_v55, %v923_v48  ;;  %v2092_v57 = vsel %vm442_vm0, %v2089_v31, %v2091_v6  ;;  %v1002_v39 = vmul.f32 %v15177_v43, %v15291_v51 }
 0x220   :  { %v1680_v59 = vrot.slane %v1500_v62, 1  ;;  %v1682_v30 = vrot.slane %v1501_v63, 1  ;;  %v1190_v10 = vrot.slane %v1003_v19, 1  ;;  %v2093_v60 = vrot.slane %v15355_v2, 6  ;;  %12287 = vmatmul.mubr.msk.f32.gmra.mrb[12].mxu0 %vm1886_vm3, %v2092_v57 }
 0x221   :  { %v1431_v38 = vadd.f32 %v15235_v18, %v1354_v3  ;;  %v15378_v45 = vadd.f32 %v15235_v18, %v1355_v42  ;;  %v2169_v31 = vrot.slane %v2092_v57, 1  ;;  %v1188_v35 = vrot.slane %v1002_v39, 1  ;;  %v15421_v48 = vpop.permute.xlu0 %799 }
 0x222   :  { %v1681_v20 = vsel %vm1100_vm2, %v1678_v11, %v1680_v59  ;;  %v1683_v53 = vsel %vm1100_vm2, %v1680_v59, %v1682_v30  ;;  %v925_v1 = vmul.f32 %v15197_v27, %v15291_v51  ;;  %v15387_v52 = vsel %vm442_vm0, %v2091_v6, %v2093_v60 }
 0x223   :  { %v1853_v4 = vmax.f32 %v1499_v56, %v1681_v20  ;;  %v1854_v28 = vmax.f32 %v1500_v62, %v1683_v53  ;;  %v1502_v7 = vmax.f32 %v1431_v38, 0.0  ;;  %v1503_v44 = vmax.f32 %v15378_v45, 0.0  ;;  %12289 = vmatprep.mubr.msk.f32.mxu0 %vm1886_vm3, %v15387_v52  ;;  %v15419_v62 = vld [vmem:[#allocation2 + $0x100] ss:$2 sm:$0xff] }
 0x224   :  { %v2170_v56 = vsel %vm1100_vm2, %v2167_v22, %v2169_v31  ;;  %v1189_v0 = vsel %vm1100_vm2, %v1186_v46, %v1188_v35  ;;  %v1191_v37 = vsel %vm1100_vm2, %v1188_v35, %v1190_v10  ;;  %v2171_v5 = vrot.slane %v15387_v52, 1 }
 0x225   :  { %1925 = vst.msk [vmem:[#allocation2 + $0x130] sm:$0xff] %vm1886_vm3, %v1853_v4  ;;  %1926 = vst.msk [vmem:[#allocation2 + $0x138] sm:$0xff] %vm1886_vm3, %v1854_v28  ;;  %v1684_v51 = vrot.slane %v1502_v7, 1  ;;  %v1686_v17 = vrot.slane %v1503_v44, 1  ;;  %12228 = vmatprep.mubr.msk.f32.mxu1 %vm1886_vm3, %v2170_v56  ;;  %v1356_v29 = vadd.f32 %v1189_v0, %v924_v8  ;;  %v1357_v15 = vadd.f32 %v1191_v37, %v925_v1  ;;  %v15460_v52 = vpop.permute.xlu0 %807 }
 0x226   :  { %v2172_v11 = vsel %vm1100_vm2, %v2169_v31, %v2171_v5  ;;  %v928_v22 = vmul.f32 %v15197_v27, %v15317_v49  ;;  %v1005_v33 = vmul.f32 %v15177_v43, %v15317_v49  ;;  %v1004_v13 = vmul.f32 %v15177_v43, %v15325_v24  ;;  %v15414_v49 = vpop.permute.xlu1 %803 }
 0x227   :  { %v1685_v23 = vsel %vm1100_vm2, %v1682_v30, %v1684_v51  ;;  %v1687_v26 = vsel %vm1100_vm2, %v1684_v51, %v1686_v17  ;;  %v1433_v41 = vadd.f32 %v15235_v18, %v1356_v29  ;;  %v15411_v8 = vadd.f32 %v15235_v18, %v1357_v15  ;;  %12229 = vmatmul.mubr.msk.f32.gmra.mrb[6].mxu1 %vm1886_vm3, %v2172_v11 }
 0x228   :  { %v1855_v50 = vmax.f32 %v1501_v63, %v1685_v23  ;;  %v1856_v9 = vmax.f32 %v1502_v7, %v1687_v26  ;;  %v1194_v61 = vrot.slane %v1005_v33, 1  ;;  %v1192_v14 = vrot.slane %v1004_v13, 1  ;;  %v11683_v7 = vld [vmem:[%s19060_s23 + $0x388] sm:$0xff] }
 0x229   :  { %v1504_v21 = vmax.f32 %v1433_v41, 0.0  ;;  %v1505_v54 = vmax.f32 %v15411_v8, 0.0  ;;  %v927_v46 = vmul.f32 %v15197_v27, %v15325_v24  ;;  %v2095_v40 = vrot.slane %v1989_v12, 6  ;;  %v19087_v33 = vld [vmem:[#allocation48_spill] sm:$0xff] }
 0x22a   :  { %1927 = vst.msk [vmem:[#allocation2 + $0x140] sm:$0xff] %vm1886_vm3, %v1855_v50  ;;  %1928 = vst.msk [vmem:[#allocation2 + $0x148] sm:$0xff] %vm1886_vm3, %v1856_v9  ;;  %v1193_v63 = vsel %vm1100_vm2, %v1190_v10, %v1192_v14  ;;  %v1195_v6 = vsel %vm1100_vm2, %v1192_v14, %v1194_v61  ;;  %v15429_v2 = vmul.f32 %v15177_v43, %v15350_v58  ;;  %v2097_v57 = vrot.slane %v15419_v62, 6  ;;  %v11682_v10 = vld [vmem:[%s19060_s23 + $0x380] sm:$0xff]  ;;  %v15449_v4 = vpop.permute.xlu1 %811  ;;  %v11684_v50 = vld [vmem:[%s19060_s23 + $0x390] sm:$0xff] }
 0x22b   :  { %v929_v24 = vmul.f32 %v15197_v27, %v15357_v47  ;;  %v1688_v25 = vrot.slane %v1504_v21, 1  ;;  %v1690_v55 = vrot.slane %v1505_v54, 1  ;;  %v1358_v19 = vadd.f32 %v1193_v63, %v15365_v36  ;;  %v15495_v9 = vld [vmem:[%s19060_s23 + $0x398] sm:$0xff] }
 0x22c   :  { %v1359_v59 = vadd.f32 %v1195_v6, %v927_v46  ;;  %v2096_v30 = vsel %vm442_vm0, %v2093_v60, %v2095_v40  ;;  %v1198_v3 = vrot.slane %v15429_v2, 1  ;;  %v1006_v42 = vmul.f32 %v15177_v43, %v15357_v47  ;;  %v15542_v2 = vld [vmem:[%s19060_s23 + $0x3a8] sm:$0xff] }
 0x22d   :  { %v1689_v39 = vsel %vm1100_vm2, %v1686_v17, %v1688_v25  ;;  %v1691_v20 = vsel %vm1100_vm2, %v1688_v25, %v1690_v55  ;;  %v1435_v36 = vadd.f32 %v15235_v18, %v1358_v19  ;;  %12290 = vmatmul.mubr.msk.f32.gmra.mrb[14].mxu0 %vm1886_vm3, %v2096_v30  ;;  %v2173_v47 = vrot.slane %v2096_v30, 1  ;;  %v15508_v25 = vpop.permute.xlu0 %815 }
 0x22e   :  { %v15446_v53 = vadd.f32 %v15235_v18, %v1359_v59  ;;  %v1857_v60 = vmax.f32 %v1503_v44, %v1689_v39  ;;  %v1858_v38 = vmax.f32 %v1504_v21, %v1691_v20  ;;  %v1196_v45 = vrot.slane %v1006_v42, 1 }
 0x22f   :  { %v1506_v28 = vmax.f32 %v1435_v36, 0.0  ;;  %v15455_v35 = vsel %vm442_vm0, %v2095_v40, %v2097_v57  ;;  %v4459_v1 = vrot.slane %v11682_v10, 6  ;;  %v2174_v44 = vsel %vm1100_vm2, %v2171_v5, %v2173_v47  ;;  %v15501_v40 = vpop.permute.xlu1 %819 }
 0x230   :  { %v1507_v31 = vmax.f32 %v15446_v53, 0.0  ;;  %1929 = vst.msk [vmem:[#allocation2 + $0x150] sm:$0xff] %vm1886_vm3, %v1857_v60  ;;  %1930 = vst.msk [vmem:[#allocation2 + $0x158] sm:$0xff] %vm1886_vm3, %v1858_v38  ;;  %v1197_v56 = vsel %vm1100_vm2, %v1194_v61, %v1196_v45  ;;  %v1199_v0 = vsel %vm1100_vm2, %v1196_v45, %v1198_v3  ;;  %v2175_v37 = vrot.slane %v15455_v35, 1  ;;  %12292 = vmatprep.mubr.msk.f32.mxu0 %vm1886_vm3, %v15455_v35  ;;  %v11686_v45 = vld [vmem:[%s19060_s23 + $0x3a0] sm:$0xff] }
 0x231   :  { %v1692_v51 = vrot.slane %v1506_v28, 1  ;;  %12231 = vmatprep.mubr.msk.f32.mxu1 %vm1886_vm3, %v2174_v44  ;;  %v1360_v29 = vadd.f32 %v1197_v56, %v928_v22  ;;  %v1361_v15 = vadd.f32 %v1199_v0, %v929_v24  ;;  %v930_v5 = vmul.f32 %v15197_v27, %v15350_v58  ;;  %v15487_v58 = vld [vmem:[#allocation2 + $0x110] ss:$2 sm:$0xff] }
 0x232   :  { %v1694_v17 = vrot.slane %v1507_v31, 1  ;;  %v4461_v11 = vrot.slane %v11683_v7, 6  ;;  %v19088_v13 = vrot.slane %v19087_v33, 6  ;;  %v2176_v23 = vsel %vm1100_vm2, %v2173_v47, %v2175_v37 }
 0x233   :  { %v1693_v26 = vsel %vm1100_vm2, %v1690_v55, %v1692_v51  ;;  %v1437_v8 = vadd.f32 %v15235_v18, %v1360_v29  ;;  %v15485_v22 = vadd.f32 %v15235_v18, %v1361_v15  ;;  %12232 = vmatmul.mubr.msk.f32.gmra.mrb[8].mxu1 %vm1886_vm3, %v2176_v23  ;;  %v1009_v46 = vmul.f32 %v15177_v43, %v15381_v34 }
 0x234   :  { %v4460_v12 = vsel %vm442_vm0, %v19088_v13, %v4459_v1  ;;  %v1695_v41 = vsel %vm1100_vm2, %v1692_v51, %v1694_v17  ;;  %v1859_v61 = vmax.f32 %v1505_v54, %v1693_v26  ;;  %v4462_v21 = vsel %vm442_vm0, %v4459_v1, %v4461_v11 }
 0x235   :  { %4689 = vperm.xlu0 %13352, %v4460_v12   ;;  %v1860_v14 = vmax.f32 %v1506_v28, %v1695_v41  ;;  %v1508_v63 = vmax.f32 %v1437_v8, 0.0  ;;  %v1509_v6 = vmax.f32 %v15485_v22, 0.0  ;;  %4693 = vperm.xlu1 %13353, %v4462_v21   ;;  %v932_v24 = vmul.f32 %v15197_v27, %v15381_v34 }
 0x236   :  { %v1008_v54 = vmul.f32 %v15177_v43, %v15389_v32  ;;  %1931 = vst.msk [vmem:[#allocation2 + $0x160] sm:$0xff] %vm1886_vm3, %v1859_v61  ;;  %v1202_v55 = vrot.slane %v1009_v46, 1  ;;  %v2099_v19 = vrot.slane %v15487_v58, 6  ;;  %v4463_v59 = vrot.slane %v11684_v50, 6 }
 0x237   :  { %1932 = vst.msk [vmem:[#allocation2 + $0x168] sm:$0xff] %vm1886_vm3, %v1860_v14  ;;  %v4465_v30 = vrot.slane %v15495_v9, 6  ;;  %v1696_v42 = vrot.slane %v1508_v63, 1  ;;  %v1698_v10 = vrot.slane %v1509_v6, 1  ;;  %v931_v34 = vmul.f32 %v15197_v27, %v15389_v32 }
 0x238   :  { %v1200_v39 = vrot.slane %v1008_v54, 1  ;;  %v2100_v20 = vsel %vm442_vm0, %v2097_v57, %v2099_v19  ;;  %v4464_v53 = vsel %vm442_vm0, %v4461_v11, %v4463_v59  ;;  %v15525_v60 = vmul.f32 %v15177_v43, %v15414_v49  ;;  %v15534_v57 = vld [vmem:[#allocation2 + $0x120] ss:$2 sm:$0xff] }
 0x239   :  { %v4466_v36 = vsel %vm442_vm0, %v4463_v59, %v4465_v30  ;;  %v1697_v38 = vsel %vm1100_vm2, %v1694_v17, %v1696_v42  ;;  %v1699_v47 = vsel %vm1100_vm2, %v1696_v42, %v1698_v10  ;;  %12293 = vmatmul.mubr.msk.f32.gmra.mrb[16].mxu0 %vm1886_vm3, %v2100_v20  ;;  %v2177_v56 = vrot.slane %v2100_v20, 1  ;;  %4697 = vperm.xlu0 %13352, %v4464_v53   ;;  %v15551_v17 = vpop.permute.xlu0 %823 }
 0x23a   :  { %v1201_v32 = vsel %vm1100_vm2, %v1198_v3, %v1200_v39  ;;  %v1203_v62 = vsel %vm1100_vm2, %v1200_v39, %v1202_v55  ;;  %v1861_v28 = vmax.f32 %v1507_v31, %v1697_v38  ;;  %v1862_v7 = vmax.f32 %v1508_v63, %v1699_v47  ;;  %4701 = vperm.xlu1 %13353, %v4466_v36   ;;  %v15544_v3 = vpop.permute.xlu1 %827 }
 0x23b   :  { %v1362_v1 = vadd.f32 %v1201_v32, %v930_v5  ;;  %v1363_v44 = vadd.f32 %v1203_v62, %v931_v34  ;;  %v934_v0 = vmul.f32 %v15197_v27, %v15414_v49  ;;  %v1206_v51 = vrot.slane %v15525_v60, 1 }
 0x23c   :  { %v1010_v31 = vmul.f32 %v15177_v43, %v15421_v48  ;;  %1933 = vst.msk [vmem:[#allocation2 + $0x170] sm:$0xff] %vm1886_vm3, %v1861_v28  ;;  %1934 = vst.msk [vmem:[#allocation2 + $0x178] sm:$0xff] %vm1886_vm3, %v1862_v7  ;;  %v2101_v5 = vrot.slane %v15534_v57, 6  ;;  %v4467_v11 = vrot.slane %v11686_v45, 6  ;;  %v2178_v49 = vsel %vm1100_vm2, %v2175_v37, %v2177_v56 }
 0x23d   :  { %v1439_v29 = vadd.f32 %v15235_v18, %v1362_v1  ;;  %v15557_v15 = vadd.f32 %v15235_v18, %v1363_v44  ;;  %v933_v33 = vmul.f32 %v15197_v27, %v15421_v48  ;;  %v4469_v12 = vrot.slane %v15542_v2, 6  ;;  %12234 = vmatprep.mubr.msk.f32.mxu1 %vm1886_vm3, %v2178_v49  ;;  %v15596_v59 = vpop.permute.xlu0 %831  ;;  %v11690_v49 = vld [vmem:[%s19060_s23 + $0x3c0] sm:$0xff] }
 0x23e   :  { %v1204_v13 = vrot.slane %v1010_v31, 1  ;;  %v15569_v41 = vsel %vm442_vm0, %v2099_v19, %v2101_v5  ;;  %v4468_v8 = vsel %vm442_vm0, %v4465_v30, %v4467_v11  ;;  %v15578_v21 = vpop.permute.xlu1 %835  ;;  %v15585_v63 = vmul.f32 %v15177_v43, %v15449_v4  ;;  %v15591_v19 = vld [vmem:[#allocation2 + $0x130] ss:$2 sm:$0xff] }
 0x23f   :  { %v1510_v23 = vmax.f32 %v1439_v29, 0.0  ;;  %v1511_v26 = vmax.f32 %v15557_v15, 0.0  ;;  %v2179_v58 = vrot.slane %v15569_v41, 1  ;;  %12295 = vmatprep.mubr.msk.f32.mxu0 %vm1886_vm3, %v15569_v41  ;;  %v4470_v48 = vsel %vm442_vm0, %v4467_v11, %v4469_v12  ;;  %4705 = vperm.xlu0 %13352, %v4468_v8  }
 0x240   :  { %v1205_v35 = vsel %vm1100_vm2, %v1202_v55, %v1204_v13  ;;  %v1207_v37 = vsel %vm1100_vm2, %v1204_v13, %v1206_v51  ;;  %4709 = vperm.xlu1 %13353, %v4470_v48   ;;  %v935_v54 = vmul.f32 %v15197_v27, %v15460_v52  ;;  %v1012_v55 = vmul.f32 %v15177_v43, %v15460_v52  ;;  %v11689_v52 = vld [vmem:[%s19060_s23 + $0x3b8] sm:$0xff] }
 0x241   :  { %v1700_v50 = vrot.slane %v1510_v23, 1  ;;  %v1702_v9 = vrot.slane %v1511_v26, 1  ;;  %v1364_v61 = vadd.f32 %v1205_v35, %v932_v24  ;;  %v1365_v14 = vadd.f32 %v1207_v37, %v933_v33  ;;  %v11688_v24 = vld [vmem:[%s19060_s23 + $0x3b0] sm:$0xff]  ;;  %v15648_v33 = vld [vmem:[%s19060_s23 + $0x3c8] sm:$0xff] }
 0x242   :  { %v2180_v46 = vsel %vm1100_vm2, %v2177_v56, %v2179_v58  ;;  %v1210_v53 = vrot.slane %v15585_v63, 1  ;;  %v2103_v47 = vrot.slane %v15591_v19, 6  ;;  %v4471_v32 = vrot.slane %v11688_v24, 6  ;;  %v15619_v44 = vpop.permute.xlu1 %843 }
 0x243   :  { %v1701_v30 = vsel %vm1100_vm2, %v1698_v10, %v1700_v50  ;;  %v1703_v42 = vsel %vm1100_vm2, %v1700_v50, %v1702_v9  ;;  %v1441_v34 = vadd.f32 %v15235_v18, %v1364_v61  ;;  %v15602_v39 = vadd.f32 %v15235_v18, %v1365_v14  ;;  %12235 = vmatmul.mubr.msk.f32.gmra.mrb[10].mxu1 %vm1886_vm3, %v2180_v46 }
 0x244   :  { %v1863_v20 = vmax.f32 %v1509_v6, %v1701_v30  ;;  %v1864_v36 = vmax.f32 %v1510_v23, %v1703_v42  ;;  %v1208_v10 = vrot.slane %v1012_v55, 1  ;;  %v936_v62 = vmul.f32 %v15197_v27, %v15449_v4 }
 0x245   :  { %v1512_v60 = vmax.f32 %v1441_v34, 0.0  ;;  %v1513_v38 = vmax.f32 %v15602_v39, 0.0  ;;  %v4473_v57 = vrot.slane %v11689_v52, 6  ;;  %v15622_v2 = vsel %vm442_vm0, %v2101_v5, %v2103_v47  ;;  %v15640_v5 = vld [vmem:[#allocation2 + $0x140] ss:$2 sm:$0xff] }
 0x246   :  { %1935 = vst.msk [vmem:[#allocation2 + $0x180] sm:$0xff] %vm1886_vm3, %v1863_v20  ;;  %1936 = vst.msk [vmem:[#allocation2 + $0x188] sm:$0xff] %vm1886_vm3, %v1864_v36  ;;  %v1209_v22 = vsel %vm1100_vm2, %v1206_v51, %v1208_v10  ;;  %v1211_v6 = vsel %vm1100_vm2, %v1208_v10, %v1210_v53  ;;  %v4472_v31 = vsel %vm442_vm0, %v4469_v12, %v4471_v32  ;;  %v15630_v51 = vpop.permute.xlu0 %839  ;;  %12296 = vmatmul.mubr.msk.f32.gmra.mrb[18].mxu0 %vm1886_vm3, %v15622_v2  ;;  %v15673_v55 = vpop.permute.xlu1 %851  ;;  %v15690_v52 = vld [vmem:[#allocation2 + $0x150] ss:$2 sm:$0xff] }
 0x247   :  { %v1704_v45 = vrot.slane %v1512_v60, 1  ;;  %v1706_v28 = vrot.slane %v1513_v38, 1  ;;  %v1366_v7 = vadd.f32 %v1209_v22, %v934_v0  ;;  %v1367_v1 = vadd.f32 %v1211_v6, %v935_v54  ;;  %4713 = vperm.xlu0 %13352, %v4472_v31   ;;  %v11692_v20 = vld [vmem:[%s19060_s23 + $0x3d0] sm:$0xff] }
 0x248   :  { %v4474_v56 = vsel %vm442_vm0, %v4471_v32, %v4473_v57  ;;  %v15628_v4 = vmul.f32 %v15177_v43, %v15501_v40  ;;  %v2181_v23 = vrot.slane %v15622_v2, 1  ;;  %v15653_v8 = vmul.f32 %v15197_v27, %v15501_v40  ;;  %v15698_v32 = vld [vmem:[%s19060_s23 + $0x3d8] sm:$0xff] }
 0x249   :  { %v1705_v29 = vsel %vm1100_vm2, %v1702_v9, %v1704_v45  ;;  %v1707_v0 = vsel %vm1100_vm2, %v1704_v45, %v1706_v28  ;;  %v1443_v15 = vadd.f32 %v15235_v18, %v1366_v7  ;;  %v15636_v11 = vadd.f32 %v15235_v18, %v1367_v1  ;;  %4717 = vperm.xlu1 %13353, %v4474_v56  }
 0x24a   :  { %v1865_v13 = vmax.f32 %v1511_v26, %v1705_v29  ;;  %v1866_v12 = vmax.f32 %v1512_v60, %v1707_v0  ;;  %v1214_v48 = vrot.slane %v15628_v4, 1  ;;  %v1014_v50 = vmul.f32 %v15177_v43, %v15508_v25  ;;  %v15682_v30 = vpop.permute.xlu0 %847  ;;  %v15716_v56 = vpop.permute.xlu1 %859 }
 0x24b   :  { %v1514_v35 = vmax.f32 %v1443_v15, 0.0  ;;  %v1515_v37 = vmax.f32 %v15636_v11, 0.0  ;;  %v2182_v26 = vsel %vm1100_vm2, %v2179_v58, %v2181_v23  ;;  %v2105_v9 = vrot.slane %v15640_v5, 6 }
 0x24c   :  { %1937 = vst.msk [vmem:[#allocation2 + $0x190] sm:$0xff] %vm1886_vm3, %v1865_v13  ;;  %1938 = vst.msk [vmem:[#allocation2 + $0x198] sm:$0xff] %vm1886_vm3, %v1866_v12  ;;  %v4475_v40 = vrot.slane %v11690_v49, 6  ;;  %v4477_v61 = vrot.slane %v15648_v33, 6  ;;  %12237 = vmatprep.mubr.msk.f32.mxu1 %vm1886_vm3, %v2182_v26  ;;  %v937_v63 = vmul.f32 %v15197_v27, %v15508_v25  ;;  %v1212_v54 = vrot.slane %v1014_v50, 1 }
 0x24d   :  { %v1708_v14 = vrot.slane %v1514_v35, 1  ;;  %v15668_v46 = vrot.slane %v1515_v37, 1  ;;  %v2106_v41 = vsel %vm442_vm0, %v2103_v47, %v2105_v9  ;;  %v15680_v24 = vmul.f32 %v15177_v43, %v15544_v3 }
 0x24e   :  { %v4478_v58 = vsel %vm442_vm0, %v4475_v40, %v4477_v61  ;;  %v4476_v19 = vsel %vm442_vm0, %v4473_v57, %v4475_v40  ;;  %v1213_v34 = vsel %vm1100_vm2, %v1210_v53, %v1212_v54  ;;  %v1215_v39 = vsel %vm1100_vm2, %v1212_v54, %v1214_v48  ;;  %12298 = vmatprep.mubr.msk.f32.mxu0 %vm1886_vm3, %v2106_v41  ;;  %v15724_v15 = vpop.permute.xlu0 %855  ;;  %v15744_v40 = vld [vmem:[#allocation2 + $0x160] ss:$2 sm:$0xff] }
 0x24f   :  { %v1709_v42 = vsel %vm1100_vm2, %v1706_v28, %v1708_v14  ;;  %v1711_v25 = vsel %vm1100_vm2, %v1708_v14, %v15668_v46  ;;  %v1368_v60 = vadd.f32 %v1213_v34, %v936_v62  ;;  %v1369_v47 = vadd.f32 %v1215_v39, %v937_v63  ;;  %4725 = vperm.xlu1 %13353, %v4478_v58  }
 0x250   :  { %v1867_v36 = vmax.f32 %v1513_v38, %v1709_v42  ;;  %v1868_v10 = vmax.f32 %v1514_v35, %v1711_v25  ;;  %v2183_v53 = vrot.slane %v2106_v41, 1  ;;  %4721 = vperm.xlu0 %13352, %v4476_v19   ;;  %v940_v22 = vmul.f32 %v15197_v27, %v15544_v3 }
 0x251   :  { %v1218_v6 = vrot.slane %v15680_v24, 1  ;;  %v1016_v57 = vmul.f32 %v15177_v43, %v15551_v17  ;;  %v1445_v38 = vadd.f32 %v15235_v18, %v1368_v60  ;;  %v15709_v62 = vadd.f32 %v15235_v18, %v1369_v47  ;;  %v15763_v24 = vpop.permute.xlu1 %867 }
 0x252   :  { %1939 = vst.msk [vmem:[#allocation2 + $0x1a0] sm:$0xff] %vm1886_vm3, %v1867_v36  ;;  %1940 = vst.msk [vmem:[#allocation2 + $0x1a8] sm:$0xff] %vm1886_vm3, %v1868_v10  ;;  %v2107_v45 = vrot.slane %v15690_v52, 6  ;;  %v4479_v28 = vrot.slane %v11692_v20, 6  ;;  %v2184_v7 = vsel %vm1100_vm2, %v2181_v23, %v2183_v53  ;;  %v939_v3 = vmul.f32 %v15197_v27, %v15551_v17  ;;  %v15767_v52 = vpop.permute.xlu0 %863 }
 0x253   :  { %v1216_v1 = vrot.slane %v1016_v57, 1  ;;  %v4481_v2 = vrot.slane %v15698_v32, 6  ;;  %v1516_v31 = vmax.f32 %v1445_v38, 0.0  ;;  %v1517_v4 = vmax.f32 %v15709_v62, 0.0  ;;  %12238 = vmatmul.mubr.msk.f32.gmra.mrb[12].mxu1 %vm1886_vm3, %v2184_v7  ;;  %v11696_v7 = vld [vmem:[%s19060_s23 + $0x3f0] sm:$0xff] }
 0x254   :  { %v15721_v29 = vsel %vm442_vm0, %v2105_v9, %v2107_v45  ;;  %v4480_v0 = vsel %vm442_vm0, %v4477_v61, %v4479_v28  ;;  %v15738_v50 = vmul.f32 %v15177_v43, %v15578_v21  ;;  %v941_v26 = vmul.f32 %v15197_v27, %v15596_v59 }
 0x255   :  { %v1217_v5 = vsel %vm1100_vm2, %v1214_v48, %v1216_v1  ;;  %v1219_v17 = vsel %vm1100_vm2, %v1216_v1, %v1218_v6  ;;  %v2185_v49 = vrot.slane %v15721_v29, 1  ;;  %12299 = vmatmul.mubr.msk.f32.gmra.mrb[20].mxu0 %vm1886_vm3, %v15721_v29  ;;  %v4482_v33 = vsel %vm442_vm0, %v4479_v28, %v4481_v2  ;;  %4729 = vperm.xlu0 %13352, %v4480_v0  }
 0x256   :  { %v1712_v13 = vrot.slane %v1516_v31, 1  ;;  %v1714_v12 = vrot.slane %v1517_v4, 1  ;;  %v1370_v23 = vadd.f32 %v1217_v5, %v15653_v8  ;;  %v1371_v35 = vadd.f32 %v1219_v17, %v939_v3  ;;  %4733 = vperm.xlu1 %13353, %v4482_v33   ;;  %v11694_v8 = vld [vmem:[%s19060_s23 + $0x3e0] sm:$0xff]  ;;  %v15800_v3 = vld [vmem:[%s19060_s23 + $0x3f8] sm:$0xff]  ;;  %v15807_v5 = vpop.permute.xlu1 %4525 }
 0x257   :  { %v2186_v48 = vsel %vm1100_vm2, %v2183_v53, %v2185_v49  ;;  %v1018_v9 = vmul.f32 %v15177_v43, %v15596_v59  ;;  %v11695_v59 = vld [vmem:[%s19060_s23 + $0x3e8] sm:$0xff]  ;;  %v1222_v19 = vrot.slane %v15738_v50, 1  ;;  %v2109_v34 = vrot.slane %v15744_v40, 6 }
 0x258   :  { %v1713_v61 = vsel %vm1100_vm2, %v15668_v46, %v1712_v13  ;;  %v1715_v14 = vsel %vm1100_vm2, %v1712_v13, %v1714_v12  ;;  %v1447_v63 = vadd.f32 %v15235_v18, %v1370_v23  ;;  %v15754_v54 = vadd.f32 %v15235_v18, %v1371_v35  ;;  %12240 = vmatprep.mubr.msk.f32.mxu1 %vm1886_vm3, %v2186_v48 }
 0x259   :  { %v1869_v41 = vmax.f32 %v1515_v37, %v1713_v61  ;;  %v1870_v58 = vmax.f32 %v1516_v31, %v1715_v14  ;;  %v1220_v46 = vrot.slane %v1018_v9, 1  ;;  %v4483_v39 = vrot.slane %v11694_v8, 6  ;;  %v15832_v8 = vld [vmem:[#allocation7] ss:$0 sm:$0xff] }
 0x25a   :  { %v1518_v42 = vmax.f32 %v1447_v63, 0.0  ;;  %v1519_v25 = vmax.f32 %v15754_v54, 0.0  ;;  %v942_v11 = vmul.f32 %v15197_v27, %v15578_v21  ;;  %v4485_v36 = vrot.slane %v11695_v59, 6  ;;  %v15844_v54 = vld [vmem:[#allocation2 + $0x180] ss:$2 sm:$0xff] }
 0x25b   :  { %1941 = vst.msk [vmem:[#allocation2 + $0x1b0] sm:$0xff] %vm1886_vm3, %v1869_v41  ;;  %1942 = vst.msk [vmem:[#allocation2 + $0x1b8] sm:$0xff] %vm1886_vm3, %v1870_v58  ;;  %v1221_v37 = vsel %vm1100_vm2, %v1218_v6, %v1220_v46  ;;  %v1223_v20 = vsel %vm1100_vm2, %v1220_v46, %v1222_v19  ;;  %v15776_v53 = vsel %vm442_vm0, %v2107_v45, %v2109_v34  ;;  %v15792_v45 = vld [vmem:[#allocation2 + $0x170] ss:$2 sm:$0xff]  ;;  %v4487_v35 = vrot.slane %v11696_v7, 6  ;;  %v11698_v59 = vld [vmem:[%s19060_s23 + $0x400] sm:$0xff] }
 0x25c   :  { %v1716_v10 = vrot.slane %v1518_v42, 1  ;;  %v1718_v60 = vrot.slane %v1519_v25, 1  ;;  %v1372_v47 = vadd.f32 %v1221_v37, %v940_v22  ;;  %v1373_v32 = vadd.f32 %v1223_v20, %v941_v26  ;;  %12301 = vmatprep.mubr.msk.f32.mxu0 %vm1886_vm3, %v15776_v53  ;;  %v15856_v37 = vld [vmem:[#allocation4] ss:$0 sm:$0xff] }
 0x25d   :  { %v4486_v57 = vsel %vm442_vm0, %v4483_v39, %v4485_v36  ;;  %v4484_v38 = vsel %vm442_vm0, %v4481_v2, %v4483_v39  ;;  %v15782_v62 = vmul.f32 %v15177_v43, %v15619_v44  ;;  %v2187_v31 = vrot.slane %v15776_v53, 1 }
 0x25e   :  { %v1717_v21 = vsel %vm1100_vm2, %v1714_v12, %v1716_v10  ;;  %v1719_v6 = vsel %vm1100_vm2, %v1716_v10, %v1718_v60  ;;  %v1449_v28 = vadd.f32 %v15235_v18, %v1372_v47  ;;  %v15788_v22 = vadd.f32 %v15235_v18, %v1373_v32  ;;  %4741 = vperm.xlu1 %13353, %v4486_v57  }
 0x25f   :  { %v1871_v1 = vmax.f32 %v1517_v4, %v1717_v21  ;;  %v1872_v2 = vmax.f32 %v1518_v42, %v1719_v6  ;;  %4737 = vperm.xlu0 %13352, %v4484_v38   ;;  %v15805_v0 = vmul.f32 %v15197_v27, %v15619_v44  ;;  %v1226_v13 = vrot.slane %v15782_v62, 1  ;;  %v15813_v4 = vpop.permute.xlu0 %872 }
 0x260   :  { %v1520_v17 = vmax.f32 %v1449_v28, 0.0  ;;  %v1521_v33 = vmax.f32 %v15788_v22, 0.0  ;;  %v1020_v12 = vmul.f32 %v15177_v43, %v15630_v51  ;;  %v2188_v44 = vsel %vm1100_vm2, %v2185_v49, %v2187_v31 }
 0x261   :  { %1943 = vst.msk [vmem:[#allocation2 + $0x1c0] sm:$0xff] %vm1886_vm3, %v1871_v1  ;;  %1944 = vst.msk [vmem:[#allocation2 + $0x1c8] sm:$0xff] %vm1886_vm3, %v1872_v2  ;;  %v2111_v23 = vrot.slane %v15792_v45, 6  ;;  %v4489_v48 = vrot.slane %v15800_v3, 6  ;;  %12241 = vmatmul.mubr.msk.f32.gmra.mrb[14].mxu1 %vm1886_vm3, %v2188_v44  ;;  %v943_v43 = vmul.f32 %v15197_v27, %v15630_v51  ;;  %v4488_v40 = vsel %vm442_vm0, %v4485_v36, %v4487_v35 }
 0x262   :  { %v1720_v50 = vrot.slane %v1520_v17, 1  ;;  %v15824_v26 = vrot.slane %v1521_v33, 1  ;;  %v1224_v9 = vrot.slane %v1020_v12, 1  ;;  %v15836_v61 = vmul.f32 %v15832_v8, %v15673_v55 }
 0x263   :  { %v2112_v29 = vsel %vm442_vm0, %v2109_v34, %v2111_v23  ;;  %v4490_v49 = vsel %vm442_vm0, %v4487_v35, %v4489_v48  ;;  %v15852_v34 = vld [vmem:[%s19060_s23 + $0x408] sm:$0xff]  ;;  %4745 = vperm.xlu0 %13352, %v4488_v40   ;;  %v946_v20 = vmul.f32 %v15856_v37, %v15673_v55  ;;  %v15863_v36 = vpop.permute.xlu0 %4529  ;;  %v2113_v55 = vrot.slane %v15844_v54, 6 }
 0x264   :  { %v1721_v14 = vsel %vm1100_vm2, %v1718_v60, %v1720_v50  ;;  %v1723_v63 = vsel %vm1100_vm2, %v1720_v50, %v15824_v26  ;;  %v1225_v27 = vsel %vm1100_vm2, %v1222_v19, %v1224_v9  ;;  %v1227_v51 = vsel %vm1100_vm2, %v1224_v9, %v1226_v13  ;;  %12302 = vmatmul.mubr.msk.f32.gmra.mrb[22].mxu0 %vm1886_vm3, %v2112_v29  ;;  %v15854_v19 = vpop.permute.xlu1 %4533  ;;  %v15868_v60 = vld [vmem:[#allocation9] ss:$0 sm:$0xff] }
 0x265   :  { %v1873_v41 = vmax.f32 %v1519_v25, %v1721_v14  ;;  %v1874_v58 = vmax.f32 %v1520_v17, %v1723_v63  ;;  %v1374_v46 = vadd.f32 %v1225_v27, %v942_v11  ;;  %v1375_v42 = vadd.f32 %v1227_v51, %v943_v43  ;;  %4749 = vperm.xlu1 %13353, %v4490_v49  }
 0x266   :  { %v2189_v39 = vrot.slane %v2112_v29, 1  ;;  %v1230_v25 = vrot.slane %v15836_v61, 1  ;;  %v1022_v11 = vmul.f32 %v15832_v8, %v15682_v30  ;;  %v4491_v32 = vrot.slane %v11698_v59, 6 }
 0x267   :  { %1945 = vst.msk [vmem:[#allocation2 + $0x1d0] sm:$0xff] %vm1886_vm3, %v1873_v41  ;;  %1946 = vst.msk [vmem:[#allocation2 + $0x1d8] sm:$0xff] %vm1886_vm3, %v1874_v58  ;;  %v1451_v10 = vadd.f32 %v15235_v18, %v1374_v46  ;;  %v15871_v47 = vadd.f32 %v15868_v60, %v1375_v42  ;;  %v945_v57 = vmul.f32 %v15856_v37, %v15682_v30  ;;  %v4493_v62 = vrot.slane %v15852_v34, 6  ;;  %v15909_v50 = vpop.permute.xlu0 %4537 }
 0x268   :  { %v2190_v53 = vsel %vm1100_vm2, %v2187_v31, %v2189_v39  ;;  %v1228_v38 = vrot.slane %v1022_v11, 1  ;;  %v15881_v18 = vsel %vm442_vm0, %v2111_v23, %v2113_v55  ;;  %v4492_v28 = vsel %vm442_vm0, %v4489_v48, %v4491_v32  ;;  %v15891_v12 = vpop.permute.xlu1 %4541  ;;  %v15904_v48 = vld [vmem:[#allocation2 + $0x190] ss:$2 sm:$0xff] }
 0x269   :  { %v1522_v21 = vmax.f32 %v1451_v10, 0.0  ;;  %v1523_v6 = vmax.f32 %v15871_v47, 0.0  ;;  %12243 = vmatprep.mubr.msk.f32.mxu1 %vm1886_vm3, %v2190_v53  ;;  %v2191_v3 = vrot.slane %v15881_v18, 1  ;;  %12304 = vmatprep.mubr.msk.f32.mxu0 %vm1886_vm3, %v15881_v18  ;;  %v4494_v30 = vsel %vm442_vm0, %v4491_v32, %v4493_v62 }
 0x26a   :  { %v1229_v45 = vsel %vm1100_vm2, %v1226_v13, %v1228_v38  ;;  %v1231_v7 = vsel %vm1100_vm2, %v1228_v38, %v1230_v25  ;;  %4753 = vperm.xlu0 %13352, %v4492_v28   ;;  %4757 = vperm.xlu1 %13353, %v4494_v30   ;;  %v15898_v44 = vmul.f32 %v15832_v8, %v15716_v56  ;;  %v2115_v51 = vrot.slane %v15904_v48, 6  ;;  %v11702_v38 = vld [vmem:[%s19060_s23 + $0x420] sm:$0xff] }
 0x26b   :  { %v1724_v1 = vrot.slane %v1522_v21, 1  ;;  %v1726_v2 = vrot.slane %v1523_v6, 1  ;;  %v1376_v31 = vadd.f32 %v1229_v45, %v15805_v0  ;;  %v1377_v17 = vadd.f32 %v1231_v7, %v945_v57  ;;  %v11700_v0 = vld [vmem:[%s19060_s23 + $0x410] sm:$0xff] }
 0x26c   :  { %v2192_v13 = vsel %vm1100_vm2, %v2189_v39, %v2191_v3  ;;  %v947_v23 = vmul.f32 %v15856_v37, %v15724_v15  ;;  %v1024_v35 = vmul.f32 %v15832_v8, %v15724_v15  ;;  %v11701_v15 = vld [vmem:[%s19060_s23 + $0x418] sm:$0xff]  ;;  %v1234_v14 = vrot.slane %v15898_v44, 1  ;;  %v15931_v34 = vpop.permute.xlu1 %4549 }
 0x26d   :  { %v1725_v43 = vsel %vm1100_vm2, %v15824_v26, %v1724_v1  ;;  %v1727_v9 = vsel %vm1100_vm2, %v1724_v1, %v1726_v2  ;;  %v1453_v29 = vadd.f32 %v15868_v60, %v1376_v31  ;;  %v15916_v49 = vadd.f32 %v15868_v60, %v1377_v17  ;;  %12244 = vmatmul.mubr.msk.f32.gmra.mrb[16].mxu1 %vm1886_vm3, %v2192_v13 }
 0x26e   :  { %v1875_v40 = vmax.f32 %v1521_v33, %v1725_v43  ;;  %v1876_v61 = vmax.f32 %v1522_v21, %v1727_v9  ;;  %v1232_v26 = vrot.slane %v1024_v35, 1  ;;  %v4495_v54 = vrot.slane %v11700_v0, 6 }
 0x26f   :  { %v1524_v63 = vmax.f32 %v1453_v29, 0.0  ;;  %v1525_v27 = vmax.f32 %v15916_v49, 0.0  ;;  %v4497_v22 = vrot.slane %v11701_v15, 6  ;;  %v2116_v39 = vsel %vm442_vm0, %v2113_v55, %v2115_v51  ;;  %v2011_v55 = vld [vmem:[#allocation2 + $0x1a0] ss:$2 sm:$0xff] }
 0x270   :  { %1947 = vst.msk [vmem:[#allocation2 + $0x1e0] sm:$0xff] %vm1886_vm3, %v1875_v40  ;;  %1948 = vst.msk [vmem:[#allocation2 + $0x1e8] sm:$0xff] %vm1886_vm3, %v1876_v61  ;;  %v1233_v59 = vsel %vm1100_vm2, %v1230_v25, %v1232_v26  ;;  %v1235_v41 = vsel %vm1100_vm2, %v1232_v26, %v1234_v14  ;;  %v4496_v10 = vsel %vm442_vm0, %v4493_v62, %v4495_v54  ;;  %v15940_v25 = vpop.permute.xlu0 %4545  ;;  %12305 = vmatmul.mubr.msk.f32.gmra.mrb[24].mxu0 %vm1886_vm3, %v2116_v39  ;;  %v15955_v62 = vld [vmem:[%s19060_s23 + $0x428] sm:$0xff]  ;;  %v15972_v0 = vpop.permute.xlu1 %4557  ;;  %v2013_v61 = vld [vmem:[#allocation2 + $0x1b0] ss:$2 sm:$0xff] }
 0x271   :  { %v1728_v33 = vrot.slane %v1524_v63, 1  ;;  %v1730_v58 = vrot.slane %v1525_v27, 1  ;;  %v1378_v46 = vadd.f32 %v1233_v59, %v946_v20  ;;  %v1379_v42 = vadd.f32 %v1235_v41, %v947_v23  ;;  %4761 = vperm.xlu0 %13352, %v4496_v10   ;;  %v15992_v59 = vld [vmem:[%s19060_s23 + $0x438] sm:$0xff] }
 0x272   :  { %v4498_v11 = vsel %vm442_vm0, %v4495_v54, %v4497_v22  ;;  %v15938_v47 = vmul.f32 %v15832_v8, %v15763_v24  ;;  %v2193_v45 = vrot.slane %v2116_v39, 1  ;;  %v2117_v31 = vrot.slane %v2011_v55, 6  ;;  %v11704_v54 = vld [vmem:[%s19060_s23 + $0x430] sm:$0xff] }
 0x273   :  { %v1729_v32 = vsel %vm1100_vm2, %v1726_v2, %v1728_v33  ;;  %v1731_v53 = vsel %vm1100_vm2, %v1728_v33, %v1730_v58  ;;  %v1455_v20 = vadd.f32 %v15868_v60, %v1378_v46  ;;  %v15946_v57 = vadd.f32 %v15868_v60, %v1379_v42  ;;  %4765 = vperm.xlu1 %13353, %v4498_v11  }
 0x274   :  { %v1877_v21 = vmax.f32 %v1523_v6, %v1729_v32  ;;  %v1878_v28 = vmax.f32 %v1524_v63, %v1731_v53  ;;  %v1238_v1 = vrot.slane %v15938_v47, 1  ;;  %v1026_v2 = vmul.f32 %v15832_v8, %v15767_v52  ;;  %v15979_v29 = vpop.permute.xlu0 %4553  ;;  %v16006_v11 = vpop.permute.xlu1 %4565 }
 0x275   :  { %v1526_v7 = vmax.f32 %v1455_v20, 0.0  ;;  %v1527_v30 = vmax.f32 %v15946_v57, 0.0  ;;  %v2194_v6 = vsel %vm1100_vm2, %v2191_v3, %v2193_v45  ;;  %v4499_v17 = vrot.slane %v11702_v38, 6 }
 0x276   :  { %1949 = vst.msk [vmem:[#allocation2 + $0x1f0] sm:$0xff] %vm1886_vm3, %v1877_v21  ;;  %1950 = vst.msk [vmem:[#allocation2 + $0x1f8] sm:$0xff] %vm1886_vm3, %v1878_v28  ;;  %v4501_v13 = vrot.slane %v15955_v62, 6  ;;  %v948_v44 = vmul.f32 %v15856_v37, %v15716_v56  ;;  %12246 = vmatprep.mubr.msk.f32.mxu1 %vm1886_vm3, %v2194_v6  ;;  %v1236_v48 = vrot.slane %v1026_v2, 1  ;;  %v949_v18 = vmul.f32 %v15856_v37, %v15767_v52  ;;  %v2015_v2 = vld [vmem:[#allocation2 + $0x1c0] ss:$2 sm:$0xff] }
 0x277   :  { %v1732_v23 = vrot.slane %v1526_v7, 1  ;;  %v1734_v35 = vrot.slane %v1527_v30, 1  ;;  %v2118_v3 = vsel %vm442_vm0, %v2115_v51, %v2117_v31  ;;  %v4500_v9 = vsel %vm442_vm0, %v4497_v22, %v4499_v17 }
 0x278   :  { %v4502_v43 = vsel %vm442_vm0, %v4499_v17, %v4501_v13  ;;  %v1237_v15 = vsel %vm1100_vm2, %v1234_v14, %v1236_v48  ;;  %v1239_v40 = vsel %vm1100_vm2, %v1236_v48, %v1238_v1  ;;  %12307 = vmatprep.mubr.msk.f32.mxu0 %vm1886_vm3, %v2118_v3  ;;  %v2195_v14 = vrot.slane %v2118_v3, 1  ;;  %4769 = vperm.xlu0 %13352, %v4500_v9   ;;  %v16011_v20 = vpop.permute.xlu0 %4561  ;;  %v11707_v17 = vld [vmem:[%s19060_s23 + $0x448] sm:$0xff] }
 0x279   :  { %v1733_v56 = vsel %vm1100_vm2, %v1730_v58, %v1732_v23  ;;  %v1735_v49 = vsel %vm1100_vm2, %v1732_v23, %v1734_v35  ;;  %v1380_v63 = vadd.f32 %v1237_v15, %v948_v44  ;;  %v1381_v51 = vadd.f32 %v1239_v40, %v949_v18  ;;  %4773 = vperm.xlu1 %13353, %v4502_v43   ;;  %v16033_v43 = vpop.permute.xlu1 %4573 }
 0x27a   :  { %v1879_v52 = vmax.f32 %v1525_v27, %v1733_v56  ;;  %v1880_v26 = vmax.f32 %v1526_v7, %v1735_v49  ;;  %v1028_v22 = vmul.f32 %v15832_v8, %v15813_v4  ;;  %v2119_v33 = vrot.slane %v2013_v61, 6 }
 0x27b   :  { %v1457_v27 = vadd.f32 %v15868_v60, %v1380_v63  ;;  %v15998_v41 = vadd.f32 %v15868_v60, %v1381_v51  ;;  %v2196_v58 = vsel %vm1100_vm2, %v2193_v45, %v2195_v14  ;;  %v951_v46 = vmul.f32 %v15856_v37, %v15813_v4 }
 0x27c   :  { %1951 = vst.msk [vmem:[#allocation2 + $0x200] sm:$0xff] %vm1886_vm3, %v1879_v52  ;;  %1952 = vst.msk [vmem:[#allocation2 + $0x208] sm:$0xff] %vm1886_vm3, %v1880_v26  ;;  %v4503_v42 = vrot.slane %v11704_v54, 6  ;;  %v4505_v39 = vrot.slane %v15992_v59, 6  ;;  %12247 = vmatmul.mubr.msk.f32.gmra.mrb[18].mxu1 %vm1886_vm3, %v2196_v58  ;;  %v1240_v32 = vrot.slane %v1028_v22, 1  ;;  %v2120_v53 = vsel %vm442_vm0, %v2117_v31, %v2119_v33  ;;  %v16035_v15 = vpop.permute.xlu0 %4569  ;;  %v11708_v59 = vld [vmem:[%s19060_s23 + $0x450] sm:$0xff] }
 0x27d   :  { %v1528_v10 = vmax.f32 %v1457_v27, 0.0  ;;  %v1529_v47 = vmax.f32 %v15998_v41, 0.0  ;;  %v950_v55 = vmul.f32 %v15856_v37, %v15763_v24  ;;  %v2197_v38 = vrot.slane %v2120_v53, 1  ;;  %12308 = vmatmul.mubr.msk.f32.gmra.mrb[26].mxu0 %vm1886_vm3, %v2120_v53  ;;  %v11706_v24 = vld [vmem:[%s19060_s23 + $0x440] sm:$0xff]  ;;  %v2017_v54 = vld [vmem:[#allocation2 + $0x1d0] ss:$2 sm:$0xff]  ;;  %v16052_v22 = vpop.permute.xlu1 %4581 }
 0x27e   :  { %v4506_v4 = vsel %vm442_vm0, %v4503_v42, %v4505_v39  ;;  %v4504_v62 = vsel %vm442_vm0, %v4501_v13, %v4503_v42  ;;  %v1241_v45 = vsel %vm1100_vm2, %v1238_v1, %v1240_v32  ;;  %v1383_v7 = vadd.f32 %v1240_v32, %v951_v46  ;;  %v11709_v41 = vld [vmem:[%s19060_s23 + $0x458] sm:$0xff] }
 0x27f   :  { %v1736_v21 = vrot.slane %v1528_v10, 1  ;;  %v1738_v28 = vrot.slane %v1529_v47, 1  ;;  %4781 = vperm.xlu1 %13353, %v4506_v4   ;;  %4777 = vperm.xlu0 %13352, %v4504_v62   ;;  %v1382_v6 = vadd.f32 %v1241_v45, %v950_v55  ;;  %v2198_v31 = vsel %vm1100_vm2, %v2195_v14, %v2197_v38  ;;  %v11710_v4 = vld [vmem:[%s19060_s23 + $0x460] sm:$0xff]  ;;  %v11711_v62 = vld [vmem:[%s19060_s23 + $0x468] sm:$0x1] }
 0x280   :  { %v1460_v1 = vadd.f32 %v15868_v60, %v1383_v7  ;;  %12249 = vmatprep.mubr.msk.f32.mxu1 %vm1886_vm3, %v2198_v31  ;;  %v2121_v3 = vrot.slane %v2015_v2, 6  ;;  %v4507_v56 = vrot.slane %v11706_v24, 6  ;;  %v4509_v49 = vrot.slane %v11707_v17, 6  ;;  %v16056_v46 = vpop.permute.xlu0 %4577 }
 0x281   :  { %v1737_v13 = vsel %vm1100_vm2, %v1734_v35, %v1736_v21  ;;  %v1739_v44 = vsel %vm1100_vm2, %v1736_v21, %v1738_v28  ;;  %v1459_v18 = vadd.f32 %v15868_v60, %v1382_v6  ;;  %v2123_v42 = vrot.slane %v2017_v54, 6  ;;  %v16070_v21 = vpop.permute.xlu1 %4589 }
 0x282   :  { %v1881_v23 = vmax.f32 %v1527_v30, %v1737_v13  ;;  %v1882_v48 = vmax.f32 %v1528_v10, %v1739_v44  ;;  %v1531_v9 = vmax.f32 %v1460_v1, 0.0  ;;  %v2122_v40 = vsel %vm442_vm0, %v2119_v33, %v2121_v3 }
 0x283   :  { %v1530_v35 = vmax.f32 %v1459_v18, 0.0  ;;  %v2199_v30 = vrot.slane %v2122_v40, 1  ;;  %12310 = vmatprep.mubr.msk.f32.mxu0 %vm1886_vm3, %v2122_v40  ;;  %v4510_v52 = vsel %vm442_vm0, %v4507_v56, %v4509_v49  ;;  %v4508_v63 = vsel %vm442_vm0, %v4505_v39, %v4507_v56  ;;  %v2021_v18 = vld [vmem:[#allocation2 + $0x1f0] ss:$2 sm:$0xff] }
 0x284   :  { %1953 = vst.msk [vmem:[#allocation2 + $0x210] sm:$0xff] %vm1886_vm3, %v1881_v23  ;;  %1954 = vst.msk [vmem:[#allocation2 + $0x218] sm:$0xff] %vm1886_vm3, %v1882_v48  ;;  %v1742_v57 = vrot.slane %v1531_v9, 1  ;;  %4789 = vperm.xlu1 %13353, %v4510_v52   ;;  %4785 = vperm.xlu0 %13352, %v4508_v63   ;;  %v4511_v39 = vrot.slane %v11708_v59, 6  ;;  %v4513_v10 = vrot.slane %v11709_v41, 6  ;;  %v2124_v32 = vsel %vm442_vm0, %v2121_v3, %v2123_v42  ;;  %v16073_v45 = vpop.permute.xlu0 %4585 }
 0x285   :  { %v1740_v61 = vrot.slane %v1530_v35, 1  ;;  %v2200_v51 = vsel %vm1100_vm2, %v2197_v38, %v2199_v30  ;;  %v2201_v55 = vrot.slane %v2124_v32, 1  ;;  %12311 = vmatmul.mubr.msk.f32.gmra.mrb[28].mxu0 %vm1886_vm3, %v2124_v32  ;;  %v2019_v38 = vld [vmem:[#allocation2 + $0x1e0] ss:$2 sm:$0xff]  ;;  %v4881_v7 = vmul.f32 %v15832_v8, %v15863_v36  ;;  %v16086_v3 = vpop.permute.xlu1 %4597 }
 0x286   :  { %v1885_v26 = vmax.f32 %v1531_v9, %v1742_v57  ;;  %12250 = vmatmul.mubr.msk.f32.gmra.mrb[20].mxu1 %vm1886_vm3, %v2200_v51  ;;  %v4512_v53 = vsel %vm442_vm0, %v4509_v49, %v4511_v39  ;;  %v2125_v2 = vrot.slane %v2019_v38, 6  ;;  %v4515_v6 = vrot.slane %v11710_v4, 6  ;;  %v2023_v63 = vld [vmem:[#allocation2 + $0x200] ss:$2 sm:$0xff] }
 0x287   :  { %v1741_v14 = vsel %vm1100_vm2, %v1738_v28, %v1740_v61  ;;  %v1743_v27 = vsel %vm1100_vm2, %v1740_v61, %v1742_v57  ;;  %v2202_v28 = vsel %vm1100_vm2, %v2199_v30, %v2201_v55  ;;  %v4882_v31 = vmul.f32 %v15832_v8, %v15854_v19 }
 0x288   :  { %v1883_v33 = vmax.f32 %v1529_v47, %v1741_v14  ;;  %v1884_v58 = vmax.f32 %v1530_v35, %v1743_v27  ;;  %1958 = vst.msk [vmem:[#allocation2 + $0x230] sm:$0x7] %vm1957_vm4, %v1885_v26  ;;  %v4514_v47 = vsel %vm442_vm0, %v4511_v39, %v4513_v10  ;;  %4793 = vperm.xlu0 %13352, %v4512_v53   ;;  %v4517_v24 = vrot.slane %v11711_v62, 6  ;;  %v16090_v35 = vpop.permute.xlu0 %4593 }
 0x289   :  { %4797 = vperm.xlu1 %13353, %v4514_v47   ;;  %12252 = vmatprep.mubr.msk.f32.mxu1 %vm1886_vm3, %v2202_v28  ;;  %v4880_v17 = vmul.f32 %v15832_v8, %v15807_v5  ;;  %v2126_v13 = vsel %vm442_vm0, %v2123_v42, %v2125_v2  ;;  %v4516_v44 = vsel %vm442_vm0, %v4513_v10, %v4515_v6  ;;  %v5023_v48 = vrot.slane %v4881_v7, 1 }
 0x28a   :  { %1955 = vst.msk [vmem:[#allocation2 + $0x220] sm:$0xff] %vm1886_vm3, %v1883_v33  ;;  %1956 = vst.msk [vmem:[#allocation2 + $0x228] sm:$0xff] %vm1886_vm3, %v1884_v58  ;;  %v2203_v1 = vrot.slane %v2126_v13, 1  ;;  %12313 = vmatprep.mubr.msk.f32.mxu0 %vm1886_vm3, %v2126_v13  ;;  %v4518_v23 = vsel %vm442_vm0, %v4515_v6, %v4517_v24  ;;  %v5025_v9 = vrot.slane %v4882_v31, 1  ;;  %v4883_v57 = vmul.f32 %v15832_v8, %v15909_v50  ;;  %v16109_v58 = vpop.permute.xlu1 %4605 }
 0x28b   :  { %v4522_v56 = vsel %vm587_vm1, %v4518_v23, 0.0  ;;  %v5022_v40 = vrot.slane %v4880_v17, 1  ;;  %v4884_v30 = vmul.f32 %v15832_v8, %v15891_v12  ;;  %v2127_v61 = vrot.slane %v2021_v18, 6 }
 0x28c   :  { %4801 = vperm.xlu0 %13352, %v4516_v44   ;;  %v2204_v49 = vsel %vm1100_vm2, %v2201_v55, %v2203_v1  ;;  %v4885_v26 = vmul.f32 %v15832_v8, %v15940_v25  ;;  %v4809_v51 = vmul.f32 %v15856_v37, %v15807_v5  ;;  %v5026_v54 = vsel %vm1100_vm2, %v5023_v48, %v5025_v9  ;;  %v16111_v5 = vpop.permute.xlu0 %4601  ;;  %v2025_v44 = vld [vmem:[#allocation2 + $0x210] ss:$2 sm:$0xff] }
 0x28d   :  { %4806 = vperm.xlu1 %13353, %v4522_v56   ;;  %12253 = vmatmul.mubr.msk.f32.gmra.mrb[22].mxu1 %vm1886_vm3, %v2204_v49  ;;  %v5024_v52 = vsel %vm1100_vm2, %v5022_v40, %v5023_v48  ;;  %v4886_v59 = vmul.f32 %v15832_v8, %v15931_v34  ;;  %v2128_v14 = vsel %vm442_vm0, %v2125_v2, %v2127_v61  ;;  %v5027_v41 = vrot.slane %v4883_v57, 1 }
 0x28e   :  { %v4810_v27 = vmul.f32 %v15856_v37, %v15863_v36  ;;  %v2205_v33 = vrot.slane %v2128_v14, 1  ;;  %12314 = vmatmul.mubr.msk.f32.gmra.mrb[30].mxu0 %vm1886_vm3, %v2128_v14  ;;  %v5234_v42 = vadd.f32 %v5024_v52, %v4809_v51  ;;  %v5029_v39 = vrot.slane %v4884_v30, 1 }
 0x28f   :  { %v2129_v10 = vrot.slane %v2023_v63, 6  ;;  %v5031_v53 = vrot.slane %v4885_v26, 1  ;;  %v5033_v55 = vrot.slane %v4886_v59, 1  ;;  %v4888_v47 = vmul.f32 %v15832_v8, %v15972_v0 }
 0x290   :  { %v5235_v32 = vadd.f32 %v5026_v54, %v4810_v27  ;;  %v4887_v36 = vmul.f32 %v15832_v8, %v15979_v29  ;;  %v2206_v38 = vsel %vm1100_vm2, %v2203_v1, %v2205_v33  ;;  %v4811_v4 = vmul.f32 %v15856_v37, %v15854_v19  ;;  %v16142_v1 = vpop.permute.xlu1 %4613  ;;  %v16145_v56 = vpop.permute.xlu0 %4609 }
 0x291   :  { %v4813_v62 = vmul.f32 %v15856_v37, %v15891_v12  ;;  %v5028_v28 = vsel %vm1100_vm2, %v5025_v9, %v5027_v41  ;;  %12255 = vmatprep.mubr.msk.f32.mxu1 %vm1886_vm3, %v2206_v38  ;;  %v4889_v7 = vmul.f32 %v15832_v8, %v16011_v20  ;;  %v16127_v2 = vadd.f32 %v15868_v60, %v5234_v42 }
 0x292   :  { %v5030_v6 = vsel %vm1100_vm2, %v5027_v41, %v5029_v39  ;;  %v16132_v31 = vmul.f32 %v15832_v8, %v16006_v11  ;;  %v2130_v19 = vsel %vm442_vm0, %v2127_v61, %v2129_v10  ;;  %v16136_v12 = vadd.f32 %v15868_v60, %v5235_v32 }
 0x293   :  { %v4812_v24 = vmul.f32 %v15856_v37, %v15909_v50  ;;  %v5032_v17 = vsel %vm1100_vm2, %v5029_v39, %v5031_v53  ;;  %v2207_v13 = vrot.slane %v2130_v19, 1  ;;  %12316 = vmatprep.mubr.msk.f32.mxu0 %vm1886_vm3, %v2130_v19  ;;  %v5236_v23 = vadd.f32 %v5028_v28, %v4811_v4  ;;  %v2027_v39 = vld [vmem:[#allocation2 + $0x220] ss:$2 sm:$0xff] }
 0x294   :  { %v5034_v48 = vsel %vm1100_vm2, %v5031_v53, %v5033_v55  ;;  %v5037_v18 = vrot.slane %v4888_v47, 1  ;;  %v5035_v9 = vrot.slane %v4887_v36, 1  ;;  %v4814_v40 = vmul.f32 %v15856_v37, %v15940_v25  ;;  %v16168_v32 = vpop.permute.xlu1 %4621  ;;  %v16179_v36 = vpop.permute.xlu0 %4617 }
 0x295   :  { %v5237_v49 = vadd.f32 %v5030_v6, %v4812_v24  ;;  %v5039_v50 = vrot.slane %v4889_v7, 1  ;;  %v2208_v57 = vsel %vm1100_vm2, %v2205_v33, %v2207_v13  ;;  %v5238_v30 = vadd.f32 %v5032_v17, %v4813_v62 }
 0x296   :  { %v5041_v61 = vrot.slane %v16132_v31, 1  ;;  %12256 = vmatmul.mubr.msk.f32.gmra.mrb[24].mxu1 %vm1886_vm3, %v2208_v57  ;;  %v2131_v52 = vrot.slane %v2025_v44, 6  ;;  %v5376_v26 = vmax.f32 %v16127_v2, 0.0  ;;  %v5377_v63 = vmax.f32 %v16136_v12, 0.0 }
 0x297   :  { %v5239_v51 = vadd.f32 %v5034_v48, %v4814_v40  ;;  %v16155_v54 = vadd.f32 %v15868_v60, %v5236_v23  ;;  %v4815_v25 = vmul.f32 %v15856_v37, %v15931_v34  ;;  %v5036_v59 = vsel %vm1100_vm2, %v5033_v55, %v5035_v9 }
 0x298   :  { %v5038_v14 = vsel %vm1100_vm2, %v5035_v9, %v5037_v18  ;;  %v16162_v27 = vadd.f32 %v15868_v60, %v5237_v49  ;;  %v4816_v41 = vmul.f32 %v15856_v37, %v15979_v29  ;;  %v5040_v33 = vsel %vm1100_vm2, %v5037_v18, %v5039_v50  ;;  %v2029_v29 = vld [vmem:[#allocation2 + $0x230] ss:$2 sm:$0x3]  ;;  %v16204_v40 = vpop.permute.xlu1 %4629 }
 0x299   :  { %v2132_v42 = vsel %vm442_vm0, %v2129_v10, %v2131_v52  ;;  %v16171_v53 = vadd.f32 %v15868_v60, %v5238_v30  ;;  %v4817_v34 = vmul.f32 %v15856_v37, %v15972_v0  ;;  %v5042_v55 = vsel %vm1100_vm2, %v5039_v50, %v5041_v61 }
 0x29a   :  { %v2209_v47 = vrot.slane %v2132_v42, 1  ;;  %12317 = vmatmul.mubr.msk.f32.gmra.mrb[32].mxu0 %vm1886_vm3, %v2132_v42  ;;  %v16182_v10 = vadd.f32 %v15868_v60, %v5239_v51  ;;  %v5240_v38 = vadd.f32 %v5036_v59, %v4815_v25  ;;  %v5241_v4 = vadd.f32 %v5038_v14, %v4816_v41  ;;  %v16210_v51 = vpop.permute.xlu0 %4625 }
 0x29b   :  { %v4818_v62 = vmul.f32 %v15856_v37, %v16011_v20  ;;  %v5242_v28 = vadd.f32 %v5040_v33, %v4817_v34  ;;  %v4891_v0 = vmul.f32 %v15832_v8, %v16035_v15  ;;  %v2133_v6 = vrot.slane %v2027_v39, 6 }
 0x29c   :  { %v2210_v7 = vsel %vm1100_vm2, %v2207_v13, %v2209_v47  ;;  %v16191_v24 = vmul.f32 %v15832_v8, %v16033_v43  ;;  %v2135_v17 = vrot.slane %v2029_v29, 6  ;;  %v5378_v44 = vmax.f32 %v16155_v54, 0.0 }
 0x29d   :  { %v5243_v19 = vadd.f32 %v5042_v55, %v4818_v62  ;;  %12258 = vmatprep.mubr.msk.f32.mxu1 %vm1886_vm3, %v2210_v7  ;;  %v5379_v20 = vmax.f32 %v16162_v27, 0.0  ;;  %v5380_v23 = vmax.f32 %v16171_v53, 0.0  ;;  %v2134_v48 = vsel %vm442_vm0, %v2131_v52, %v2133_v6  ;;  %v16242_v7 = vpop.permute.xlu1 %4637 }
 0x29e   :  { %v5381_v13 = vmax.f32 %v16182_v10, 0.0  ;;  %v16200_v18 = vadd.f32 %v15868_v60, %v5240_v38  ;;  %v2211_v9 = vrot.slane %v2134_v48, 1  ;;  %12319 = vmatprep.mubr.msk.f32.mxu0 %vm1886_vm3, %v2134_v48  ;;  %v2136_v49 = vsel %vm442_vm0, %v2133_v6, %v2135_v17 }
 0x29f   :  { %v16207_v50 = vadd.f32 %v15868_v60, %v5241_v4  ;;  %v5043_v57 = vrot.slane %v4891_v0, 1  ;;  %v2141_v30 = vsel %vm2140_vm5, %v2136_v49, 0.0  ;;  %v16213_v52 = vadd.f32 %v15868_v60, %v5242_v28 }
 0x2a0   :  { %v16216_v54 = vadd.f32 %v15868_v60, %v5243_v19  ;;  %v5045_v25 = vrot.slane %v16191_v24, 1  ;;  %v2213_v59 = vrot.slane %v2141_v30, 1  ;;  %12320 = vmatmul.mubr.msk.f32.gmra.mrb[34].mxu0 %vm1886_vm3, %v2141_v30  ;;  %v5518_v14 = vrot.slane %v5376_v26, 1  ;;  %v16250_v19 = vpop.permute.xlu0 %4633 }
 0x2a1   :  { %v5519_v27 = vrot.slane %v5377_v63, 1  ;;  %v5521_v41 = vrot.slane %v5378_v44, 1  ;;  %v2212_v33 = vsel %vm1100_vm2, %v2209_v47, %v2211_v9  ;;  %v5523_v42 = vrot.slane %v5379_v20, 1 }
 0x2a2   :  { %v5525_v39 = vrot.slane %v5380_v23, 1  ;;  %v5527_v53 = vrot.slane %v5381_v13, 1  ;;  %v5382_v34 = vmax.f32 %v16200_v18, 0.0  ;;  %12259 = vmatmul.mubr.msk.f32.gmra.mrb[26].mxu1 %vm1886_vm3, %v2212_v33  ;;  %v5383_v55 = vmax.f32 %v16207_v50, 0.0 }
 0x2a3   :  { %v5044_v29 = vsel %vm1100_vm2, %v5041_v61, %v5043_v57  ;;  %v4893_v38 = vmul.f32 %v15832_v8, %v16056_v46  ;;  %v2214_v47 = vsel %vm1100_vm2, %v2211_v9, %v2213_v59  ;;  %v4819_v4 = vmul.f32 %v15856_v37, %v16006_v11 }
 0x2a4   :  { %v5384_v62 = vmax.f32 %v16213_v52, 0.0  ;;  %v19027_v28 = vmax.f32 %v16216_v54, 0.0  ;;  %v5046_v0 = vsel %vm1100_vm2, %v5043_v57, %v5045_v25  ;;  %12261 = vmatprep.mubr.msk.f32.mxu1 %vm1886_vm3, %v2214_v47  ;;  %v5520_v31 = vsel %vm1100_vm2, %v5518_v14, %v5519_v27 }
 0x2a5   :  { %v5522_v61 = vsel %vm1100_vm2, %v5519_v27, %v5521_v41  ;;  %v4820_v6 = vmul.f32 %v15856_v37, %v16035_v15  ;;  %v4894_v11 = vmul.f32 %v15832_v8, %v16052_v22  ;;  %v5524_v24 = vsel %vm1100_vm2, %v5521_v41, %v5523_v42 }
 0x2a6   :  { %v5526_v17 = vsel %vm1100_vm2, %v5523_v42, %v5525_v39  ;;  %v5528_v48 = vsel %vm1100_vm2, %v5525_v39, %v5527_v53  ;;  %v5244_v18 = vadd.f32 %v5044_v29, %v4819_v4  ;;  %12262 = vmatmul.mubr.msk.f32.gmra.mrb[28].mxu1 %vm1886_vm3, %v2213_v59  ;;  %v5529_v9 = vrot.slane %v5382_v34, 1  ;;  %v16281_v39 = vpop.permute.xlu1 %4645  ;;  %v16289_v29 = vpop.permute.xlu0 %4641 }
 0x2a7   :  { %v5531_v49 = vrot.slane %v5383_v55, 1  ;;  %v5245_v50 = vadd.f32 %v5046_v0, %v4820_v6  ;;  %v5047_v57 = vrot.slane %v4893_v38, 1  ;;  %v16258_v15 = vmax.f32 %v5376_v26, %v5520_v31 }
 0x2a8   :  { %v5533_v30 = vrot.slane %v5384_v62, 1  ;;  %v16262_v52 = vrot.slane %v19027_v28, 1  ;;  %v16266_v14 = vmax.f32 %v5377_v63, %v5522_v61  ;;  %v16268_v27 = vmax.f32 %v5378_v44, %v5524_v24 }
 0x2a9   :  { %v5049_v59 = vrot.slane %v4894_v11, 1  ;;  %v4895_v41 = vmul.f32 %v15832_v8, %v16073_v45  ;;  %v16272_v33 = vmax.f32 %v5379_v20, %v5526_v17  ;;  %v16274_v2 = vmax.f32 %v5380_v23, %v5528_v48 }
 0x2aa   :  { %19089 = vst [vmem:[#allocation40_spill] sm:$0xff] %v16268_v27  ;;  %v4821_v26 = vmul.f32 %v15856_v37, %v16033_v43  ;;  %v16279_v42 = vadd.f32 %v15868_v60, %v5244_v18  ;;  %v5530_v12 = vsel %vm1100_vm2, %v5527_v53, %v5529_v9  ;;  %v5532_v63 = vsel %vm1100_vm2, %v5529_v9, %v5531_v49 }
 0x2ab   :  { %19090 = vst [vmem:[#allocation41_spill] sm:$0xff] %v16272_v33  ;;  %19091 = vst [vmem:[#allocation42_spill] sm:$0xff] %v16274_v2  ;;  %v16286_v44 = vadd.f32 %v15868_v60, %v5245_v50  ;;  %v5048_v20 = vsel %vm1100_vm2, %v5045_v25, %v5047_v57  ;;  %v5534_v23 = vsel %vm1100_vm2, %v5531_v49, %v5533_v30  ;;  %v5051_v4 = vrot.slane %v4895_v41, 1  ;;  %v16326_v41 = vpop.permute.xlu0 %4649 }
 0x2ac   :  { %v5536_v43 = vsel %vm1100_vm2, %v5533_v30, %v16262_v52  ;;  %v4822_v38 = vmul.f32 %v15856_v37, %v16056_v46  ;;  %v4896_v53 = vmul.f32 %v15832_v8, %v16070_v21  ;;  %v5050_v47 = vsel %vm1100_vm2, %v5047_v57, %v5049_v59  ;;  %v16321_v57 = vpop.permute.xlu1 %4653 }
 0x2ad   :  { %v4898_v0 = vmul.f32 %v15832_v8, %v16086_v3  ;;  %v4897_v25 = vmul.f32 %v15832_v8, %v16090_v35  ;;  %v19026_v31 = vmax.f32 %v16279_v42, 0.0  ;;  %v5246_v61 = vadd.f32 %v5048_v20, %v4821_v26 }
 0x2ae   :  { %v4900_v6 = vmul.f32 %v15832_v8, %v16109_v58  ;;  %v4899_v46 = vmul.f32 %v15832_v8, %v16111_v5  ;;  %v16310_v11 = vmax.f32 %v5381_v13, %v5530_v12  ;;  %v16312_v24 = vmax.f32 %v5382_v34, %v5532_v63 }
 0x2af   :  { %v19025_v17 = vmax.f32 %v16286_v44, 0.0  ;;  %v4823_v48 = vmul.f32 %v15856_v37, %v16052_v22  ;;  %v16317_v18 = vmax.f32 %v5383_v55, %v5534_v23  ;;  %v16319_v9 = vmax.f32 %v5384_v62, %v5536_v43 }
 0x2b0   :  { %19092 = vst [vmem:[#allocation43_spill] sm:$0xff] %v16310_v11  ;;  %19093 = vst [vmem:[#allocation44_spill] sm:$0xff] %v16312_v24  ;;  %v5247_v49 = vadd.f32 %v5050_v47, %v4822_v38  ;;  %v5053_v50 = vrot.slane %v4896_v53, 1  ;;  %v4825_v10 = vmul.f32 %v15856_v37, %v16070_v21  ;;  %v5052_v13 = vsel %vm1100_vm2, %v5049_v59, %v5051_v4 }
 0x2b1   :  { %19094 = vst [vmem:[#allocation45_spill] sm:$0xff] %v16317_v18  ;;  %19095 = vst [vmem:[#allocation46_spill] sm:$0xff] %v16319_v9  ;;  %v5057_v34 = vrot.slane %v4898_v0, 1  ;;  %v5055_v30 = vrot.slane %v4897_v25, 1  ;;  %v5537_v22 = vrot.slane %v19026_v31, 1  ;;  %v16331_v55 = vadd.f32 %v15868_v60, %v5246_v61 }
 0x2b2   :  { %v5061_v62 = vrot.slane %v4900_v6, 1  ;;  %v5059_v26 = vrot.slane %v4899_v46, 1  ;;  %v5539_v12 = vrot.slane %v19025_v17, 1  ;;  %v4824_v21 = vmul.f32 %v15856_v37, %v16073_v45 }
 0x2b3   :  { %v4902_v59 = vmul.f32 %v15832_v8, %v16142_v1  ;;  %v4901_v63 = vmul.f32 %v15832_v8, %v16145_v56  ;;  %v16342_v20 = vadd.f32 %v15868_v60, %v5247_v49  ;;  %v5054_v23 = vsel %vm1100_vm2, %v5051_v4, %v5053_v50 }
 0x2b4   :  { %v5248_v43 = vadd.f32 %v5052_v13, %v4823_v48  ;;  %v4827_v38 = vmul.f32 %v15856_v37, %v16086_v3  ;;  %v4826_v53 = vmul.f32 %v15856_v37, %v16090_v35  ;;  %v5056_v45 = vsel %vm1100_vm2, %v5053_v50, %v5055_v30  ;;  %v16360_v3 = vpop.permute.xlu1 %4661  ;;  %v16364_v50 = vpop.permute.xlu0 %4657 }
 0x2b5   :  { %v5058_v47 = vsel %vm1100_vm2, %v5055_v30, %v5057_v34  ;;  %v4903_v0 = vmul.f32 %v15832_v8, %v16179_v36  ;;  %v19030_v25 = vmax.f32 %v16331_v55, 0.0  ;;  %v5060_v61 = vsel %vm1100_vm2, %v5057_v34, %v5059_v26  ;;  %19096 = vst [vmem:[#allocation47_spill] sm:$0xff] %v16360_v3  ;;  %19097 = vst [vmem:[#allocation49_spill] sm:$0xff] %v16364_v50 }
 0x2b6   :  { %v5062_v4 = vsel %vm1100_vm2, %v5059_v26, %v5061_v62  ;;  %v16358_v6 = vmul.f32 %v15832_v8, %v16168_v32  ;;  %v5249_v35 = vadd.f32 %v5054_v23, %v4824_v21  ;;  %v4828_v46 = vmul.f32 %v15856_v37, %v16111_v5 }
 0x2b7   :  { %v5065_v48 = vrot.slane %v4902_v59, 1  ;;  %v5063_v49 = vrot.slane %v4901_v63, 1  ;;  %v5538_v13 = vsel %vm1100_vm2, %v16262_v52, %v5537_v22  ;;  %v16369_v34 = vadd.f32 %v15868_v60, %v5248_v43 }
 0x2b8   :  { %v5250_v30 = vadd.f32 %v5056_v45, %v4825_v10  ;;  %v5251_v26 = vadd.f32 %v5058_v47, %v4826_v53  ;;  %v5540_v17 = vsel %vm1100_vm2, %v5537_v22, %v5539_v12  ;;  %v5252_v31 = vadd.f32 %v5060_v61, %v4827_v38  ;;  %v16394_v47 = vpop.permute.xlu1 %4669 }
 0x2b9   :  { %v5253_v28 = vadd.f32 %v5062_v4, %v4828_v46  ;;  %v5067_v21 = vrot.slane %v4903_v0, 1  ;;  %v19029_v23 = vmax.f32 %v16342_v20, 0.0  ;;  %v5541_v5 = vrot.slane %v19030_v25, 1  ;;  %v16405_v4 = vpop.permute.xlu0 %4665 }
 0x2ba   :  { %v4829_v59 = vmul.f32 %v15856_v37, %v16109_v58  ;;  %v5069_v52 = vrot.slane %v16358_v6, 1  ;;  %v16379_v63 = vadd.f32 %v15868_v60, %v5249_v35  ;;  %v4831_v10 = vmul.f32 %v15856_v37, %v16142_v1 }
 0x2bb   :  { %v5064_v22 = vsel %vm1100_vm2, %v5061_v62, %v5063_v49  ;;  %v5066_v43 = vsel %vm1100_vm2, %v5063_v49, %v5065_v48  ;;  %v19028_v38 = vmax.f32 %v16369_v34, 0.0  ;;  %v16387_v53 = vadd.f32 %v15868_v60, %v5250_v30 }
 0x2bc   :  { %v16390_v45 = vadd.f32 %v15868_v60, %v5251_v26  ;;  %v4830_v58 = vmul.f32 %v15856_v37, %v16145_v56  ;;  %v16397_v0 = vadd.f32 %v15868_v60, %v5252_v31  ;;  %v16400_v1 = vadd.f32 %v15868_v60, %v5253_v28 }
 0x2bd   :  { %v5068_v62 = vsel %vm1100_vm2, %v5065_v48, %v5067_v21  ;;  %v4905_v61 = vmul.f32 %v15832_v8, %v16210_v51  ;;  %v5254_v6 = vadd.f32 %v5064_v22, %v4829_v59  ;;  %v5070_v46 = vsel %vm1100_vm2, %v5067_v21, %v5069_v52 }
 0x2be   :  { %v5255_v35 = vadd.f32 %v5066_v43, %v4830_v58  ;;  %v16410_v56 = vmul.f32 %v15832_v8, %v16204_v40  ;;  %v19098_v31 = vmax.f32 %v16216_v54, 0.0  ;;  %v5543_v28 = vrot.slane %v19029_v23, 1 }
 0x2bf   :  { %v5391_v48 = vmax.f32 %v16379_v63, 0.0  ;;  %v4832_v30 = vmul.f32 %v15856_v37, %v16179_v36  ;;  %v5542_v26 = vsel %vm1100_vm2, %v5539_v12, %v5541_v5  ;;  %v5545_v21 = vrot.slane %v19028_v38, 1  ;;  %v16448_v38 = vpop.permute.xlu0 %4673 }
 0x2c0   :  { %v16414_v49 = vmax.f32 %v19098_v31, %v5538_v13  ;;  %v5392_v8 = vmax.f32 %v16387_v53, 0.0  ;;  %v5256_v59 = vadd.f32 %v5068_v62, %v4831_v10  ;;  %v19031_v54 = vmax.f32 %v16390_v45, 0.0  ;;  %v16435_v31 = vpop.permute.xlu1 %4677 }
 0x2c1   :  { %v19032_v13 = vmax.f32 %v16397_v0, 0.0  ;;  %v5257_v22 = vadd.f32 %v5070_v46, %v4832_v30  ;;  %v5071_v43 = vrot.slane %v4905_v61, 1  ;;  %v19035_v58 = vmax.f32 %v16400_v1, 0.0 }
 0x2c2   :  { %19099 = vst [vmem:[#allocation48_spill] sm:$0xff] %v16414_v49  ;;  %v16429_v63 = vadd.f32 %v15868_v60, %v5254_v6  ;;  %v16432_v36 = vadd.f32 %v15868_v60, %v5255_v35  ;;  %v19100_v10 = vmax.f32 %v16279_v42, 0.0  ;;  %v5544_v61 = vsel %vm1100_vm2, %v5541_v5, %v5543_v28 }
 0x2c3   :  { %v19102_v46 = vmax.f32 %v16286_v44, 0.0  ;;  %v5547_v6 = vrot.slane %v5391_v48, 1  ;;  %v5546_v23 = vsel %vm1100_vm2, %v5543_v28, %v5545_v21  ;;  %v5549_v25 = vrot.slane %v5392_v8, 1 }
 0x2c4   :  { %v16441_v62 = vmax.f32 %v19100_v10, %v5540_v17  ;;  %v4833_v12 = vmul.f32 %v15856_v37, %v16168_v32  ;;  %v16456_v42 = vadd.f32 %v15868_v60, %v5256_v59  ;;  %v5551_v17 = vrot.slane %v19031_v54, 1 }
 0x2c5   :  { %v16446_v30 = vmax.f32 %v19102_v46, %v5542_v26  ;;  %v5553_v44 = vrot.slane %v19032_v13, 1  ;;  %v16463_v5 = vadd.f32 %v15868_v60, %v5257_v22  ;;  %v5072_v26 = vsel %vm1100_vm2, %v5069_v52, %v5071_v43  ;;  %v16481_v52 = vld [vmem:[#allocation7] ss:$0 sm:$0xff] }
 0x2c6   :  { %19101 = vst [vmem:[#allocation50_spill] sm:$0xff] %v16441_v62  ;;  %v5555_v28 = vrot.slane %v19035_v58, 1  ;;  %v5396_v10 = vmax.f32 %v16429_v63, 0.0  ;;  %v19105_v59 = vrot.slane %v16410_v56, 1  ;;  %v19106_v13 = vmax.f32 %v16331_v55, 0.0 }
 0x2c7   :  { %19103 = vst [vmem:[#allocation51_spill] sm:$0xff] %v16446_v30  ;;  %19104 = vst [vmem:[#allocation52_spill] sm:$0xff] %v16463_v5  ;;  %v4834_v60 = vmul.f32 %v15856_v37, %v16210_v51  ;;  %v16485_v22 = vmul.f32 %v16481_v52, %v16242_v7  ;;  %v4907_v63 = vmul.f32 %v16481_v52, %v16250_v19  ;;  %v19108_v37 = vmax.f32 %v16342_v20, 0.0 }
 0x2c8   :  { %v5074_v46 = vsel %vm1100_vm2, %v5071_v43, %v19105_v59  ;;  %v16477_v16 = vmax.f32 %v19106_v13, %v5544_v61  ;;  %v5548_v43 = vsel %vm1100_vm2, %v5545_v21, %v5547_v6  ;;  %v5550_v55 = vsel %vm1100_vm2, %v5547_v6, %v5549_v25  ;;  %v16494_v59 = vpop.permute.xlu1 %4685 }
 0x2c9   :  { %v5398_v13 = vmax.f32 %v16456_v42, 0.0  ;;  %v5258_v61 = vadd.f32 %v5072_v26, %v4833_v12  ;;  %v16498_v51 = vmax.f32 %v19108_v37, %v5546_v23  ;;  %v5552_v32 = vsel %vm1100_vm2, %v5549_v25, %v5551_v17 }
 0x2ca   :  { %19107 = vst [vmem:[#allocation53_spill] sm:$0xff] %v16477_v16  ;;  %v5259_v3 = vadd.f32 %v5074_v46, %v4834_v60  ;;  %v16502_v16 = vpop.permute.xlu0 %4681  ;;  %v5554_v21 = vsel %vm1100_vm2, %v5551_v17, %v5553_v44  ;;  %v5556_v6 = vsel %vm1100_vm2, %v5553_v44, %v5555_v28  ;;  %v5557_v30 = vrot.slane %v5396_v10, 1 }
 0x2cb   :  { %19109 = vst [vmem:[#allocation54_spill] sm:$0xff] %v16498_v51  ;;  %v19110_v12 = vmax.f32 %v16432_v36, 0.0  ;;  %v19111_v23 = vmax.f32 %v16369_v34, 0.0  ;;  %v16516_v37 = vmax.f32 %v5391_v48, %v5550_v55  ;;  %v5077_v46 = vrot.slane %v16485_v22, 1  ;;  %v16525_v51 = vld [vmem:[#allocation4] ss:$0 sm:$0xff] }
 0x2cc   :  { %v5075_v60 = vrot.slane %v4907_v63, 1  ;;  %v16523_v50 = vmax.f32 %v5392_v8, %v5552_v32  ;;  %v4835_v62 = vmul.f32 %v16525_v51, %v16204_v40  ;;  %v16529_v34 = vld [vmem:[#allocation9] ss:$0 sm:$0xff]  ;;  %v19116_v22 = vmax.f32 %v16390_v45, 0.0 }
 0x2cd   :  { %v5559_v42 = vrot.slane %v19110_v12, 1  ;;  %v16514_v25 = vmax.f32 %v19111_v23, %v5548_v43  ;;  %19113 = vst [vmem:[#allocation56_spill] sm:$0xff] %v16516_v37  ;;  %v5561_v12 = vrot.slane %v5398_v13, 1  ;;  %v16532_v48 = vadd.f32 %v16529_v34, %v5258_v61 }
 0x2ce   :  { %19114 = vst [vmem:[#allocation57_spill] sm:$0xff] %v16523_v50  ;;  %v16536_v63 = vmax.f32 %v19116_v22, %v5554_v21  ;;  %v19118_v43 = vmax.f32 %v16397_v0, 0.0  ;;  %v19120_v8 = vmax.f32 %v16463_v5, 0.0  ;;  %v16545_v23 = vadd.f32 %v16529_v34, %v5259_v3  ;;  %v16553_v21 = vpop.permute.xlu1 %4693 }
 0x2cf   :  { %19112 = vst [vmem:[#allocation55_spill] sm:$0xff] %v16514_v25  ;;  %19115 = vst [vmem:[#allocation58_spill] sm:$0xff] %v16532_v48  ;;  %v5558_v40 = vsel %vm1100_vm2, %v5555_v28, %v5557_v30  ;;  %v5560_v50 = vsel %vm1100_vm2, %v5557_v30, %v5559_v42  ;;  %v4837_v61 = vmul.f32 %v16525_v51, %v16242_v7  ;;  %v19122_v3 = vrot.slane %v16410_v56, 1  ;;  %v16575_v56 = vpop.permute.xlu0 %4689 }
 0x2d0   :  { %v16437_v53 = vpop.f32.mrb[0].mxu0  ;;  %19117 = vst [vmem:[#allocation59_spill] sm:$0xff] %v16536_v63  ;;  %v16540_v55 = vmax.f32 %v19118_v43, %v5556_v6  ;;  %v5563_v32 = vrot.slane %v19120_v8, 1  ;;  %19121 = vst [vmem:[#allocation61_spill] sm:$0xff] %v16545_v23  ;;  %v4909_v45 = vmul.f32 %v16481_v52, %v16289_v29  ;;  %v4836_v6 = vmul.f32 %v16525_v51, %v16250_v19 }
 0x2d1   :  { %v16450_v35 = vpop.f32.mrb[1].mxu0  ;;  %v5076_v22 = vsel %vm1100_vm2, %v19122_v3, %v5075_v60  ;;  %v5078_v28 = vsel %vm1100_vm2, %v5075_v60, %v5077_v46  ;;  %v16565_v30 = vmul.f32 %v16481_v52, %v16281_v39  ;;  %v5562_v7 = vsel %vm1100_vm2, %v5559_v42, %v5561_v12 }
 0x2d2   :  { %19119 = vst [vmem:[#allocation60_spill] sm:$0xff] %v16540_v55  ;;  %v16571_v8 = vmul.f32 %v16525_v51, %v16281_v39  ;;  %v4916_v19 = vmul.f32 %v16481_v52, %v16394_v47  ;;  %v19125_v60 = vmax.f32 %v16400_v1, 0.0  ;;  %v16583_v5 = vmax.f32 %v5396_v10, %v5560_v50 }
 0x2d3   :  { %19123 = vst [vmem:[#allocation62_spill] sm:$0xff] %v16565_v30  ;;  %v5564_v42 = vsel %vm1100_vm2, %v5561_v12, %v5563_v32  ;;  %v19039_v43 = vmax.f32 %v16545_v23, 0.0  ;;  %v5260_v63 = vadd.f32 %v5076_v22, %v4835_v62  ;;  %v5261_v39 = vadd.f32 %v5078_v28, %v4836_v6  ;;  %v16636_v1 = vpop.permute.xlu0 %4697 }
 0x2d4   :  { %v16473_v54 = vpop.f32.mrb[2].mxu0  ;;  %19124 = vst [vmem:[#allocation63_spill] sm:$0xff] %v16571_v8  ;;  %v16581_v55 = vmax.f32 %v19125_v60, %v5558_v40  ;;  %19127 = vst [vmem:[#allocation65_spill] sm:$0xff] %v16583_v5  ;;  %v4838_v8 = vmul.f32 %v16525_v51, %v16289_v29  ;;  %v5079_v37 = vrot.slane %v4909_v45, 1  ;;  %v19128_v49 = vmax.f32 %v16432_v36, 0.0  ;;  %v16612_v45 = vpop.permute.xlu1 %4701 }
 0x2d5   :  { %v16489_v58 = vpop.f32.mrb[3].mxu0  ;;  %v16598_v50 = vmul.f32 %v16481_v52, %v16321_v57  ;;  %v16602_v62 = vmul.f32 %v16481_v52, %v16405_v4  ;;  %v16606_v29 = vmax.f32 %v5398_v13, %v5564_v42  ;;  %v19133_v12 = vmax.f32 %v16532_v48, 0.0 }
 0x2d6   :  { %19126 = vst [vmem:[#allocation64_spill] sm:$0xff] %v16581_v55  ;;  %v16593_v9 = vmax.f32 %v19128_v49, %v5562_v7  ;;  %v5093_v36 = vrot.slane %v4916_v19, 1  ;;  %v4918_v49 = vmul.f32 %v16481_v52, %v16435_v31  ;;  %v16618_v22 = vrot.slane %v19039_v43, 1 }
 0x2d7   :  { %v16508_v26 = vpop.f32.mrb[0].mxu1  ;;  %19130 = vst [vmem:[#allocation67_spill] sm:$0xff] %v16598_v50  ;;  %19131 = vst [vmem:[#allocation68_spill] sm:$0xff] %v16602_v62  ;;  %v5565_v40 = vrot.slane %v19133_v12, 1  ;;  %v16622_v28 = vmul.f32 %v16525_v51, %v16321_v57  ;;  %v4917_v7 = vmul.f32 %v16481_v52, %v16448_v38  ;;  %v16630_v60 = vadd.f32 %v16529_v34, %v5260_v63 }
 0x2d8   :  { %v16510_v20 = vpop.f32.mrb[4].mxu0  ;;  %v16519_v17 = vpop.f32.mrb[1].mxu1  ;;  %19129 = vst [vmem:[#allocation66_spill] sm:$0xff] %v16593_v9  ;;  %19132 = vst [vmem:[#allocation69_spill] sm:$0xff] %v16606_v29  ;;  %v16633_v42 = vadd.f32 %v16529_v34, %v5261_v39  ;;  %v5080_v12 = vsel %vm1100_vm2, %v5077_v46, %v5079_v37  ;;  %v5097_v43 = vrot.slane %v4918_v49, 1  ;;  %v19138_v57 = vrot.slane %v16565_v30, 1 }
 0x2d9   :  { %v16521_v44 = vpop.f32.mrb[5].mxu0  ;;  %19134 = vst [vmem:[#allocation70_spill] sm:$0xff] %v16618_v22  ;;  %19135 = vst [vmem:[#allocation71_spill] sm:$0xff] %v16622_v28  ;;  %v16644_v23 = vmul.f32 %v16525_v51, %v16326_v41  ;;  %v4844_v63 = vmul.f32 %v16525_v51, %v16405_v4  ;;  %v16649_v39 = vsel %vm1100_vm2, %v5563_v32, %v5565_v40  ;;  %v19141_v46 = vrot.slane %v16602_v62, 1 }
 0x2da   :  { %19136 = vst [vmem:[#allocation72_spill] sm:$0xff] %v16630_v60  ;;  %19137 = vst [vmem:[#allocation73_spill] sm:$0xff] %v16633_v42  ;;  %v5082_v13 = vsel %vm1100_vm2, %v5079_v37, %v19138_v57  ;;  %v5095_v29 = vrot.slane %v4917_v7, 1  ;;  %v4920_v37 = vmul.f32 %v16481_v52, %v16494_v59  ;;  %v5262_v57 = vadd.f32 %v5080_v12, %v4837_v61  ;;  %v16670_v61 = vpop.permute.xlu1 %4709 }
 0x2db   :  { %19139 = vst [vmem:[#allocation74_spill] sm:$0xff] %v16644_v23  ;;  %19140 = vst [vmem:[#allocation75_spill] sm:$0xff] %v16649_v39  ;;  %v5094_v49 = vsel %vm1100_vm2, %v19141_v46, %v5093_v36  ;;  %v4845_v28 = vmul.f32 %v16525_v51, %v16394_v47  ;;  %v4846_v23 = vmul.f32 %v16525_v51, %v16448_v38 }
 0x2dc   :  { %v16555_v0 = vpop.f32.mrb[6].mxu0  ;;  %v5269_v50 = vadd.f32 %v5094_v49, %v4844_v63  ;;  %v16662_v4 = vsel %vm1100_vm2, %v5565_v40, %v16618_v22  ;;  %v16666_v32 = vmul.f32 %v16481_v52, %v16326_v41  ;;  %v5096_v7 = vsel %vm1100_vm2, %v5093_v36, %v5095_v29  ;;  %v4706_v36 = vpop.permute.xlu0 %4705 }
 0x2dd   :  { %v16577_v3 = vpop.f32.mrb[7].mxu0  ;;  %19142 = vst [vmem:[#allocation76_spill] sm:$0xff] %v16662_v4  ;;  %v5098_v46 = vsel %vm1100_vm2, %v5095_v29, %v5097_v43  ;;  %v5270_v63 = vadd.f32 %v5096_v7, %v4845_v28  ;;  %v16679_v41 = vadd.f32 %v5082_v13, %v4838_v8  ;;  %v5101_v22 = vrot.slane %v4920_v37, 1 }
 0x2de   :  { %19143 = vst [vmem:[#allocation77_spill] sm:$0xff] %v16666_v32  ;;  %v5340_v38 = vadd.f32 %v16529_v34, %v5269_v50  ;;  %v5271_v49 = vadd.f32 %v5098_v46, %v4846_v23  ;;  %v4919_v29 = vmul.f32 %v16481_v52, %v16502_v16  ;;  %v16684_v9 = vadd.f32 %v16529_v34, %v5262_v57  ;;  %v16702_v23 = vpop.permute.xlu1 %4717 }
 0x2df   :  { %19144 = vst [vmem:[#allocation78_spill] sm:$0xff] %v16679_v41  ;;  %v5341_v47 = vadd.f32 %v16529_v34, %v5270_v63  ;;  %v4922_v8 = vmul.f32 %v16481_v52, %v16553_v21  ;;  %v4921_v13 = vmul.f32 %v16481_v52, %v16575_v56  ;;  %v4847_v37 = vmul.f32 %v16525_v51, %v16435_v31 }
 0x2e0   :  { %v16589_v25 = vpop.f32.mrb[8].mxu0  ;;  %19145 = vst [vmem:[#allocation79_spill] sm:$0xff] %v16684_v9  ;;  %v5411_v5 = vmax.f32 %v5340_v38, 0.0  ;;  %v16688_v50 = vadd.f32 %v16529_v34, %v5271_v49  ;;  %v5099_v28 = vrot.slane %v4919_v29, 1  ;;  %v4848_v46 = vmul.f32 %v16525_v51, %v16502_v16 }
 0x2e1   :  { %v16604_v10 = vpop.f32.mrb[9].mxu0  ;;  %v5412_v57 = vmax.f32 %v5341_v47, 0.0  ;;  %v5105_v49 = vrot.slane %v4922_v8, 1  ;;  %v5103_v29 = vrot.slane %v4921_v13, 1  ;;  %v4849_v47 = vmul.f32 %v16525_v51, %v16494_v59  ;;  %v16716_v8 = vpop.permute.xlu0 %4713 }
 0x2e2   :  { %v16614_v6 = vpop.f32.mrb[2].mxu1  ;;  %v5413_v7 = vmax.f32 %v16688_v50, 0.0  ;;  %v5100_v38 = vsel %vm1100_vm2, %v5097_v43, %v5099_v28  ;;  %v5102_v63 = vsel %vm1100_vm2, %v5099_v28, %v5101_v22  ;;  %v16706_v55 = vrot.slane %v5411_v5, 1 }
 0x2e3   :  { %v16627_v19 = vpop.f32.mrb[3].mxu1  ;;  %v5589_v30 = vrot.slane %v5412_v57, 1  ;;  %v5272_v16 = vadd.f32 %v5100_v38, %v4847_v37  ;;  %v5273_v32 = vadd.f32 %v5102_v63, %v4848_v46  ;;  %v4851_v43 = vmul.f32 %v16525_v51, %v16553_v21 }
 0x2e4   :  { %19146 = vst [vmem:[#allocation80_spill] sm:$0xff] %v16706_v55  ;;  %v5591_v31 = vrot.slane %v5413_v7, 1  ;;  %v4850_v28 = vmul.f32 %v16525_v51, %v16575_v56  ;;  %v5104_v41 = vsel %vm1100_vm2, %v5101_v22, %v5103_v29  ;;  %v5106_v59 = vsel %vm1100_vm2, %v5103_v29, %v5105_v49 }
 0x2e5   :  { %v5590_v13 = vsel %vm1100_vm2, %v16706_v55, %v5589_v30  ;;  %v5343_v46 = vadd.f32 %v16529_v34, %v5272_v16  ;;  %v5344_v21 = vadd.f32 %v16529_v34, %v5273_v32  ;;  %v5274_v38 = vadd.f32 %v5104_v41, %v4849_v47 }
 0x2e6   :  { %v5592_v9 = vsel %vm1100_vm2, %v5589_v30, %v5591_v31  ;;  %v16723_v42 = vmax.f32 %v5411_v5, %v5590_v13  ;;  %v5275_v56 = vadd.f32 %v5106_v59, %v4850_v28  ;;  %v4853_v63 = vmul.f32 %v16525_v51, %v16612_v45 }
 0x2e7   :  { %v5766_v37 = vmax.f32 %v5412_v57, %v5592_v9  ;;  %v4924_v55 = vmul.f32 %v16481_v52, %v16612_v45  ;;  %v5414_v30 = vmax.f32 %v5343_v46, 0.0  ;;  %v5415_v22 = vmax.f32 %v5344_v21, 0.0  ;;  %v4726_v57 = vpop.permute.xlu1 %4725 }
 0x2e8   :  { %v16672_v12 = vpop.f32.mrb[10].mxu0  ;;  %19147 = vst [vmem:[#allocation81_spill] sm:$0xff] %v16723_v42  ;;  %v4852_v5 = vmul.f32 %v16525_v51, %v16636_v1  ;;  %v4923_v9 = vmul.f32 %v16481_v52, %v16636_v1  ;;  %v5345_v41 = vadd.f32 %v16529_v34, %v5274_v38  ;;  %v16740_v29 = vadd.f32 %v16529_v34, %v5275_v56 }
 0x2e9   :  { %v16676_v40 = vpop.f32.mrb[11].mxu0  ;;  %5837 = vst.msk [vmem:[#allocation2 + $0x120] sm:$0xff] %vm1886_vm3, %v5766_v37  ;;  %v5109_v47 = vrot.slane %v4924_v55, 1  ;;  %v16744_v45 = vmul.f32 %v16525_v51, %v16670_v61  ;;  %v5593_v28 = vrot.slane %v5414_v30, 1  ;;  %v5595_v13 = vrot.slane %v5415_v22, 1  ;;  %v4722_v37 = vpop.permute.xlu0 %4721 }
 0x2ea   :  { %v5107_v59 = vrot.slane %v4923_v9, 1  ;;  %v16750_v1 = vmul.f32 %v16481_v52, %v16670_v61  ;;  %v5416_v46 = vmax.f32 %v5345_v41, 0.0  ;;  %v5417_v21 = vmax.f32 %v16740_v29, 0.0 }
 0x2eb   :  { %v4854_v38 = vmul.f32 %v16525_v51, %v4706_v36  ;;  %v4925_v55 = vmul.f32 %v16481_v52, %v4706_v36  ;;  %v5594_v56 = vsel %vm1100_vm2, %v5591_v31, %v5593_v28  ;;  %v5596_v42 = vsel %vm1100_vm2, %v5593_v28, %v5595_v13  ;;  %v4734_v11 = vpop.permute.xlu1 %4733 }
 0x2ec   :  { %v5108_v60 = vsel %vm1100_vm2, %v5105_v49, %v5107_v59  ;;  %v5110_v9 = vsel %vm1100_vm2, %v5107_v59, %v5109_v47  ;;  %v5767_v48 = vmax.f32 %v5413_v7, %v5594_v56  ;;  %v5768_v4 = vmax.f32 %v5414_v30, %v5596_v42 }
 0x2ed   :  { %v5597_v61 = vrot.slane %v5416_v46, 1  ;;  %v5599_v39 = vrot.slane %v5417_v21, 1  ;;  %v5276_v18 = vadd.f32 %v5108_v60, %v4851_v43  ;;  %v5277_v41 = vadd.f32 %v5110_v9, %v4852_v5 }
 0x2ee   :  { %v16704_v62 = vpop.f32.mrb[4].mxu1  ;;  %v5113_v29 = vrot.slane %v16750_v1, 1  ;;  %v5111_v24 = vrot.slane %v4925_v55, 1  ;;  %5838 = vst.msk [vmem:[#allocation2 + $0x128] sm:$0xff] %vm1886_vm3, %v5767_v48  ;;  %5839 = vst.msk [vmem:[#allocation2 + $0x130] sm:$0xff] %vm1886_vm3, %v5768_v4  ;;  %v16768_v42 = vmul.f32 %v16525_v51, %v16702_v23  ;;  %v4928_v60 = vmul.f32 %v16481_v52, %v16702_v23  ;;  %v4730_v4 = vpop.permute.xlu0 %4729 }
 0x2ef   :  { %v16710_v50 = vpop.f32.mrb[5].mxu1  ;;  %v5598_v36 = vsel %vm1100_vm2, %v5595_v13, %v5597_v61  ;;  %v5600_v49 = vsel %vm1100_vm2, %v5597_v61, %v5599_v39  ;;  %v5347_v30 = vadd.f32 %v16529_v34, %v5276_v18  ;;  %v5348_v48 = vadd.f32 %v16529_v34, %v5277_v41 }
 0x2f0   :  { %v5769_v31 = vmax.f32 %v5415_v22, %v5598_v36  ;;  %v5770_v43 = vmax.f32 %v5416_v46, %v5600_v49  ;;  %v5112_v5 = vsel %vm1100_vm2, %v5109_v47, %v5111_v24  ;;  %v5114_v28 = vsel %vm1100_vm2, %v5111_v24, %v5113_v29  ;;  %v4742_v36 = vpop.permute.xlu1 %4741 }
 0x2f1   :  { %v5117_v13 = vrot.slane %v4928_v60, 1  ;;  %v4856_v59 = vmul.f32 %v16525_v51, %v16716_v8  ;;  %v5418_v23 = vmax.f32 %v5347_v30, 0.0  ;;  %v5419_v22 = vmax.f32 %v5348_v48, 0.0 }
 0x2f2   :  { %5840 = vst.msk [vmem:[#allocation2 + $0x138] sm:$0xff] %vm1886_vm3, %v5769_v31  ;;  %5841 = vst.msk [vmem:[#allocation2 + $0x140] sm:$0xff] %vm1886_vm3, %v5770_v43  ;;  %v5278_v1 = vadd.f32 %v5112_v5, %v4853_v63  ;;  %v5279_v46 = vadd.f32 %v5114_v28, %v4854_v38  ;;  %v4927_v18 = vmul.f32 %v16481_v52, %v16716_v8  ;;  %v4738_v5 = vpop.permute.xlu0 %4737 }
 0x2f3   :  { %v16736_v32 = vpop.f32.mrb[12].mxu0  ;;  %v16785_v55 = vmul.f32 %v16525_v51, %v4726_v57  ;;  %v4930_v24 = vmul.f32 %v16481_v52, %v4726_v57  ;;  %v4858_v47 = vmul.f32 %v16525_v51, %v4722_v37  ;;  %v5601_v56 = vrot.slane %v5418_v23, 1 }
 0x2f4   :  { %v16746_v16 = vpop.f32.mrb[13].mxu0  ;;  %v5603_v9 = vrot.slane %v5419_v22, 1  ;;  %v5349_v61 = vadd.f32 %v16529_v34, %v5278_v1  ;;  %v16791_v41 = vadd.f32 %v16529_v34, %v5279_v46  ;;  %v5115_v38 = vrot.slane %v4927_v18, 1 }
 0x2f5   :  { %v5121_v49 = vrot.slane %v4930_v24, 1  ;;  %v4929_v8 = vmul.f32 %v16481_v52, %v4722_v37  ;;  %v16797_v60 = vmul.f32 %v16525_v51, %v4734_v11  ;;  %v5602_v31 = vsel %vm1100_vm2, %v5599_v39, %v5601_v56 }
 0x2f6   :  { %v5604_v43 = vsel %vm1100_vm2, %v5601_v56, %v5603_v9  ;;  %v5420_v30 = vmax.f32 %v5349_v61, 0.0  ;;  %v5421_v48 = vmax.f32 %v16791_v41, 0.0  ;;  %v5771_v28 = vmax.f32 %v5417_v21, %v5602_v31 }
 0x2f7   :  { %v5772_v1 = vmax.f32 %v5418_v23, %v5604_v43  ;;  %v5116_v46 = vsel %vm1100_vm2, %v5113_v29, %v5115_v38  ;;  %v5118_v18 = vsel %vm1100_vm2, %v5115_v38, %v5117_v13  ;;  %v5119_v39 = vrot.slane %v4929_v8, 1 }
 0x2f8   :  { %v5605_v37 = vrot.slane %v5420_v30, 1  ;;  %v5607_v24 = vrot.slane %v5421_v48, 1  ;;  %v5280_v33 = vadd.f32 %v5116_v46, %v16744_v45  ;;  %v5281_v27 = vadd.f32 %v5118_v18, %v4856_v59  ;;  %5842 = vst.msk [vmem:[#allocation2 + $0x148] sm:$0xff] %vm1886_vm3, %v5771_v28  ;;  %v4750_v59 = vpop.permute.xlu1 %4749  ;;  %v4746_v46 = vpop.permute.xlu0 %4745 }
 0x2f9   :  { %5843 = vst.msk [vmem:[#allocation2 + $0x150] sm:$0xff] %vm1886_vm3, %v5772_v1  ;;  %v16810_v56 = vmul.f32 %v16481_v52, %v4734_v11  ;;  %v4860_v21 = vmul.f32 %v16525_v51, %v4730_v4  ;;  %v4931_v23 = vmul.f32 %v16481_v52, %v4730_v4  ;;  %v5120_v8 = vsel %vm1100_vm2, %v5117_v13, %v5119_v39 }
 0x2fa   :  { %v16760_v2 = vpop.f32.mrb[6].mxu1  ;;  %v5606_v29 = vsel %vm1100_vm2, %v5603_v9, %v5605_v37  ;;  %v5608_v61 = vsel %vm1100_vm2, %v5605_v37, %v5607_v24  ;;  %v5351_v41 = vadd.f32 %v16529_v34, %v5280_v33  ;;  %v5352_v45 = vadd.f32 %v16529_v34, %v5281_v27 }
 0x2fb   :  { %v16772_v7 = vpop.f32.mrb[7].mxu1  ;;  %v5773_v38 = vmax.f32 %v5419_v22, %v5606_v29  ;;  %v5774_v31 = vmax.f32 %v5420_v30, %v5608_v61  ;;  %v5122_v11 = vsel %vm1100_vm2, %v5119_v39, %v5121_v49  ;;  %v5282_v4 = vadd.f32 %v5120_v8, %v16768_v42 }
 0x2fc   :  { %v5422_v28 = vmax.f32 %v5351_v41, 0.0  ;;  %v5423_v1 = vmax.f32 %v5352_v45, 0.0  ;;  %v5283_v9 = vadd.f32 %v5122_v11, %v4858_v47  ;;  %v5125_v27 = vrot.slane %v16810_v56, 1 }
 0x2fd   :  { %5844 = vst.msk [vmem:[#allocation2 + $0x158] sm:$0xff] %vm1886_vm3, %v5773_v38  ;;  %5845 = vst.msk [vmem:[#allocation2 + $0x160] sm:$0xff] %vm1886_vm3, %v5774_v31  ;;  %v5123_v33 = vrot.slane %v4931_v23, 1  ;;  %v16829_v13 = vmul.f32 %v16525_v51, %v4742_v36  ;;  %v4934_v22 = vmul.f32 %v16481_v52, %v4742_v36  ;;  %v5353_v42 = vadd.f32 %v16529_v34, %v5282_v4  ;;  %v4758_v36 = vpop.permute.xlu1 %4757 }
 0x2fe   :  { %v5609_v30 = vrot.slane %v5422_v28, 1  ;;  %v5611_v37 = vrot.slane %v5423_v1, 1  ;;  %v5354_v47 = vadd.f32 %v16529_v34, %v5283_v9  ;;  %v4862_v41 = vmul.f32 %v16525_v51, %v4738_v5 }
 0x2ff   :  { %v5124_v39 = vsel %vm1100_vm2, %v5121_v49, %v5123_v33  ;;  %v5126_v29 = vsel %vm1100_vm2, %v5123_v33, %v5125_v27  ;;  %v5129_v61 = vrot.slane %v4934_v22, 1  ;;  %v5424_v45 = vmax.f32 %v5353_v42, 0.0 }
 0x300   :  { %v16793_v63 = vpop.f32.mrb[14].mxu0  ;;  %v5610_v56 = vsel %vm1100_vm2, %v5607_v24, %v5609_v30  ;;  %v5612_v23 = vsel %vm1100_vm2, %v5609_v30, %v5611_v37  ;;  %v5425_v38 = vmax.f32 %v5354_v47, 0.0  ;;  %v5284_v4 = vadd.f32 %v5124_v39, %v16785_v55  ;;  %v4754_v30 = vpop.permute.xlu0 %4753 }
 0x301   :  { %v16799_v57 = vpop.f32.mrb[15].mxu0  ;;  %v5775_v8 = vmax.f32 %v5421_v48, %v5610_v56  ;;  %v5776_v11 = vmax.f32 %v5422_v28, %v5612_v23  ;;  %v5285_v9 = vadd.f32 %v5126_v29, %v4860_v21  ;;  %v5613_v33 = vrot.slane %v5424_v45, 1 }
 0x302   :  { %19148 = vst [vmem:[#allocation82_spill] sm:$0xff] %v16799_v57  ;;  %v5615_v22 = vrot.slane %v5425_v38, 1  ;;  %v4933_v57 = vmul.f32 %v16481_v52, %v4738_v5  ;;  %v16846_v24 = vmul.f32 %v16525_v51, %v4750_v59  ;;  %v5355_v48 = vadd.f32 %v16529_v34, %v5284_v4 }
 0x303   :  { %5846 = vst.msk [vmem:[#allocation2 + $0x168] sm:$0xff] %vm1886_vm3, %v5775_v8  ;;  %5847 = vst.msk [vmem:[#allocation2 + $0x170] sm:$0xff] %vm1886_vm3, %v5776_v11  ;;  %v16852_v28 = vadd.f32 %v16529_v34, %v5285_v9  ;;  %v16855_v55 = vmul.f32 %v16481_v52, %v4750_v59  ;;  %v4864_v21 = vmul.f32 %v16525_v51, %v4746_v46 }
 0x304   :  { %v5614_v5 = vsel %vm1100_vm2, %v5611_v37, %v5613_v33  ;;  %v5616_v42 = vsel %vm1100_vm2, %v5613_v33, %v5615_v22  ;;  %v5127_v47 = vrot.slane %v4933_v57, 1  ;;  %v4935_v39 = vmul.f32 %v16481_v52, %v4746_v46 }
 0x305   :  { %v5777_v29 = vmax.f32 %v5423_v1, %v5614_v5  ;;  %v5778_v56 = vmax.f32 %v5424_v45, %v5616_v42  ;;  %v5426_v23 = vmax.f32 %v5355_v48, 0.0  ;;  %v5427_v8 = vmax.f32 %v16852_v28, 0.0  ;;  %v4762_v28 = vpop.permute.xlu0 %4761 }
 0x306   :  { %v16820_v43 = vpop.f32.mrb[8].mxu1  ;;  %v5128_v11 = vsel %vm1100_vm2, %v5125_v27, %v5127_v47  ;;  %v5130_v4 = vsel %vm1100_vm2, %v5127_v47, %v5129_v61  ;;  %v5133_v59 = vrot.slane %v16855_v55, 1  ;;  %v5131_v9 = vrot.slane %v4935_v39, 1 }
 0x307   :  { %v16823_v18 = vpop.f32.mrb[9].mxu1  ;;  %5848 = vst.msk [vmem:[#allocation2 + $0x178] sm:$0xff] %vm1886_vm3, %v5777_v29  ;;  %5849 = vst.msk [vmem:[#allocation2 + $0x180] sm:$0xff] %vm1886_vm3, %v5778_v56  ;;  %v5617_v57 = vrot.slane %v5426_v23, 1  ;;  %v5619_v37 = vrot.slane %v5427_v8, 1  ;;  %v5286_v1 = vadd.f32 %v5128_v11, %v16797_v60  ;;  %v5287_v46 = vadd.f32 %v5130_v4, %v4862_v41 }
 0x308   :  { %v5132_v45 = vsel %vm1100_vm2, %v5129_v61, %v5131_v9  ;;  %v5134_v33 = vsel %vm1100_vm2, %v5131_v9, %v5133_v59  ;;  %v4867_v27 = vmul.f32 %v16525_v51, %v4758_v36  ;;  %v4938_v48 = vmul.f32 %v16481_v52, %v4758_v36 }
 0x309   :  { %v5618_v55 = vsel %vm1100_vm2, %v5615_v22, %v5617_v57  ;;  %v5620_v5 = vsel %vm1100_vm2, %v5617_v57, %v5619_v37  ;;  %v5357_v42 = vadd.f32 %v16529_v34, %v5286_v1  ;;  %v5358_v47 = vadd.f32 %v16529_v34, %v5287_v46 }
 0x30a   :  { %v5779_v60 = vmax.f32 %v5425_v38, %v5618_v55  ;;  %v5780_v41 = vmax.f32 %v5426_v23, %v5620_v5  ;;  %v5288_v61 = vadd.f32 %v5132_v45, %v16829_v13  ;;  %v5289_v29 = vadd.f32 %v5134_v33, %v4864_v21 }
 0x30b   :  { %v5428_v11 = vmax.f32 %v5357_v42, 0.0  ;;  %v5429_v36 = vmax.f32 %v5358_v47, 0.0  ;;  %v5137_v4 = vrot.slane %v4938_v48, 1  ;;  %v4866_v22 = vmul.f32 %v16525_v51, %v4754_v30  ;;  %v4770_v42 = vpop.permute.xlu0 %4769 }
 0x30c   :  { %v16839_v31 = vpop.f32.mrb[16].mxu0  ;;  %5850 = vst.msk [vmem:[#allocation2 + $0x188] sm:$0xff] %vm1886_vm3, %v5779_v60  ;;  %5851 = vst.msk [vmem:[#allocation2 + $0x190] sm:$0xff] %vm1886_vm3, %v5780_v41  ;;  %v5359_v9 = vadd.f32 %v16529_v34, %v5288_v61  ;;  %v16886_v57 = vadd.f32 %v16529_v34, %v5289_v29  ;;  %v4937_v38 = vmul.f32 %v16481_v52, %v4754_v30 }
 0x30d   :  { %19149 = vst [vmem:[#allocation83_spill] sm:$0xff] %v16839_v31  ;;  %v16842_v49 = vpop.f32.mrb[17].mxu0  ;;  %v5621_v23 = vrot.slane %v5428_v11, 1  ;;  %v5623_v1 = vrot.slane %v5429_v36, 1  ;;  %v4868_v45 = vmul.f32 %v16525_v51, %v4762_v28  ;;  %v4939_v5 = vmul.f32 %v16481_v52, %v4762_v28 }
 0x30e   :  { %19150 = vst [vmem:[#allocation84_spill] sm:$0xff] %v16842_v49  ;;  %v4766_v49 = vpop.permute.xlu1 %4765  ;;  %v5430_v33 = vmax.f32 %v5359_v9, 0.0  ;;  %v5431_v48 = vmax.f32 %v16886_v57, 0.0  ;;  %v5135_v55 = vrot.slane %v4937_v38, 1 }
 0x30f   :  { %v16890_v13 = vmul.f32 %v16525_v51, %v4766_v49  ;;  %v4940_v46 = vmul.f32 %v16481_v52, %v4766_v49  ;;  %v5622_v47 = vsel %vm1100_vm2, %v5619_v37, %v5621_v23  ;;  %v5624_v30 = vsel %vm1100_vm2, %v5621_v23, %v5623_v1 }
 0x310   :  { %v5781_v49 = vmax.f32 %v5427_v8, %v5622_v47  ;;  %v5782_v29 = vmax.f32 %v5428_v11, %v5624_v30  ;;  %v5627_v9 = vrot.slane %v5431_v48, 1  ;;  %v5136_v57 = vsel %vm1100_vm2, %v5133_v59, %v5135_v55 }
 0x311   :  { %v5141_v60 = vrot.slane %v4940_v46, 1  ;;  %v5138_v28 = vsel %vm1100_vm2, %v5135_v55, %v5137_v4  ;;  %v5139_v38 = vrot.slane %v4939_v5, 1  ;;  %v5290_v11 = vadd.f32 %v5136_v57, %v16846_v24 }
 0x312   :  { %v4774_v21 = vpop.permute.xlu1 %4773  ;;  %5852 = vst.msk [vmem:[#allocation2 + $0x198] sm:$0xff] %vm1886_vm3, %v5781_v49  ;;  %5853 = vst.msk [vmem:[#allocation2 + $0x1a0] sm:$0xff] %vm1886_vm3, %v5782_v29  ;;  %v5291_v46 = vadd.f32 %v5138_v28, %v4866_v22 }
 0x313   :  { %v16899_v41 = vmul.f32 %v16525_v51, %v4774_v21  ;;  %v4942_v37 = vmul.f32 %v16481_v52, %v4774_v21  ;;  %v5140_v59 = vsel %vm1100_vm2, %v5137_v4, %v5139_v38  ;;  %v5142_v55 = vsel %vm1100_vm2, %v5139_v38, %v5141_v60 }
 0x314   :  { %v5361_v21 = vadd.f32 %v16529_v34, %v5290_v11  ;;  %v5362_v5 = vadd.f32 %v16529_v34, %v5291_v46  ;;  %v5292_v49 = vadd.f32 %v5140_v59, %v4867_v27  ;;  %v5293_v29 = vadd.f32 %v5142_v55, %v4868_v45 }
 0x315   :  { %v5145_v24 = vrot.slane %v4942_v37, 1 }
 0x316   :  { %v16876_v39 = vpop.f32.mrb[10].mxu1  ;;  %v4782_v47 = vpop.permute.xlu1 %4781  ;;  %v5432_v22 = vmax.f32 %v5361_v21, 0.0  ;;  %v16926_v27 = vadd.f32 %v16529_v34, %v5293_v29 }
 0x317   :  { %19151 = vst [vmem:[#allocation85_spill] sm:$0xff] %v16876_v39  ;;  %v16879_v56 = vpop.f32.mrb[11].mxu1  ;;  %v16922_v4 = vmul.f32 %v16525_v51, %v4782_v47  ;;  %v16929_v57 = vmul.f32 %v16481_v52, %v4782_v47 }
 0x318   :  { %19152 = vst [vmem:[#allocation86_spill] sm:$0xff] %v16879_v56  ;;  %v5625_v56 = vrot.slane %v5430_v33, 1  ;;  %v5629_v38 = vrot.slane %v5432_v22, 1 }
 0x319   :  { %v16901_v61 = vpop.f32.mrb[18].mxu0  ;;  %v5149_v46 = vrot.slane %v16929_v57, 1 }
 0x31a   :  { %19153 = vst [vmem:[#allocation87_spill] sm:$0xff] %v16901_v61  ;;  %v16903_v31 = vpop.f32.mrb[19].mxu0  ;;  %v5626_v23 = vsel %vm1100_vm2, %v5623_v1, %v5625_v56  ;;  %v5628_v8 = vsel %vm1100_vm2, %v5625_v56, %v5627_v9  ;;  %v4778_v61 = vpop.permute.xlu0 %4777  ;;  %v4870_v56 = vmul.f32 %v16525_v51, %v4770_v42  ;;  %v5433_v1 = vmax.f32 %v5362_v5, 0.0 }
 0x31b   :  { %19154 = vst [vmem:[#allocation88_spill] sm:$0xff] %v16903_v31  ;;  %v5783_v30 = vmax.f32 %v5429_v36, %v5626_v23  ;;  %v5784_v31 = vmax.f32 %v5430_v33, %v5628_v8  ;;  %v4941_v36 = vmul.f32 %v16481_v52, %v4770_v42  ;;  %v5363_v33 = vadd.f32 %v16529_v34, %v5292_v49  ;;  %v4790_v59 = vpop.permute.xlu1 %4789 }
 0x31c   :  { %v4943_v28 = vmul.f32 %v16481_v52, %v4778_v61  ;;  %v5631_v42 = vrot.slane %v5433_v1, 1  ;;  %v5435_v23 = vmax.f32 %v16926_v27, 0.0  ;;  %v5630_v47 = vsel %vm1100_vm2, %v5627_v9, %v5629_v38 }
 0x31d   :  { %5854 = vst.msk [vmem:[#allocation2 + $0x1a8] sm:$0xff] %vm1886_vm3, %v5783_v30  ;;  %5855 = vst.msk [vmem:[#allocation2 + $0x1b0] sm:$0xff] %vm1886_vm3, %v5784_v31  ;;  %v5143_v45 = vrot.slane %v4941_v36, 1  ;;  %v4872_v31 = vmul.f32 %v16525_v51, %v4778_v61  ;;  %v5434_v37 = vmax.f32 %v5363_v33, 0.0  ;;  %v5785_v49 = vmax.f32 %v5431_v48, %v5630_v47 }
 0x31e   :  { %v5147_v30 = vrot.slane %v4943_v28, 1  ;;  %v5632_v55 = vsel %vm1100_vm2, %v5629_v38, %v5631_v42  ;;  %v5635_v5 = vrot.slane %v5435_v23, 1  ;;  %v4786_v38 = vpop.permute.xlu0 %4785 }
 0x31f   :  { %v5144_v8 = vsel %vm1100_vm2, %v5141_v60, %v5143_v45  ;;  %v5146_v11 = vsel %vm1100_vm2, %v5143_v45, %v5145_v24  ;;  %v5633_v21 = vrot.slane %v5434_v37, 1  ;;  %v5786_v29 = vmax.f32 %v5432_v22, %v5632_v55  ;;  %5856 = vst.msk [vmem:[#allocation2 + $0x1b8] sm:$0xff] %vm1886_vm3, %v5785_v49 }
 0x320   :  { %v5294_v36 = vadd.f32 %v5144_v8, %v16890_v13  ;;  %v5295_v33 = vadd.f32 %v5146_v11, %v4870_v56  ;;  %v5148_v9 = vsel %vm1100_vm2, %v5145_v24, %v5147_v30  ;;  %v5150_v28 = vsel %vm1100_vm2, %v5147_v30, %v5149_v46 }
 0x321   :  { %v5634_v45 = vsel %vm1100_vm2, %v5631_v42, %v5633_v21  ;;  %v5636_v57 = vsel %vm1100_vm2, %v5633_v21, %v5635_v5  ;;  %5857 = vst.msk [vmem:[#allocation2 + $0x1c0] sm:$0xff] %vm1886_vm3, %v5786_v29  ;;  %v16956_v42 = vld [vmem:[#allocation13] ss:$0 sm:$0xff]  ;;  %v5296_v8 = vadd.f32 %v5148_v9, %v16899_v41  ;;  %v5297_v24 = vadd.f32 %v5150_v28, %v4872_v31  ;;  %v4798_v21 = vpop.permute.xlu1 %4797 }
 0x322   :  { %v5787_v13 = vmax.f32 %v5433_v1, %v5634_v45  ;;  %v5788_v48 = vmax.f32 %v5434_v37, %v5636_v57  ;;  %v5365_v56 = vadd.f32 %v16529_v34, %v5294_v36  ;;  %v5366_v22 = vadd.f32 %v16529_v34, %v5295_v33 }
 0x323   :  { %v16960_v11 = vmul.f32 %v16525_v51, %v4790_v59  ;;  %v16963_v30 = vmul.f32 %v16481_v52, %v4790_v59  ;;  %v4874_v47 = vmul.f32 %v16525_v51, %v4786_v38  ;;  %v4945_v55 = vmul.f32 %v16481_v52, %v4786_v38 }
 0x324   :  { %5858 = vst.msk [vmem:[#allocation2 + $0x1c8] sm:$0xff] %vm1886_vm3, %v5787_v13  ;;  %5859 = vst.msk [vmem:[#allocation2 + $0x1d0] sm:$0xff] %vm1886_vm3, %v5788_v48  ;;  %v5436_v1 = vmax.f32 %v5365_v56, 0.0  ;;  %v5437_v37 = vmax.f32 %v5366_v22, 0.0  ;;  %v5367_v41 = vadd.f32 %v16529_v34, %v5296_v8  ;;  %v16971_v31 = vadd.f32 %v16529_v34, %v5297_v24  ;;  %v4794_v22 = vpop.permute.xlu0 %4793 }
 0x325   :  { %v5153_v49 = vrot.slane %v16963_v30, 1  ;;  %v16976_v59 = vadd.f32 %v16437_v53, %v16956_v42  ;;  %v5151_v33 = vrot.slane %v4945_v55, 1  ;;  %v2855_v45 = vadd.f32 %v16956_v42, %v16450_v35 }
 0x326   :  { %v16939_v61 = vpop.f32.mrb[12].mxu1  ;;  %v5637_v29 = vrot.slane %v5436_v1, 1  ;;  %v5639_v36 = vrot.slane %v5437_v37, 1  ;;  %v5438_v57 = vmax.f32 %v5367_v41, 0.0  ;;  %v5439_v9 = vmax.f32 %v16971_v31, 0.0 }
 0x327   :  { %v16942_v60 = vpop.f32.mrb[13].mxu1  ;;  %v19055_v28 = vmax.f32 %v16976_v59, 0.0  ;;  %v16983_v38 = vmul.f32 %v16525_v51, %v4798_v21  ;;  %v5152_v53 = vsel %vm1100_vm2, %v5149_v46, %v5151_v33  ;;  %v5154_v56 = vsel %vm1100_vm2, %v5151_v33, %v5153_v49 }
 0x328   :  { %v16944_v27 = vpop.f32.mrb[20].mxu0  ;;  %v5638_v13 = vsel %vm1100_vm2, %v5635_v5, %v5637_v29  ;;  %v5640_v48 = vsel %vm1100_vm2, %v5637_v29, %v5639_v36  ;;  %v5641_v35 = vrot.slane %v5438_v57, 1  ;;  %v5643_v30 = vrot.slane %v5439_v9, 1  ;;  %v4807_v29 = vpop.permute.xlu1 %4806 }
 0x329   :  { %v16950_v39 = vpop.f32.mrb[21].mxu0  ;;  %v5789_v8 = vmax.f32 %v5435_v23, %v5638_v13  ;;  %v5790_v24 = vmax.f32 %v5436_v1, %v5640_v48  ;;  %v5298_v55 = vadd.f32 %v5152_v53, %v16922_v4  ;;  %v5299_v41 = vadd.f32 %v5154_v56, %v4874_v47 }
 0x32a   :  { %19155 = vst [vmem:[#allocation89_spill] sm:$0xff] %v16950_v39  ;;  %v2964_v31 = vrot.slane %v19055_v28, 1  ;;  %v2891_v39 = vmax.f32 %v2855_v45, 0.0  ;;  %v5642_v46 = vsel %vm1100_vm2, %v5639_v36, %v5641_v35  ;;  %v5644_v5 = vsel %vm1100_vm2, %v5641_v35, %v5643_v30 }
 0x32b   :  { %5860 = vst.msk [vmem:[#allocation2 + $0x1d8] sm:$0xff] %vm1886_vm3, %v5789_v8  ;;  %5861 = vst.msk [vmem:[#allocation2 + $0x1e0] sm:$0xff] %vm1886_vm3, %v5790_v24  ;;  %v16997_v23 = vmul.f32 %v16481_v52, %v4798_v21  ;;  %v4876_v1 = vmul.f32 %v16525_v51, %v4794_v22  ;;  %v5791_v4 = vmax.f32 %v5437_v37, %v5642_v46 }
 0x32c   :  { %v5792_v47 = vmax.f32 %v5438_v57, %v5644_v5  ;;  %v5369_v33 = vadd.f32 %v16529_v34, %v5298_v55  ;;  %v17002_v45 = vadd.f32 %v16529_v34, %v5299_v41  ;;  %v2963_v13 = vrot.slane %v2891_v39, 1 }
 0x32d   :  { %v5157_v48 = vrot.slane %v16997_v23, 1  ;;  %v4947_v36 = vmul.f32 %v16481_v52, %v4794_v22  ;;  %v17008_v53 = vadd.f32 %v16473_v54, %v16956_v42  ;;  %5862 = vst.msk [vmem:[#allocation2 + $0x1e8] sm:$0xff] %vm1886_vm3, %v5791_v4  ;;  %v2857_v56 = vadd.f32 %v16956_v42, %v16489_v58 }
 0x32e   :  { %5863 = vst.msk [vmem:[#allocation2 + $0x1f0] sm:$0xff] %vm1886_vm3, %v5792_v47  ;;  %v5440_v37 = vmax.f32 %v5369_v33, 0.0  ;;  %v5441_v57 = vmax.f32 %v17002_v45, 0.0  ;;  %v4879_v8 = vmul.f32 %v16525_v51, %v4807_v29  ;;  %v2965_v22 = vsel %vm1100_vm2, %v2963_v13, %v2964_v31 }
 0x32f   :  { %v5155_v54 = vrot.slane %v4947_v36, 1  ;;  %v19056_v35 = vmax.f32 %v17008_v53, 0.0  ;;  %v4950_v55 = vmul.f32 %v16481_v52, %v4807_v29  ;;  %v3070_v23 = vmax.f32 %v2891_v39, %v2965_v22  ;;  %v4802_v36 = vpop.permute.xlu0 %4801 }
 0x330   :  { %v5645_v46 = vrot.slane %v5440_v37, 1  ;;  %v5647_v5 = vrot.slane %v5441_v57, 1  ;;  %v2893_v4 = vmax.f32 %v2857_v56, 0.0 }
 0x331   :  { %v5156_v58 = vsel %vm1100_vm2, %v5153_v49, %v5155_v54  ;;  %v5158_v33 = vsel %vm1100_vm2, %v5155_v54, %v5157_v48  ;;  %v17031_v45 = vrot.slane %v19056_v35, 1  ;;  %v5161_v13 = vrot.slane %v4950_v55, 1  ;;  %3106 = vst.msk [vmem:[#allocation2] sm:$0xff] %vm1886_vm3, %v3070_v23 }
 0x332   :  { %v5646_v29 = vsel %vm1100_vm2, %v5643_v30, %v5645_v46  ;;  %v5648_v28 = vsel %vm1100_vm2, %v5645_v46, %v5647_v5  ;;  %v5300_v39 = vadd.f32 %v5156_v58, %v16960_v11  ;;  %v5301_v56 = vadd.f32 %v5158_v33, %v4876_v1 }
 0x333   :  { %v5793_v22 = vmax.f32 %v5439_v9, %v5646_v29  ;;  %v2966_v49 = vrot.slane %v2893_v4, 1  ;;  %v4878_v55 = vmul.f32 %v16525_v51, %v4802_v36  ;;  %v4949_v30 = vmul.f32 %v16481_v52, %v4802_v36 }
 0x334   :  { %v17010_v21 = vpop.f32.mrb[14].mxu1  ;;  %v5371_v54 = vadd.f32 %v16529_v34, %v5300_v39  ;;  %v17039_v35 = vadd.f32 %v16529_v34, %v5301_v56  ;;  %v17051_v1 = vadd.f32 %v16510_v20, %v16956_v42  ;;  %v19158_v52 = vmax.f32 %v16976_v59, 0.0 }
 0x335   :  { %v17018_v24 = vpop.f32.mrb[15].mxu1  ;;  %5864 = vst.msk [vmem:[#allocation2 + $0x1f8] sm:$0xff] %vm1886_vm3, %v5793_v22  ;;  %v2967_v11 = vsel %vm1100_vm2, %v2964_v31, %v2966_v49  ;;  %v2969_v9 = vsel %vm1100_vm2, %v2966_v49, %v17031_v45  ;;  %v2859_v58 = vadd.f32 %v16956_v42, %v16521_v44  ;;  %v2706_v20 = vadd.f32 %v16555_v0, %v16508_v26 }
 0x336   :  { %v5443_v51 = vmax.f32 %v17039_v35, 0.0  ;;  %v3072_v46 = vmax.f32 %v2893_v4, %v2969_v9  ;;  %v2896_v31 = vmax.f32 %v17051_v1, 0.0  ;;  %v2701_v59 = vadd.f32 %v16577_v3, %v16519_v17 }
 0x337   :  { %v17023_v41 = vpop.f32.mrb[22].mxu0  ;;  %v2721_v1 = vadd.f32 %v16676_v40, %v16710_v50 }
 0x338   :  { %19156 = vst [vmem:[#allocation90_spill] sm:$0xff] %v17023_v41  ;;  %v17025_v47 = vpop.f32.mrb[23].mxu0  ;;  %v5304_v41 = vadd.f32 %v5161_v13, %v4879_v8  ;;  %v3071_v8 = vmax.f32 %v19158_v52, %v2967_v11  ;;  %3108 = vst.msk [vmem:[#allocation2 + $0x10] sm:$0xff] %vm1886_vm3, %v3072_v46  ;;  %v2972_v29 = vrot.slane %v2896_v31, 1  ;;  %v2862_v11 = vadd.f32 %v16956_v42, %v2706_v20 }
 0x339   :  { %19157 = vst [vmem:[#allocation91_spill] sm:$0xff] %v17025_v47  ;;  %v5794_v47 = vmax.f32 %v5440_v37, %v5648_v28  ;;  %v5442_v37 = vmax.f32 %v5371_v54, 0.0  ;;  %v2895_v54 = vmax.f32 %v2859_v58, 0.0  ;;  %v2861_v9 = vadd.f32 %v16956_v42, %v2701_v59 }
 0x33a   :  { %v5375_v28 = vadd.f32 %v16529_v34, %v5304_v41  ;;  %v5651_v34 = vrot.slane %v5443_v51, 1  ;;  %3107 = vst.msk [vmem:[#allocation2 + $0x8] sm:$0xff] %vm1886_vm3, %v3071_v8  ;;  %v13759_v8 = vmov 0.0|0.0   ;;  %v2865_v50 = vadd.f32 %v16956_v42, %v2721_v1 }
 0x33b   :  { %5865 = vst.msk [vmem:[#allocation2 + $0x200] sm:$0xff] %vm1886_vm3, %v5794_v47  ;;  %v5159_v47 = vrot.slane %v4949_v30, 1  ;;  %v5649_v33 = vrot.slane %v5442_v37, 1  ;;  %v17078_v30 = vld [vmem:[#allocation9] ss:$0 sm:$0xff]  ;;  %v2897_v52 = vmax.f32 %v2861_v9, 0.0  ;;  %12782 = vmatprep.subr.bf16.mxu1 %v13759_v8 }
 0x33c   :  { %v5446_v23 = vmax.f32 %v5375_v28, 0.0 }
 0x33d   :  { %v5160_v36 = vsel %vm1100_vm2, %v5157_v48, %v5159_v47  ;;  %v5162_v44 = vsel %vm1100_vm2, %v5159_v47, %v5161_v13  ;;  %v5650_v56 = vsel %vm1100_vm2, %v5647_v5, %v5649_v33  ;;  %v5652_v22 = vsel %vm1100_vm2, %v5649_v33, %v5651_v34 }
 0x33e   :  { %v5657_v4 = vrot.slane %v5446_v23, 1  ;;  %v5302_v26 = vadd.f32 %v5160_v36, %v16983_v38  ;;  %v5303_v0 = vadd.f32 %v5162_v44, %v4878_v55  ;;  %v5795_v17 = vmax.f32 %v5441_v57, %v5650_v56 }
 0x33f   :  { %v5796_v3 = vmax.f32 %v5442_v37, %v5652_v22  ;;  %v2970_v38 = vrot.slane %v2895_v54, 1  ;;  %v2716_v57 = vadd.f32 %v16589_v25, %v16614_v6  ;;  %v2711_v5 = vadd.f32 %v16604_v10, %v16627_v19  ;;  %v254_v10 = vld [vmem:[#allocation16] sm:$0xff]  ;;  %v255_v6 = vld [vmem:[#allocation16 + $0x8] sm:$0xff] }
 0x340   :  { %v17067_v41 = vpop.f32.mrb[16].mxu1  ;;  %v5800_v49 = vmax.f32 %v5446_v23, %v5657_v4  ;;  %v5373_v48 = vadd.f32 %v17078_v30, %v5302_v26  ;;  %v5374_v13 = vadd.f32 %v17078_v30, %v5303_v0  ;;  %5866 = vst.msk [vmem:[#allocation2 + $0x208] sm:$0xff] %vm1886_vm3, %v5795_v17  ;;  %v2898_v37 = vmax.f32 %v2862_v11, 0.0 }
 0x341   :  { %v17073_v39 = vpop.f32.mrb[17].mxu1  ;;  %5867 = vst.msk [vmem:[#allocation2 + $0x210] sm:$0xff] %vm1886_vm3, %v5796_v3  ;;  %v2971_v23 = vsel %vm1100_vm2, %v17031_v45, %v2970_v38  ;;  %v2973_v47 = vsel %vm1100_vm2, %v2970_v38, %v2972_v29  ;;  %v17098_v58 = vadd.f32 %v16956_v42, %v2716_v57  ;;  %v2863_v25 = vadd.f32 %v16956_v42, %v2711_v5  ;;  %v17101_v19 = vld [vmem:[#allocation2] ss:$2 sm:$0xff] }
 0x342   :  { %5871 = vst.msk [vmem:[#allocation2 + $0x230] sm:$0x7] %vm1957_vm4, %v5800_v49  ;;  %v5444_v55 = vmax.f32 %v5373_v48, 0.0  ;;  %v5445_v28 = vmax.f32 %v5374_v13, 0.0  ;;  %v19159_v36 = vmax.f32 %v17008_v53, 0.0  ;;  %v3074_v56 = vmax.f32 %v2895_v54, %v2973_v47 }
 0x343   :  { %v17092_v46 = vpop.f32.mrb[24].mxu0  ;;  %5801 = vst.msk [vmem:[#allocation2] sm:$0xff] %vm1886_vm3, %v16258_v15  ;;  %5802 = vst.msk [vmem:[#allocation2 + $0x8] sm:$0xff] %vm1886_vm3, %v16266_v14  ;;  %v2976_v45 = vrot.slane %v2898_v37, 1  ;;  %v2974_v22 = vrot.slane %v2897_v52, 1  ;;  %v2900_v26 = vmax.f32 %v17098_v58, 0.0  ;;  %v17117_v53 = vpack.c.bf16 %v255_v6, %v254_v10 }
 0x344   :  { %v17103_v33 = vpop.f32.mrb[25].mxu0  ;;  %v5653_v20 = vrot.slane %v5444_v55, 1  ;;  %v5655_v59 = vrot.slane %v5445_v28, 1  ;;  %v3073_v44 = vmax.f32 %v19159_v36, %v2971_v23  ;;  %v2899_v0 = vmax.f32 %v2863_v25, 0.0  ;;  %3110 = vst.msk [vmem:[#allocation2 + $0x20] sm:$0xff] %vm1886_vm3, %v3074_v56 }
 0x345   :  { %v2975_v48 = vsel %vm1100_vm2, %v2972_v29, %v2974_v22  ;;  %v2977_v13 = vsel %vm1100_vm2, %v2974_v22, %v2976_v45  ;;  %12784 = vmatpush3.bf16.msra.mxu1 %v17117_v53  ;;  %v2731_v38 = vadd.f32 %v16746_v16, %v16772_v7  ;;  %v3179_v57 = vrot.slane %v17101_v19, 6  ;;  %v19161_v19 = vld [vmem:[#allocation40_spill] sm:$0xff] }
 0x346   :  { %v5654_v17 = vsel %vm1100_vm2, %v5651_v34, %v5653_v20  ;;  %v5656_v3 = vsel %vm1100_vm2, %v5653_v20, %v5655_v59  ;;  %v5658_v49 = vsel %vm1100_vm2, %v5655_v59, %v5657_v4  ;;  %3109 = vst.msk [vmem:[#allocation2 + $0x18] sm:$0xff] %vm1886_vm3, %v3073_v44  ;;  %v3075_v34 = vmax.f32 %v2896_v31, %v2975_v48  ;;  %v19162_v20 = vld [vmem:[#allocation41_spill] sm:$0xff] }
 0x347   :  { %v5797_v15 = vmax.f32 %v5443_v51, %v5654_v17  ;;  %v5798_v14 = vmax.f32 %v5444_v55, %v5656_v3  ;;  %v5799_v54 = vmax.f32 %v5445_v28, %v5658_v49  ;;  %v2980_v4 = vrot.slane %v2900_v26, 1  ;;  %12785 = vmatprep.subr.bf16.mxu1 %v13759_v8 }
 0x348   :  { %v2978_v11 = vrot.slane %v2899_v0, 1  ;;  %v3076_v35 = vmax.f32 %v2897_v52, %v2977_v13  ;;  %v2726_v51 = vadd.f32 %v16672_v12, %v16704_v62  ;;  %v2736_v31 = vadd.f32 %v16736_v32, %v16760_v2  ;;  %3111 = vst.msk [vmem:[#allocation2 + $0x28] sm:$0xff] %vm1886_vm3, %v3075_v34 }
 0x349   :  { %5868 = vst.msk [vmem:[#allocation2 + $0x218] sm:$0xff] %vm1886_vm3, %v5797_v15  ;;  %5869 = vst.msk [vmem:[#allocation2 + $0x220] sm:$0xff] %vm1886_vm3, %v5798_v14  ;;  %v2867_v32 = vadd.f32 %v16956_v42, %v2731_v38  ;;  %v2901_v7 = vmax.f32 %v2865_v50, 0.0  ;;  %v13761_v5 = vmov 0.0   ;;  %v2746_v28 = vadd.f32 %v16793_v63, %v16820_v43  ;;  %v19165_v38 = vld [vmem:[#allocation85_spill] sm:$0xff]  ;;  %v19168_v50 = vld [vmem:[#allocation84_spill] sm:$0xff] }
 0x34a   :  { %5870 = vst.msk [vmem:[#allocation2 + $0x228] sm:$0xff] %vm1886_vm3, %v5799_v54  ;;  %v2979_v29 = vsel %vm1100_vm2, %v2976_v45, %v2978_v11  ;;  %v2981_v9 = vsel %vm1100_vm2, %v2978_v11, %v2980_v4  ;;  %3112 = vst.msk [vmem:[#allocation2 + $0x30] sm:$0xff] %vm1886_vm3, %v3076_v35  ;;  %v2866_v40 = vadd.f32 %v16956_v42, %v2726_v51  ;;  %12326 = vmatprep.mubr.msk.f32.mxu1 %vm13760_vm6, %v13761_v5  ;;  %v19163_v35 = vld [vmem:[#allocation42_spill] sm:$0xff]  ;;  %v19164_v51 = vld [vmem:[#allocation43_spill] sm:$0xff] }
 0x34b   :  { %v3077_v62 = vmax.f32 %v2898_v37, %v2979_v29  ;;  %v3078_v12 = vmax.f32 %v2899_v0, %v2981_v9  ;;  %v17147_v2 = vadd.f32 %v16956_v42, %v2736_v31  ;;  %v19160_v37 = vld [vmem:[#allocation82_spill] sm:$0xff]  ;;  %v2903_v25 = vmax.f32 %v2867_v32, 0.0 }
 0x34c   :  { %v2902_v16 = vmax.f32 %v2866_v40, 0.0  ;;  %v2741_v52 = vadd.f32 %v19160_v37, %v16823_v18  ;;  %v17163_v6 = vsel %vm442_vm0, 0.0, %v3179_v57  ;;  %v2982_v18 = vrot.slane %v2901_v7, 1  ;;  %v19167_v40 = vld [vmem:[#allocation86_spill] sm:$0xff] }
 0x34d   :  { %3113 = vst.msk [vmem:[#allocation2 + $0x38] sm:$0xff] %vm1886_vm3, %v3077_v62  ;;  %3114 = vst.msk [vmem:[#allocation2 + $0x40] sm:$0xff] %vm1886_vm3, %v3078_v12  ;;  %v3144_v55 = vld [vmem:[#allocation2 + $0x10] ss:$2 sm:$0xff]  ;;  %v2904_v47 = vmax.f32 %v17147_v2, 0.0  ;;  %v3218_v36 = vrot.slane %v17163_v6, 1  ;;  %v17175_v44 = vadd.f32 %v16956_v42, %v2746_v28  ;;  %v2751_v2 = vadd.f32 %v19168_v50, %v19167_v40 }
 0x34e   :  { %v3180_v10 = vrot.slane %v3144_v55, 6  ;;  %5803 = vst.msk [vmem:[#allocation2 + $0x10] sm:$0xff] %vm1886_vm3, %v19161_v19  ;;  %5804 = vst.msk [vmem:[#allocation2 + $0x18] sm:$0xff] %vm1886_vm3, %v19162_v20  ;;  %v2984_v43 = vrot.slane %v2902_v16, 1  ;;  %v2986_v22 = vrot.slane %v2903_v25, 1  ;;  %v2869_v17 = vadd.f32 %v16956_v42, %v2741_v52  ;;  %v19166_v62 = vld [vmem:[#allocation83_spill] sm:$0xff] }
 0x34f   :  { %v17159_v23 = vpop.f32.mrb[18].mxu1  ;;  %v2988_v45 = vrot.slane %v2904_v47, 1  ;;  %v2983_v3 = vsel %vm1100_vm2, %v2980_v4, %v2982_v18  ;;  %v2906_v14 = vmax.f32 %v17175_v44, 0.0  ;;  %v3145_v54 = vld [vmem:[#allocation2 + $0x20] ss:$2 sm:$0xff]  ;;  %v2756_v12 = vadd.f32 %v19166_v62, %v19165_v38 }
 0x350   :  { %v17169_v59 = vpop.f32.mrb[19].mxu1  ;;  %v17171_v63 = vpop.f32.mrb[26].mxu0  ;;  %v17180_v0 = vsel %vm442_vm0, %v3179_v57, %v3180_v10  ;;  %v2985_v49 = vsel %vm1100_vm2, %v2982_v18, %v2984_v43  ;;  %v3079_v48 = vmax.f32 %v2900_v26, %v2983_v3  ;;  %v2987_v34 = vsel %vm1100_vm2, %v2984_v43, %v2986_v22  ;;  %5805 = vst.msk [vmem:[#allocation2 + $0x20] sm:$0xff] %vm1886_vm3, %v19163_v35  ;;  %v19169_v57 = vld [vmem:[#allocation44_spill] sm:$0xff]  ;;  %v19177_v50 = vld [vmem:[#allocation91_spill] sm:$0xff] }
 0x351   :  { %v17177_v56 = vpop.f32.mrb[27].mxu0  ;;  %v3219_v15 = vrot.slane %v17180_v0, 1  ;;  %v3080_v13 = vmax.f32 %v2901_v7, %v2985_v49  ;;  %v2989_v11 = vsel %vm1100_vm2, %v2986_v22, %v2988_v45  ;;  %5806 = vst.msk [vmem:[#allocation2 + $0x28] sm:$0xff] %vm1886_vm3, %v19164_v51  ;;  %v3081_v4 = vmax.f32 %v2902_v16, %v2987_v34  ;;  %v19170_v16 = vld [vmem:[#allocation45_spill] sm:$0xff]  ;;  %v19171_v7 = vld [vmem:[#allocation87_spill] sm:$0xff]  ;;  %v19172_v28 = vld [vmem:[#allocation88_spill] sm:$0xff] }
 0x352   :  { %v3082_v1 = vmax.f32 %v2903_v25, %v2989_v11  ;;  %v2992_v29 = vrot.slane %v2906_v14, 1  ;;  %3115 = vst.msk [vmem:[#allocation2 + $0x48] sm:$0xff] %vm1886_vm3, %v3079_v48  ;;  %v2905_v58 = vmax.f32 %v2869_v17, 0.0  ;;  %v3182_v26 = vrot.slane %v3145_v54, 6  ;;  %v19176_v38 = vld [vmem:[#allocation48_spill] sm:$0xff] }
 0x353   :  { %v3220_v31 = vsel %vm1100_vm2, %v3218_v36, %v3219_v15  ;;  %3116 = vst.msk [vmem:[#allocation2 + $0x50] sm:$0xff] %vm1886_vm3, %v3080_v13  ;;  %3117 = vst.msk [vmem:[#allocation2 + $0x58] sm:$0xff] %vm1886_vm3, %v3081_v4  ;;  %v2766_v55 = vadd.f32 %v19171_v7, %v16939_v61  ;;  %v2761_v37 = vadd.f32 %v19172_v28, %v16942_v60  ;;  %v19173_v4 = vld [vmem:[#allocation89_spill] sm:$0xff]  ;;  %v19179_v7 = vld [vmem:[#allocation51_spill] sm:$0xff] }
 0x354   :  { %12327 = vmatmul.mubr.msk.f32.vlgmr.msra.gmra.mrb[30].mxu1 %vm1886_vm3, %v3220_v31  ;;  %v3146_v9 = vld [vmem:[#allocation2 + $0x30] ss:$2 sm:$0xff]  ;;  %3118 = vst.msk [vmem:[#allocation2 + $0x60] sm:$0xff] %vm1886_vm3, %v3082_v1  ;;  %v2776_v52 = vadd.f32 %v16944_v27, %v17010_v21  ;;  %v2990_v25 = vrot.slane %v2905_v58, 1  ;;  %v17220_v19 = vsel %vm442_vm0, %v3180_v10, %v3182_v26  ;;  %v2872_v20 = vadd.f32 %v16956_v42, %v2756_v12  ;;  %v252_v44 = vld [vmem:[#allocation15] sm:$0xff] }
 0x355   :  { %12329 = vmatprep.mubr.msk.f32.mxu1 %vm13760_vm6, %v13761_v5  ;;  %v3184_v32 = vrot.slane %v3146_v9, 6  ;;  %5807 = vst.msk [vmem:[#allocation2 + $0x30] sm:$0xff] %vm1886_vm3, %v19169_v57  ;;  %5808 = vst.msk [vmem:[#allocation2 + $0x38] sm:$0xff] %vm1886_vm3, %v19170_v16  ;;  %v2871_v43 = vadd.f32 %v16956_v42, %v2751_v2  ;;  %v3221_v18 = vrot.slane %v17220_v19, 1  ;;  %v17229_v61 = vadd.f32 %v16956_v42, %v2766_v55  ;;  %v19174_v31 = vld [vmem:[#allocation90_spill] sm:$0xff] }
 0x356   :  { %v2873_v60 = vadd.f32 %v16956_v42, %v2761_v37  ;;  %v2991_v27 = vsel %vm1100_vm2, %v2988_v45, %v2990_v25  ;;  %v2993_v21 = vsel %vm1100_vm2, %v2990_v25, %v2992_v29  ;;  %v2908_v22 = vmax.f32 %v2872_v20, 0.0  ;;  %v19175_v9 = vld [vmem:[#allocation46_spill] sm:$0xff] }
 0x357   :  { %v17226_v36 = vsel %vm442_vm0, %v3182_v26, %v3184_v32  ;;  %v3083_v17 = vmax.f32 %v2904_v47, %v2991_v27  ;;  %v3084_v3 = vmax.f32 %v2905_v58, %v2993_v21  ;;  %v3222_v49 = vsel %vm1100_vm2, %v3219_v15, %v3221_v18  ;;  %v19178_v16 = vld [vmem:[#allocation50_spill] sm:$0xff] }
 0x358   :  { %v3223_v10 = vrot.slane %v17226_v36, 1  ;;  %v2907_v54 = vmax.f32 %v2871_v43, 0.0  ;;  %12330 = vmatmul.mubr.msk.f32.gmra.mrb[32].mxu1 %vm1886_vm3, %v3222_v49  ;;  %v2996_v34 = vrot.slane %v2908_v22, 1  ;;  %v2910_v11 = vmax.f32 %v17229_v61, 0.0  ;;  %v17269_v28 = vpop.f32.mrb[28].mxu0  ;;  %v19184_v61 = vld [vmem:[#allocation56_spill] sm:$0xff] }
 0x359   :  { %v17236_v48 = vpop.f32.mrb[20].mxu1  ;;  %v2909_v45 = vmax.f32 %v2873_v60, 0.0  ;;  %3119 = vst.msk [vmem:[#allocation2 + $0x68] sm:$0xff] %vm1886_vm3, %v3083_v17  ;;  %3120 = vst.msk [vmem:[#allocation2 + $0x70] sm:$0xff] %vm1886_vm3, %v3084_v3  ;;  %12332 = vmatprep.mubr.msk.f32.mxu1 %vm13760_vm6, %v13761_v5  ;;  %v3147_v15 = vld [vmem:[#allocation2 + $0x40] ss:$2 sm:$0xff]  ;;  %v17248_v51 = vadd.f32 %v16956_v42, %v2776_v52  ;;  %v2771_v1 = vadd.f32 %v19173_v4, %v17018_v24 }
 0x35a   :  { %v3224_v13 = vsel %vm1100_vm2, %v3221_v18, %v3223_v10  ;;  %v17241_v35 = vpop.f32.mrb[21].mxu1  ;;  %v2994_v47 = vrot.slane %v2907_v54, 1  ;;  %v2786_v58 = vadd.f32 %v19174_v31, %v17067_v41  ;;  %v3186_v26 = vrot.slane %v3147_v15, 6  ;;  %5809 = vst.msk [vmem:[#allocation2 + $0x40] sm:$0xff] %vm1886_vm3, %v19175_v9  ;;  %5810 = vst.msk [vmem:[#allocation2 + $0x48] sm:$0xff] %vm1886_vm3, %v19176_v38  ;;  %v17278_v25 = vpop.f32.mrb[29].mxu0 }
 0x35b   :  { %v3000_v62 = vrot.slane %v2910_v11, 1  ;;  %v2998_v12 = vrot.slane %v2909_v45, 1  ;;  %v3148_v40 = vld [vmem:[#allocation2 + $0x50] ss:$2 sm:$0xff]  ;;  %v2781_v2 = vadd.f32 %v19177_v50, %v17073_v39  ;;  %v2912_v55 = vmax.f32 %v17248_v51, 0.0 }
 0x35c   :  { %v2995_v24 = vsel %vm1100_vm2, %v2992_v29, %v2994_v47  ;;  %v2997_v57 = vsel %vm1100_vm2, %v2994_v47, %v2996_v34  ;;  %v3188_v41 = vrot.slane %v3148_v40, 6  ;;  %5811 = vst.msk [vmem:[#allocation2 + $0x50] sm:$0xff] %vm1886_vm3, %v19178_v16  ;;  %5812 = vst.msk [vmem:[#allocation2 + $0x58] sm:$0xff] %vm1886_vm3, %v19179_v7  ;;  %12333 = vmatmul.mubr.msk.f32.gmra.mrb[34].mxu1 %vm1886_vm3, %v3224_v13  ;;  %v19180_v4 = vld [vmem:[#allocation53_spill] sm:$0xff]  ;;  %v19182_v50 = vld [vmem:[#allocation38_spill] sm:$0xff] }
 0x35d   :  { %v3085_v39 = vmax.f32 %v2906_v14, %v2995_v24  ;;  %v3086_v37 = vmax.f32 %v2907_v54, %v2997_v57  ;;  %v17275_v29 = vsel %vm442_vm0, %v3184_v32, %v3186_v26  ;;  %v2999_v52 = vsel %vm1100_vm2, %v2996_v34, %v2998_v12  ;;  %12335 = vmatprep.mubr.msk.f32.mxu1 %vm13760_vm6, %v13761_v5  ;;  %v253_v14 = vld [vmem:[#allocation15 + $0x8] sm:$0xff] }
 0x35e   :  { %v3225_v20 = vrot.slane %v17275_v29, 1  ;;  %v3001_v43 = vsel %vm1100_vm2, %v2998_v12, %v3000_v62  ;;  %v3087_v18 = vmax.f32 %v2908_v22, %v2999_v52  ;;  %v17285_v60 = vsel %vm442_vm0, %v3186_v26, %v3188_v41 }
 0x35f   :  { %3121 = vst.msk [vmem:[#allocation2 + $0x78] sm:$0xff] %vm1886_vm3, %v3085_v39  ;;  %3122 = vst.msk [vmem:[#allocation2 + $0x80] sm:$0xff] %vm1886_vm3, %v3086_v37  ;;  %v3088_v32 = vmax.f32 %v2909_v45, %v3001_v43  ;;  %v3227_v27 = vrot.slane %v17285_v60, 1  ;;  %v3004_v21 = vrot.slane %v2912_v55, 1  ;;  %v2875_v17 = vadd.f32 %v16956_v42, %v2771_v1 }
 0x360   :  { %v3226_v3 = vsel %vm1100_vm2, %v3223_v10, %v3225_v20  ;;  %3123 = vst.msk [vmem:[#allocation2 + $0x88] sm:$0xff] %vm1886_vm3, %v3087_v18  ;;  %v17296_v22 = vadd.f32 %v16956_v42, %v2786_v58  ;;  %v2877_v49 = vadd.f32 %v16956_v42, %v2781_v2  ;;  %v2796_v54 = vadd.f32 %v17092_v46, %v17159_v23  ;;  %v3149_v45 = vld [vmem:[#allocation2 + $0x60] ss:$2 sm:$0xff]  ;;  %v19181_v46 = vld [vmem:[#allocation54_spill] sm:$0xff]  ;;  %v12254_v7 = vpop.f32.mrb[22].mxu1 }
 0x361   :  { %12336 = vmatmul.mubr.msk.f32.gmra.mrb[36].mxu1 %vm1886_vm3, %v3226_v3  ;;  %3124 = vst.msk [vmem:[#allocation2 + $0x90] sm:$0xff] %vm1886_vm3, %v3088_v32  ;;  %v3228_v13 = vsel %vm1100_vm2, %v3225_v20, %v3227_v27  ;;  %v2911_v34 = vmax.f32 %v2875_v17, 0.0  ;;  %v2791_v10 = vadd.f32 %v17103_v33, %v17169_v59  ;;  %v17306_v47 = vpack.c.bf16 %v253_v14, %v252_v44  ;;  %v19183_v20 = vld [vmem:[#allocation55_spill] sm:$0xff]  ;;  %v2493_v43 = vpop.f32.mrb[23].mxu1  ;;  %v19185_v44 = vld [vmem:[#allocation57_spill] sm:$0xff] }
 0x362   :  { %12338 = vmatprep.mubr.msk.f32.mxu1 %vm13760_vm6, %v13761_v5  ;;  %v3190_v15 = vrot.slane %v3149_v45, 6  ;;  %5813 = vst.msk [vmem:[#allocation2 + $0x60] sm:$0xff] %vm1886_vm3, %v19180_v4  ;;  %5814 = vst.msk [vmem:[#allocation2 + $0x68] sm:$0xff] %vm1886_vm3, %v19181_v46  ;;  %v2914_v23 = vmax.f32 %v17296_v22, 0.0  ;;  %v2913_v1 = vmax.f32 %v2877_v49, 0.0  ;;  %v17316_v31 = vadd.f32 %v16956_v42, %v2796_v54  ;;  %v19186_v14 = vld [vmem:[#allocation59_spill] sm:$0xff] }
 0x363   :  { %v3002_v58 = vrot.slane %v2911_v34, 1  ;;  %v2879_v33 = vadd.f32 %v16956_v42, %v2791_v10  ;;  %12787 = vmatpush3.bf16.msra.mxu1 %v17306_v47  ;;  %v2806_v59 = vadd.f32 %v17171_v63, %v17236_v48  ;;  %v2801_v26 = vadd.f32 %v17177_v56, %v17241_v35  ;;  %v17369_v22 = vpop.f32.mrb[30].mxu0 }
 0x364   :  { %v17325_v9 = vsel %vm442_vm0, %v3188_v41, %v3190_v15  ;;  %v3008_v38 = vrot.slane %v2914_v23, 1  ;;  %v3006_v12 = vrot.slane %v2913_v1, 1  ;;  %v2916_v40 = vmax.f32 %v17316_v31, 0.0  ;;  %12805 = vmatprep.subr.bf16.mxu1 %v19182_v50  ;;  %v2820_v45 = vpop.f32.mrb[31].mxu0 }
 0x365   :  { %12339 = vmatmul.mubr.msk.f32.gmra.mrb[38].mxu1 %vm1886_vm3, %v3228_v13  ;;  %v3003_v2 = vsel %vm1100_vm2, %v3000_v62, %v3002_v58  ;;  %v3005_v24 = vsel %vm1100_vm2, %v3002_v58, %v3004_v21  ;;  %v3229_v63 = vrot.slane %v17325_v9, 1  ;;  %v2915_v48 = vmax.f32 %v2879_v33, 0.0  ;;  %v19187_v33 = vld [vmem:[#allocation75_spill] sm:$0xff] }
 0x366   :  { %v3089_v56 = vmax.f32 %v2910_v11, %v3003_v2  ;;  %v3090_v35 = vmax.f32 %v2911_v34, %v3005_v24  ;;  %12341 = vmatprep.mubr.msk.f32.mxu1 %vm13760_vm6, %v13761_v5  ;;  %v3007_v57 = vsel %vm1100_vm2, %v3004_v21, %v3006_v12  ;;  %v3009_v41 = vsel %vm1100_vm2, %v3006_v12, %v3008_v38  ;;  %v3150_v16 = vld [vmem:[#allocation2 + $0x70] ss:$2 sm:$0xff]  ;;  %v19190_v12 = vld [vmem:[#allocation76_spill] sm:$0xff] }
 0x367   :  { %v3230_v62 = vsel %vm1100_vm2, %v3227_v27, %v3229_v63  ;;  %v3091_v39 = vmax.f32 %v2912_v55, %v3007_v57  ;;  %v3092_v37 = vmax.f32 %v2913_v1, %v3009_v41  ;;  %v3192_v52 = vrot.slane %v3150_v16, 6  ;;  %5815 = vst.msk [vmem:[#allocation2 + $0x70] sm:$0xff] %vm1886_vm3, %v19183_v20  ;;  %5816 = vst.msk [vmem:[#allocation2 + $0x78] sm:$0xff] %vm1886_vm3, %v19184_v61  ;;  %v17346_v11 = vld [vmem:[#allocation2 + $0x80] ss:$2 sm:$0xff]  ;;  %v19191_v2 = vld [vmem:[#allocation58_spill] sm:$0xff] }
 0x368   :  { %3125 = vst.msk [vmem:[#allocation2 + $0x98] sm:$0xff] %vm1886_vm3, %v3089_v56  ;;  %3126 = vst.msk [vmem:[#allocation2 + $0xa0] sm:$0xff] %vm1886_vm3, %v3090_v35  ;;  %v3012_v18 = vrot.slane %v2916_v40, 1  ;;  %v3010_v51 = vrot.slane %v2915_v48, 1  ;;  %v3194_v55 = vrot.slane %v17346_v11, 6  ;;  %v17358_v32 = vadd.f32 %v16956_v42, %v2806_v59  ;;  %v19188_v59 = vld [vmem:[#allocation52_spill] sm:$0xff] }
 0x369   :  { %5817 = vst.msk [vmem:[#allocation2 + $0x80] sm:$0xff] %vm1886_vm3, %v19185_v44  ;;  %5818 = vst.msk [vmem:[#allocation2 + $0x88] sm:$0xff] %vm1886_vm3, %v19186_v14  ;;  %12342 = vmatmul.mubr.msk.f32.gmra.mrb[40].mxu1 %vm1886_vm3, %v3230_v62  ;;  %v17364_v27 = vsel %vm442_vm0, %v3190_v15, %v3192_v52  ;;  %v2881_v21 = vadd.f32 %v16956_v42, %v2801_v26  ;;  %v2816_v17 = vadd.f32 %v17269_v28, %v12254_v7  ;;  %v19195_v62 = vld [vmem:[#allocation73_spill] sm:$0xff]  ;;  %v19198_v61 = vld [vmem:[#allocation79_spill] sm:$0xff] }
 0x36a   :  { %3127 = vst.msk [vmem:[#allocation2 + $0xa8] sm:$0xff] %vm1886_vm3, %v3091_v39  ;;  %3128 = vst.msk [vmem:[#allocation2 + $0xb0] sm:$0xff] %vm1886_vm3, %v3092_v37  ;;  %v2811_v3 = vadd.f32 %v17278_v25, %v2493_v43  ;;  %12344 = vmatprep.mubr.msk.f32.mxu1 %vm13760_vm6, %v13761_v5  ;;  %v3231_v49 = vrot.slane %v17364_v27, 1  ;;  %v3011_v54 = vsel %vm1100_vm2, %v3008_v38, %v3010_v51  ;;  %v2918_v15 = vmax.f32 %v17358_v32, 0.0  ;;  %v19201_v14 = vld [vmem:[#allocation62_spill] sm:$0xff] }
 0x36b   :  { %v3013_v13 = vsel %vm1100_vm2, %v3010_v51, %v3012_v18  ;;  %v17379_v34 = vsel %vm442_vm0, %v3192_v52, %v3194_v55  ;;  %v3093_v28 = vmax.f32 %v2914_v23, %v3011_v54  ;;  %v2917_v46 = vmax.f32 %v2881_v21, 0.0  ;;  %v19197_v52 = vld [vmem:[#allocation78_spill] sm:$0xff]  ;;  %v19199_v51 = vld [vmem:[#allocation77_spill] sm:$0xff] }
 0x36c   :  { %v3094_v10 = vmax.f32 %v2915_v48, %v3013_v13  ;;  %v3233_v25 = vrot.slane %v17379_v34, 1  ;;  %v3232_v4 = vsel %vm1100_vm2, %v3229_v63, %v3231_v49  ;;  %v17385_v1 = vadd.f32 %v16956_v42, %v2816_v17  ;;  %v19193_v48 = vld [vmem:[#allocation72_spill] sm:$0xff] }
 0x36d   :  { %v2883_v58 = vadd.f32 %v16956_v42, %v2811_v3  ;;  %v19189_v26 = vmax.f32 %v19188_v59, 0.0  ;;  %v19192_v23 = vmax.f32 %v19191_v2, 0.0  ;;  %v19194_v56 = vmax.f32 %v19193_v48, 0.0  ;;  %12345 = vmatmul.mubr.msk.f32.gmra.mrb[42].mxu1 %vm1886_vm3, %v3232_v4  ;;  %3129 = vst.msk [vmem:[#allocation2 + $0xb8] sm:$0xff] %vm1886_vm3, %v3093_v28  ;;  %v19203_v13 = vld [vmem:[#allocation60_spill] sm:$0xff]  ;;  %v19207_v2 = vld [vmem:[#allocation63_spill] sm:$0xff] }
 0x36e   :  { %3130 = vst.msk [vmem:[#allocation2 + $0xc0] sm:$0xff] %vm1886_vm3, %v3094_v10  ;;  %v3016_v63 = vrot.slane %v2918_v15, 1  ;;  %12347 = vmatprep.mubr.msk.f32.mxu1 %vm13760_vm6, %v13761_v5  ;;  %v3234_v57 = vsel %vm1100_vm2, %v3231_v49, %v3233_v25  ;;  %v3014_v41 = vrot.slane %v2917_v46, 1  ;;  %v2920_v16 = vmax.f32 %v17385_v1, 0.0  ;;  %v19204_v28 = vld [vmem:[#allocation64_spill] sm:$0xff] }
 0x36f   :  { %v5753_v38 = vmax.f32 %v19189_v26, %v19187_v33  ;;  %v17394_v24 = vmax.f32 %v19192_v23, %v19190_v12  ;;  %v17398_v35 = vrot.slane %v19194_v56, 1  ;;  %v2919_v7 = vmax.f32 %v2883_v58, 0.0  ;;  %v3152_v17 = vld [vmem:[#allocation2 + $0x90] ss:$2 sm:$0xff]  ;;  %v13364_v56 = vld [vmem:[#allocation7] ss:$0 sm:$0xff] }
 0x370   :  { %v19196_v39 = vmax.f32 %v19195_v62, 0.0  ;;  %v17413_v20 = vadd.f32 %v17078_v30, %v19197_v52  ;;  %v5404_v43 = vmax.f32 %v19198_v61, 0.0  ;;  %v19200_v44 = vrot.slane %v19199_v51, 1  ;;  %5819 = vst.msk [vmem:[#allocation2 + $0x90] sm:$0xff] %vm1886_vm3, %v19203_v13  ;;  %5820 = vst.msk [vmem:[#allocation2 + $0x98] sm:$0xff] %vm1886_vm3, %v19204_v28  ;;  %v19205_v26 = vld [vmem:[#allocation65_spill] sm:$0xff] }
 0x371   :  { %v19202_v32 = vrot.slane %v19201_v14, 1  ;;  %v3015_v3 = vsel %vm1100_vm2, %v3012_v18, %v3014_v41  ;;  %v3017_v49 = vsel %vm1100_vm2, %v3014_v41, %v3016_v63  ;;  %v3196_v54 = vrot.slane %v3152_v17, 6  ;;  %v3153_v4 = vld [vmem:[#allocation2 + $0xa0] ss:$2 sm:$0xff]  ;;  %12348 = vmatmul.mubr.msk.f32.gmra.mrb[44].mxu1 %vm1886_vm3, %v3234_v57  ;;  %v19206_v12 = vld [vmem:[#allocation66_spill] sm:$0xff] }
 0x372   :  { %v17409_v37 = vrot.slane %v19196_v39, 1  ;;  %v17429_v10 = vrot.slane %v2920_v16, 1  ;;  %v3095_v58 = vmax.f32 %v2916_v40, %v3015_v3  ;;  %v3096_v18 = vmax.f32 %v2917_v46, %v3017_v49  ;;  %5821 = vst.msk [vmem:[#allocation2 + $0xa0] sm:$0xff] %vm1886_vm3, %v19205_v26  ;;  %5822 = vst.msk [vmem:[#allocation2 + $0xa8] sm:$0xff] %vm1886_vm3, %v19206_v12  ;;  %v19208_v41 = vld [vmem:[#allocation47_spill] sm:$0xff]  ;;  %v19209_v52 = vld [vmem:[#allocation49_spill] sm:$0xff]  ;;  %12350 = vmatprep.mubr.msk.f32.mxu1 %vm13760_vm6, %v13761_v5 }
 0x373   :  { %v5084_v21 = vsel %vm1100_vm2, %v19202_v32, %v19200_v44  ;;  %v3018_v33 = vrot.slane %v2919_v7, 1  ;;  %v3198_v59 = vrot.slane %v3153_v4, 6  ;;  %v17440_v39 = vmul.f32 %v13364_v56, %v19208_v41  ;;  %v12257_v40 = vpop.f32.mrb[24].mxu1 }
 0x374   :  { %v5264_v23 = vadd.f32 %v5084_v21, %v19207_v2  ;;  %v17443_v57 = vmul.f32 %v13364_v56, %v19209_v52  ;;  %v17450_v31 = vsel %vm442_vm0, %v3194_v55, %v3196_v54  ;;  %3131 = vst.msk [vmem:[#allocation2 + $0xc8] sm:$0xff] %vm1886_vm3, %v3095_v58  ;;  %3132 = vst.msk [vmem:[#allocation2 + $0xd0] sm:$0xff] %vm1886_vm3, %v3096_v18  ;;  %v2503_v21 = vpop.f32.mrb[25].mxu1  ;;  %v3154_v49 = vld [vmem:[#allocation2 + $0xb0] ss:$2 sm:$0xff]  ;;  %v17465_v13 = vrot.slane %v5404_v43, 1 }
 0x375   :  { %v3235_v46 = vrot.slane %v17450_v31, 1  ;;  %v3019_v44 = vsel %vm1100_vm2, %v3016_v63, %v3018_v33  ;;  %v3021_v14 = vsel %vm1100_vm2, %v3018_v33, %v17429_v10  ;;  %v17459_v32 = vsel %vm442_vm0, %v3196_v54, %v3198_v59  ;;  %v19210_v58 = vld [vmem:[#allocation69_spill] sm:$0xff]  ;;  %5824 = vst.msk [vmem:[#allocation2 + $0xb8] sm:$0xff] %vm1886_vm3, %v5753_v38  ;;  %v19212_v54 = vld [vmem:[#allocation67_spill] sm:$0xff] }
 0x376   :  { %v3097_v11 = vmax.f32 %v2918_v15, %v3019_v44  ;;  %v3098_v17 = vmax.f32 %v2919_v7, %v3021_v14  ;;  %v3237_v55 = vrot.slane %v17459_v32, 1  ;;  %v2826_v3 = vadd.f32 %v17369_v22, %v12257_v40  ;;  %5823 = vst.msk [vmem:[#allocation2 + $0xb0] sm:$0xff] %vm1886_vm3, %v19210_v58  ;;  %v19211_v15 = vld [vmem:[#allocation70_spill] sm:$0xff] }
 0x377   :  { %v3236_v63 = vsel %vm1100_vm2, %v3233_v25, %v3235_v46  ;;  %v2821_v28 = vadd.f32 %v2820_v45, %v2503_v21  ;;  %v3200_v4 = vrot.slane %v3154_v49, 6  ;;  %v5570_v7 = vsel %vm1100_vm2, %v19211_v15, %v17398_v35  ;;  %v12318_v25 = vpop.f32.mrb[32].mxu0  ;;  %v19215_v21 = vld [vmem:[#allocation61_spill] sm:$0xff]  ;;  %v13365_v49 = vld [vmem:[#allocation4] ss:$0 sm:$0xff] }
 0x378   :  { %v19213_v22 = vrot.slane %v19212_v54, 1  ;;  %v19214_v18 = vrot.slane %v19199_v51, 1  ;;  %v5087_v26 = vrot.slane %v17443_v57, 1  ;;  %12351 = vmatmul.mubr.msk.f32.gmra.mrb[46].mxu1 %vm1886_vm3, %v3236_v63  ;;  %3133 = vst.msk [vmem:[#allocation2 + $0xd8] sm:$0xff] %vm1886_vm3, %v3097_v11  ;;  %3134 = vst.msk [vmem:[#allocation2 + $0xe0] sm:$0xff] %vm1886_vm3, %v3098_v17  ;;  %v17484_v45 = vadd.f32 %v16956_v42, %v2826_v3  ;;  %v2830_v2 = vpop.f32.mrb[33].mxu0 }
 0x379   :  { %v17487_v38 = vadd.f32 %v17078_v30, %v5264_v23  ;;  %12353 = vmatprep.mubr.msk.f32.mxu1 %vm13760_vm6, %v13761_v5  ;;  %v3238_v51 = vsel %vm1100_vm2, %v3235_v46, %v3237_v55  ;;  %v2885_v12 = vadd.f32 %v16956_v42, %v2821_v28  ;;  %v17494_v56 = vsel %vm442_vm0, %v3198_v59, %v3200_v4  ;;  %v19217_v17 = vld [vmem:[#allocation74_spill] sm:$0xff] }
 0x37a   :  { %v5086_v33 = vsel %vm1100_vm2, %v19214_v18, %v19213_v22  ;;  %v5405_v57 = vmax.f32 %v17413_v20, 0.0  ;;  %v5089_v40 = vrot.slane %v17440_v39, 1  ;;  %v2922_v44 = vmax.f32 %v17484_v45, 0.0 }
 0x37b   :  { %v3239_v23 = vrot.slane %v17494_v56, 1  ;;  %v5572_v14 = vsel %vm1100_vm2, %v17398_v35, %v17409_v37  ;;  %v19216_v46 = vmax.f32 %v19215_v21, 0.0  ;;  %v5574_v42 = vsel %vm1100_vm2, %v17409_v37, %v17465_v13  ;;  %v3155_v58 = vld [vmem:[#allocation2 + $0xc0] ss:$2 sm:$0xff] }
 0x37c   :  { %v2921_v59 = vmax.f32 %v2885_v12, 0.0  ;;  %v5265_v3 = vadd.f32 %v5086_v33, %v19217_v17  ;;  %v4842_v39 = vmul.f32 %v13365_v49, %v19209_v52  ;;  %v19218_v63 = vmov %v19213_v22  ;;  %12354 = vmatmul.mubr.msk.f32.gmra.mrb[48].mxu1 %vm1886_vm3, %v3238_v51  ;;  %5825 = vst.msk [vmem:[#allocation2 + $0xc0] sm:$0xff] %vm1886_vm3, %v17394_v24  ;;  %v19221_v21 = vld [vmem:[#allocation71_spill] sm:$0xff] }
 0x37d   :  { %v5755_v11 = vmax.f32 %v19216_v46, %v5570_v7  ;;  %v5088_v28 = vsel %vm1100_vm2, %v19218_v63, %v5087_v26  ;;  %v17516_v35 = vrot.slane %v2922_v44, 1  ;;  %v5406_v15 = vmax.f32 %v17487_v38, 0.0  ;;  %12356 = vmatprep.mubr.msk.f32.mxu1 %vm13760_vm6, %v13761_v5 }
 0x37e   :  { %v3022_v37 = vrot.slane %v2921_v59, 1  ;;  %v3240_v7 = vsel %vm1100_vm2, %v3237_v55, %v3239_v23  ;;  %v3202_v52 = vrot.slane %v3155_v58, 6  ;;  %v19219_v54 = vmax.f32 %v19193_v48, 0.0 }
 0x37f   :  { %5826 = vst.msk [vmem:[#allocation2 + $0xc8] sm:$0xff] %vm1886_vm3, %v5755_v11  ;;  %v5575_v18 = vrot.slane %v5405_v57, 1  ;;  %v19220_v33 = vmax.f32 %v19195_v62, 0.0  ;;  %v5090_v12 = vsel %vm1100_vm2, %v5087_v26, %v5089_v40  ;;  %v5266_v46 = vadd.f32 %v5088_v28, %v19221_v21  ;;  %v12321_v11 = vpop.f32.mrb[34].mxu0 }
 0x380   :  { %v5756_v22 = vmax.f32 %v19219_v54, %v5572_v14  ;;  %v3023_v55 = vsel %vm1100_vm2, %v17429_v10, %v3022_v37  ;;  %v3025_v24 = vsel %vm1100_vm2, %v3022_v37, %v17516_v35  ;;  %v17538_v48 = vsel %vm442_vm0, %v3200_v4, %v3202_v52  ;;  %v17540_v14 = vld [vmem:[#allocation2 + $0xd0] ss:$2 sm:$0xff]  ;;  %12357 = vmatmul.mubr.msk.f32.gmra.mrb[50].mxu1 %vm1886_vm3, %v3240_v7  ;;  %v2840_v26 = vpop.f32.mrb[35].mxu0 }
 0x381   :  { %v5757_v51 = vmax.f32 %v19220_v33, %v5574_v42  ;;  %v3099_v62 = vmax.f32 %v2920_v16, %v3023_v55  ;;  %v3100_v42 = vmax.f32 %v2921_v59, %v3025_v24  ;;  %v3241_v17 = vrot.slane %v17538_v48, 1  ;;  %v12260_v16 = vpop.f32.mrb[26].mxu1  ;;  %12359 = vmatprep.mubr.msk.f32.mxu1 %vm13760_vm6, %v13761_v5  ;;  %v19222_v59 = vld [vmem:[#allocation68_spill] sm:$0xff] }
 0x382   :  { %v3204_v10 = vrot.slane %v17540_v14, 6  ;;  %5827 = vst.msk [vmem:[#allocation2 + $0xd0] sm:$0xff] %vm1886_vm3, %v5756_v22  ;;  %v17550_v4 = vadd.f32 %v17078_v30, %v5265_v3  ;;  %v17554_v63 = vrot.slane %v5406_v15, 1  ;;  %v5267_v1 = vadd.f32 %v5090_v12, %v4842_v39  ;;  %v2513_v3 = vpop.f32.mrb[27].mxu1  ;;  %v13366_v12 = vld [vmem:[#allocation13] ss:$0 sm:$0xff] }
 0x383   :  { %5828 = vst.msk [vmem:[#allocation2 + $0xd8] sm:$0xff] %vm1886_vm3, %v5757_v51  ;;  %v19223_v28 = vrot.slane %v19222_v59, 1  ;;  %3135 = vst.msk [vmem:[#allocation2 + $0xe8] sm:$0xff] %vm1886_vm3, %v3099_v62  ;;  %v2836_v37 = vadd.f32 %v12318_v25, %v12260_v16  ;;  %v3242_v7 = vsel %vm1100_vm2, %v3239_v23, %v3241_v17  ;;  %v4843_v39 = vmul.f32 %v13365_v49, %v19208_v41  ;;  %v12263_v55 = vpop.f32.mrb[28].mxu1 }
 0x384   :  { %3136 = vst.msk [vmem:[#allocation2 + $0xf0] sm:$0xff] %vm1886_vm3, %v3100_v42  ;;  %v17565_v54 = vsel %vm442_vm0, %v3202_v52, %v3204_v10  ;;  %v17569_v22 = vadd.f32 %v17078_v30, %v5266_v46  ;;  %v2831_v33 = vadd.f32 %v2830_v2, %v2513_v3  ;;  %12360 = vmatmul.mubr.msk.f32.gmra.mrb[52].mxu1 %vm1886_vm3, %v3242_v7  ;;  %v5407_v2 = vmax.f32 %v17550_v4, 0.0  ;;  %v2523_v24 = vpop.f32.mrb[29].mxu1 }
 0x385   :  { %v5092_v58 = vsel %vm1100_vm2, %v5089_v40, %v19223_v28  ;;  %v3243_v51 = vrot.slane %v17565_v54, 1  ;;  %v5576_v40 = vsel %vm1100_vm2, %v17465_v13, %v5575_v18  ;;  %v2888_v21 = vadd.f32 %v13366_v12, %v2836_v37  ;;  %12362 = vmatprep.mubr.msk.f32.mxu1 %vm13760_vm6, %v13761_v5 }
 0x386   :  { %v5578_v25 = vsel %vm1100_vm2, %v5575_v18, %v17554_v63  ;;  %v5268_v23 = vadd.f32 %v5092_v58, %v4843_v39  ;;  %v2887_v52 = vadd.f32 %v13366_v12, %v2831_v33  ;;  %v17582_v49 = vadd.f32 %v17078_v30, %v5267_v1 }
 0x387   :  { %v3244_v41 = vsel %vm1100_vm2, %v3241_v17, %v3243_v51  ;;  %v2924_v13 = vmax.f32 %v2888_v21, 0.0  ;;  %v2846_v46 = vadd.f32 %v12321_v11, %v12263_v55  ;;  %v5408_v14 = vmax.f32 %v17569_v22, 0.0 }
 0x388   :  { %v2923_v62 = vmax.f32 %v2887_v52, 0.0  ;;  %v2841_v18 = vadd.f32 %v2840_v26, %v2523_v24  ;;  %v5758_v42 = vmax.f32 %v5404_v43, %v5576_v40  ;;  %v5759_v16 = vmax.f32 %v5405_v57, %v5578_v25  ;;  %12363 = vmatmul.mubr.msk.f32.gmra.mrb[54].mxu1 %vm1886_vm3, %v3244_v41 }
 0x389   :  { %v3028_v59 = vrot.slane %v2924_v13, 1  ;;  %v2890_v17 = vadd.f32 %v13366_v12, %v2846_v46  ;;  %v5339_v4 = vadd.f32 %v17078_v30, %v5268_v23  ;;  %12365 = vmatprep.mubr.msk.f32.mxu1 %vm13760_vm6, %v13761_v5  ;;  %v5579_v58 = vrot.slane %v5407_v2, 1 }
 0x38a   :  { %v3026_v1 = vrot.slane %v2923_v62, 1  ;;  %v2889_v28 = vadd.f32 %v13366_v12, %v2841_v18  ;;  %v3157_v11 = vld [vmem:[#allocation2 + $0xe0] ss:$2 sm:$0xff]  ;;  %v5409_v26 = vmax.f32 %v17582_v49, 0.0  ;;  %v5581_v20 = vrot.slane %v5408_v14, 1 }
 0x38b   :  { %v2926_v61 = vmax.f32 %v2890_v17, 0.0  ;;  %v3206_v43 = vrot.slane %v3157_v11, 6  ;;  %5829 = vst.msk [vmem:[#allocation2 + $0xe0] sm:$0xff] %vm1886_vm3, %v5758_v42  ;;  %5830 = vst.msk [vmem:[#allocation2 + $0xe8] sm:$0xff] %vm1886_vm3, %v5759_v16  ;;  %v5410_v33 = vmax.f32 %v5339_v4, 0.0  ;;  %v5580_v23 = vsel %vm1100_vm2, %v17554_v63, %v5579_v58  ;;  %v19224_v63 = vld [vmem:[#allocation80_spill] sm:$0xff] }
 0x38c   :  { %v3027_v57 = vsel %vm1100_vm2, %v17516_v35, %v3026_v1  ;;  %v3029_v30 = vsel %vm1100_vm2, %v3026_v1, %v3028_v59  ;;  %v2925_v37 = vmax.f32 %v2889_v28, 0.0  ;;  %v5582_v52 = vsel %vm1100_vm2, %v5579_v58, %v5581_v20  ;;  %v19225_v28 = vld [vmem:[#allocation81_spill] sm:$0xff] }
 0x38d   :  { %v3101_v3 = vmax.f32 %v2922_v44, %v3027_v57  ;;  %v3102_v7 = vmax.f32 %v2923_v62, %v3029_v30  ;;  %v3032_v39 = vrot.slane %v2926_v61, 1  ;;  %v17602_v22 = vsel %vm442_vm0, %v3204_v10, %v3206_v43 }
 0x38e   :  { %v3030_v40 = vrot.slane %v2925_v37, 1  ;;  %v3245_v12 = vrot.slane %v17602_v22, 1  ;;  %v5583_v55 = vrot.slane %v5409_v26, 1  ;;  %v5585_v41 = vrot.slane %v5410_v33, 1 }
 0x38f   :  { %3137 = vst.msk [vmem:[#allocation2 + $0xf8] sm:$0xff] %vm1886_vm3, %v3101_v3  ;;  %3138 = vst.msk [vmem:[#allocation2 + $0x100] sm:$0xff] %vm1886_vm3, %v3102_v7  ;;  %v3105_v35 = vmax.f32 %v2926_v61, %v3032_v39  ;;  %v5761_v49 = vmax.f32 %v5407_v2, %v5582_v52  ;;  %v17648_v57 = vrot.slane %v13761_v5, 1 }
 0x390   :  { %v3031_v21 = vsel %vm1100_vm2, %v3028_v59, %v3030_v40  ;;  %v3033_v45 = vsel %vm1100_vm2, %v3030_v40, %v3032_v39  ;;  %v3246_v44 = vsel %vm1100_vm2, %v3243_v51, %v3245_v12  ;;  %v5760_v51 = vmax.f32 %v5406_v15, %v5580_v23  ;;  %v5878_v39 = vld [vmem:[#allocation2 + $0x60] ss:$2 sm:$0xff]  ;;  %v5881_v23 = vld [vmem:[#allocation2 + $0x90] ss:$2 sm:$0xff] }
 0x391   :  { %3142 = vst.msk [vmem:[#allocation2 + $0x118] sm:$0xf] %vm3141_vm7, %v3105_v35  ;;  %v3103_v10 = vmax.f32 %v2924_v13, %v3031_v21  ;;  %v3104_v25 = vmax.f32 %v2925_v37, %v3033_v45  ;;  %12366 = vmatmul.mubr.msk.f32.gmra.mrb[56].mxu1 %vm1886_vm3, %v3246_v44  ;;  %v5584_v13 = vsel %vm1100_vm2, %v5581_v20, %v5583_v55  ;;  %v19226_v37 = vld [vmem:[#allocation39_spill] sm:$0xff]  ;;  %v5955_v45 = vrot.slane %v5878_v39, 6 }
 0x392   :  { %12368 = vmatprep.mubr.msk.f32.mxu1 %vm13760_vm6, %v13761_v5  ;;  %v5586_v46 = vsel %vm1100_vm2, %v5583_v55, %v5585_v41  ;;  %v5588_v24 = vsel %vm1100_vm2, %v5585_v41, %v19224_v63  ;;  %v5762_v42 = vmax.f32 %v5408_v14, %v5584_v13  ;;  %v5961_v63 = vrot.slane %v5881_v23, 6 }
 0x393   :  { %3139 = vst.msk [vmem:[#allocation2 + $0x108] sm:$0xff] %vm1886_vm3, %v3103_v10  ;;  %3140 = vst.msk [vmem:[#allocation2 + $0x110] sm:$0xff] %vm1886_vm3, %v3104_v25  ;;  %v5763_v16 = vmax.f32 %v5409_v26, %v5586_v46  ;;  %v5764_v59 = vmax.f32 %v5410_v33, %v5588_v24  ;;  %v5879_v33 = vld [vmem:[#allocation2 + $0x70] ss:$2 sm:$0xff]  ;;  %v5880_v25 = vld [vmem:[#allocation2 + $0x80] ss:$2 sm:$0xff] }
 0x394   :  { %v5957_v10 = vrot.slane %v5879_v33, 6  ;;  %v5959_v13 = vrot.slane %v5880_v25, 6  ;;  %v5882_v24 = vld [vmem:[#allocation2 + $0xa0] ss:$2 sm:$0xff] }
 0x396   :  { %v3158_v62 = vld [vmem:[#allocation2 + $0xf0] ss:$2 sm:$0xff]  ;;  %v17770_v46 = vsel %vm442_vm0, %v5955_v45, %v5957_v10 }
 0x397   :  { %v3208_v18 = vrot.slane %v3158_v62, 6  ;;  %5831 = vst.msk [vmem:[#allocation2 + $0xf0] sm:$0xff] %vm1886_vm3, %v5760_v51  ;;  %5832 = vst.msk [vmem:[#allocation2 + $0xf8] sm:$0xff] %vm1886_vm3, %v5761_v49  ;;  %v5883_v62 = vld [vmem:[#allocation2 + $0xb0] ss:$2 sm:$0xff] }
 0x399   :  { %v3209_v38 = vsel %vm442_vm0, %v3206_v43, %v3208_v18 }
 0x39a   :  { %v3247_v15 = vrot.slane %v3209_v38, 1  ;;  %v3159_v2 = vld [vmem:[#allocation2 + $0x100] ss:$2 sm:$0xff]  ;;  %v3160_v17 = vld [vmem:[#allocation2 + $0x110] ss:$2 sm:$0x3f] }
 0x39b   :  { %v3210_v4 = vrot.slane %v3159_v2, 6  ;;  %5833 = vst.msk [vmem:[#allocation2 + $0x100] sm:$0xff] %vm1886_vm3, %v5762_v42  ;;  %5834 = vst.msk [vmem:[#allocation2 + $0x108] sm:$0xff] %vm1886_vm3, %v5763_v16  ;;  %v3212_v1 = vrot.slane %v3160_v17, 6  ;;  %v17783_v2 = vsel %vm442_vm0, %v5959_v13, %v5961_v63  ;;  %v5965_v17 = vrot.slane %v5883_v62, 6 }
 0x39c   :  { %5835 = vst.msk [vmem:[#allocation2 + $0x110] sm:$0xff] %vm1886_vm3, %v5764_v59  ;;  %5836 = vst.msk [vmem:[#allocation2 + $0x118] sm:$0xff] %vm1886_vm3, %v19225_v28  ;;  %v3248_v14 = vsel %vm1100_vm2, %v3245_v12, %v3247_v15  ;;  %v6034_v59 = vrot.slane %v17770_v46, 1 }
 0x39d   :  { %12369 = vmatmul.mubr.msk.f32.gmra.mrb[58].mxu1 %vm1886_vm3, %v3248_v14  ;;  %v3211_v11 = vsel %vm442_vm0, %v3208_v18, %v3210_v4  ;;  %v17637_v58 = vsel %vm442_vm0, %v3210_v4, %v3212_v1  ;;  %v5884_v4 = vld [vmem:[#allocation2 + $0xc0] ss:$2 sm:$0xff]  ;;  %v5885_v1 = vld [vmem:[#allocation2 + $0xd0] ss:$2 sm:$0xff] }
 0x39e   :  { %12371 = vmatprep.mubr.msk.f32.mxu1 %vm13760_vm6, %v13761_v5  ;;  %v3249_v26 = vrot.slane %v3211_v11, 1  ;;  %v3251_v43 = vrot.slane %v17637_v58, 1 }
 0x3a0   :  { %v3250_v61 = vsel %vm1100_vm2, %v3247_v15, %v3249_v26  ;;  %v3252_v20 = vsel %vm1100_vm2, %v3249_v26, %v3251_v43  ;;  %v3254_v30 = vsel %vm1100_vm2, %v3251_v43, %v17648_v57  ;;  %v5963_v15 = vrot.slane %v5882_v24, 6 }
 0x3a1   :  { %12372 = vmatmul.mubr.msk.f32.gmra.mrb[60].mxu1 %vm1886_vm3, %v3250_v61  ;;  %v5967_v61 = vrot.slane %v5884_v4, 6  ;;  %v5894_v4 = vld [vmem:[#allocation2 + $0x160] ss:$2 sm:$0xff] }
 0x3a2   :  { %12374 = vmatprep.mubr.msk.f32.mxu1 %vm13760_vm6, %v13761_v5  ;;  %v17791_v26 = vsel %vm442_vm0, %v5961_v63, %v5963_v15  ;;  %v17795_v43 = vsel %vm442_vm0, %v5963_v15, %v5965_v17  ;;  %v5893_v63 = vld [vmem:[#allocation2 + $0x150] ss:$2 sm:$0xff] }
 0x3a5   :  { %12375 = vmatmul.mubr.msk.f32.gmra.mrb[62].mxu1 %vm1886_vm3, %v3252_v20  ;;  %v5969_v20 = vrot.slane %v5885_v1, 6  ;;  %v5895_v1 = vld [vmem:[#allocation2 + $0x170] ss:$2 sm:$0xff] }
 0x3a6   :  { %12377 = vmatprep.mubr.msk.f32.mxu1 %vm13760_vm6, %v13761_v5 }
 0x3a9   :  { %12378 = vmatmul.mubr.msk.f32.gmra.mrb[64].mxu1 %vm1886_vm3, %v3254_v30  ;;  %v5886_v30 = vld [vmem:[#allocation2 + $0xe0] ss:$2 sm:$0xff] }
 0x3aa   :  { %12380 = vmatprep.mubr.msk.f32.mxu1 %vm13760_vm6, %v13761_v5 }
 0x3ad   :  { %12381 = vmatmul.mubr.msk.f32.gmra.mrb[66].mxu1 %vm1886_vm3, %v17648_v57 }
 0x3ae   :  { %12387 = vmatprep.mubr.msk.f32.mxu1 %vm13760_vm6, %v13761_v5 }
 0x3b1   :  { %12388 = vmatmul.mubr.msk.f32.vlgmr.msra.gmra.mrb[68].mxu1 %vm1886_vm3, %v17163_v6  ;;  %v5873_v6 = vld [vmem:[#allocation2 + $0x10] ss:$2 sm:$0xff] }
 0x3b2   :  { %12807 = vmatpush3.bf16.msra.mxu1 %v19182_v50  ;;  %12390 = vmatprep.mubr.msk.f32.mxu1 %vm13760_vm6, %v13761_v5 }
 0x3b3   :  { %12809 = vmatprep.subr.bf16.mxu1 %v19226_v37 }
 0x3b5   :  { %12391 = vmatmul.mubr.msk.f32.gmra.mrb[70].mxu1 %vm1886_vm3, %v17180_v0  ;;  %v5872_v0 = vld [vmem:[#allocation2] ss:$2 sm:$0xff] }
 0x3b6   :  { %12393 = vmatprep.mubr.msk.f32.mxu1 %vm13760_vm6, %v13761_v5 }
 0x3b9   :  { %12394 = vmatmul.mubr.msk.f32.gmra.mrb[72].mxu1 %vm1886_vm3, %v17220_v19  ;;  %v5945_v19 = vrot.slane %v5873_v6, 6 }
 0x3ba   :  { %12396 = vmatprep.mubr.msk.f32.mxu1 %vm13760_vm6, %v13761_v5 }
 0x3bd   :  { %12397 = vmatmul.mubr.msk.f32.gmra.mrb[74].mxu1 %vm1886_vm3, %v17226_v36  ;;  %v5874_v36 = vld [vmem:[#allocation2 + $0x20] ss:$2 sm:$0xff] }
 0x3be   :  { %12399 = vmatprep.mubr.msk.f32.mxu1 %vm13760_vm6, %v13761_v5 }
 0x3c1   :  { %12400 = vmatmul.mubr.msk.f32.gmra.mrb[76].mxu1 %vm1886_vm3, %v17275_v29  ;;  %v5875_v29 = vld [vmem:[#allocation2 + $0x30] ss:$2 sm:$0xff] }
 0x3c2   :  { %12402 = vmatprep.mubr.msk.f32.mxu1 %vm13760_vm6, %v13761_v5 }
 0x3c5   :  { %12403 = vmatmul.mubr.msk.f32.gmra.mrb[78].mxu1 %vm1886_vm3, %v17285_v60  ;;  %v5944_v60 = vrot.slane %v5872_v0, 6  ;;  %v6040_v0 = vrot.slane %v17791_v26, 1 }
 0x3c6   :  { %12405 = vmatprep.mubr.msk.f32.mxu1 %vm13760_vm6, %v13761_v5 }
 0x3c7   :  { %v17731_v50 = vsel %vm442_vm0, %v5944_v60, %v5945_v19 }
 0x3c9   :  { %12406 = vmatmul.mubr.msk.f32.gmra.mrb[80].mxu1 %vm1886_vm3, %v17325_v9  ;;  %v5947_v9 = vrot.slane %v5874_v36, 6  ;;  %v6042_v36 = vrot.slane %v17795_v43, 1 }
 0x3ca   :  { %12408 = vmatprep.mubr.msk.f32.mxu1 %vm13760_vm6, %v13761_v5 }
 0x3cd   :  { %12409 = vmatmul.mubr.msk.f32.gmra.mrb[82].mxu1 %vm1886_vm3, %v17364_v27  ;;  %v5949_v27 = vrot.slane %v5875_v29, 6  ;;  %v17803_v29 = vsel %vm442_vm0, %v5965_v17, %v5967_v61  ;;  %v5985_v17 = vrot.slane %v5893_v63, 6  ;;  %v5901_v63 = vld [vmem:[#allocation2 + $0x1d0] ss:$2 sm:$0xff] }
 0x3ce   :  { %12411 = vmatprep.mubr.msk.f32.mxu1 %vm13760_vm6, %v13761_v5 }
 0x3cf   :  { %v17745_v3 = vsel %vm442_vm0, %v5947_v9, %v5949_v27 }
 0x3d0   :  { %v6026_v35 = vrot.slane %v17745_v3, 1 }
 0x3d1   :  { %12412 = vmatmul.mubr.msk.f32.gmra.mrb[84].mxu1 %vm1886_vm3, %v17379_v34  ;;  %v5876_v34 = vld [vmem:[#allocation2 + $0x40] ss:$2 sm:$0xff] }
 0x3d2   :  { %12414 = vmatprep.mubr.msk.f32.mxu1 %vm13760_vm6, %v13761_v5 }
 0x3d5   :  { %12415 = vmatmul.mubr.msk.f32.gmra.mrb[86].mxu1 %vm1886_vm3, %v17450_v31  ;;  %v5877_v31 = vld [vmem:[#allocation2 + $0x50] ss:$2 sm:$0xff] }
 0x3d6   :  { %12417 = vmatprep.mubr.msk.f32.mxu1 %vm13760_vm6, %v13761_v5  ;;  %v5953_v7 = vrot.slane %v5877_v31, 6  ;;  %v5889_v31 = vld [vmem:[#allocation2 + $0x110] ss:$2 sm:$0xff] }
 0x3d8   :  { %v17765_v49 = vsel %vm442_vm0, %v5953_v7, %v5955_v45 }
 0x3d9   :  { %12418 = vmatmul.mubr.msk.f32.gmra.mrb[88].mxu1 %vm1886_vm3, %v17459_v32  ;;  %v17734_v32 = vsel %vm442_vm0, 0.0, %v5944_v60  ;;  %v6032_v42 = vrot.slane %v17765_v49, 1  ;;  %v5971_v60 = vrot.slane %v5886_v30, 6 }
 0x3da   :  { %12420 = vmatprep.mubr.msk.f32.mxu1 %vm13760_vm6, %v13761_v5 }
 0x3dd   :  { %12421 = vmatmul.mubr.msk.f32.gmra.mrb[90].mxu1 %vm1886_vm3, %v17494_v56  ;;  %v6022_v56 = vrot.slane %v17731_v50, 1 }
 0x3de   :  { %12423 = vmatprep.mubr.msk.f32.mxu1 %vm13760_vm6, %v13761_v5 }
 0x3e1   :  { %12424 = vmatmul.mubr.msk.f32.gmra.mrb[92].mxu1 %vm1886_vm3, %v17538_v48  ;;  %v17740_v48 = vsel %vm442_vm0, %v5945_v19, %v5947_v9  ;;  %v17807_v9 = vsel %vm442_vm0, %v5967_v61, %v5969_v20 }
 0x3e2   :  { %12426 = vmatprep.mubr.msk.f32.mxu1 %vm13760_vm6, %v13761_v5  ;;  %v6024_v40 = vrot.slane %v17740_v48, 1  ;;  %v6046_v39 = vrot.slane %v17807_v9, 1 }
 0x3e4   :  { %v6025_v52 = vsel %vm1100_vm2, %v6022_v56, %v6024_v40  ;;  %v6027_v41 = vsel %vm1100_vm2, %v6024_v40, %v6026_v35 }
 0x3e5   :  { %12427 = vmatmul.mubr.msk.f32.gmra.mrb[94].mxu1 %vm1886_vm3, %v17565_v54  ;;  %v5951_v54 = vrot.slane %v5876_v34, 6  ;;  %v5888_v34 = vld [vmem:[#allocation2 + $0x100] ss:$2 sm:$0xff] }
 0x3e6   :  { %12429 = vmatprep.mubr.msk.f32.mxu1 %vm13760_vm6, %v13761_v5  ;;  %v5975_v33 = vrot.slane %v5888_v34, 6 }
 0x3e7   :  { %v17753_v21 = vsel %vm442_vm0, %v5949_v27, %v5951_v54  ;;  %v17757_v44 = vsel %vm442_vm0, %v5951_v54, %v5953_v7  ;;  %v6044_v54 = vrot.slane %v17803_v29, 1  ;;  %v6043_v7 = vsel %vm1100_vm2, %v6040_v0, %v6042_v36 }
 0x3e8   :  { %v6028_v55 = vrot.slane %v17753_v21, 1  ;;  %v6030_v51 = vrot.slane %v17757_v44, 1 }
 0x3e9   :  { %12430 = vmatmul.mubr.msk.f32.gmra.mrb[96].mxu1 %vm1886_vm3, %v17602_v22  ;;  %v6021_v22 = vrot.slane %v17734_v32, 1  ;;  %v6047_v25 = vsel %vm1100_vm2, %v6044_v54, %v6046_v39 }
 0x3ea   :  { %12432 = vmatprep.mubr.msk.f32.mxu1 %vm13760_vm6, %v13761_v5  ;;  %v6029_v18 = vsel %vm1100_vm2, %v6026_v35, %v6028_v55  ;;  %v6031_v16 = vsel %vm1100_vm2, %v6028_v55, %v6030_v51  ;;  %v6033_v28 = vsel %vm1100_vm2, %v6030_v51, %v6032_v42  ;;  %v6045_v35 = vsel %vm1100_vm2, %v6042_v36, %v6044_v54  ;;  %v5891_v55 = vld [vmem:[#allocation2 + $0x130] ss:$2 sm:$0xff]  ;;  %v5892_v51 = vld [vmem:[#allocation2 + $0x140] ss:$2 sm:$0xff] }
 0x3eb   :  { %v6023_v12 = vsel %vm1100_vm2, %v6021_v22, %v6022_v56  ;;  %v17815_v22 = vsel %vm442_vm0, %v5969_v20, %v5971_v60  ;;  %v5983_v15 = vrot.slane %v5892_v51, 6  ;;  %v5987_v20 = vrot.slane %v5894_v4, 6 }
 0x3ec   :  { %v6048_v45 = vrot.slane %v17815_v22, 1  ;;  %v6001_v4 = vrot.slane %v5901_v63, 6 }
 0x3ed   :  { %12433 = vmatmul.mubr.msk.f32.gmra.mrb[98].mxu1 %vm1886_vm3, %v3209_v38  ;;  %v17779_v38 = vsel %vm442_vm0, %v5957_v10, %v5959_v13  ;;  %v5890_v10 = vld [vmem:[#allocation2 + $0x120] ss:$2 sm:$0xff]  ;;  %v17854_v30 = vsel %vm442_vm0, %v5983_v15, %v5985_v17 }
 0x3ee   :  { %12435 = vmatprep.mubr.msk.f32.mxu1 %vm13760_vm6, %v13761_v5  ;;  %v6036_v14 = vrot.slane %v17779_v38, 1  ;;  %v5979_v13 = vrot.slane %v5890_v10, 6  ;;  %v6049_v24 = vsel %vm1100_vm2, %v6046_v39, %v6048_v45  ;;  %v6062_v34 = vrot.slane %v17854_v30, 1  ;;  %v5898_v39 = vld [vmem:[#allocation2 + $0x1a0] ss:$2 sm:$0xff] }
 0x3f0   :  { %v6037_v6 = vsel %vm1100_vm2, %v6034_v59, %v6036_v14 }
 0x3f1   :  { %12436 = vmatmul.mubr.msk.f32.gmra.mrb[100].mxu1 %vm1886_vm3, %v3211_v11  ;;  %v6035_v11 = vsel %vm1100_vm2, %v6032_v42, %v6034_v59 }
 0x3f2   :  { %12438 = vmatprep.mubr.msk.f32.mxu1 %vm13760_vm6, %v13761_v5 }
 0x3f5   :  { %12439 = vmatmul.mubr.msk.f32.gmra.mrb[102].mxu1 %vm1886_vm3, %v17637_v58  ;;  %v6038_v58 = vrot.slane %v17783_v2, 1 }
 0x3f6   :  { %12441 = vmatprep.mubr.msk.f32.mxu1 %vm13760_vm6, %v13761_v5 }
 0x3f7   :  { %v6039_v19 = vsel %vm1100_vm2, %v6036_v14, %v6038_v58  ;;  %v6041_v56 = vsel %vm1100_vm2, %v6038_v58, %v6040_v0 }
 0x3f9   :  { %12442 = vmatmul.mubr.f32.gmra.mrb[104].mxu1 %v13761_v5 }
 0x3fa   :  { %12494 = vmatprep.mubr.msk.f32.mxu1 %vm1886_vm3, %v6023_v12  ;;  %v5977_v12 = vrot.slane %v5889_v31, 6  ;;  %v17863_v31 = vsel %vm442_vm0, %v5985_v17, %v5987_v20 }
 0x3fc   :  { %v17839_v59 = vsel %vm442_vm0, %v5977_v12, %v5979_v13 }
 0x3fd   :  { %12495 = vmatmul.mubr.msk.f32.vlgmr.msra.gmra.mrb[106].mxu1 %vm1886_vm3, %v6025_v52  ;;  %v6056_v14 = vrot.slane %v17839_v59, 1 }
 0x3fe   :  { %12811 = vmatpush3.bf16.msra.mxu1 %v19226_v37  ;;  %12497 = vmatprep.mubr.msk.f32.mxu1 %vm1886_vm3, %v6027_v41  ;;  %v5887_v37 = vld [vmem:[#allocation2 + $0xf0] ss:$2 sm:$0xff]  ;;  %v17831_v41 = vsel %vm442_vm0, %v5975_v33, %v5977_v12 }
 0x3ff   :  { %12812 = vmatprep.subr.bf16.mxu1 %v13759_v8  ;;  %v5973_v27 = vrot.slane %v5887_v37, 6  ;;  %v5989_v37 = vrot.slane %v5895_v1, 6  ;;  %v5902_v1 = vld [vmem:[#allocation2 + $0x1e0] ss:$2 sm:$0xff] }
 0x401   :  { %12498 = vmatmul.mubr.msk.f32.gmra.mrb[108].mxu1 %vm1886_vm3, %v6029_v18  ;;  %v17819_v40 = vsel %vm442_vm0, %v5971_v60, %v5973_v27  ;;  %v17827_v52 = vsel %vm442_vm0, %v5973_v27, %v5975_v33  ;;  %v5981_v18 = vrot.slane %v5891_v55, 6  ;;  %v17867_v54 = vsel %vm442_vm0, %v5987_v20, %v5989_v37  ;;  %v5899_v33 = vld [vmem:[#allocation2 + $0x1b0] ss:$2 sm:$0xff] }
 0x402   :  { %12500 = vmatprep.mubr.msk.f32.mxu1 %vm1886_vm3, %v6031_v16  ;;  %v6050_v23 = vrot.slane %v17819_v40, 1  ;;  %v6052_v62 = vrot.slane %v17827_v52, 1  ;;  %v6054_v16 = vrot.slane %v17831_v41, 1  ;;  %v6066_v10 = vrot.slane %v17867_v54, 1 }
 0x403   :  { %v17850_v61 = vsel %vm442_vm0, %v5981_v18, %v5983_v15  ;;  %v5997_v51 = vrot.slane %v5899_v33, 6  ;;  %v5906_v33 = vld [vmem:[#allocation2 + $0x220] ss:$2 sm:$0xff] }
 0x404   :  { %v6051_v42 = vsel %vm1100_vm2, %v6048_v45, %v6050_v23  ;;  %v6055_v58 = vsel %vm1100_vm2, %v6052_v62, %v6054_v16  ;;  %v6057_v36 = vsel %vm1100_vm2, %v6054_v16, %v6056_v14  ;;  %v6060_v60 = vrot.slane %v17850_v61, 1 }
 0x405   :  { %12501 = vmatmul.mubr.msk.f32.gmra.mrb[110].mxu1 %vm1886_vm3, %v6033_v28  ;;  %v6053_v28 = vsel %vm1100_vm2, %v6050_v23, %v6052_v62  ;;  %v5995_v23 = vrot.slane %v5898_v39, 6 }
 0x406   :  { %12503 = vmatprep.mubr.msk.f32.mxu1 %vm1886_vm3, %v6035_v11  ;;  %v17845_v11 = vsel %vm442_vm0, %v5979_v13, %v5981_v18  ;;  %v6063_v45 = vsel %vm1100_vm2, %v6060_v60, %v6062_v34  ;;  %v5900_v13 = vld [vmem:[#allocation2 + $0x1c0] ss:$2 sm:$0xff] }
 0x407   :  { %v6058_v0 = vrot.slane %v17845_v11, 1  ;;  %v5999_v15 = vrot.slane %v5900_v13, 6  ;;  %v17891_v17 = vsel %vm442_vm0, %v5995_v23, %v5997_v51  ;;  %v5907_v13 = vld [vmem:[#allocation2 + $0x230] ss:$2 sm:$0x3] }
 0x409   :  { %12504 = vmatmul.mubr.msk.f32.gmra.mrb[112].mxu1 %vm1886_vm3, %v6037_v6  ;;  %v5896_v6 = vld [vmem:[#allocation2 + $0x180] ss:$2 sm:$0xff]  ;;  %v6059_v27 = vsel %vm1100_vm2, %v6056_v14, %v6058_v0  ;;  %v6061_v12 = vsel %vm1100_vm2, %v6058_v0, %v6060_v60  ;;  %v17901_v0 = vsel %vm442_vm0, %v5997_v51, %v5999_v15  ;;  %v17905_v60 = vsel %vm442_vm0, %v5999_v15, %v6001_v4 }
 0x40a   :  { %12506 = vmatprep.mubr.msk.f32.mxu1 %vm1886_vm3, %v6039_v19  ;;  %v5897_v19 = vld [vmem:[#allocation2 + $0x190] ss:$2 sm:$0xff]  ;;  %v6076_v39 = vrot.slane %v17901_v0, 1 }
 0x40d   :  { %12507 = vmatmul.mubr.msk.f32.gmra.mrb[114].mxu1 %vm1886_vm3, %v6041_v56  ;;  %v5991_v56 = vrot.slane %v5896_v6, 6  ;;  %v6074_v6 = vrot.slane %v17891_v17, 1 }
 0x40e   :  { %12509 = vmatprep.mubr.msk.f32.mxu1 %vm1886_vm3, %v6043_v7  ;;  %v5993_v7 = vrot.slane %v5897_v19, 6  ;;  %v6003_v19 = vrot.slane %v5902_v1, 6 }
 0x410   :  { %v17879_v55 = vsel %vm442_vm0, %v5991_v56, %v5993_v7  ;;  %v17887_v16 = vsel %vm442_vm0, %v5993_v7, %v5995_v23 }
 0x411   :  { %12510 = vmatmul.mubr.msk.f32.gmra.mrb[116].mxu1 %vm1886_vm3, %v6045_v35  ;;  %v6064_v35 = vrot.slane %v17863_v31, 1 }
 0x412   :  { %12512 = vmatprep.mubr.msk.f32.mxu1 %vm1886_vm3, %v6047_v25  ;;  %v17875_v25 = vsel %vm442_vm0, %v5989_v37, %v5991_v56  ;;  %v5905_v56 = vld [vmem:[#allocation2 + $0x210] ss:$2 sm:$0xff] }
 0x413   :  { %v6068_v62 = vrot.slane %v17875_v25, 1  ;;  %v6067_v18 = vsel %vm1100_vm2, %v6064_v35, %v6066_v10  ;;  %v6009_v51 = vrot.slane %v5905_v56, 6 }
 0x415   :  { %12513 = vmatmul.mubr.msk.f32.gmra.mrb[118].mxu1 %vm1886_vm3, %v6049_v24  ;;  %v6065_v24 = vsel %vm1100_vm2, %v6062_v34, %v6064_v35  ;;  %v6069_v14 = vsel %vm1100_vm2, %v6066_v10, %v6068_v62  ;;  %v5904_v34 = vld [vmem:[#allocation2 + $0x200] ss:$2 sm:$0xff]  ;;  %v6078_v35 = vrot.slane %v17905_v60, 1 }
 0x416   :  { %12515 = vmatprep.mubr.msk.f32.mxu1 %vm1886_vm3, %v6051_v42  ;;  %v6070_v42 = vrot.slane %v17879_v55, 1  ;;  %v6007_v10 = vrot.slane %v5904_v34, 6 }
 0x417   :  { %v6079_v15 = vsel %vm1100_vm2, %v6076_v39, %v6078_v35 }
 0x418   :  { %v6071_v37 = vsel %vm1100_vm2, %v6068_v62, %v6070_v42 }
 0x419   :  { %12516 = vmatmul.mubr.msk.f32.gmra.mrb[120].mxu1 %vm1886_vm3, %v6053_v28  ;;  %v5903_v28 = vld [vmem:[#allocation2 + $0x1f0] ss:$2 sm:$0xff] }
 0x41a   :  { %12518 = vmatprep.mubr.msk.f32.mxu1 %vm1886_vm3, %v6055_v58  ;;  %v6072_v58 = vrot.slane %v17887_v16, 1 }
 0x41c   :  { %v6073_v7 = vsel %vm1100_vm2, %v6070_v42, %v6072_v58 }
 0x41d   :  { %12519 = vmatmul.mubr.msk.f32.gmra.mrb[122].mxu1 %vm1886_vm3, %v6057_v36 }
 0x41e   :  { %12521 = vmatprep.mubr.msk.f32.mxu1 %vm1886_vm3, %v6059_v27  ;;  %v6005_v27 = vrot.slane %v5903_v28, 6  ;;  %v6013_v28 = vrot.slane %v5907_v13, 6  ;;  %v262_v13 = vld [vmem:[#allocation21 + $0x8] sm:$0xff] }
 0x420   :  { %v17917_v23 = vsel %vm442_vm0, %v6003_v19, %v6005_v27  ;;  %v17927_v1 = vsel %vm442_vm0, %v6005_v27, %v6007_v10 }
 0x421   :  { %12522 = vmatmul.mubr.msk.f32.gmra.mrb[124].mxu1 %vm1886_vm3, %v6061_v12  ;;  %v6075_v12 = vsel %vm1100_vm2, %v6072_v58, %v6074_v6 }
 0x422   :  { %12524 = vmatprep.mubr.msk.f32.mxu1 %vm1886_vm3, %v6063_v45  ;;  %v17913_v45 = vsel %vm442_vm0, %v6001_v4, %v6003_v19  ;;  %v6082_v4 = vrot.slane %v17917_v23, 1 }
 0x423   :  { %v6080_v42 = vrot.slane %v17913_v45, 1 }
 0x425   :  { %12525 = vmatmul.mubr.msk.f32.gmra.mrb[126].mxu1 %vm1886_vm3, %v6065_v24  ;;  %v6011_v24 = vrot.slane %v5906_v33, 6  ;;  %v6081_v19 = vsel %vm1100_vm2, %v6078_v35, %v6080_v42  ;;  %v6083_v27 = vsel %vm1100_vm2, %v6080_v42, %v6082_v4 }
 0x426   :  { %12527 = vmatprep.mubr.msk.f32.mxu1 %vm1886_vm3, %v6067_v18  ;;  %v6077_v18 = vsel %vm1100_vm2, %v6074_v6, %v6076_v39 }
 0x427   :  { %v17895_v20 = vpop.f32.mrb[30].mxu1  ;;  %v17942_v56 = vsel %vm442_vm0, %v6009_v51, %v6011_v24 }
 0x428   :  { %v12328_v36 = vpop.f32.mrb[31].mxu1  ;;  %v6088_v35 = vrot.slane %v17942_v56, 1 }
 0x429   :  { %12528 = vmatmul.mubr.msk.f32.gmra.mrb[128].mxu1 %vm1886_vm3, %v6069_v14  ;;  %v17931_v14 = vsel %vm442_vm0, %v6007_v10, %v6009_v51  ;;  %v6084_v36 = vrot.slane %v17927_v1, 1  ;;  %v261_v10 = vld [vmem:[#allocation21] sm:$0xff] }
 0x42a   :  { %12530 = vmatprep.mubr.msk.f32.mxu1 %vm1886_vm3, %v6071_v37  ;;  %v6014_v37 = vsel %vm442_vm0, %v6011_v24, %v6013_v28  ;;  %v6086_v34 = vrot.slane %v17931_v14, 1  ;;  %v17955_v24 = vpack.c.bf16 %v262_v13, %v261_v10  ;;  %v264_v28 = vld [vmem:[#allocation21 + $0x18] sm:$0xff] }
 0x42b   :  { %v17919_v63 = vpop.f32.mrb[32].mxu1 }
 0x42c   :  { %v12331_v62 = vpop.f32.mrb[33].mxu1  ;;  %12789 = vmatprep.subr.bf16.mxu0 %v17955_v24 }
 0x42d   :  { %12531 = vmatmul.mubr.msk.f32.gmra.mrb[130].mxu1 %vm1886_vm3, %v6073_v7  ;;  %v17946_v7 = vsel %vm2140_vm5, %v6014_v37, 0.0  ;;  %v6087_v62 = vsel %vm1100_vm2, %v6084_v36, %v6086_v34  ;;  %12791 = vmatpush3.bf16.msra.mxu0 %v17955_v24 }
 0x42e   :  { %12533 = vmatprep.mubr.msk.f32.mxu1 %vm1886_vm3, %v6075_v12  ;;  %v6085_v12 = vsel %vm1100_vm2, %v6082_v4, %v6084_v36  ;;  %v6090_v51 = vrot.slane %v17946_v7, 1  ;;  %v263_v4 = vld [vmem:[#allocation21 + $0x10] sm:$0xff] }
 0x42f   :  { %v17933_v58 = vpop.f32.mrb[34].mxu1 }
 0x430   :  { %v12334_v6 = vpop.f32.mrb[35].mxu1  ;;  %v6091_v37 = vsel %vm1100_vm2, %v6088_v35, %v6090_v51 }
 0x431   :  { %12534 = vmatmul.mubr.msk.f32.gmra.mrb[132].mxu1 %vm1886_vm3, %v6077_v18  ;;  %v17965_v6 = vpack.c.bf16 %v264_v28, %v263_v4 }
 0x432   :  { %12536 = vmatprep.mubr.msk.f32.mxu1 %vm1886_vm3, %v6079_v15  ;;  %v6089_v15 = vsel %vm1100_vm2, %v6086_v34, %v6088_v35 }
 0x433   :  { %12793 = vmatprep.subr.bf16.mxu0 %v17965_v6 }
 0x434   :  { %v17948_v39 = vpop.f32.mrb[36].mxu1  ;;  %12795 = vmatpush3.bf16.msra.mxu0 %v17965_v6 }
 0x435   :  { %12537 = vmatmul.mubr.msk.f32.gmra.mrb[134].mxu1 %vm1886_vm3, %v6081_v19  ;;  %v12337_v33 = vpop.f32.mrb[37].mxu1 }
 0x436   :  { %12539 = vmatprep.mubr.msk.f32.mxu1 %vm1886_vm3, %v6083_v27 }
 0x438   :  { %v17958_v18 = vpop.f32.mrb[38].mxu1 }
 0x439   :  { %12540 = vmatmul.mubr.msk.f32.gmra.mrb[136].mxu1 %vm1886_vm3, %v6085_v12  ;;  %v12340_v42 = vpop.f32.mrb[39].mxu1 }
 0x43a   :  { %12542 = vmatprep.mubr.msk.f32.mxu1 %vm1886_vm3, %v6087_v62 }
 0x43c   :  { %v17968_v19 = vpop.f32.mrb[40].mxu1 }
 0x43d   :  { %12543 = vmatmul.mubr.msk.f32.gmra.mrb[138].mxu1 %vm1886_vm3, %v6089_v15  ;;  %v12343_v36 = vpop.f32.mrb[41].mxu1 }
 0x43e   :  { %12545 = vmatprep.mubr.msk.f32.mxu1 %vm1886_vm3, %v6091_v37 }
 0x440   :  { %v17975_v27 = vpop.f32.mrb[42].mxu1 }
 0x441   :  { %12546 = vmatmul.mubr.msk.f32.gmra.mrb[140].mxu1 %vm1886_vm3, %v6090_v51  ;;  %v12346_v34 = vpop.f32.mrb[43].mxu1 }
 0x442   :  { %12552 = vmatprep.mubr.msk.f32.mxu1 %vm1886_vm3, %v17734_v32 }
 0x444   :  { %v17982_v33 = vpop.f32.mrb[44].mxu1 }
 0x445   :  { %12553 = vmatmul.mubr.msk.f32.vlgmr.msra.gmra.mrb[106].mxu1 %vm1886_vm3, %v17731_v50  ;;  %v12349_v12 = vpop.f32.mrb[45].mxu1 }
 0x446   :  { %12555 = vmatprep.mubr.msk.f32.mxu1 %vm1886_vm3, %v17740_v48  ;;  %12814 = vmatpush3.bf16.msra.mxu1 %v17117_v53 }
 0x447   :  { %12819 = vmatprep.subr.bf16.mxu1 %v17955_v24 }
 0x449   :  { %12556 = vmatmul.mubr.msk.f32.gmra.mrb[108].mxu1 %vm1886_vm3, %v17745_v3 }
 0x44a   :  { %12558 = vmatprep.mubr.msk.f32.mxu1 %vm1886_vm3, %v17753_v21 }
 0x44b   :  { %v17989_v32 = vpop.f32.mrb[46].mxu1 }
 0x44c   :  { %v12352_v35 = vpop.f32.mrb[47].mxu1 }
 0x44d   :  { %12559 = vmatmul.mubr.msk.f32.gmra.mrb[110].mxu1 %vm1886_vm3, %v17757_v44 }
 0x44e   :  { %12561 = vmatprep.mubr.msk.f32.mxu1 %vm1886_vm3, %v17765_v49 }
 0x44f   :  { %v17995_v53 = vpop.f32.mrb[48].mxu1 }
 0x450   :  { %v12355_v50 = vpop.f32.mrb[49].mxu1 }
 0x451   :  { %12562 = vmatmul.mubr.msk.f32.gmra.mrb[112].mxu1 %vm1886_vm3, %v17770_v46 }
 0x452   :  { %12564 = vmatprep.mubr.msk.f32.mxu1 %vm1886_vm3, %v17779_v38 }
 0x453   :  { %v18001_v48 = vpop.f32.mrb[50].mxu1 }
 0x454   :  { %v12358_v3 = vpop.f32.mrb[51].mxu1 }
 0x455   :  { %12565 = vmatmul.mubr.msk.f32.gmra.mrb[114].mxu1 %vm1886_vm3, %v17783_v2 }
 0x456   :  { %12567 = vmatprep.mubr.msk.f32.mxu1 %vm1886_vm3, %v17791_v26  ;;  %v257_v26 = vld [vmem:[#allocation19] sm:$0xff] }
 0x457   :  { %v18007_v21 = vpop.f32.mrb[52].mxu1 }
 0x458   :  { %v12361_v44 = vpop.f32.mrb[53].mxu1 }
 0x459   :  { %12568 = vmatmul.mubr.msk.f32.gmra.mrb[116].mxu1 %vm1886_vm3, %v17795_v43  ;;  %v258_v43 = vld [vmem:[#allocation19 + $0x8] sm:$0xff] }
 0x45a   :  { %12570 = vmatprep.mubr.msk.f32.mxu1 %vm1886_vm3, %v17803_v29  ;;  %v18029_v29 = vpack.c.bf16 %v258_v43, %v257_v26 }
 0x45b   :  { %v18013_v49 = vpop.f32.mrb[54].mxu1 }
 0x45c   :  { %v12364_v46 = vpop.f32.mrb[55].mxu1  ;;  %12797 = vmatprep.subr.bf16.mxu0 %v18029_v29 }
 0x45d   :  { %12571 = vmatmul.mubr.msk.f32.gmra.mrb[118].mxu1 %vm1886_vm3, %v17807_v9 }
 0x45e   :  { %12573 = vmatprep.mubr.msk.f32.mxu1 %vm1886_vm3, %v17815_v22 }
 0x461   :  { %12574 = vmatmul.mubr.msk.f32.gmra.mrb[120].mxu1 %vm1886_vm3, %v17819_v40 }
 0x462   :  { %12576 = vmatprep.mubr.msk.f32.mxu1 %vm1886_vm3, %v17827_v52 }
 0x464   :  { %v18023_v38 = vpop.f32.mrb[56].mxu1 }
 0x465   :  { %12577 = vmatmul.mubr.msk.f32.gmra.mrb[122].mxu1 %vm1886_vm3, %v17831_v41  ;;  %v12367_v2 = vpop.f32.mrb[57].mxu1 }
 0x466   :  { %12579 = vmatprep.mubr.msk.f32.mxu1 %vm1886_vm3, %v17839_v59 }
 0x469   :  { %12580 = vmatmul.mubr.msk.f32.gmra.mrb[124].mxu1 %vm1886_vm3, %v17845_v11 }
 0x46a   :  { %12582 = vmatprep.mubr.msk.f32.mxu1 %vm1886_vm3, %v17850_v61 }
 0x46d   :  { %12583 = vmatmul.mubr.msk.f32.gmra.mrb[126].mxu1 %vm1886_vm3, %v17854_v30 }
 0x46e   :  { %12585 = vmatprep.mubr.msk.f32.mxu1 %vm1886_vm3, %v17863_v31 }
 0x470   :  { %v18040_v9 = vpop.f32.mrb[58].mxu1 }
 0x471   :  { %v12370_v22 = vpop.f32.mrb[59].mxu1  ;;  %12586 = vmatmul.mubr.msk.f32.gmra.mrb[128].mxu1 %vm1886_vm3, %v17867_v54  ;;  %v18070_v54 = vld [vmem:[#allocation18] ss:$0 sm:$0xff] }
 0x472   :  { %12588 = vmatprep.mubr.msk.f32.mxu1 %vm1886_vm3, %v17875_v25 }
 0x474   :  { %v18046_v40 = vpop.f32.mrb[60].mxu1 }
 0x475   :  { %v12373_v52 = vpop.f32.mrb[61].mxu1  ;;  %12589 = vmatmul.mubr.msk.f32.gmra.mrb[130].mxu1 %vm1886_vm3, %v17879_v55 }
 0x476   :  { %12591 = vmatprep.mubr.msk.f32.mxu1 %vm1886_vm3, %v17887_v16 }
 0x478   :  { %v18052_v41 = vpop.f32.mrb[62].mxu1 }
 0x479   :  { %v12376_v59 = vpop.f32.mrb[63].mxu1  ;;  %12592 = vmatmul.mubr.msk.f32.gmra.mrb[132].mxu1 %vm1886_vm3, %v17891_v17 }
 0x47a   :  { %12594 = vmatprep.mubr.msk.f32.mxu1 %vm1886_vm3, %v17901_v0 }
 0x47c   :  { %v18058_v11 = vpop.f32.mrb[64].mxu1 }
 0x47d   :  { %v12379_v61 = vpop.f32.mrb[65].mxu1  ;;  %12595 = vmatmul.mubr.msk.f32.gmra.mrb[134].mxu1 %vm1886_vm3, %v17905_v60 }
 0x47e   :  { %12597 = vmatprep.mubr.msk.f32.mxu1 %vm1886_vm3, %v17913_v45 }
 0x480   :  { %v18064_v30 = vpop.f32.mrb[66].mxu1 }
 0x481   :  { %v12382_v31 = vpop.f32.mrb[67].mxu1  ;;  %12598 = vmatmul.mubr.msk.f32.gmra.mrb[136].mxu1 %vm1886_vm3, %v17917_v23 }
 0x482   :  { %12600 = vmatprep.mubr.msk.f32.mxu1 %vm1886_vm3, %v17927_v1 }
 0x484   :  { %v3557_v25 = vpop.f32.mrb[68].mxu1 }
 0x485   :  { %v3558_v55 = vadd.f32 %v3557_v25, %v17895_v20  ;;  %v12389_v16 = vpop.f32.mrb[69].mxu1  ;;  %12601 = vmatmul.mubr.msk.f32.gmra.mrb[138].mxu1 %vm1886_vm3, %v17931_v14 }
 0x486   :  { %12603 = vmatprep.mubr.msk.f32.mxu1 %vm1886_vm3, %v17942_v56 }
 0x487   :  { %v3657_v17 = vadd.f32 %v18070_v54, %v3558_v55 }
 0x488   :  { %v3562_v0 = vpop.f32.mrb[70].mxu1 }
 0x489   :  { %v3563_v60 = vadd.f32 %v3562_v0, %v17919_v63  ;;  %v12392_v45 = vpop.f32.mrb[71].mxu1  ;;  %12604 = vmatmul.mubr.msk.f32.gmra.mrb[140].mxu1 %vm1886_vm3, %v17946_v7  ;;  %v3676_v20 = vmax.f32 %v3657_v17, 0.0 }
 0x48a   :  { %12610 = vmatprep.mubr.msk.f32.mxu1 %vm13760_vm6, %v13761_v5 }
 0x48b   :  { %v3658_v23 = vadd.f32 %v18070_v54, %v3563_v60  ;;  %v3714_v13 = vrot.slane %v3676_v20, 1 }
 0x48c   :  { %v3567_v1 = vpop.f32.mrb[72].mxu1 }
 0x48d   :  { %v3677_v14 = vmax.f32 %v3658_v23, 0.0  ;;  %v3568_v10 = vadd.f32 %v3567_v1, %v17933_v58  ;;  %v12395_v56 = vpop.f32.mrb[73].mxu1 }
 0x48f   :  { %v3715_v62 = vrot.slane %v3677_v14, 1  ;;  %v3659_v51 = vadd.f32 %v18070_v54, %v3568_v10 }
 0x490   :  { %v3572_v63 = vpop.f32.mrb[74].mxu1 }
 0x491   :  { %v3716_v42 = vsel %vm1100_vm2, %v3714_v13, %v3715_v62  ;;  %v3678_v7 = vmax.f32 %v3659_v51, 0.0  ;;  %v3573_v15 = vadd.f32 %v3572_v63, %v17948_v39  ;;  %v12398_v4 = vpop.f32.mrb[75].mxu1 }
 0x492   :  { %v3769_v28 = vmax.f32 %v3676_v20, %v3716_v42 }
 0x493   :  { %v3717_v37 = vrot.slane %v3678_v7, 1  ;;  %v3660_v36 = vadd.f32 %v18070_v54, %v3573_v15 }
 0x494   :  { %3788 = vst.msk [vmem:[#allocation3] sm:$0xff] %vm3787_vm8, %v3769_v28  ;;  %v3577_v58 = vpop.f32.mrb[76].mxu1 }
 0x495   :  { %v3718_v34 = vsel %vm1100_vm2, %v3715_v62, %v3717_v37  ;;  %v3679_v12 = vmax.f32 %v3660_v36, 0.0  ;;  %v3578_v35 = vadd.f32 %v3577_v58, %v17958_v18  ;;  %v12401_v50 = vpop.f32.mrb[77].mxu1 }
 0x496   :  { %v3770_v3 = vmax.f32 %v3677_v14, %v3718_v34 }
 0x497   :  { %v3719_v44 = vrot.slane %v3679_v12, 1  ;;  %v3661_v46 = vadd.f32 %v18070_v54, %v3578_v35 }
 0x498   :  { %3789 = vst.msk [vmem:[#allocation3 + $0x8] sm:$0xff] %vm3787_vm8, %v3770_v3  ;;  %v3582_v39 = vpop.f32.mrb[78].mxu1 }
 0x499   :  { %v3720_v2 = vsel %vm1100_vm2, %v3717_v37, %v3719_v44  ;;  %v3680_v26 = vmax.f32 %v3661_v46, 0.0  ;;  %v3583_v43 = vadd.f32 %v3582_v39, %v17968_v19  ;;  %v12404_v22 = vpop.f32.mrb[79].mxu1 }
 0x49a   :  { %v3771_v52 = vmax.f32 %v3678_v7, %v3720_v2 }
 0x49b   :  { %v3721_v59 = vrot.slane %v3680_v26, 1  ;;  %v3662_v61 = vadd.f32 %v18070_v54, %v3583_v43 }
 0x49c   :  { %3790 = vst.msk [vmem:[#allocation3 + $0x10] sm:$0xff] %vm3787_vm8, %v3771_v52  ;;  %v3587_v18 = vpop.f32.mrb[80].mxu1 }
 0x49d   :  { %v3722_v31 = vsel %vm1100_vm2, %v3719_v44, %v3721_v59  ;;  %v3681_v25 = vmax.f32 %v3662_v61, 0.0  ;;  %v3588_v55 = vadd.f32 %v3587_v18, %v17975_v27  ;;  %v12407_v16 = vpop.f32.mrb[81].mxu1 }
 0x49e   :  { %v3772_v17 = vmax.f32 %v3679_v12, %v3722_v31 }
 0x49f   :  { %v3723_v0 = vrot.slane %v3681_v25, 1  ;;  %v3663_v60 = vadd.f32 %v18070_v54, %v3588_v55  ;;  %v3806_v14 = vld [vmem:[#allocation3] ss:$2 sm:$0xff] }
 0x4a0   :  { %3791 = vst.msk [vmem:[#allocation3 + $0x18] sm:$0xff] %vm3787_vm8, %v3772_v17  ;;  %v3592_v19 = vpop.f32.mrb[82].mxu1  ;;  %v3832_v62 = vrot.slane %v3806_v14, 6 }
 0x4a1   :  { %v3724_v45 = vsel %vm1100_vm2, %v3721_v59, %v3723_v0  ;;  %v3682_v20 = vmax.f32 %v3663_v60, 0.0  ;;  %v3593_v23 = vadd.f32 %v3592_v19, %v17982_v33  ;;  %v12410_v1 = vpop.f32.mrb[83].mxu1  ;;  %v259_v19 = vld [vmem:[#allocation19 + $0x10] sm:$0xff] }
 0x4a2   :  { %v3773_v10 = vmax.f32 %v3680_v26, %v3724_v45  ;;  %v18111_v58 = vsel %vm442_vm0, 0.0, %v3832_v62  ;;  %v260_v45 = vld [vmem:[#allocation19 + $0x18] sm:$0xff] }
 0x4a3   :  { %v3725_v56 = vrot.slane %v3682_v20, 1  ;;  %v3664_v13 = vadd.f32 %v18070_v54, %v3593_v23  ;;  %v3855_v39 = vrot.slane %v18111_v58, 1 }
 0x4a4   :  { %3792 = vst.msk [vmem:[#allocation3 + $0x20] sm:$0xff] %vm3787_vm8, %v3773_v10  ;;  %v3597_v27 = vpop.f32.mrb[84].mxu1 }
 0x4a5   :  { %v3726_v51 = vsel %vm1100_vm2, %v3723_v0, %v3725_v56  ;;  %v3683_v63 = vmax.f32 %v3664_v13, 0.0  ;;  %v3598_v42 = vadd.f32 %v3597_v27, %v17989_v32  ;;  %v12413_v7 = vpop.f32.mrb[85].mxu1  ;;  %v18136_v13 = vpack.c.bf16 %v260_v45, %v259_v19 }
 0x4a6   :  { %v3774_v15 = vmax.f32 %v3681_v25, %v3726_v51 }
 0x4a7   :  { %v3727_v4 = vrot.slane %v3683_v63, 1  ;;  %v3665_v33 = vadd.f32 %v18070_v54, %v3598_v42  ;;  %v3808_v28 = vld [vmem:[#allocation3 + $0x10] ss:$2 sm:$0xff] }
 0x4a8   :  { %3793 = vst.msk [vmem:[#allocation3 + $0x28] sm:$0xff] %vm3787_vm8, %v3774_v15  ;;  %v3602_v37 = vpop.f32.mrb[86].mxu1  ;;  %v3833_v36 = vrot.slane %v3808_v28, 6 }
 0x4a9   :  { %v3728_v34 = vsel %vm1100_vm2, %v3725_v56, %v3727_v4  ;;  %v3684_v12 = vmax.f32 %v3665_v33, 0.0  ;;  %v3603_v35 = vadd.f32 %v3602_v37, %v17995_v53  ;;  %v12416_v50 = vpop.f32.mrb[87].mxu1 }
 0x4aa   :  { %v3775_v32 = vmax.f32 %v3682_v20, %v3728_v34  ;;  %v18116_v3 = vsel %vm442_vm0, %v3832_v62, %v3833_v36 }
 0x4ab   :  { %v3729_v44 = vrot.slane %v3684_v12, 1  ;;  %v3666_v46 = vadd.f32 %v18070_v54, %v3603_v35  ;;  %v3856_v2 = vrot.slane %v18116_v3, 1 }
 0x4ac   :  { %3794 = vst.msk [vmem:[#allocation3 + $0x30] sm:$0xff] %vm3787_vm8, %v3775_v32  ;;  %v3607_v26 = vpop.f32.mrb[88].mxu1 }
 0x4ad   :  { %v3730_v43 = vsel %vm1100_vm2, %v3727_v4, %v3729_v44  ;;  %v3685_v22 = vmax.f32 %v3666_v46, 0.0  ;;  %v3608_v53 = vadd.f32 %v3607_v26, %v18001_v48  ;;  %v12419_v52 = vpop.f32.mrb[89].mxu1  ;;  %v3857_v59 = vsel %vm1100_vm2, %v3855_v39, %v3856_v2 }
 0x4ae   :  { %v3776_v61 = vmax.f32 %v3683_v63, %v3730_v43  ;;  %12452 = vmatprep.mubr.msk.f32.mxu0 %vm3787_vm8, %v3857_v59 }
 0x4af   :  { %v3731_v18 = vrot.slane %v3685_v22, 1  ;;  %v3667_v31 = vadd.f32 %v18070_v54, %v3608_v53  ;;  %v3810_v25 = vld [vmem:[#allocation3 + $0x20] ss:$2 sm:$0xff] }
 0x4b0   :  { %3795 = vst.msk [vmem:[#allocation3 + $0x38] sm:$0xff] %vm3787_vm8, %v3776_v61  ;;  %v3612_v55 = vpop.f32.mrb[90].mxu1  ;;  %v3835_v16 = vrot.slane %v3810_v25, 6 }
 0x4b1   :  { %v3732_v17 = vsel %vm1100_vm2, %v3729_v44, %v3731_v18  ;;  %v3686_v0 = vmax.f32 %v3667_v31, 0.0  ;;  %v3613_v60 = vadd.f32 %v3612_v55, %v18007_v21  ;;  %v12422_v48 = vpop.f32.mrb[91].mxu1 }
 0x4b2   :  { %v3777_v20 = vmax.f32 %v3684_v12, %v3732_v17  ;;  %v18131_v23 = vsel %vm442_vm0, %v3833_v36, %v3835_v16 }
 0x4b3   :  { %v3733_v1 = vrot.slane %v3686_v0, 1  ;;  %v3668_v14 = vadd.f32 %v18070_v54, %v3613_v60  ;;  %v3858_v10 = vrot.slane %v18131_v23, 1 }
 0x4b4   :  { %3796 = vst.msk [vmem:[#allocation3 + $0x40] sm:$0xff] %vm3787_vm8, %v3777_v20  ;;  %v3617_v56 = vpop.f32.mrb[92].mxu1 }
 0x4b5   :  { %v3734_v27 = vsel %vm1100_vm2, %v3731_v18, %v3733_v1  ;;  %v3687_v21 = vmax.f32 %v3668_v14, 0.0  ;;  %v3618_v62 = vadd.f32 %v3617_v56, %v18013_v49  ;;  %v12425_v51 = vpop.f32.mrb[93].mxu1  ;;  %v3859_v63 = vsel %vm1100_vm2, %v3856_v2, %v3858_v10 }
 0x4b6   :  { %v3778_v42 = vmax.f32 %v3685_v22, %v3734_v27  ;;  %12453 = vmatmul.mubr.msk.f32.vlgmr.msra.gmra.mrb[36].mxu0 %vm3787_vm8, %v3859_v63 }
 0x4b7   :  { %v3735_v7 = vrot.slane %v3687_v21, 1  ;;  %v3669_v15 = vadd.f32 %v18070_v54, %v3618_v62  ;;  %v3812_v4 = vld [vmem:[#allocation3 + $0x30] ss:$2 sm:$0xff]  ;;  %12799 = vmatpush3.bf16.msra.mxu0 %v18029_v29 }
 0x4b8   :  { %3797 = vst.msk [vmem:[#allocation3 + $0x48] sm:$0xff] %vm3787_vm8, %v3778_v42  ;;  %v3622_v33 = vpop.f32.mrb[94].mxu1  ;;  %v3837_v28 = vrot.slane %v3812_v4, 6  ;;  %12801 = vmatprep.subr.bf16.mxu0 %v18136_v13 }
 0x4b9   :  { %v3736_v49 = vsel %vm1100_vm2, %v3733_v1, %v3735_v7  ;;  %v3688_v37 = vmax.f32 %v3669_v15, 0.0  ;;  %v3623_v36 = vadd.f32 %v3622_v33, %v18023_v38  ;;  %v12428_v34 = vpop.f32.mrb[95].mxu1 }
 0x4ba   :  { %v3779_v12 = vmax.f32 %v3686_v0, %v3736_v49  ;;  %v18149_v35 = vsel %vm442_vm0, %v3835_v16, %v3837_v28 }
 0x4bb   :  { %v3737_v50 = vrot.slane %v3688_v37, 1  ;;  %v3670_v32 = vadd.f32 %v18070_v54, %v3623_v36  ;;  %v3860_v44 = vrot.slane %v18149_v35, 1  ;;  %12803 = vmatpush3.bf16.msra.mxu0 %v18136_v13 }
 0x4bc   :  { %3798 = vst.msk [vmem:[#allocation3 + $0x50] sm:$0xff] %vm3787_vm8, %v3779_v12  ;;  %v3627_v46 = vpop.f32.mrb[96].mxu1  ;;  %12815 = vmatprep.subr.bf16.mxu0 %v13759_v8 }
 0x4bd   :  { %v3738_v39 = vsel %vm1100_vm2, %v3735_v7, %v3737_v50  ;;  %v3689_v38 = vmax.f32 %v3670_v32, 0.0  ;;  %v3628_v2 = vadd.f32 %v3627_v46, %v18040_v9  ;;  %v12431_v26 = vpop.f32.mrb[97].mxu1  ;;  %v3861_v43 = vsel %vm1100_vm2, %v3858_v10, %v3860_v44 }
 0x4be   :  { %v3780_v22 = vmax.f32 %v3687_v21, %v3738_v39  ;;  %12455 = vmatprep.mubr.msk.f32.mxu0 %vm3787_vm8, %v3861_v43 }
 0x4bf   :  { %v3739_v53 = vrot.slane %v3689_v38, 1  ;;  %v3671_v52 = vadd.f32 %v18070_v54, %v3628_v2  ;;  %v3814_v59 = vld [vmem:[#allocation3 + $0x40] ss:$2 sm:$0xff] }
 0x4c0   :  { %3799 = vst.msk [vmem:[#allocation3 + $0x58] sm:$0xff] %vm3787_vm8, %v3780_v22  ;;  %v3632_v61 = vpop.f32.mrb[98].mxu1  ;;  %v3839_v18 = vrot.slane %v3814_v59, 6 }
 0x4c1   :  { %v3740_v8 = vsel %vm1100_vm2, %v3737_v50, %v3739_v53  ;;  %v3690_v31 = vmax.f32 %v3671_v52, 0.0  ;;  %v3633_v25 = vadd.f32 %v3632_v61, %v18046_v40  ;;  %v12434_v9 = vpop.f32.mrb[99].mxu1 }
 0x4c2   :  { %v3781_v55 = vmax.f32 %v3688_v37, %v3740_v8  ;;  %v18165_v16 = vsel %vm442_vm0, %v3837_v28, %v3839_v18 }
 0x4c3   :  { %v3741_v17 = vrot.slane %v3690_v31, 1  ;;  %v3672_v0 = vadd.f32 %v18070_v54, %v3633_v25  ;;  %v3862_v60 = vrot.slane %v18165_v16, 1 }
 0x4c4   :  { %3800 = vst.msk [vmem:[#allocation3 + $0x60] sm:$0xff] %vm3787_vm8, %v3781_v55  ;;  %v3637_v48 = vpop.f32.mrb[100].mxu1 }
 0x4c5   :  { %v3742_v19 = vsel %vm1100_vm2, %v3739_v53, %v3741_v17  ;;  %v3691_v45 = vmax.f32 %v3672_v0, 0.0  ;;  %v3638_v20 = vadd.f32 %v3637_v48, %v18052_v41  ;;  %v12437_v1 = vpop.f32.mrb[101].mxu1  ;;  %v3863_v40 = vsel %vm1100_vm2, %v3860_v44, %v3862_v60 }
 0x4c6   :  { %v3782_v14 = vmax.f32 %v3689_v38, %v3742_v19  ;;  %12456 = vmatmul.mubr.msk.f32.gmra.mrb[38].mxu0 %vm3787_vm8, %v3863_v40 }
 0x4c7   :  { %v3743_v10 = vrot.slane %v3691_v45, 1  ;;  %v3673_v56 = vadd.f32 %v18070_v54, %v3638_v20  ;;  %v3816_v27 = vld [vmem:[#allocation3 + $0x50] ss:$2 sm:$0xff] }
 0x4c8   :  { %3801 = vst.msk [vmem:[#allocation3 + $0x68] sm:$0xff] %vm3787_vm8, %v3782_v14  ;;  %v3642_v21 = vpop.f32.mrb[102].mxu1  ;;  %v3841_v62 = vrot.slane %v3816_v27, 6 }
 0x4c9   :  { %v3744_v51 = vsel %vm1100_vm2, %v3741_v17, %v3743_v10  ;;  %v3692_v63 = vmax.f32 %v3673_v56, 0.0  ;;  %v3643_v42 = vadd.f32 %v3642_v21, %v18058_v11  ;;  %v12440_v41 = vpop.f32.mrb[103].mxu1 }
 0x4ca   :  { %v3783_v7 = vmax.f32 %v3690_v31, %v3744_v51  ;;  %v3842_v15 = vsel %vm442_vm0, %v3839_v18, %v3841_v62 }
 0x4cb   :  { %v3745_v4 = vrot.slane %v3692_v63, 1  ;;  %v3674_v33 = vadd.f32 %v18070_v54, %v3643_v42  ;;  %v3864_v28 = vrot.slane %v3842_v15, 1 }
 0x4cc   :  { %3802 = vst.msk [vmem:[#allocation3 + $0x70] sm:$0xff] %vm3787_vm8, %v3783_v7  ;;  %v3647_v49 = vpop.f32.mrb[104].mxu1 }
 0x4cd   :  { %v3746_v37 = vsel %vm1100_vm2, %v3743_v10, %v3745_v4  ;;  %v3693_v36 = vmax.f32 %v3674_v33, 0.0  ;;  %v3648_v34 = vadd.f32 %v3647_v49, %v18064_v30  ;;  %v12443_v12 = vpop.f32.mrb[105].mxu1  ;;  %v3865_v50 = vsel %vm1100_vm2, %v3862_v60, %v3864_v28 }
 0x4ce   :  { %v3784_v11 = vmax.f32 %v3691_v45, %v3746_v37  ;;  %12458 = vmatprep.mubr.msk.f32.mxu0 %vm3787_vm8, %v3865_v50 }
 0x4cf   :  { %v3747_v32 = vrot.slane %v3693_v36, 1  ;;  %v3675_v44 = vadd.f32 %v18070_v54, %v3648_v34  ;;  %v3818_v46 = vld [vmem:[#allocation3 + $0x60] ss:$2 sm:$0xff] }
 0x4d0   :  { %3803 = vst.msk [vmem:[#allocation3 + $0x78] sm:$0xff] %vm3787_vm8, %v3784_v11  ;;  %v3843_v39 = vrot.slane %v3818_v46, 6 }
 0x4d1   :  { %v3748_v38 = vsel %vm1100_vm2, %v3745_v4, %v3747_v32  ;;  %v3694_v2 = vmax.f32 %v3675_v44, 0.0 }
 0x4d2   :  { %v3785_v26 = vmax.f32 %v3692_v63, %v3748_v38  ;;  %v3844_v43 = vsel %vm442_vm0, %v3841_v62, %v3843_v39 }
 0x4d3   :  { %v3749_v30 = vrot.slane %v3694_v2, 1  ;;  %v3866_v22 = vrot.slane %v3844_v43, 1 }
 0x4d4   :  { %3804 = vst.msk [vmem:[#allocation3 + $0x80] sm:$0xff] %vm3787_vm8, %v3785_v26 }
 0x4d5   :  { %v3750_v53 = vsel %vm1100_vm2, %v3747_v32, %v3749_v30  ;;  %v3867_v52 = vsel %vm1100_vm2, %v3864_v28, %v3866_v22 }
 0x4d6   :  { %v3786_v59 = vmax.f32 %v3693_v36, %v3750_v53  ;;  %12459 = vmatmul.mubr.msk.f32.gmra.mrb[40].mxu0 %vm3787_vm8, %v3867_v52 }
 0x4d7   :  { %v3820_v54 = vld [vmem:[#allocation3 + $0x70] ss:$2 sm:$0xff] }
 0x4d8   :  { %3805 = vst.msk [vmem:[#allocation3 + $0x88] sm:$0xff] %vm3787_vm8, %v3786_v59  ;;  %v3845_v61 = vrot.slane %v3820_v54, 6 }
 0x4da   :  { %v3846_v18 = vsel %vm442_vm0, %v3843_v39, %v3845_v61 }
 0x4db   :  { %v3868_v8 = vrot.slane %v3846_v18, 1 }
 0x4dd   :  { %v3869_v31 = vsel %vm1100_vm2, %v3866_v22, %v3868_v8 }
 0x4de   :  { %12461 = vmatprep.mubr.msk.f32.mxu0 %vm3787_vm8, %v3869_v31 }
 0x4df   :  { %v3822_v25 = vld [vmem:[#allocation3 + $0x80] ss:$2 sm:$0xff] }
 0x4e0   :  { %v3847_v9 = vrot.slane %v3822_v25, 6 }
 0x4e2   :  { %v3848_v55 = vsel %vm442_vm0, %v3845_v61, %v3847_v9  ;;  %v3852_v17 = vsel %vm442_vm0, %v3847_v9, 0.0 }
 0x4e3   :  { %v3870_v0 = vrot.slane %v3848_v55, 1  ;;  %v3872_v60 = vrot.slane %v3852_v17, 1 }
 0x4e5   :  { %v3871_v48 = vsel %vm1100_vm2, %v3868_v8, %v3870_v0  ;;  %v3873_v19 = vsel %vm1100_vm2, %v3870_v0, %v3872_v60 }
 0x4e6   :  { %12462 = vmatmul.mubr.msk.f32.gmra.mrb[42].mxu0 %vm3787_vm8, %v3871_v48 }
 0x4e7   :  { %12464 = vmatprep.mubr.msk.f32.mxu0 %vm3787_vm8, %v3873_v19 }
 0x4ea   :  { %12465 = vmatmul.mubr.msk.f32.gmra.mrb[44].mxu0 %vm3787_vm8, %v3872_v60 }
 0x4eb   :  { %12475 = vmatprep.mubr.msk.f32.mxu0 %vm3787_vm8, %v18111_v58  ;;  %v18222_v58 = vld [vmem:[#allocation13] ss:$0 sm:$0xff] }
 0x4ee   :  { %12476 = vmatmul.mubr.msk.f32.vlgmr.msra.gmra.mrb[36].mxu0 %vm3787_vm8, %v18116_v3 }
 0x4ef   :  { %12478 = vmatprep.mubr.msk.f32.mxu0 %vm3787_vm8, %v18131_v23  ;;  %12817 = vmatpush3.bf16.msra.mxu0 %v17306_v47 }
 0x4f2   :  { %12479 = vmatmul.mubr.msk.f32.gmra.mrb[38].mxu0 %vm3787_vm8, %v18149_v35 }
 0x4f3   :  { %12481 = vmatprep.mubr.msk.f32.mxu0 %vm3787_vm8, %v18165_v16 }
 0x4f6   :  { %12482 = vmatmul.mubr.msk.f32.gmra.mrb[40].mxu0 %vm3787_vm8, %v3842_v15 }
 0x4f7   :  { %12484 = vmatprep.mubr.msk.f32.mxu0 %vm3787_vm8, %v3844_v43 }
 0x4fa   :  { %12485 = vmatmul.mubr.msk.f32.gmra.mrb[42].mxu0 %vm3787_vm8, %v3846_v18 }
 0x4fb   :  { %12487 = vmatprep.mubr.msk.f32.mxu0 %vm3787_vm8, %v3848_v55 }
 0x4fe   :  { %12488 = vmatmul.mubr.msk.f32.gmra.mrb[44].mxu0 %vm3787_vm8, %v3852_v17 }
 0x4ff   :  { %12671 = vmatprep.mubr.msk.f32.mxu0 %vm13760_vm6, %v13761_v5 }
 0x518   :  { %v12554_v47 = vpop.f32.mrb[106].mxu1 }
 0x519   :  { %v6727_v3 = vadd.f32 %v18222_v58, %v12554_v47  ;;  %v6547_v23 = vpop.f32.mrb[107].mxu1 }
 0x51a   :  { %v6726_v35 = vadd.f32 %v18222_v58, %v6547_v23 }
 0x51b   :  { %v6763_v16 = vmax.f32 %v6727_v3, 0.0 }
 0x51c   :  { %v6762_v45 = vmax.f32 %v6726_v35, 0.0  ;;  %v12557_v20 = vpop.f32.mrb[108].mxu1 }
 0x51d   :  { %v6835_v1 = vrot.slane %v6763_v16, 1  ;;  %v6729_v40 = vadd.f32 %v18222_v58, %v12557_v20  ;;  %v6557_v14 = vpop.f32.mrb[109].mxu1 }
 0x51e   :  { %v6834_v10 = vrot.slane %v6762_v45, 1  ;;  %v6728_v56 = vadd.f32 %v18222_v58, %v6557_v14 }
 0x51f   :  { %v6765_v27 = vmax.f32 %v6729_v40, 0.0 }
 0x520   :  { %v6836_v21 = vsel %vm1100_vm2, %v6834_v10, %v6835_v1  ;;  %v6764_v62 = vmax.f32 %v6728_v56, 0.0  ;;  %v12560_v51 = vpop.f32.mrb[110].mxu1 }
 0x521   :  { %v6941_v63 = vmax.f32 %v6762_v45, %v6836_v21  ;;  %v6839_v42 = vrot.slane %v6765_v27, 1  ;;  %v6731_v41 = vadd.f32 %v18222_v58, %v12560_v51  ;;  %v6567_v7 = vpop.f32.mrb[111].mxu1 }
 0x522   :  { %v6837_v15 = vrot.slane %v6764_v62, 1  ;;  %v6730_v4 = vadd.f32 %v18222_v58, %v6567_v7 }
 0x523   :  { %6977 = vst.msk [vmem:[#allocation2] sm:$0xff] %vm1886_vm3, %v6941_v63  ;;  %v6767_v33 = vmax.f32 %v6731_v41, 0.0 }
 0x524   :  { %v6838_v28 = vsel %vm1100_vm2, %v6835_v1, %v6837_v15  ;;  %v6840_v49 = vsel %vm1100_vm2, %v6837_v15, %v6839_v42  ;;  %v6766_v37 = vmax.f32 %v6730_v4, 0.0  ;;  %v12563_v36 = vpop.f32.mrb[112].mxu1 }
 0x525   :  { %v6942_v34 = vmax.f32 %v6763_v16, %v6838_v28  ;;  %v6943_v12 = vmax.f32 %v6764_v62, %v6840_v49  ;;  %v6843_v50 = vrot.slane %v6767_v33, 1  ;;  %v6733_v11 = vadd.f32 %v18222_v58, %v12563_v36  ;;  %v6577_v32 = vpop.f32.mrb[113].mxu1 }
 0x526   :  { %v6841_v44 = vrot.slane %v6766_v37, 1  ;;  %v6732_v46 = vadd.f32 %v18222_v58, %v6577_v32 }
 0x527   :  { %6978 = vst.msk [vmem:[#allocation2 + $0x8] sm:$0xff] %vm1886_vm3, %v6942_v34  ;;  %6979 = vst.msk [vmem:[#allocation2 + $0x10] sm:$0xff] %vm1886_vm3, %v6943_v12  ;;  %v6769_v39 = vmax.f32 %v6733_v11, 0.0 }
 0x528   :  { %v6842_v38 = vsel %vm1100_vm2, %v6839_v42, %v6841_v44  ;;  %v6844_v2 = vsel %vm1100_vm2, %v6841_v44, %v6843_v50  ;;  %v6768_v26 = vmax.f32 %v6732_v46, 0.0  ;;  %v12566_v43 = vpop.f32.mrb[114].mxu1 }
 0x529   :  { %v6944_v30 = vmax.f32 %v6765_v27, %v6842_v38  ;;  %v6945_v22 = vmax.f32 %v6766_v37, %v6844_v2  ;;  %v6847_v53 = vrot.slane %v6769_v39, 1  ;;  %v6735_v52 = vadd.f32 %v18222_v58, %v12566_v43  ;;  %v6587_v59 = vpop.f32.mrb[115].mxu1 }
 0x52a   :  { %v6845_v54 = vrot.slane %v6768_v26, 1  ;;  %v6734_v61 = vadd.f32 %v18222_v58, %v6587_v59 }
 0x52b   :  { %6980 = vst.msk [vmem:[#allocation2 + $0x18] sm:$0xff] %vm1886_vm3, %v6944_v30  ;;  %6981 = vst.msk [vmem:[#allocation2 + $0x20] sm:$0xff] %vm1886_vm3, %v6945_v22  ;;  %v6771_v18 = vmax.f32 %v6735_v52, 0.0 }
 0x52c   :  { %v6846_v8 = vsel %vm1100_vm2, %v6843_v50, %v6845_v54  ;;  %v6848_v31 = vsel %vm1100_vm2, %v6845_v54, %v6847_v53  ;;  %v6770_v25 = vmax.f32 %v6734_v61, 0.0  ;;  %v12569_v9 = vpop.f32.mrb[116].mxu1 }
 0x52d   :  { %v6946_v55 = vmax.f32 %v6767_v33, %v6846_v8  ;;  %v6947_v17 = vmax.f32 %v6768_v26, %v6848_v31  ;;  %v6851_v0 = vrot.slane %v6771_v18, 1  ;;  %v6737_v60 = vadd.f32 %v18222_v58, %v12569_v9  ;;  %v6597_v48 = vpop.f32.mrb[117].mxu1 }
 0x52e   :  { %v6849_v19 = vrot.slane %v6770_v25, 1  ;;  %v6736_v47 = vadd.f32 %v18222_v58, %v6597_v48  ;;  %v7013_v3 = vld [vmem:[#allocation2] ss:$2 sm:$0xff] }
 0x52f   :  { %6982 = vst.msk [vmem:[#allocation2 + $0x28] sm:$0xff] %vm1886_vm3, %v6946_v55  ;;  %6983 = vst.msk [vmem:[#allocation2 + $0x30] sm:$0xff] %vm1886_vm3, %v6947_v17  ;;  %v6773_v23 = vmax.f32 %v6737_v60, 0.0  ;;  %v7049_v35 = vrot.slane %v7013_v3, 6 }
 0x530   :  { %v6850_v16 = vsel %vm1100_vm2, %v6847_v53, %v6849_v19  ;;  %v6852_v45 = vsel %vm1100_vm2, %v6849_v19, %v6851_v0  ;;  %v6772_v20 = vmax.f32 %v6736_v47, 0.0  ;;  %v12572_v1 = vpop.f32.mrb[118].mxu1 }
 0x531   :  { %v6948_v40 = vmax.f32 %v6769_v39, %v6850_v16  ;;  %v6949_v14 = vmax.f32 %v6770_v25, %v6852_v45  ;;  %v6855_v10 = vrot.slane %v6773_v23, 1  ;;  %v6739_v56 = vadd.f32 %v18222_v58, %v12572_v1  ;;  %v6607_v27 = vpop.f32.mrb[119].mxu1 }
 0x532   :  { %v6853_v21 = vrot.slane %v6772_v20, 1  ;;  %v6738_v62 = vadd.f32 %v18222_v58, %v6607_v27  ;;  %v7085_v51 = vsel %vm442_vm0, 0.0, %v7049_v35  ;;  %v7014_v63 = vld [vmem:[#allocation2 + $0x10] ss:$2 sm:$0xff] }
 0x533   :  { %6984 = vst.msk [vmem:[#allocation2 + $0x38] sm:$0xff] %vm1886_vm3, %v6948_v40  ;;  %6985 = vst.msk [vmem:[#allocation2 + $0x40] sm:$0xff] %vm1886_vm3, %v6949_v14  ;;  %v6775_v42 = vmax.f32 %v6739_v56, 0.0  ;;  %12672 = vmatmul.mubr.msk.f32.vlgmr.msra.gmra.mrb[46].mxu0 %vm1886_vm3, %v7085_v51  ;;  %v7050_v41 = vrot.slane %v7014_v63, 6  ;;  %v7087_v26 = vrot.slane %v7085_v51, 1 }
 0x534   :  { %v6854_v7 = vsel %vm1100_vm2, %v6851_v0, %v6853_v21  ;;  %v6856_v15 = vsel %vm1100_vm2, %v6853_v21, %v6855_v10  ;;  %v6774_v4 = vmax.f32 %v6738_v62, 0.0  ;;  %v12575_v33 = vpop.f32.mrb[120].mxu1  ;;  %12674 = vmatprep.mubr.msk.f32.mxu0 %vm13760_vm6, %v13761_v5 }
 0x535   :  { %v6950_v28 = vmax.f32 %v6771_v18, %v6854_v7  ;;  %v6951_v49 = vmax.f32 %v6772_v20, %v6856_v15  ;;  %v6859_v37 = vrot.slane %v6775_v42, 1  ;;  %v18263_v36 = vadd.f32 %v18222_v58, %v12575_v33  ;;  %v6617_v34 = vpop.f32.mrb[121].mxu1 }
 0x536   :  { %v6857_v12 = vrot.slane %v6774_v4, 1  ;;  %v6740_v50 = vadd.f32 %v18222_v58, %v6617_v34  ;;  %v7051_v11 = vsel %vm442_vm0, %v7049_v35, %v7050_v41  ;;  %v7015_v32 = vld [vmem:[#allocation2 + $0x20] ss:$2 sm:$0xff] }
 0x537   :  { %6986 = vst.msk [vmem:[#allocation2 + $0x48] sm:$0xff] %vm1886_vm3, %v6950_v28  ;;  %6987 = vst.msk [vmem:[#allocation2 + $0x50] sm:$0xff] %vm1886_vm3, %v6951_v49  ;;  %v6777_v44 = vmax.f32 %v18263_v36, 0.0  ;;  %v7088_v46 = vrot.slane %v7051_v11, 1  ;;  %12675 = vmatmul.mubr.msk.f32.gmra.mrb[48].mxu0 %vm1886_vm3, %v7051_v11  ;;  %v7052_v39 = vrot.slane %v7015_v32, 6 }
 0x538   :  { %v6858_v38 = vsel %vm1100_vm2, %v6855_v10, %v6857_v12  ;;  %v6860_v2 = vsel %vm1100_vm2, %v6857_v12, %v6859_v37  ;;  %v6776_v43 = vmax.f32 %v6740_v50, 0.0  ;;  %v12578_v30 = vpop.f32.mrb[122].mxu1  ;;  %12677 = vmatprep.mubr.msk.f32.mxu0 %vm13760_vm6, %v13761_v5 }
 0x539   :  { %v6952_v22 = vmax.f32 %v6773_v23, %v6858_v38  ;;  %v6953_v53 = vmax.f32 %v6774_v4, %v6860_v2  ;;  %v6863_v52 = vrot.slane %v6777_v44, 1  ;;  %v18276_v59 = vadd.f32 %v18222_v58, %v12578_v30  ;;  %v6627_v54 = vpop.f32.mrb[123].mxu1 }
 0x53a   :  { %v6861_v61 = vrot.slane %v6776_v43, 1  ;;  %v6742_v18 = vadd.f32 %v18222_v58, %v6627_v54  ;;  %v7089_v8 = vsel %vm1100_vm2, %v7087_v26, %v7088_v46  ;;  %v7053_v31 = vsel %vm442_vm0, %v7050_v41, %v7052_v39  ;;  %v7016_v25 = vld [vmem:[#allocation2 + $0x30] ss:$2 sm:$0xff] }
 0x53b   :  { %6988 = vst.msk [vmem:[#allocation2 + $0x58] sm:$0xff] %vm1886_vm3, %v6952_v22  ;;  %6989 = vst.msk [vmem:[#allocation2 + $0x60] sm:$0xff] %vm1886_vm3, %v6953_v53  ;;  %v6779_v9 = vmax.f32 %v18276_v59, 0.0  ;;  %12611 = vmatmul.mubr.msk.f32.vlgmr.msra.gmra.mrb[142].mxu1 %vm1886_vm3, %v7089_v8  ;;  %v7090_v55 = vrot.slane %v7053_v31, 1  ;;  %12678 = vmatmul.mubr.msk.f32.gmra.mrb[50].mxu0 %vm1886_vm3, %v7053_v31  ;;  %v7054_v17 = vrot.slane %v7016_v25, 6 }
 0x53c   :  { %v6862_v0 = vsel %vm1100_vm2, %v6859_v37, %v6861_v61  ;;  %v6864_v60 = vsel %vm1100_vm2, %v6861_v61, %v6863_v52  ;;  %v6778_v48 = vmax.f32 %v6742_v18, 0.0  ;;  %v12581_v19 = vpop.f32.mrb[124].mxu1  ;;  %12613 = vmatprep.mubr.msk.f32.mxu1 %vm13760_vm6, %v13761_v5  ;;  %12680 = vmatprep.mubr.msk.f32.mxu0 %vm13760_vm6, %v13761_v5 }
 0x53d   :  { %v6954_v47 = vmax.f32 %v6775_v42, %v6862_v0  ;;  %v6955_v3 = vmax.f32 %v6776_v43, %v6864_v60  ;;  %v6867_v23 = vrot.slane %v6779_v9, 1  ;;  %v18293_v35 = vadd.f32 %v18222_v58, %v12581_v19  ;;  %v6637_v16 = vpop.f32.mrb[125].mxu1  ;;  %12821 = vmatpush3.bf16.msra.mxu1 %v17955_v24 }
 0x53e   :  { %v6865_v45 = vrot.slane %v6778_v48, 1  ;;  %v6744_v20 = vadd.f32 %v18222_v58, %v6637_v16  ;;  %v7091_v1 = vsel %vm1100_vm2, %v7088_v46, %v7090_v55  ;;  %v7055_v40 = vsel %vm442_vm0, %v7052_v39, %v7054_v17  ;;  %v7017_v14 = vld [vmem:[#allocation2 + $0x40] ss:$2 sm:$0xff]  ;;  %12823 = vmatprep.subr.bf16.mxu1 %v17965_v6 }
 0x53f   :  { %6990 = vst.msk [vmem:[#allocation2 + $0x68] sm:$0xff] %vm1886_vm3, %v6954_v47  ;;  %6991 = vst.msk [vmem:[#allocation2 + $0x70] sm:$0xff] %vm1886_vm3, %v6955_v3  ;;  %v6781_v10 = vmax.f32 %v18293_v35, 0.0  ;;  %12614 = vmatmul.mubr.msk.f32.gmra.mrb[144].mxu1 %vm1886_vm3, %v7091_v1  ;;  %v7092_v56 = vrot.slane %v7055_v40, 1  ;;  %12681 = vmatmul.mubr.msk.f32.gmra.mrb[52].mxu0 %vm1886_vm3, %v7055_v40  ;;  %v7056_v24 = vrot.slane %v7017_v14, 6 }
 0x540   :  { %v6866_v27 = vsel %vm1100_vm2, %v6863_v52, %v6865_v45  ;;  %v6868_v21 = vsel %vm1100_vm2, %v6865_v45, %v6867_v23  ;;  %v6780_v62 = vmax.f32 %v6744_v20, 0.0  ;;  %v12584_v51 = vpop.f32.mrb[126].mxu1  ;;  %12616 = vmatprep.mubr.msk.f32.mxu1 %vm13760_vm6, %v13761_v5  ;;  %12683 = vmatprep.mubr.msk.f32.mxu0 %vm13760_vm6, %v13761_v5 }
 0x541   :  { %v6956_v63 = vmax.f32 %v6777_v44, %v6866_v27  ;;  %v6957_v42 = vmax.f32 %v6778_v48, %v6868_v21  ;;  %v6871_v41 = vrot.slane %v6781_v10, 1  ;;  %v18312_v7 = vadd.f32 %v18222_v58, %v12584_v51  ;;  %v6647_v15 = vpop.f32.mrb[127].mxu1  ;;  %12825 = vmatpush3.bf16.msra.mxu1 %v17965_v6 }
 0x542   :  { %v6869_v4 = vrot.slane %v6780_v62, 1  ;;  %v6746_v33 = vadd.f32 %v18222_v58, %v6647_v15  ;;  %v7093_v28 = vsel %vm1100_vm2, %v7090_v55, %v7092_v56  ;;  %v7057_v49 = vsel %vm442_vm0, %v7054_v17, %v7056_v24  ;;  %v7018_v37 = vld [vmem:[#allocation2 + $0x50] ss:$2 sm:$0xff]  ;;  %12827 = vmatprep.subr.bf16.mxu1 %v18029_v29 }
 0x543   :  { %6992 = vst.msk [vmem:[#allocation2 + $0x78] sm:$0xff] %vm1886_vm3, %v6956_v63  ;;  %6993 = vst.msk [vmem:[#allocation2 + $0x80] sm:$0xff] %vm1886_vm3, %v6957_v42  ;;  %v6783_v36 = vmax.f32 %v18312_v7, 0.0  ;;  %12617 = vmatmul.mubr.msk.f32.gmra.mrb[146].mxu1 %vm1886_vm3, %v7093_v28  ;;  %v7094_v34 = vrot.slane %v7057_v49, 1  ;;  %12684 = vmatmul.mubr.msk.f32.gmra.mrb[54].mxu0 %vm1886_vm3, %v7057_v49  ;;  %v7058_v6 = vrot.slane %v7018_v37, 6 }
 0x544   :  { %v6870_v12 = vsel %vm1100_vm2, %v6867_v23, %v6869_v4  ;;  %v6872_v50 = vsel %vm1100_vm2, %v6869_v4, %v6871_v41  ;;  %v6782_v11 = vmax.f32 %v6746_v33, 0.0  ;;  %v12587_v32 = vpop.f32.mrb[128].mxu1  ;;  %12619 = vmatprep.mubr.msk.f32.mxu1 %vm13760_vm6, %v13761_v5  ;;  %12686 = vmatprep.mubr.msk.f32.mxu0 %vm13760_vm6, %v13761_v5 }
 0x545   :  { %v6958_v44 = vmax.f32 %v6779_v9, %v6870_v12  ;;  %v6959_v46 = vmax.f32 %v6780_v62, %v6872_v50  ;;  %v6875_v39 = vrot.slane %v6783_v36, 1  ;;  %v18331_v38 = vadd.f32 %v18222_v58, %v12587_v32  ;;  %v6657_v2 = vpop.f32.mrb[129].mxu1 }
 0x546   :  { %v6873_v26 = vrot.slane %v6782_v11, 1  ;;  %v6748_v43 = vadd.f32 %v18222_v58, %v6657_v2  ;;  %v7095_v30 = vsel %vm1100_vm2, %v7092_v56, %v7094_v34  ;;  %v7059_v22 = vsel %vm442_vm0, %v7056_v24, %v7058_v6  ;;  %v7019_v53 = vld [vmem:[#allocation2 + $0x60] ss:$2 sm:$0xff] }
 0x547   :  { %6994 = vst.msk [vmem:[#allocation2 + $0x88] sm:$0xff] %vm1886_vm3, %v6958_v44  ;;  %6995 = vst.msk [vmem:[#allocation2 + $0x90] sm:$0xff] %vm1886_vm3, %v6959_v46  ;;  %v6785_v52 = vmax.f32 %v18331_v38, 0.0  ;;  %12620 = vmatmul.mubr.msk.f32.gmra.mrb[148].mxu1 %vm1886_vm3, %v7095_v30  ;;  %v7096_v59 = vrot.slane %v7059_v22, 1  ;;  %12687 = vmatmul.mubr.msk.f32.gmra.mrb[56].mxu0 %vm1886_vm3, %v7059_v22  ;;  %v7060_v54 = vrot.slane %v7019_v53, 6 }
 0x548   :  { %v6874_v61 = vsel %vm1100_vm2, %v6871_v41, %v6873_v26  ;;  %v6876_v18 = vsel %vm1100_vm2, %v6873_v26, %v6875_v39  ;;  %v6784_v8 = vmax.f32 %v6748_v43, 0.0  ;;  %v12590_v31 = vpop.f32.mrb[130].mxu1  ;;  %12622 = vmatprep.mubr.msk.f32.mxu1 %vm13760_vm6, %v13761_v5  ;;  %12689 = vmatprep.mubr.msk.f32.mxu0 %vm13760_vm6, %v13761_v5 }
 0x549   :  { %v6960_v25 = vmax.f32 %v6781_v10, %v6874_v61  ;;  %v6961_v9 = vmax.f32 %v6782_v11, %v6876_v18  ;;  %v6879_v55 = vrot.slane %v6785_v52, 1  ;;  %v18348_v17 = vadd.f32 %v18222_v58, %v12590_v31  ;;  %v6667_v0 = vpop.f32.mrb[131].mxu1 }
 0x54a   :  { %v6877_v60 = vrot.slane %v6784_v8, 1  ;;  %v6750_v48 = vadd.f32 %v18222_v58, %v6667_v0  ;;  %v7097_v19 = vsel %vm1100_vm2, %v7094_v34, %v7096_v59  ;;  %v7061_v47 = vsel %vm442_vm0, %v7058_v6, %v7060_v54  ;;  %v7020_v3 = vld [vmem:[#allocation2 + $0x70] ss:$2 sm:$0xff] }
 0x54b   :  { %6996 = vst.msk [vmem:[#allocation2 + $0x98] sm:$0xff] %vm1886_vm3, %v6960_v25  ;;  %6997 = vst.msk [vmem:[#allocation2 + $0xa0] sm:$0xff] %vm1886_vm3, %v6961_v9  ;;  %v6787_v23 = vmax.f32 %v18348_v17, 0.0  ;;  %12623 = vmatmul.mubr.msk.f32.gmra.mrb[150].mxu1 %vm1886_vm3, %v7097_v19  ;;  %v7098_v35 = vrot.slane %v7061_v47, 1  ;;  %12690 = vmatmul.mubr.msk.f32.gmra.mrb[58].mxu0 %vm1886_vm3, %v7061_v47  ;;  %v7062_v16 = vrot.slane %v7020_v3, 6 }
 0x54c   :  { %v6878_v45 = vsel %vm1100_vm2, %v6875_v39, %v6877_v60  ;;  %v6880_v20 = vsel %vm1100_vm2, %v6877_v60, %v6879_v55  ;;  %v6786_v1 = vmax.f32 %v6750_v48, 0.0  ;;  %v12593_v40 = vpop.f32.mrb[132].mxu1  ;;  %12625 = vmatprep.mubr.msk.f32.mxu1 %vm13760_vm6, %v13761_v5  ;;  %12692 = vmatprep.mubr.msk.f32.mxu0 %vm13760_vm6, %v13761_v5 }
 0x54d   :  { %v6962_v14 = vmax.f32 %v6783_v36, %v6878_v45  ;;  %v6963_v10 = vmax.f32 %v6784_v8, %v6880_v20  ;;  %v6883_v56 = vrot.slane %v6787_v23, 1  ;;  %v18365_v24 = vadd.f32 %v18222_v58, %v12593_v40  ;;  %v6677_v27 = vpop.f32.mrb[133].mxu1 }
 0x54e   :  { %v6881_v21 = vrot.slane %v6786_v1, 1  ;;  %v6752_v62 = vadd.f32 %v18222_v58, %v6677_v27  ;;  %v7099_v51 = vsel %vm1100_vm2, %v7096_v59, %v7098_v35  ;;  %v7063_v63 = vsel %vm442_vm0, %v7060_v54, %v7062_v16  ;;  %v7021_v42 = vld [vmem:[#allocation2 + $0x80] ss:$2 sm:$0xff] }
 0x54f   :  { %6998 = vst.msk [vmem:[#allocation2 + $0xa8] sm:$0xff] %vm1886_vm3, %v6962_v14  ;;  %6999 = vst.msk [vmem:[#allocation2 + $0xb0] sm:$0xff] %vm1886_vm3, %v6963_v10  ;;  %v6789_v41 = vmax.f32 %v18365_v24, 0.0  ;;  %12626 = vmatmul.mubr.msk.f32.gmra.mrb[152].mxu1 %vm1886_vm3, %v7099_v51  ;;  %v7100_v7 = vrot.slane %v7063_v63, 1  ;;  %12693 = vmatmul.mubr.msk.f32.gmra.mrb[60].mxu0 %vm1886_vm3, %v7063_v63  ;;  %v7064_v15 = vrot.slane %v7021_v42, 6 }
 0x550   :  { %v6882_v4 = vsel %vm1100_vm2, %v6879_v55, %v6881_v21  ;;  %v6884_v33 = vsel %vm1100_vm2, %v6881_v21, %v6883_v56  ;;  %v6788_v28 = vmax.f32 %v6752_v62, 0.0  ;;  %v12596_v49 = vpop.f32.mrb[134].mxu1  ;;  %12628 = vmatprep.mubr.msk.f32.mxu1 %vm13760_vm6, %v13761_v5  ;;  %12695 = vmatprep.mubr.msk.f32.mxu0 %vm13760_vm6, %v13761_v5 }
 0x551   :  { %v6964_v37 = vmax.f32 %v6785_v52, %v6882_v4  ;;  %v6965_v36 = vmax.f32 %v6786_v1, %v6884_v33  ;;  %v6887_v34 = vrot.slane %v6789_v41, 1  ;;  %v18382_v6 = vadd.f32 %v18222_v58, %v12596_v49  ;;  %v6687_v12 = vpop.f32.mrb[135].mxu1 }
 0x552   :  { %v6885_v50 = vrot.slane %v6788_v28, 1  ;;  %v6754_v11 = vadd.f32 %v18222_v58, %v6687_v12  ;;  %v7101_v32 = vsel %vm1100_vm2, %v7098_v35, %v7100_v7  ;;  %v7065_v44 = vsel %vm442_vm0, %v7062_v16, %v7064_v15  ;;  %v7022_v46 = vld [vmem:[#allocation2 + $0x90] ss:$2 sm:$0xff] }
 0x553   :  { %7000 = vst.msk [vmem:[#allocation2 + $0xb8] sm:$0xff] %vm1886_vm3, %v6964_v37  ;;  %7001 = vst.msk [vmem:[#allocation2 + $0xc0] sm:$0xff] %vm1886_vm3, %v6965_v36  ;;  %v6791_v39 = vmax.f32 %v18382_v6, 0.0  ;;  %12629 = vmatmul.mubr.msk.f32.gmra.mrb[154].mxu1 %vm1886_vm3, %v7101_v32  ;;  %v7102_v38 = vrot.slane %v7065_v44, 1  ;;  %12696 = vmatmul.mubr.msk.f32.gmra.mrb[62].mxu0 %vm1886_vm3, %v7065_v44  ;;  %v7066_v2 = vrot.slane %v7022_v46, 6 }
 0x554   :  { %v6886_v26 = vsel %vm1100_vm2, %v6883_v56, %v6885_v50  ;;  %v6888_v43 = vsel %vm1100_vm2, %v6885_v50, %v6887_v34  ;;  %v6790_v30 = vmax.f32 %v6754_v11, 0.0  ;;  %v12599_v22 = vpop.f32.mrb[136].mxu1  ;;  %12631 = vmatprep.mubr.msk.f32.mxu1 %vm13760_vm6, %v13761_v5  ;;  %12698 = vmatprep.mubr.msk.f32.mxu0 %vm13760_vm6, %v13761_v5 }
 0x555   :  { %v6966_v53 = vmax.f32 %v6787_v23, %v6886_v26  ;;  %v6967_v52 = vmax.f32 %v6788_v28, %v6888_v43  ;;  %v6891_v59 = vrot.slane %v6791_v39, 1  ;;  %v18399_v54 = vadd.f32 %v18222_v58, %v12599_v22  ;;  %v6697_v61 = vpop.f32.mrb[137].mxu1 }
 0x556   :  { %v6889_v18 = vrot.slane %v6790_v30, 1  ;;  %v6756_v8 = vadd.f32 %v18222_v58, %v6697_v61  ;;  %v7103_v31 = vsel %vm1100_vm2, %v7100_v7, %v7102_v38  ;;  %v7067_v25 = vsel %vm442_vm0, %v7064_v15, %v7066_v2  ;;  %v7023_v9 = vld [vmem:[#allocation2 + $0xa0] ss:$2 sm:$0xff] }
 0x557   :  { %7002 = vst.msk [vmem:[#allocation2 + $0xc8] sm:$0xff] %vm1886_vm3, %v6966_v53  ;;  %7003 = vst.msk [vmem:[#allocation2 + $0xd0] sm:$0xff] %vm1886_vm3, %v6967_v52  ;;  %v6793_v55 = vmax.f32 %v18399_v54, 0.0  ;;  %12632 = vmatmul.mubr.msk.f32.gmra.mrb[156].mxu1 %vm1886_vm3, %v7103_v31  ;;  %v7104_v17 = vrot.slane %v7067_v25, 1  ;;  %12699 = vmatmul.mubr.msk.f32.gmra.mrb[64].mxu0 %vm1886_vm3, %v7067_v25  ;;  %v7068_v0 = vrot.slane %v7023_v9, 6 }
 0x558   :  { %v6890_v60 = vsel %vm1100_vm2, %v6887_v34, %v6889_v18  ;;  %v6892_v48 = vsel %vm1100_vm2, %v6889_v18, %v6891_v59  ;;  %v6792_v19 = vmax.f32 %v6756_v8, 0.0  ;;  %v12602_v47 = vpop.f32.mrb[138].mxu1  ;;  %12634 = vmatprep.mubr.msk.f32.mxu1 %vm13760_vm6, %v13761_v5  ;;  %12701 = vmatprep.mubr.msk.f32.mxu0 %vm13760_vm6, %v13761_v5 }
 0x559   :  { %v6968_v3 = vmax.f32 %v6789_v41, %v6890_v60  ;;  %v6969_v23 = vmax.f32 %v6790_v30, %v6892_v48  ;;  %v6895_v35 = vrot.slane %v6793_v55, 1  ;;  %v6759_v16 = vadd.f32 %v18222_v58, %v12602_v47  ;;  %v6707_v45 = vpop.f32.mrb[139].mxu1 }
 0x55a   :  { %v6893_v20 = vrot.slane %v6792_v19, 1  ;;  %v6758_v1 = vadd.f32 %v18222_v58, %v6707_v45  ;;  %v7105_v40 = vsel %vm1100_vm2, %v7102_v38, %v7104_v17  ;;  %v7069_v14 = vsel %vm442_vm0, %v7066_v2, %v7068_v0  ;;  %v7024_v10 = vld [vmem:[#allocation2 + $0xb0] ss:$2 sm:$0xff] }
 0x55b   :  { %7004 = vst.msk [vmem:[#allocation2 + $0xd8] sm:$0xff] %vm1886_vm3, %v6968_v3  ;;  %7005 = vst.msk [vmem:[#allocation2 + $0xe0] sm:$0xff] %vm1886_vm3, %v6969_v23  ;;  %v6795_v56 = vmax.f32 %v6759_v16, 0.0  ;;  %12635 = vmatmul.mubr.msk.f32.gmra.mrb[158].mxu1 %vm1886_vm3, %v7105_v40  ;;  %v7106_v24 = vrot.slane %v7069_v14, 1  ;;  %12702 = vmatmul.mubr.msk.f32.gmra.mrb[66].mxu0 %vm1886_vm3, %v7069_v14  ;;  %v7070_v27 = vrot.slane %v7024_v10, 6 }
 0x55c   :  { %v6894_v21 = vsel %vm1100_vm2, %v6891_v59, %v6893_v20  ;;  %v6896_v62 = vsel %vm1100_vm2, %v6893_v20, %v6895_v35  ;;  %v6794_v51 = vmax.f32 %v6758_v1, 0.0  ;;  %v12605_v63 = vpop.f32.mrb[140].mxu1  ;;  %12637 = vmatprep.mubr.msk.f32.mxu1 %vm13760_vm6, %v13761_v5  ;;  %12704 = vmatprep.mubr.msk.f32.mxu0 %vm13760_vm6, %v13761_v5 }
 0x55d   :  { %v6970_v42 = vmax.f32 %v6791_v39, %v6894_v21  ;;  %v6971_v41 = vmax.f32 %v6792_v19, %v6896_v62  ;;  %v6899_v7 = vrot.slane %v6795_v56, 1  ;;  %v6761_v15 = vadd.f32 %v18222_v58, %v12605_v63  ;;  %v6717_v4 = vpop.f32.mrb[141].mxu1 }
 0x55e   :  { %v6897_v33 = vrot.slane %v6794_v51, 1  ;;  %v6760_v28 = vadd.f32 %v18222_v58, %v6717_v4  ;;  %v7107_v49 = vsel %vm1100_vm2, %v7104_v17, %v7106_v24  ;;  %v7071_v37 = vsel %vm442_vm0, %v7068_v0, %v7070_v27  ;;  %v7025_v36 = vld [vmem:[#allocation2 + $0xc0] ss:$2 sm:$0xff] }
 0x55f   :  { %7006 = vst.msk [vmem:[#allocation2 + $0xe8] sm:$0xff] %vm1886_vm3, %v6970_v42  ;;  %7007 = vst.msk [vmem:[#allocation2 + $0xf0] sm:$0xff] %vm1886_vm3, %v6971_v41  ;;  %v6797_v34 = vmax.f32 %v6761_v15, 0.0  ;;  %12638 = vmatmul.mubr.msk.f32.gmra.mrb[160].mxu1 %vm1886_vm3, %v7107_v49  ;;  %v7108_v6 = vrot.slane %v7071_v37, 1  ;;  %12705 = vmatmul.mubr.msk.f32.gmra.mrb[68].mxu0 %vm1886_vm3, %v7071_v37  ;;  %v7072_v12 = vrot.slane %v7025_v36, 6 }
 0x560   :  { %v6898_v50 = vsel %vm1100_vm2, %v6895_v35, %v6897_v33  ;;  %v6900_v58 = vsel %vm1100_vm2, %v6897_v33, %v6899_v7  ;;  %v6796_v11 = vmax.f32 %v6760_v28, 0.0  ;;  %12640 = vmatprep.mubr.msk.f32.mxu1 %vm13760_vm6, %v13761_v5  ;;  %12707 = vmatprep.mubr.msk.f32.mxu0 %vm13760_vm6, %v13761_v5 }
 0x561   :  { %v6972_v32 = vmax.f32 %v6793_v55, %v6898_v50  ;;  %v6973_v44 = vmax.f32 %v6794_v51, %v6900_v58  ;;  %v6903_v46 = vrot.slane %v6797_v34, 1  ;;  %v7109_v39 = vsel %vm1100_vm2, %v7106_v24, %v7108_v6 }
 0x562   :  { %v6901_v38 = vrot.slane %v6796_v11, 1  ;;  %v7073_v2 = vsel %vm442_vm0, %v7070_v27, %v7072_v12  ;;  %v7026_v26 = vld [vmem:[#allocation2 + $0xd0] ss:$2 sm:$0xff]  ;;  %v18511_v27 = vld [vmem:[#allocation22] ss:$0 sm:$0xff] }
 0x563   :  { %7008 = vst.msk [vmem:[#allocation2 + $0xf8] sm:$0xff] %vm1886_vm3, %v6972_v32  ;;  %7009 = vst.msk [vmem:[#allocation2 + $0x100] sm:$0xff] %vm1886_vm3, %v6973_v44  ;;  %v6976_v43 = vmax.f32 %v6797_v34, %v6903_v46  ;;  %12641 = vmatmul.mubr.msk.f32.gmra.mrb[162].mxu1 %vm1886_vm3, %v7109_v39  ;;  %v7110_v30 = vrot.slane %v7073_v2, 1  ;;  %12708 = vmatmul.mubr.msk.f32.gmra.mrb[70].mxu0 %vm1886_vm3, %v7073_v2  ;;  %v7074_v22 = vrot.slane %v7026_v26, 6 }
 0x564   :  { %v6902_v53 = vsel %vm1100_vm2, %v6899_v7, %v6901_v38  ;;  %v6904_v52 = vsel %vm1100_vm2, %v6901_v38, %v6903_v46  ;;  %12643 = vmatprep.mubr.msk.f32.mxu1 %vm13760_vm6, %v13761_v5  ;;  %12710 = vmatprep.mubr.msk.f32.mxu0 %vm13760_vm6, %v13761_v5 }
 0x565   :  { %7012 = vst.msk [vmem:[#allocation2 + $0x118] sm:$0xf] %vm3141_vm7, %v6976_v43  ;;  %v6974_v59 = vmax.f32 %v6795_v56, %v6902_v53  ;;  %v6975_v54 = vmax.f32 %v6796_v11, %v6904_v52  ;;  %v7111_v61 = vsel %vm1100_vm2, %v7108_v6, %v7110_v30  ;;  %v7075_v18 = vsel %vm442_vm0, %v7072_v12, %v7074_v22 }
 0x566   :  { %v7112_v8 = vrot.slane %v7075_v18, 1  ;;  %v7027_v31 = vld [vmem:[#allocation2 + $0xe0] ss:$2 sm:$0xff] }
 0x567   :  { %7010 = vst.msk [vmem:[#allocation2 + $0x108] sm:$0xff] %vm1886_vm3, %v6974_v59  ;;  %7011 = vst.msk [vmem:[#allocation2 + $0x110] sm:$0xff] %vm1886_vm3, %v6975_v54  ;;  %12644 = vmatmul.mubr.msk.f32.gmra.mrb[164].mxu1 %vm1886_vm3, %v7111_v61  ;;  %12711 = vmatmul.mubr.msk.f32.gmra.mrb[72].mxu0 %vm1886_vm3, %v7075_v18  ;;  %v7076_v25 = vrot.slane %v7027_v31, 6 }
 0x568   :  { %12646 = vmatprep.mubr.msk.f32.mxu1 %vm13760_vm6, %v13761_v5  ;;  %v7113_v9 = vsel %vm1100_vm2, %v7110_v30, %v7112_v8  ;;  %12713 = vmatprep.mubr.msk.f32.mxu0 %vm13760_vm6, %v13761_v5 }
 0x569   :  { %v7077_v55 = vsel %vm442_vm0, %v7074_v22, %v7076_v25 }
 0x56a   :  { %v7114_v17 = vrot.slane %v7077_v55, 1  ;;  %v7028_v0 = vld [vmem:[#allocation2 + $0xf0] ss:$2 sm:$0xff] }
 0x56b   :  { %12647 = vmatmul.mubr.msk.f32.gmra.mrb[166].mxu1 %vm1886_vm3, %v7113_v9  ;;  %12714 = vmatmul.mubr.msk.f32.gmra.mrb[74].mxu0 %vm1886_vm3, %v7077_v55  ;;  %v7078_v60 = vrot.slane %v7028_v0, 6 }
 0x56c   :  { %12649 = vmatprep.mubr.msk.f32.mxu1 %vm13760_vm6, %v13761_v5  ;;  %v7115_v48 = vsel %vm1100_vm2, %v7112_v8, %v7114_v17  ;;  %12716 = vmatprep.mubr.msk.f32.mxu0 %vm13760_vm6, %v13761_v5 }
 0x56d   :  { %v7079_v19 = vsel %vm442_vm0, %v7076_v25, %v7078_v60 }
 0x56e   :  { %v7116_v47 = vrot.slane %v7079_v19, 1  ;;  %v7029_v3 = vld [vmem:[#allocation2 + $0x100] ss:$2 sm:$0xff]  ;;  %v7030_v23 = vld [vmem:[#allocation2 + $0x110] ss:$2 sm:$0x3f] }
 0x56f   :  { %12650 = vmatmul.mubr.msk.f32.gmra.mrb[168].mxu1 %vm1886_vm3, %v7115_v48  ;;  %12717 = vmatmul.mubr.msk.f32.gmra.mrb[76].mxu0 %vm1886_vm3, %v7079_v19  ;;  %v7080_v35 = vrot.slane %v7029_v3, 6  ;;  %v7082_v16 = vrot.slane %v7030_v23, 6 }
 0x570   :  { %12652 = vmatprep.mubr.msk.f32.mxu1 %vm13760_vm6, %v13761_v5  ;;  %v7117_v45 = vsel %vm1100_vm2, %v7114_v17, %v7116_v47  ;;  %12719 = vmatprep.mubr.msk.f32.mxu0 %vm13760_vm6, %v13761_v5 }
 0x571   :  { %v7081_v20 = vsel %vm442_vm0, %v7078_v60, %v7080_v35  ;;  %v7083_v40 = vsel %vm442_vm0, %v7080_v35, %v7082_v16 }
 0x572   :  { %v7118_v1 = vrot.slane %v7081_v20, 1  ;;  %v7120_v10 = vrot.slane %v7083_v40, 1 }
 0x573   :  { %12653 = vmatmul.mubr.msk.f32.gmra.mrb[170].mxu1 %vm1886_vm3, %v7117_v45  ;;  %12720 = vmatmul.mubr.msk.f32.gmra.mrb[78].mxu0 %vm1886_vm3, %v7081_v20 }
 0x574   :  { %12655 = vmatprep.mubr.msk.f32.mxu1 %vm13760_vm6, %v13761_v5  ;;  %v7119_v14 = vsel %vm1100_vm2, %v7116_v47, %v7118_v1  ;;  %12722 = vmatprep.mubr.msk.f32.mxu0 %vm13760_vm6, %v13761_v5  ;;  %v7121_v56 = vsel %vm1100_vm2, %v7118_v1, %v7120_v10  ;;  %v7122_v24 = vsel %vm1100_vm2, %v7120_v10, %v17648_v57 }
 0x577   :  { %12656 = vmatmul.mubr.msk.f32.gmra.mrb[172].mxu1 %vm1886_vm3, %v7119_v14  ;;  %12723 = vmatmul.mubr.msk.f32.gmra.mrb[80].mxu0 %vm1886_vm3, %v7083_v40 }
 0x578   :  { %12658 = vmatprep.mubr.msk.f32.mxu1 %vm13760_vm6, %v13761_v5  ;;  %12725 = vmatprep.mubr.msk.f32.mxu0 %vm13760_vm6, %v13761_v5 }
 0x57b   :  { %12659 = vmatmul.mubr.msk.f32.gmra.mrb[174].mxu1 %vm1886_vm3, %v7121_v56  ;;  %12726 = vmatmul.mubr.f32.gmra.mrb[82].mxu0 %v13761_v5 }
 0x57c   :  { %12661 = vmatprep.mubr.msk.f32.mxu1 %vm13760_vm6, %v13761_v5  ;;  %8170 = vmatprep.mubr.f32.mxu0 %v13761_v5 }
 0x57f   :  { %12662 = vmatmul.mubr.msk.f32.gmra.mrb[176].mxu1 %vm1886_vm3, %v7122_v24 }
 0x580   :  { %12664 = vmatprep.mubr.msk.f32.mxu1 %vm13760_vm6, %v13761_v5 }
 0x583   :  { %12665 = vmatmul.mubr.msk.f32.gmra.mrb[178].mxu1 %vm1886_vm3, %v17648_v57 }
 0x5c1   :  { %v12477_v21 = vpop.f32.mrb[36].mxu0 }
 0x5c2   :  { %v4151_v62 = vadd.f32 %v12477_v21, %v18511_v27  ;;  %v4095_v51 = vpop.f32.mrb[37].mxu0 }
 0x5c3   :  { %v4150_v63 = vadd.f32 %v18511_v27, %v4095_v51  ;;  %v8098_v51 = vld [vmem:[#allocation24 + $0x58] sm:$0xff] }
 0x5c4   :  { %v4161_v42 = vmax.f32 %v4151_v62, 0.0  ;;  %v8096_v62 = vld [vmem:[#allocation24 + $0x48] sm:$0xff] }
 0x5c5   :  { %v4160_v41 = vmax.f32 %v4150_v63, 0.0  ;;  %v12480_v7 = vpop.f32.mrb[38].mxu0  ;;  %v8095_v63 = vld [vmem:[#allocation24 + $0x40] sm:$0xff] }
 0x5c6   :  { %v4181_v15 = vrot.slane %v4161_v42, 1  ;;  %v4153_v4 = vadd.f32 %v12480_v7, %v18511_v27  ;;  %v4105_v33 = vpop.f32.mrb[39].mxu0  ;;  %v8100_v7 = vld [vmem:[#allocation24 + $0x68] sm:$0xff] }
 0x5c7   :  { %v4180_v28 = vrot.slane %v4160_v41, 1  ;;  %v4152_v49 = vadd.f32 %v18511_v27, %v4105_v33 }
 0x5c8   :  { %v4163_v37 = vmax.f32 %v4153_v4, 0.0 }
 0x5c9   :  { %v4182_v57 = vsel %vm1100_vm2, %v4180_v28, %v4181_v15  ;;  %v4162_v36 = vmax.f32 %v4152_v49, 0.0  ;;  %v12483_v34 = vpop.f32.mrb[40].mxu0  ;;  %v8099_v49 = vld [vmem:[#allocation24 + $0x60] sm:$0xff] }
 0x5ca   :  { %v4209_v6 = vmax.f32 %v4160_v41, %v4182_v57  ;;  %v4185_v12 = vrot.slane %v4163_v37, 1  ;;  %v4155_v50 = vadd.f32 %v12483_v34, %v18511_v27  ;;  %v4115_v58 = vpop.f32.mrb[41].mxu0  ;;  %v8097_v41 = vld [vmem:[#allocation24 + $0x50] sm:$0xff] }
 0x5cb   :  { %v4183_v11 = vrot.slane %v4162_v36, 1  ;;  %v4154_v32 = vadd.f32 %v18511_v27, %v4115_v58  ;;  %v12836_v33 = vpack.c.bf16 %v8097_v41, %v8095_v63 }
 0x5cc   :  { %4219 = vst.msk [vmem:[#allocation3] sm:$0xff] %vm3787_vm8, %v4209_v6  ;;  %v4165_v44 = vmax.f32 %v4155_v50, 0.0 }
 0x5cd   :  { %v4184_v46 = vsel %vm1100_vm2, %v4181_v15, %v4183_v11  ;;  %v4186_v39 = vsel %vm1100_vm2, %v4183_v11, %v4185_v12  ;;  %v4164_v38 = vmax.f32 %v4154_v32, 0.0  ;;  %v12486_v2 = vpop.f32.mrb[42].mxu0  ;;  %v8102_v15 = vld [vmem:[#allocation24 + $0x78] sm:$0xff] }
 0x5ce   :  { %v4210_v26 = vmax.f32 %v4161_v42, %v4184_v46  ;;  %v4211_v43 = vmax.f32 %v4162_v36, %v4186_v39  ;;  %v4189_v30 = vrot.slane %v4165_v44, 1  ;;  %v4157_v22 = vadd.f32 %v12486_v2, %v18511_v27  ;;  %v4125_v53 = vpop.f32.mrb[43].mxu0  ;;  %v18542_v11 = vld [vmem:[#allocation18] ss:$0 sm:$0xff] }
 0x5cf   :  { %v4187_v52 = vrot.slane %v4164_v38, 1  ;;  %v4156_v59 = vadd.f32 %v18511_v27, %v4125_v53  ;;  %v12834_v42 = vpack.c.bf16 %v8098_v51, %v8096_v62  ;;  %v12838_v28 = vpack.c.bf16 %v8102_v15, %v8100_v7 }
 0x5d0   :  { %4220 = vst.msk [vmem:[#allocation3 + $0x8] sm:$0xff] %vm3787_vm8, %v4210_v26  ;;  %4221 = vst.msk [vmem:[#allocation3 + $0x10] sm:$0xff] %vm3787_vm8, %v4211_v43  ;;  %v4167_v54 = vmax.f32 %v4157_v22, 0.0 }
 0x5d1   :  { %v4188_v61 = vsel %vm1100_vm2, %v4185_v12, %v4187_v52  ;;  %v4190_v18 = vsel %vm1100_vm2, %v4187_v52, %v4189_v30  ;;  %v4166_v8 = vmax.f32 %v4156_v59, 0.0  ;;  %v12489_v31 = vpop.f32.mrb[44].mxu0  ;;  %12835 = vmatprep.subr.bf16.mxu0 %v12834_v42 }
 0x5d2   :  { %v4212_v25 = vmax.f32 %v4163_v37, %v4188_v61  ;;  %v4213_v9 = vmax.f32 %v4164_v38, %v4190_v18  ;;  %v4193_v55 = vrot.slane %v4167_v54, 1  ;;  %v4159_v17 = vadd.f32 %v12489_v31, %v18511_v27  ;;  %v4135_v0 = vpop.f32.mrb[45].mxu0  ;;  %v8101_v37 = vld [vmem:[#allocation24 + $0x70] sm:$0xff]  ;;  %12837 = vmatpush1.bf16.msra.mxu0 %v12836_v33 }
 0x5d3   :  { %v4191_v60 = vrot.slane %v4166_v8, 1  ;;  %v4158_v48 = vadd.f32 %v18511_v27, %v4135_v0  ;;  %v12840_v36 = vpack.c.bf16 %v8101_v37, %v8099_v49  ;;  %12839 = vmatprep.subr.bf16.mxu0 %v12838_v28 }
 0x5d4   :  { %4222 = vst.msk [vmem:[#allocation3 + $0x18] sm:$0xff] %vm3787_vm8, %v4212_v25  ;;  %4223 = vst.msk [vmem:[#allocation3 + $0x20] sm:$0xff] %vm3787_vm8, %v4213_v9  ;;  %v4169_v19 = vmax.f32 %v4159_v17, 0.0 }
 0x5d5   :  { %v4192_v47 = vsel %vm1100_vm2, %v4189_v30, %v4191_v60  ;;  %v4194_v3 = vsel %vm1100_vm2, %v4191_v60, %v4193_v55  ;;  %v4168_v23 = vmax.f32 %v4158_v48, 0.0 }
 0x5d6   :  { %v4214_v35 = vmax.f32 %v4165_v44, %v4192_v47  ;;  %v4215_v16 = vmax.f32 %v4166_v8, %v4194_v3  ;;  %v4197_v45 = vrot.slane %v4169_v19, 1  ;;  %12841 = vmatpush1.bf16.msra.mxu0 %v12840_v36 }
 0x5d7   :  { %v4195_v20 = vrot.slane %v4168_v23, 1 }
 0x5d8   :  { %4224 = vst.msk [vmem:[#allocation3 + $0x28] sm:$0xff] %vm3787_vm8, %v4214_v35  ;;  %4225 = vst.msk [vmem:[#allocation3 + $0x30] sm:$0xff] %vm3787_vm8, %v4215_v16  ;;  %v4218_v1 = vmax.f32 %v4169_v19, %v4197_v45  ;;  %v18548_v19 = vld [vmem:[#allocation3] ss:$2 sm:$0xff] }
 0x5d9   :  { %v4196_v40 = vsel %vm1100_vm2, %v4193_v55, %v4195_v20  ;;  %v4198_v14 = vsel %vm1100_vm2, %v4195_v20, %v4197_v45 }
 0x5da   :  { %4229 = vst.msk [vmem:[#allocation3 + $0x48] sm:$0x3] %vm4228_vm9, %v4218_v1  ;;  %v4216_v10 = vmax.f32 %v4167_v54, %v4196_v40  ;;  %v4217_v56 = vmax.f32 %v4168_v23, %v4198_v14 }
 0x5db   :  { %v18556_v15 = vld [vmem:[#allocation3 + $0x10] ss:$2 sm:$0xff] }
 0x5dc   :  { %4226 = vst.msk [vmem:[#allocation3 + $0x38] sm:$0xff] %vm3787_vm8, %v4216_v10  ;;  %4227 = vst.msk [vmem:[#allocation3 + $0x40] sm:$0xff] %vm3787_vm8, %v4217_v56 }
 0x606   :  { %v7421_v24 = vpop.f32.mrb[46].mxu0 }
 0x607   :  { %v12673_v21 = vpop.f32.mrb[47].mxu0 }
 0x60a   :  { %v7426_v4 = vpop.f32.mrb[48].mxu0 }
 0x60b   :  { %v12676_v57 = vpop.f32.mrb[49].mxu0 }
 0x60e   :  { %v7225_v34 = vpop.f32.mrb[142].mxu1  ;;  %v7431_v6 = vpop.f32.mrb[50].mxu0 }
 0x60f   :  { %v7422_v12 = vadd.f32 %v7421_v24, %v7225_v34  ;;  %v12612_v50 = vpop.f32.mrb[143].mxu1  ;;  %v12679_v58 = vpop.f32.mrb[51].mxu0 }
 0x611   :  { %v7515_v32 = vadd.f32 %v18542_v11, %v7422_v12 }
 0x612   :  { %v7230_v44 = vpop.f32.mrb[144].mxu1  ;;  %v7436_v46 = vpop.f32.mrb[52].mxu0 }
 0x613   :  { %v7427_v39 = vadd.f32 %v7426_v4, %v7230_v44  ;;  %v12615_v38 = vpop.f32.mrb[145].mxu1  ;;  %v12682_v2 = vpop.f32.mrb[53].mxu0  ;;  %v7534_v26 = vmax.f32 %v7515_v32, 0.0 }
 0x615   :  { %v7516_v43 = vadd.f32 %v18542_v11, %v7427_v39  ;;  %v7572_v61 = vrot.slane %v7534_v26, 1 }
 0x616   :  { %v7235_v30 = vpop.f32.mrb[146].mxu1  ;;  %v7441_v22 = vpop.f32.mrb[54].mxu0 }
 0x617   :  { %v7535_v53 = vmax.f32 %v7516_v43, 0.0  ;;  %v7432_v52 = vadd.f32 %v7431_v6, %v7235_v30  ;;  %v12618_v59 = vpop.f32.mrb[147].mxu1  ;;  %v12685_v54 = vpop.f32.mrb[55].mxu0 }
 0x619   :  { %v7573_v18 = vrot.slane %v7535_v53, 1  ;;  %v7517_v8 = vadd.f32 %v18542_v11, %v7432_v52 }
 0x61a   :  { %v7240_v31 = vpop.f32.mrb[148].mxu1  ;;  %v7446_v25 = vpop.f32.mrb[56].mxu0 }
 0x61b   :  { %v7574_v9 = vsel %vm1100_vm2, %v7572_v61, %v7573_v18  ;;  %v7536_v55 = vmax.f32 %v7517_v8, 0.0  ;;  %v7437_v17 = vadd.f32 %v7436_v46, %v7240_v31  ;;  %v12621_v0 = vpop.f32.mrb[149].mxu1  ;;  %v12688_v60 = vpop.f32.mrb[57].mxu0 }
 0x61c   :  { %v7627_v48 = vmax.f32 %v7534_v26, %v7574_v9 }
 0x61d   :  { %v7575_v47 = vrot.slane %v7536_v55, 1  ;;  %v7518_v3 = vadd.f32 %v18542_v11, %v7437_v17 }
 0x61e   :  { %7645 = vst.msk [vmem:[#allocation3] sm:$0xff] %vm3787_vm8, %v7627_v48  ;;  %v7245_v23 = vpop.f32.mrb[150].mxu1  ;;  %v7451_v35 = vpop.f32.mrb[58].mxu0 }
 0x61f   :  { %v7576_v16 = vsel %vm1100_vm2, %v7573_v18, %v7575_v47  ;;  %v7537_v45 = vmax.f32 %v7518_v3, 0.0  ;;  %v7442_v20 = vadd.f32 %v7441_v22, %v7245_v23  ;;  %v12624_v1 = vpop.f32.mrb[151].mxu1  ;;  %v12691_v40 = vpop.f32.mrb[59].mxu0  ;;  %v18564_v22 = vld [vmem:[#allocation3 + $0x20] ss:$2 sm:$0xff] }
 0x620   :  { %v7628_v14 = vmax.f32 %v7535_v53, %v7576_v16 }
 0x621   :  { %v7577_v10 = vrot.slane %v7537_v45, 1  ;;  %v7519_v56 = vadd.f32 %v18542_v11, %v7442_v20 }
 0x622   :  { %7646 = vst.msk [vmem:[#allocation3 + $0x8] sm:$0xff] %vm3787_vm8, %v7628_v14  ;;  %v7250_v24 = vpop.f32.mrb[152].mxu1  ;;  %v7456_v21 = vpop.f32.mrb[60].mxu0 }
 0x623   :  { %v7578_v62 = vsel %vm1100_vm2, %v7575_v47, %v7577_v10  ;;  %v7538_v51 = vmax.f32 %v7519_v56, 0.0  ;;  %v7447_v63 = vadd.f32 %v7446_v25, %v7250_v24  ;;  %v12627_v42 = vpop.f32.mrb[153].mxu1  ;;  %v12694_v41 = vpop.f32.mrb[61].mxu0 }
 0x624   :  { %v7629_v7 = vmax.f32 %v7536_v55, %v7578_v62 }
 0x625   :  { %v7579_v4 = vrot.slane %v7538_v51, 1  ;;  %v7520_v33 = vadd.f32 %v18542_v11, %v7447_v63 }
 0x626   :  { %7647 = vst.msk [vmem:[#allocation3 + $0x10] sm:$0xff] %vm3787_vm8, %v7629_v7  ;;  %v7255_v28 = vpop.f32.mrb[154].mxu1  ;;  %v7461_v49 = vpop.f32.mrb[62].mxu0 }
 0x627   :  { %v7580_v37 = vsel %vm1100_vm2, %v7577_v10, %v7579_v4  ;;  %v7539_v57 = vmax.f32 %v7520_v33, 0.0  ;;  %v7452_v36 = vadd.f32 %v7451_v35, %v7255_v28  ;;  %v12630_v34 = vpop.f32.mrb[155].mxu1  ;;  %v12697_v6 = vpop.f32.mrb[63].mxu0  ;;  %v18578_v10 = vld [vmem:[#allocation3 + $0x30] ss:$2 sm:$0xff] }
 0x628   :  { %v7630_v12 = vmax.f32 %v7537_v45, %v7580_v37 }
 0x629   :  { %v7581_v50 = vrot.slane %v7539_v57, 1  ;;  %v7521_v58 = vadd.f32 %v18542_v11, %v7452_v36  ;;  %v7663_v43 = vld [vmem:[#allocation3] ss:$2 sm:$0xff] }
 0x62a   :  { %7648 = vst.msk [vmem:[#allocation3 + $0x18] sm:$0xff] %vm3787_vm8, %v7630_v12  ;;  %v7260_v32 = vpop.f32.mrb[156].mxu1  ;;  %v7466_v44 = vpop.f32.mrb[64].mxu0  ;;  %v7681_v61 = vrot.slane %v7663_v43, 6 }
 0x62b   :  { %v7582_v46 = vsel %vm1100_vm2, %v7579_v4, %v7581_v50  ;;  %v7540_v39 = vmax.f32 %v7521_v58, 0.0  ;;  %v7457_v38 = vadd.f32 %v7456_v21, %v7260_v32  ;;  %v12633_v2 = vpop.f32.mrb[157].mxu1  ;;  %v12700_v26 = vpop.f32.mrb[65].mxu0 }
 0x62c   :  { %v7631_v30 = vmax.f32 %v7538_v51, %v7582_v46  ;;  %v18572_v23 = vsel %vm442_vm0, 0.0, %v7681_v61  ;;  %v18593_v2 = vld [vmem:[#allocation3 + $0x40] ss:$2 sm:$0x1f] }
 0x62d   :  { %v7583_v53 = vrot.slane %v7540_v39, 1  ;;  %v7522_v52 = vadd.f32 %v18542_v11, %v7457_v38  ;;  %v7704_v21 = vrot.slane %v18572_v23, 1 }
 0x62e   :  { %7649 = vst.msk [vmem:[#allocation3 + $0x20] sm:$0xff] %vm3787_vm8, %v7631_v30  ;;  %v7265_v59 = vpop.f32.mrb[158].mxu1  ;;  %v7471_v54 = vpop.f32.mrb[66].mxu0 }
 0x62f   :  { %v7584_v18 = vsel %vm1100_vm2, %v7581_v50, %v7583_v53  ;;  %v7541_v8 = vmax.f32 %v7522_v52, 0.0  ;;  %v7462_v31 = vadd.f32 %v7461_v49, %v7265_v59  ;;  %v12636_v25 = vpop.f32.mrb[159].mxu1  ;;  %v12703_v9 = vpop.f32.mrb[67].mxu0 }
 0x630   :  { %v7632_v55 = vmax.f32 %v7539_v57, %v7584_v18 }
 0x631   :  { %v7585_v17 = vrot.slane %v7541_v8, 1  ;;  %v7523_v0 = vadd.f32 %v18542_v11, %v7462_v31  ;;  %v7664_v60 = vld [vmem:[#allocation3 + $0x10] ss:$2 sm:$0xff] }
 0x632   :  { %7650 = vst.msk [vmem:[#allocation3 + $0x28] sm:$0xff] %vm3787_vm8, %v7632_v55  ;;  %v7270_v48 = vpop.f32.mrb[160].mxu1  ;;  %v7476_v47 = vpop.f32.mrb[68].mxu0  ;;  %v7682_v3 = vrot.slane %v7664_v60, 6 }
 0x633   :  { %v7586_v35 = vsel %vm1100_vm2, %v7583_v53, %v7585_v17  ;;  %v7542_v16 = vmax.f32 %v7523_v0, 0.0  ;;  %v7467_v45 = vadd.f32 %v7466_v44, %v7270_v48  ;;  %v12639_v20 = vpop.f32.mrb[161].mxu1  ;;  %v12706_v1 = vpop.f32.mrb[69].mxu0 }
 0x634   :  { %v7633_v40 = vmax.f32 %v7540_v39, %v7586_v35  ;;  %v18576_v14 = vsel %vm442_vm0, %v7681_v61, %v7682_v3 }
 0x635   :  { %v7587_v56 = vrot.slane %v7542_v16, 1  ;;  %v7524_v24 = vadd.f32 %v18542_v11, %v7467_v45  ;;  %v7705_v62 = vrot.slane %v18576_v14, 1 }
 0x636   :  { %7651 = vst.msk [vmem:[#allocation3 + $0x30] sm:$0xff] %vm3787_vm8, %v7633_v40  ;;  %v7275_v51 = vpop.f32.mrb[162].mxu1  ;;  %v7481_v63 = vpop.f32.mrb[70].mxu0 }
 0x637   :  { %v7588_v42 = vsel %vm1100_vm2, %v7585_v17, %v7587_v56  ;;  %v7543_v41 = vmax.f32 %v7524_v24, 0.0  ;;  %v7472_v7 = vadd.f32 %v7471_v54, %v7275_v51  ;;  %v12642_v4 = vpop.f32.mrb[163].mxu1  ;;  %v12709_v33 = vpop.f32.mrb[71].mxu0  ;;  %v7706_v28 = vsel %vm1100_vm2, %v7704_v21, %v7705_v62 }
 0x638   :  { %v7634_v49 = vmax.f32 %v7541_v8, %v7588_v42  ;;  %12736 = vmatprep.mubr.msk.f32.mxu1 %vm3787_vm8, %v7706_v28 }
 0x639   :  { %v7589_v37 = vrot.slane %v7543_v41, 1  ;;  %v7525_v57 = vadd.f32 %v18542_v11, %v7472_v7  ;;  %v7665_v36 = vld [vmem:[#allocation3 + $0x20] ss:$2 sm:$0xff] }
 0x63a   :  { %7652 = vst.msk [vmem:[#allocation3 + $0x38] sm:$0xff] %vm3787_vm8, %v7634_v49  ;;  %v7280_v34 = vpop.f32.mrb[164].mxu1  ;;  %v7486_v6 = vpop.f32.mrb[72].mxu0  ;;  %v7684_v12 = vrot.slane %v7665_v36, 6 }
 0x63b   :  { %v7590_v50 = vsel %vm1100_vm2, %v7587_v56, %v7589_v37  ;;  %v7544_v58 = vmax.f32 %v7525_v57, 0.0  ;;  %v7477_v32 = vadd.f32 %v7476_v47, %v7280_v34  ;;  %v12645_v44 = vpop.f32.mrb[165].mxu1  ;;  %v12712_v46 = vpop.f32.mrb[73].mxu0 }
 0x63c   :  { %v7635_v39 = vmax.f32 %v7542_v16, %v7590_v50  ;;  %v18591_v38 = vsel %vm442_vm0, %v7682_v3, %v7684_v12 }
 0x63d   :  { %v7591_v26 = vrot.slane %v7544_v58, 1  ;;  %v7526_v43 = vadd.f32 %v18542_v11, %v7477_v32  ;;  %v7707_v30 = vrot.slane %v18591_v38, 1 }
 0x63e   :  { %7653 = vst.msk [vmem:[#allocation3 + $0x40] sm:$0xff] %vm3787_vm8, %v7635_v39  ;;  %v7285_v53 = vpop.f32.mrb[166].mxu1  ;;  %v7491_v52 = vpop.f32.mrb[74].mxu0 }
 0x63f   :  { %v7592_v59 = vsel %vm1100_vm2, %v7589_v37, %v7591_v26  ;;  %v7545_v54 = vmax.f32 %v7526_v43, 0.0  ;;  %v7482_v61 = vadd.f32 %v7481_v63, %v7285_v53  ;;  %v12648_v18 = vpop.f32.mrb[167].mxu1  ;;  %v12715_v8 = vpop.f32.mrb[75].mxu0  ;;  %v7708_v31 = vsel %vm1100_vm2, %v7705_v62, %v7707_v30 }
 0x640   :  { %v7636_v25 = vmax.f32 %v7543_v41, %v7592_v59  ;;  %12737 = vmatmul.mubr.msk.f32.vlgmr.msra.gmra.mrb[180].mxu1 %vm3787_vm8, %v7708_v31 }
 0x641   :  { %v7593_v9 = vrot.slane %v7545_v54, 1  ;;  %v7527_v55 = vadd.f32 %v18542_v11, %v7482_v61  ;;  %v7666_v17 = vld [vmem:[#allocation3 + $0x30] ss:$2 sm:$0xff]  ;;  %12829 = vmatpush3.bf16.msra.mxu1 %v18029_v29 }
 0x642   :  { %7654 = vst.msk [vmem:[#allocation3 + $0x48] sm:$0xff] %vm3787_vm8, %v7636_v25  ;;  %v7290_v0 = vpop.f32.mrb[168].mxu1  ;;  %v7496_v60 = vpop.f32.mrb[76].mxu0  ;;  %v7686_v48 = vrot.slane %v7666_v17, 6  ;;  %12831 = vmatprep.subr.bf16.mxu1 %v18136_v13 }
 0x643   :  { %v7594_v47 = vsel %vm1100_vm2, %v7591_v26, %v7593_v9  ;;  %v7546_v3 = vmax.f32 %v7527_v55, 0.0  ;;  %v7487_v35 = vadd.f32 %v7486_v6, %v7290_v0  ;;  %v12651_v16 = vpop.f32.mrb[169].mxu1  ;;  %v12718_v45 = vpop.f32.mrb[77].mxu0 }
 0x644   :  { %v7637_v20 = vmax.f32 %v7544_v58, %v7594_v47  ;;  %v18607_v1 = vsel %vm442_vm0, %v7684_v12, %v7686_v48 }
 0x645   :  { %v7595_v40 = vrot.slane %v7546_v3, 1  ;;  %v7528_v29 = vadd.f32 %v18542_v11, %v7487_v35  ;;  %v7709_v56 = vrot.slane %v18607_v1, 1  ;;  %12833 = vmatpush3.bf16.msra.mxu1 %v18136_v13 }
 0x646   :  { %7655 = vst.msk [vmem:[#allocation3 + $0x50] sm:$0xff] %vm3787_vm8, %v7637_v20  ;;  %v7295_v24 = vpop.f32.mrb[170].mxu1  ;;  %v7501_v21 = vpop.f32.mrb[78].mxu0 }
 0x647   :  { %v7596_v62 = vsel %vm1100_vm2, %v7593_v9, %v7595_v40  ;;  %v7547_v51 = vmax.f32 %v7528_v29, 0.0  ;;  %v7492_v63 = vadd.f32 %v7491_v52, %v7295_v24  ;;  %v12654_v42 = vpop.f32.mrb[171].mxu1  ;;  %v12721_v41 = vpop.f32.mrb[79].mxu0  ;;  %v7710_v7 = vsel %vm1100_vm2, %v7707_v30, %v7709_v56 }
 0x648   :  { %v7638_v4 = vmax.f32 %v7545_v54, %v7596_v62  ;;  %12739 = vmatprep.mubr.msk.f32.mxu1 %vm3787_vm8, %v7710_v7 }
 0x649   :  { %v7597_v33 = vrot.slane %v7547_v51, 1  ;;  %v7529_v28 = vadd.f32 %v18542_v11, %v7492_v63  ;;  %v7667_v49 = vld [vmem:[#allocation3 + $0x40] ss:$2 sm:$0xff] }
 0x64a   :  { %7656 = vst.msk [vmem:[#allocation3 + $0x58] sm:$0xff] %vm3787_vm8, %v7638_v4  ;;  %v7300_v13 = vpop.f32.mrb[172].mxu1  ;;  %v7506_v37 = vpop.f32.mrb[80].mxu0  ;;  %v7688_v57 = vrot.slane %v7667_v49, 6 }
 0x64b   :  { %v7598_v36 = vsel %vm1100_vm2, %v7595_v40, %v7597_v33  ;;  %v7548_v34 = vmax.f32 %v7529_v28, 0.0  ;;  %v7497_v6 = vadd.f32 %v7496_v60, %v7300_v13  ;;  %v12657_v12 = vpop.f32.mrb[173].mxu1  ;;  %v12724_v50 = vpop.f32.mrb[81].mxu0 }
 0x64c   :  { %v7639_v58 = vmax.f32 %v7546_v3, %v7598_v36  ;;  %v18620_v32 = vsel %vm442_vm0, %v7686_v48, %v7688_v57 }
 0x64d   :  { %v7599_v44 = vrot.slane %v7548_v34, 1  ;;  %v7530_v46 = vadd.f32 %v18542_v11, %v7497_v6  ;;  %v7711_v39 = vrot.slane %v18620_v32, 1 }
 0x64e   :  { %7657 = vst.msk [vmem:[#allocation3 + $0x60] sm:$0xff] %vm3787_vm8, %v7639_v58  ;;  %v7305_v26 = vpop.f32.mrb[174].mxu1  ;;  %v7511_v43 = vpop.f32.mrb[82].mxu0 }
 0x64f   :  { %v7600_v30 = vsel %vm1100_vm2, %v7597_v33, %v7599_v44  ;;  %v7549_v53 = vmax.f32 %v7530_v46, 0.0  ;;  %v7502_v52 = vadd.f32 %v7501_v21, %v7305_v26  ;;  %v12660_v59 = vpop.f32.mrb[175].mxu1  ;;  %v7712_v54 = vsel %vm1100_vm2, %v7709_v56, %v7711_v39  ;;  %v12727_v61 = vpop.f32.mrb[83].mxu0 }
 0x650   :  { %v7640_v18 = vmax.f32 %v7547_v51, %v7600_v30  ;;  %12740 = vmatmul.mubr.msk.f32.gmra.mrb[182].mxu1 %vm3787_vm8, %v7712_v54 }
 0x651   :  { %v7601_v8 = vrot.slane %v7549_v53, 1  ;;  %v7531_v31 = vadd.f32 %v18542_v11, %v7502_v52  ;;  %v7668_v25 = vld [vmem:[#allocation3 + $0x50] ss:$2 sm:$0xff] }
 0x652   :  { %7658 = vst.msk [vmem:[#allocation3 + $0x68] sm:$0xff] %vm3787_vm8, %v7640_v18  ;;  %v7310_v9 = vpop.f32.mrb[176].mxu1  ;;  %v7690_v55 = vrot.slane %v7668_v25, 6 }
 0x653   :  { %v7602_v17 = vsel %vm1100_vm2, %v7599_v44, %v7601_v8  ;;  %v7550_v0 = vmax.f32 %v7531_v31, 0.0  ;;  %v7507_v60 = vadd.f32 %v7506_v37, %v7310_v9  ;;  %v12663_v48 = vpop.f32.mrb[177].mxu1 }
 0x654   :  { %v7641_v47 = vmax.f32 %v7548_v34, %v7602_v17  ;;  %v7691_v3 = vsel %vm442_vm0, %v7688_v57, %v7690_v55 }
 0x655   :  { %v7603_v35 = vrot.slane %v7550_v0, 1  ;;  %v7532_v16 = vadd.f32 %v18542_v11, %v7507_v60  ;;  %v7713_v45 = vrot.slane %v7691_v3, 1 }
 0x656   :  { %7659 = vst.msk [vmem:[#allocation3 + $0x70] sm:$0xff] %vm3787_vm8, %v7641_v47  ;;  %v7315_v20 = vpop.f32.mrb[178].mxu1 }
 0x657   :  { %v7604_v40 = vsel %vm1100_vm2, %v7601_v8, %v7603_v35  ;;  %v7551_v29 = vmax.f32 %v7532_v16, 0.0  ;;  %v7512_v56 = vadd.f32 %v7511_v43, %v7315_v20  ;;  %v12666_v24 = vpop.f32.mrb[179].mxu1  ;;  %v7714_v21 = vsel %vm1100_vm2, %v7711_v39, %v7713_v45 }
 0x658   :  { %v7642_v62 = vmax.f32 %v7549_v53, %v7604_v40  ;;  %12742 = vmatprep.mubr.msk.f32.mxu1 %vm3787_vm8, %v7714_v21 }
 0x659   :  { %v7605_v51 = vrot.slane %v7551_v29, 1  ;;  %v7533_v63 = vadd.f32 %v18542_v11, %v7512_v56  ;;  %v7669_v42 = vld [vmem:[#allocation3 + $0x60] ss:$2 sm:$0xff] }
 0x65a   :  { %7660 = vst.msk [vmem:[#allocation3 + $0x78] sm:$0xff] %vm3787_vm8, %v7642_v62  ;;  %v7692_v41 = vrot.slane %v7669_v42, 6 }
 0x65b   :  { %v7606_v7 = vsel %vm1100_vm2, %v7603_v35, %v7605_v51  ;;  %v7552_v4 = vmax.f32 %v7533_v63, 0.0 }
 0x65c   :  { %v7643_v33 = vmax.f32 %v7550_v0, %v7606_v7  ;;  %v7693_v28 = vsel %vm442_vm0, %v7690_v55, %v7692_v41 }
 0x65d   :  { %v7607_v49 = vrot.slane %v7552_v4, 1  ;;  %v7715_v13 = vrot.slane %v7693_v28, 1 }
 0x65e   :  { %7661 = vst.msk [vmem:[#allocation3 + $0x80] sm:$0xff] %vm3787_vm8, %v7643_v33 }
 0x65f   :  { %v7608_v37 = vsel %vm1100_vm2, %v7605_v51, %v7607_v49  ;;  %v7716_v57 = vsel %vm1100_vm2, %v7713_v45, %v7715_v13 }
 0x660   :  { %v7644_v36 = vmax.f32 %v7551_v29, %v7608_v37  ;;  %12743 = vmatmul.mubr.msk.f32.gmra.mrb[184].mxu1 %vm3787_vm8, %v7716_v57 }
 0x661   :  { %v7670_v11 = vld [vmem:[#allocation3 + $0x70] ss:$2 sm:$0xff] }
 0x662   :  { %7662 = vst.msk [vmem:[#allocation3 + $0x88] sm:$0xff] %vm3787_vm8, %v7644_v36  ;;  %v7694_v34 = vrot.slane %v7670_v11, 6 }
 0x664   :  { %v7695_v6 = vsel %vm442_vm0, %v7692_v41, %v7694_v34 }
 0x665   :  { %v7717_v12 = vrot.slane %v7695_v6, 1 }
 0x667   :  { %v7718_v50 = vsel %vm1100_vm2, %v7715_v13, %v7717_v12 }
 0x668   :  { %12745 = vmatprep.mubr.msk.f32.mxu1 %vm3787_vm8, %v7718_v50 }
 0x669   :  { %v7671_v58 = vld [vmem:[#allocation3 + $0x80] ss:$2 sm:$0xff] }
 0x66a   :  { %v7696_v44 = vrot.slane %v7671_v58, 6  ;;  %v8082_v58 = vld [vmem:[#allocation24] sm:$0xff] }
 0x66c   :  { %v7697_v46 = vsel %vm442_vm0, %v7694_v34, %v7696_v44  ;;  %v7701_v39 = vsel %vm442_vm0, %v7696_v44, 0.0  ;;  %v8084_v44 = vld [vmem:[#allocation24 + $0x10] sm:$0xff] }
 0x66d   :  { %v7719_v26 = vrot.slane %v7697_v46, 1  ;;  %v7721_v43 = vrot.slane %v7701_v39, 1 }
 0x66f   :  { %v7720_v30 = vsel %vm1100_vm2, %v7717_v12, %v7719_v26  ;;  %v7722_v53 = vsel %vm1100_vm2, %v7719_v26, %v7721_v43  ;;  %v8087_v26 = vld [vmem:[#allocation24 + $0x28] sm:$0xff] }
 0x670   :  { %12746 = vmatmul.mubr.msk.f32.gmra.mrb[186].mxu1 %vm3787_vm8, %v7720_v30 }
 0x671   :  { %12748 = vmatprep.mubr.msk.f32.mxu1 %vm3787_vm8, %v7722_v53 }
 0x674   :  { %12749 = vmatmul.mubr.msk.f32.gmra.mrb[188].mxu1 %vm3787_vm8, %v7721_v43  ;;  %v8089_v43 = vld [vmem:[#allocation24 + $0x38] sm:$0xff] }
 0x675   :  { %12759 = vmatprep.mubr.msk.f32.mxu1 %vm3787_vm8, %v18572_v23  ;;  %v8083_v23 = vld [vmem:[#allocation24 + $0x8] sm:$0xff] }
 0x678   :  { %12760 = vmatmul.mubr.msk.f32.vlgmr.msra.gmra.mrb[180].mxu1 %vm3787_vm8, %v18576_v14  ;;  %v8085_v14 = vld [vmem:[#allocation24 + $0x18] sm:$0xff] }
 0x679   :  { %12762 = vmatprep.mubr.msk.f32.mxu1 %vm3787_vm8, %v18591_v38  ;;  %v12842_v52 = vpack.c.bf16 %v8085_v14, %v8083_v23 }
 0x67b   :  { %12843 = vmatprep.subr.bf16.mxu0 %v12842_v52 }
 0x67c   :  { %12763 = vmatmul.mubr.msk.f32.gmra.mrb[182].mxu1 %vm3787_vm8, %v18607_v1 }
 0x67d   :  { %12765 = vmatprep.mubr.msk.f32.mxu1 %vm3787_vm8, %v18620_v32 }
 0x680   :  { %12766 = vmatmul.mubr.msk.f32.gmra.mrb[184].mxu1 %vm3787_vm8, %v7691_v3 }
 0x681   :  { %12768 = vmatprep.mubr.msk.f32.mxu1 %vm3787_vm8, %v7693_v28 }
 0x684   :  { %12769 = vmatmul.mubr.msk.f32.gmra.mrb[186].mxu1 %vm3787_vm8, %v7695_v6 }
 0x685   :  { %12771 = vmatprep.mubr.msk.f32.mxu1 %vm3787_vm8, %v7697_v46 }
 0x688   :  { %12772 = vmatmul.mubr.msk.f32.gmra.mrb[188].mxu1 %vm3787_vm8, %v7701_v39  ;;  %v8091_v39 = vrot.slane %v18548_v19, 1 }
 0x74b   :  { %v12761_v38 = vpop.f32.mrb[180].mxu1 }
 0x74c   :  { %v7994_v1 = vadd.f32 %v12761_v38, %v18511_v27  ;;  %v7944_v59 = vpop.f32.mrb[181].mxu1  ;;  %v12844_v38 = vpack.c.bf16 %v8084_v44, %v8082_v58  ;;  %v8439_v58 = vld [vmem:[#allocation24 + $0x110] sm:$0xff] }
 0x74d   :  { %v7993_v32 = vadd.f32 %v18511_v27, %v7944_v59 }
 0x74e   :  { %v8004_v54 = vmax.f32 %v7994_v1, 0.0 }
 0x74f   :  { %v8003_v61 = vmax.f32 %v7993_v32, 0.0  ;;  %v12764_v18 = vpop.f32.mrb[182].mxu1  ;;  %v12846_v32 = vpack.c.bf16 %v8089_v43, %v8087_v26  ;;  %v8341_v26 = vrot.slane %v18548_v19, 3 }
 0x750   :  { %v8024_v8 = vrot.slane %v8004_v54, 1  ;;  %v7996_v31 = vadd.f32 %v12764_v18, %v18511_v27  ;;  %v7954_v25 = vpop.f32.mrb[183].mxu1 }
 0x751   :  { %v8023_v9 = vrot.slane %v8003_v61, 1  ;;  %v7995_v55 = vadd.f32 %v18511_v27, %v7954_v25  ;;  %v8260_v25 = vld [vmem:[#allocation24 + $0x98] sm:$0xff] }
 0x752   :  { %v8006_v17 = vmax.f32 %v7996_v31, 0.0  ;;  %v8258_v31 = vld [vmem:[#allocation24 + $0x88] sm:$0xff] }
 0x753   :  { %v8025_v0 = vsel %vm1100_vm2, %v8023_v9, %v8024_v8  ;;  %v8005_v60 = vmax.f32 %v7995_v55, 0.0  ;;  %v12767_v48 = vpop.f32.mrb[184].mxu1 }
 0x754   :  { %v8052_v47 = vmax.f32 %v8003_v61, %v8025_v0  ;;  %v8028_v3 = vrot.slane %v8006_v17, 1  ;;  %v7998_v35 = vadd.f32 %v12767_v48, %v18511_v27  ;;  %v7964_v16 = vpop.f32.mrb[185].mxu1  ;;  %v8088_v61 = vld [vmem:[#allocation24 + $0x30] sm:$0xff]  ;;  %v12850_v48 = vpack.c.bf16 %v8260_v25, %v8258_v31 }
 0x755   :  { %v8026_v45 = vrot.slane %v8005_v60, 1  ;;  %v7997_v20 = vadd.f32 %v18511_v27, %v7964_v16  ;;  %v8262_v16 = vld [vmem:[#allocation24 + $0xa8] sm:$0xff]  ;;  %v8431_v31 = vrot.slane %v18548_v19, 4 }
 0x756   :  { %8062 = vst.msk [vmem:[#allocation3] sm:$0xff] %vm3787_vm8, %v8052_v47  ;;  %v8008_v40 = vmax.f32 %v7998_v35, 0.0  ;;  %v8257_v47 = vld [vmem:[#allocation24 + $0x80] sm:$0xff] }
 0x757   :  { %v8027_v29 = vsel %vm1100_vm2, %v8024_v8, %v8026_v45  ;;  %v8029_v56 = vsel %vm1100_vm2, %v8026_v45, %v8028_v3  ;;  %v8007_v24 = vmax.f32 %v7997_v20, 0.0  ;;  %v12770_v21 = vpop.f32.mrb[186].mxu1  ;;  %v8264_v45 = vld [vmem:[#allocation24 + $0xb8] sm:$0xff] }
 0x758   :  { %v8053_v62 = vmax.f32 %v8004_v54, %v8027_v29  ;;  %v8054_v51 = vmax.f32 %v8005_v60, %v8029_v56  ;;  %v8032_v63 = vrot.slane %v8008_v40, 1  ;;  %v8000_v42 = vadd.f32 %v12770_v21, %v18511_v27  ;;  %v7974_v41 = vpop.f32.mrb[187].mxu1  ;;  %v8086_v54 = vld [vmem:[#allocation24 + $0x20] sm:$0xff]  ;;  %v8263_v56 = vld [vmem:[#allocation24 + $0xb0] sm:$0xff]  ;;  %v8348_v21 = vld [vmem:[#allocation24 + $0xc8] sm:$0xff] }
 0x759   :  { %v8030_v7 = vrot.slane %v8007_v24, 1  ;;  %v7999_v4 = vadd.f32 %v18511_v27, %v7974_v41  ;;  %v12848_v60 = vpack.c.bf16 %v8088_v61, %v8086_v54  ;;  %v8261_v29 = vld [vmem:[#allocation24 + $0xa0] sm:$0xff]  ;;  %v8349_v41 = vld [vmem:[#allocation24 + $0xd0] sm:$0xff] }
 0x75a   :  { %8063 = vst.msk [vmem:[#allocation3 + $0x8] sm:$0xff] %vm3787_vm8, %v8053_v62  ;;  %8064 = vst.msk [vmem:[#allocation3 + $0x10] sm:$0xff] %vm3787_vm8, %v8054_v51  ;;  %v8010_v33 = vmax.f32 %v8000_v42, 0.0  ;;  %v8350_v62 = vld [vmem:[#allocation24 + $0xd8] sm:$0xff]  ;;  %v12856_v51 = vpack.c.bf16 %v8263_v56, %v8261_v29  ;;  %v8347_v42 = vld [vmem:[#allocation24 + $0xc0] sm:$0xff]  ;;  %v8521_v29 = vrot.slane %v18548_v19, 5 }
 0x75b   :  { %v8031_v28 = vsel %vm1100_vm2, %v8028_v3, %v8030_v7  ;;  %v8033_v49 = vsel %vm1100_vm2, %v8030_v7, %v8032_v63  ;;  %v8009_v13 = vmax.f32 %v7999_v4, 0.0  ;;  %v12773_v37 = vpop.f32.mrb[188].mxu1  ;;  %v8259_v3 = vld [vmem:[#allocation24 + $0x90] sm:$0xff]  ;;  %v8352_v4 = vld [vmem:[#allocation24 + $0xe8] sm:$0xff] }
 0x75c   :  { %v8055_v57 = vmax.f32 %v8006_v17, %v8031_v28  ;;  %v8056_v36 = vmax.f32 %v8007_v24, %v8033_v49  ;;  %v8036_v11 = vrot.slane %v8010_v33, 1  ;;  %v8002_v34 = vadd.f32 %v12773_v37, %v18511_v27  ;;  %v7984_v6 = vpop.f32.mrb[189].mxu1  ;;  %v8351_v37 = vld [vmem:[#allocation24 + $0xe0] sm:$0xff]  ;;  %v8529_v54 = vld [vmem:[#allocation24 + $0x150] sm:$0xff] }
 0x75d   :  { %v8034_v12 = vrot.slane %v8009_v13, 1  ;;  %v8001_v50 = vadd.f32 %v18511_v27, %v7984_v6  ;;  %v12852_v20 = vpack.c.bf16 %v8259_v3, %v8257_v47  ;;  %v8251_v28 = vrot.slane %v18548_v19, 2 }
 0x75e   :  { %8065 = vst.msk [vmem:[#allocation3 + $0x18] sm:$0xff] %vm3787_vm8, %v8055_v57  ;;  %8066 = vst.msk [vmem:[#allocation3 + $0x20] sm:$0xff] %vm3787_vm8, %v8056_v36  ;;  %v8012_v46 = vmax.f32 %v8002_v34, 0.0  ;;  %v12860_v49 = vpack.c.bf16 %v8349_v41, %v8347_v42  ;;  %v8353_v57 = vld [vmem:[#allocation24 + $0xf0] sm:$0xff]  ;;  %v8440_v34 = vld [vmem:[#allocation24 + $0x118] sm:$0xff] }
 0x75f   :  { %v8035_v30 = vsel %vm1100_vm2, %v8032_v63, %v8034_v12  ;;  %v8037_v53 = vsel %vm1100_vm2, %v8034_v12, %v8036_v11  ;;  %v8011_v23 = vmax.f32 %v8001_v50, 0.0  ;;  %v12858_v63 = vpack.c.bf16 %v8350_v62, %v8348_v21  ;;  %v8437_v50 = vld [vmem:[#allocation24 + $0x100] sm:$0xff]  ;;  %v8623_v62 = vld [vmem:[#allocation24 + $0x1b0] sm:$0xff]  ;;  %v8710_v42 = vld [vmem:[#allocation24 + $0x1d8] sm:$0xff] }
 0x760   :  { %v8057_v14 = vmax.f32 %v8008_v40, %v8035_v30  ;;  %v8058_v52 = vmax.f32 %v8009_v13, %v8037_v53  ;;  %v8040_v27 = vrot.slane %v8012_v46, 1  ;;  %v12854_v40 = vpack.c.bf16 %v8264_v45, %v8262_v16  ;;  %v8441_v53 = vld [vmem:[#allocation24 + $0x120] sm:$0xff]  ;;  %v8619_v16 = vld [vmem:[#allocation24 + $0x190] sm:$0xff] }
 0x761   :  { %v8038_v1 = vrot.slane %v8011_v23, 1  ;;  %v18694_v59 = vld [vmem:[#allocation3] ss:$2 sm:$0xff]  ;;  %v12864_v6 = vpack.c.bf16 %v8353_v57, %v8351_v37  ;;  %v12868_v43 = vpack.c.bf16 %v8439_v58, %v8437_v50  ;;  %v8611_v37 = vrot.slane %v18548_v19, 6 }
 0x762   :  { %8067 = vst.msk [vmem:[#allocation3 + $0x28] sm:$0xff] %vm3787_vm8, %v8057_v14  ;;  %8068 = vst.msk [vmem:[#allocation3 + $0x30] sm:$0xff] %vm3787_vm8, %v8058_v52  ;;  %v8061_v18 = vmax.f32 %v8012_v46, %v8040_v27  ;;  %v8093_v8 = vsel %vm8080_vm10, %v8091_v39, %v18694_v59  ;;  %v8078_v35 = vrot.slane %v18694_v59, 7  ;;  %v8253_v7 = vrot.slane %v18694_v59, 1  ;;  %v8442_v46 = vld [vmem:[#allocation24 + $0x128] sm:$0xff]  ;;  %v8444_v39 = vld [vmem:[#allocation24 + $0x138] sm:$0xff] }
 0x763   :  { %v8039_v9 = vsel %vm1100_vm2, %v8036_v11, %v8038_v1  ;;  %v8041_v55 = vsel %vm1100_vm2, %v8038_v1, %v8040_v27  ;;  %11841 = vmatmul.mubr.msk.f32.vlgmr.msra.gmra.mrb[84].mxu0 %vm3787_vm8, %v8093_v8  ;;  %v8438_v11 = vld [vmem:[#allocation24 + $0x108] sm:$0xff]  ;;  %v8343_v44 = vrot.slane %v18694_v59, 2  ;;  %v12870_v30 = vpack.c.bf16 %v8444_v39, %v8442_v46  ;;  %v8530_v27 = vld [vmem:[#allocation24 + $0x158] sm:$0xff]  ;;  %v8621_v21 = vld [vmem:[#allocation24 + $0x1a0] sm:$0xff] }
 0x764   :  { %8071 = vst.msk [vmem:[#allocation3 + $0x48] sm:$0x3] %vm4228_vm9, %v8061_v18  ;;  %v8059_v17 = vmax.f32 %v8010_v33, %v8039_v9  ;;  %v8060_v0 = vmax.f32 %v8011_v23, %v8041_v55  ;;  %12845 = vmatpush1.bf16.msra.mxu0 %v12844_v38  ;;  %8244 = vmatprep.mubr.f32.mxu0 %v13761_v5  ;;  %v8354_v33 = vld [vmem:[#allocation24 + $0xf8] sm:$0xff]  ;;  %v8443_v23 = vld [vmem:[#allocation24 + $0x130] sm:$0xff]  ;;  %v8528_v52 = vld [vmem:[#allocation24 + $0x148] sm:$0xff]  ;;  %v8433_v61 = vrot.slane %v18694_v59, 3 }
 0x765   :  { %12847 = vmatprep.subr.bf16.mxu0 %v12846_v32  ;;  %v8081_v24 = vsel %vm8080_vm10, %v18548_v19, %v8078_v35  ;;  %v12862_v13 = vpack.c.bf16 %v8354_v33, %v8352_v4  ;;  %v8255_v36 = vsel %vm8080_vm10, %v8251_v28, %v8253_v7  ;;  %v12866_v12 = vpack.c.bf16 %v8440_v34, %v8438_v11  ;;  %v8527_v32 = vld [vmem:[#allocation24 + $0x140] sm:$0xff]  ;;  %v8532_v18 = vld [vmem:[#allocation24 + $0x168] sm:$0xff]  ;;  %v8534_v8 = vld [vmem:[#allocation24 + $0x178] sm:$0xff] }
 0x766   :  { %8069 = vst.msk [vmem:[#allocation3 + $0x38] sm:$0xff] %vm3787_vm8, %v8059_v17  ;;  %8070 = vst.msk [vmem:[#allocation3 + $0x40] sm:$0xff] %vm3787_vm8, %v8060_v0  ;;  %v8345_v14 = vsel %vm8080_vm10, %v8341_v26, %v8343_v44  ;;  %v12872_v38 = vpack.c.bf16 %v8443_v23, %v8441_v53  ;;  %v12874_v1 = vpack.c.bf16 %v8530_v27, %v8528_v52  ;;  %v8531_v55 = vld [vmem:[#allocation24 + $0x160] sm:$0xff]  ;;  %v8533_v17 = vld [vmem:[#allocation24 + $0x170] sm:$0xff]  ;;  %v8523_v45 = vrot.slane %v18694_v59, 4 }
 0x767   :  { %v12876_v25 = vpack.c.bf16 %v8529_v54, %v8527_v32  ;;  %v12878_v9 = vpack.c.bf16 %v8534_v8, %v8532_v18  ;;  %v8435_v0 = vsel %vm8080_vm10, %v8431_v31, %v8433_v61  ;;  %v12880_v47 = vpack.c.bf16 %v8533_v17, %v8531_v55  ;;  %v8617_v35 = vld [vmem:[#allocation24 + $0x180] sm:$0xff]  ;;  %v8709_v33 = vld [vmem:[#allocation24 + $0x1d0] sm:$0xff]  ;;  %v8799_v50 = vld [vmem:[#allocation24 + $0x218] sm:$0xff] }
 0x768   :  { %12849 = vmatpush1.bf16.msra.mxu0 %v12848_v60  ;;  %v8618_v60 = vld [vmem:[#allocation24 + $0x188] sm:$0xff]  ;;  %v12884_v56 = vpack.c.bf16 %v8619_v16, %v8617_v35  ;;  %v12888_v41 = vpack.c.bf16 %v8623_v62, %v8621_v21  ;;  %v8707_v4 = vld [vmem:[#allocation24 + $0x1c0] sm:$0xff]  ;;  %v8613_v28 = vrot.slane %v18694_v59, 5  ;;  %v8713_v34 = vld [vmem:[#allocation24 + $0x1f0] sm:$0xff]  ;;  %v8703_v26 = vrot.slane %v18694_v59, 6 }
 0x769   :  { %12851 = vmatprep.subr.bf16.mxu0 %v12850_v48  ;;  %v8620_v48 = vld [vmem:[#allocation24 + $0x198] sm:$0xff]  ;;  %v12892_v57 = vpack.c.bf16 %v8709_v33, %v8707_v4  ;;  %v8711_v11 = vld [vmem:[#allocation24 + $0x1e0] sm:$0xff]  ;;  %v8798_v39 = vld [vmem:[#allocation24 + $0x210] sm:$0xff]  ;;  %v8701_v53 = vrot.slane %v18548_v19, 7 }
 0x76a   :  { %v12882_v3 = vpack.c.bf16 %v8620_v48, %v8618_v60  ;;  %v12896_v58 = vpack.c.bf16 %v8713_v34, %v8711_v11  ;;  %v8796_v46 = vld [vmem:[#allocation24 + $0x200] sm:$0xff]  ;;  %v8802_v27 = vld [vmem:[#allocation24 + $0x230] sm:$0xff]  ;;  %v8888_v32 = vld [vmem:[#allocation24 + $0x258] sm:$0xff] }
 0x76b   :  { %11842 = vmatmul.mubr.msk.f32.vlgmr.msra.gmra.mrb[84].mxu0 %vm3787_vm8, %v8081_v24  ;;  %v12900_v23 = vpack.c.bf16 %v8798_v39, %v8796_v46  ;;  %v8800_v52 = vld [vmem:[#allocation24 + $0x220] sm:$0xff]  ;;  %v8887_v18 = vld [vmem:[#allocation24 + $0x250] sm:$0xff]  ;;  %v8890_v31 = vld [vmem:[#allocation24 + $0x268] sm:$0xff] }
 0x76c   :  { %12853 = vmatpush1.bf16.msra.mxu0 %v12852_v20  ;;  %8332 = vmatprep.mubr.f32.mxu0 %v13761_v5  ;;  %v8622_v20 = vld [vmem:[#allocation24 + $0x1a8] sm:$0xff]  ;;  %v12904_v59 = vpack.c.bf16 %v8802_v27, %v8800_v52  ;;  %v8885_v19 = vld [vmem:[#allocation24 + $0x240] sm:$0xff]  ;;  %v8981_v62 = vld [vmem:[#allocation24 + $0x2b0] sm:$0xff] }
 0x76d   :  { %12855 = vmatprep.subr.bf16.mxu0 %v12854_v40  ;;  %v8624_v40 = vld [vmem:[#allocation24 + $0x1b8] sm:$0xff]  ;;  %v18741_v54 = vld [vmem:[#allocation3 + $0x10] ss:$2 sm:$0xff] }
 0x76e   :  { %v12886_v24 = vpack.c.bf16 %v8624_v40, %v8622_v20  ;;  %v8792_v8 = vrot.slane %v18741_v54, 7  ;;  %v8889_v17 = vld [vmem:[#allocation24 + $0x260] sm:$0xff]  ;;  %v8976_v48 = vld [vmem:[#allocation24 + $0x288] sm:$0xff]  ;;  %v8982_v40 = vld [vmem:[#allocation24 + $0x2b8] sm:$0xff] }
 0x76f   :  { %v8975_v16 = vld [vmem:[#allocation24 + $0x280] sm:$0xff]  ;;  %v8980_v20 = vld [vmem:[#allocation24 + $0x2a8] sm:$0xff]  ;;  %v9067_v33 = vld [vmem:[#allocation24 + $0x2d0] sm:$0xff] }
 0x770   :  { %12857 = vmatpush1.bf16.msra.mxu0 %v12856_v51  ;;  %v8525_v51 = vsel %vm8080_vm10, %v8521_v29, %v8523_v45  ;;  %v8794_v60 = vsel %vm8080_vm10, %v18556_v15, %v8792_v8  ;;  %v8977_v45 = vld [vmem:[#allocation24 + $0x290] sm:$0xff]  ;;  %v8881_v29 = vrot.slane %v18556_v15, 1  ;;  %v8979_v21 = vld [vmem:[#allocation24 + $0x2a0] sm:$0xff]  ;;  %v9151_v8 = vrot.slane %v18741_v54, 3 }
 0x771   :  { %12859 = vmatprep.subr.bf16.mxu0 %v12858_v63  ;;  %v8708_v63 = vld [vmem:[#allocation24 + $0x1c8] sm:$0xff]  ;;  %v9065_v4 = vld [vmem:[#allocation24 + $0x2c0] sm:$0xff]  ;;  %v9071_v34 = vld [vmem:[#allocation24 + $0x2f0] sm:$0xff] }
 0x772   :  { %v12890_v7 = vpack.c.bf16 %v8710_v42, %v8708_v63  ;;  %v9066_v63 = vld [vmem:[#allocation24 + $0x2c8] sm:$0xff]  ;;  %v9068_v42 = vld [vmem:[#allocation24 + $0x2d8] sm:$0xff]  ;;  %v9069_v11 = vld [vmem:[#allocation24 + $0x2e0] sm:$0xff] }
 0x773   :  { %11843 = vmatmul.mubr.msk.f32.vlgmr.msra.gmra.mrb[84].mxu0 %vm3787_vm8, %v8255_v36  ;;  %v9155_v46 = vld [vmem:[#allocation24 + $0x300] sm:$0xff]  ;;  %v9157_v39 = vld [vmem:[#allocation24 + $0x310] sm:$0xff] }
 0x774   :  { %12861 = vmatpush1.bf16.msra.mxu0 %v12860_v49  ;;  %8422 = vmatprep.mubr.f32.mxu0 %v13761_v5  ;;  %v8712_v49 = vld [vmem:[#allocation24 + $0x1e8] sm:$0xff]  ;;  %v9159_v52 = vld [vmem:[#allocation24 + $0x320] sm:$0xff]  ;;  %v9161_v27 = vld [vmem:[#allocation24 + $0x330] sm:$0xff] }
 0x775   :  { %12863 = vmatprep.subr.bf16.mxu0 %v12862_v13  ;;  %v8714_v13 = vld [vmem:[#allocation24 + $0x1f8] sm:$0xff] }
 0x776   :  { %v12894_v36 = vpack.c.bf16 %v8714_v13, %v8712_v49  ;;  %v9070_v49 = vld [vmem:[#allocation24 + $0x2e8] sm:$0xff]  ;;  %v9072_v13 = vld [vmem:[#allocation24 + $0x2f8] sm:$0xff] }
 0x778   :  { %12865 = vmatpush1.bf16.msra.mxu0 %v12864_v6  ;;  %v8615_v6 = vsel %vm8080_vm10, %v8611_v37, %v8613_v28  ;;  %v8971_v28 = vrot.slane %v18741_v54, 1  ;;  %v8969_v37 = vrot.slane %v18556_v15, 2 }
 0x779   :  { %12867 = vmatprep.subr.bf16.mxu0 %v12866_v12  ;;  %v8797_v12 = vld [vmem:[#allocation24 + $0x208] sm:$0xff] }
 0x77a   :  { %v12898_v44 = vpack.c.bf16 %v8799_v50, %v8797_v12  ;;  %v9156_v12 = vld [vmem:[#allocation24 + $0x308] sm:$0xff]  ;;  %v9158_v50 = vld [vmem:[#allocation24 + $0x318] sm:$0xff] }
 0x77b   :  { %11844 = vmatmul.mubr.msk.f32.vlgmr.msra.gmra.mrb[84].mxu0 %vm3787_vm8, %v8345_v14 }
 0x77c   :  { %12869 = vmatpush1.bf16.msra.mxu0 %v12868_v43  ;;  %8512 = vmatprep.mubr.f32.mxu0 %v13761_v5  ;;  %v8801_v43 = vld [vmem:[#allocation24 + $0x228] sm:$0xff] }
 0x77d   :  { %12871 = vmatprep.subr.bf16.mxu0 %v12870_v30  ;;  %v8803_v30 = vld [vmem:[#allocation24 + $0x238] sm:$0xff] }
 0x77e   :  { %v12902_v14 = vpack.c.bf16 %v8803_v30, %v8801_v43  ;;  %v9160_v43 = vld [vmem:[#allocation24 + $0x328] sm:$0xff]  ;;  %v9162_v30 = vld [vmem:[#allocation24 + $0x338] sm:$0xff] }
 0x780   :  { %12873 = vmatpush1.bf16.msra.mxu0 %v12872_v38  ;;  %v8705_v38 = vsel %vm8080_vm10, %v8701_v53, %v8703_v26  ;;  %v9061_v26 = vrot.slane %v18741_v54, 2  ;;  %v9059_v53 = vrot.slane %v18556_v15, 3 }
 0x781   :  { %12875 = vmatprep.subr.bf16.mxu0 %v12874_v1  ;;  %v8886_v1 = vld [vmem:[#allocation24 + $0x248] sm:$0xff] }
 0x782   :  { %v12906_v61 = vpack.c.bf16 %v8888_v32, %v8886_v1  ;;  %v9246_v1 = vld [vmem:[#allocation24 + $0x348] sm:$0xff]  ;;  %v9248_v32 = vld [vmem:[#allocation24 + $0x358] sm:$0xff] }
 0x783   :  { %11845 = vmatmul.mubr.msk.f32.vlgmr.msra.gmra.mrb[84].mxu0 %vm3787_vm8, %v8435_v0  ;;  %v8891_v0 = vld [vmem:[#allocation24 + $0x270] sm:$0xff] }
 0x784   :  { %12877 = vmatpush1.bf16.msra.mxu0 %v12876_v25  ;;  %8602 = vmatprep.mubr.f32.mxu0 %v13761_v5  ;;  %v8892_v25 = vld [vmem:[#allocation24 + $0x278] sm:$0xff] }
 0x785   :  { %12879 = vmatprep.subr.bf16.mxu0 %v12878_v9  ;;  %v12908_v9 = vpack.c.bf16 %v8887_v18, %v8885_v19  ;;  %v12910_v55 = vpack.c.bf16 %v8892_v25, %v8890_v31  ;;  %v9245_v19 = vld [vmem:[#allocation24 + $0x340] sm:$0xff]  ;;  %v9247_v18 = vld [vmem:[#allocation24 + $0x350] sm:$0xff]  ;;  %v9250_v31 = vld [vmem:[#allocation24 + $0x368] sm:$0xff] }
 0x786   :  { %v9252_v25 = vld [vmem:[#allocation24 + $0x378] sm:$0xff] }
 0x788   :  { %12881 = vmatpush1.bf16.msra.mxu0 %v12880_v47  ;;  %v8978_v47 = vld [vmem:[#allocation24 + $0x298] sm:$0xff] }
 0x789   :  { %12883 = vmatprep.subr.bf16.mxu0 %v12882_v3  ;;  %v12912_v3 = vpack.c.bf16 %v8891_v0, %v8889_v17  ;;  %v12914_v35 = vpack.c.bf16 %v8978_v47, %v8976_v48  ;;  %v12942_v17 = vpack.c.bf16 %v9252_v25, %v9250_v31  ;;  %v9249_v0 = vld [vmem:[#allocation24 + $0x360] sm:$0xff]  ;;  %v9336_v47 = vld [vmem:[#allocation24 + $0x388] sm:$0xff] }
 0x78a   :  { %v9608_v25 = vld [vmem:[#allocation24 + $0x468] sm:$0xff] }
 0x78b   :  { %11846 = vmatmul.mubr.msk.f32.vlgmr.msra.gmra.mrb[84].mxu0 %vm3787_vm8, %v8525_v51  ;;  %v8883_v51 = vsel %vm8080_vm10, %v8881_v29, %v18741_v54  ;;  %v9340_v29 = vld [vmem:[#allocation24 + $0x3a8] sm:$0xff] }
 0x78c   :  { %12885 = vmatpush1.bf16.msra.mxu0 %v12884_v56  ;;  %8692 = vmatprep.mubr.f32.mxu0 %v13761_v5  ;;  %v12916_v56 = vpack.c.bf16 %v8977_v45, %v8975_v16  ;;  %v9335_v45 = vld [vmem:[#allocation24 + $0x380] sm:$0xff] }
 0x78d   :  { %12887 = vmatprep.subr.bf16.mxu0 %v12886_v24  ;;  %v12918_v24 = vpack.c.bf16 %v8982_v40, %v8980_v20  ;;  %v9337_v20 = vld [vmem:[#allocation24 + $0x390] sm:$0xff]  ;;  %v9241_v40 = vrot.slane %v18741_v54, 4 }
 0x790   :  { %12889 = vmatpush1.bf16.msra.mxu0 %v12888_v41  ;;  %v12920_v41 = vpack.c.bf16 %v8981_v62, %v8979_v21  ;;  %v12948_v21 = vpack.c.bf16 %v9337_v20, %v9335_v45  ;;  %v9693_v45 = vld [vmem:[#allocation24 + $0x480] sm:$0xff]  ;;  %v9695_v20 = vld [vmem:[#allocation24 + $0x490] sm:$0xff] }
 0x791   :  { %12891 = vmatprep.subr.bf16.mxu0 %v12890_v7  ;;  %v12922_v7 = vpack.c.bf16 %v9068_v42, %v9066_v63  ;;  %v9341_v63 = vld [vmem:[#allocation24 + $0x3b0] sm:$0xff] }
 0x793   :  { %11847 = vmatmul.mubr.msk.f32.vlgmr.msra.gmra.mrb[84].mxu0 %vm3787_vm8, %v8615_v6  ;;  %v8973_v6 = vsel %vm8080_vm10, %v8969_v37, %v8971_v28  ;;  %v9425_v28 = vld [vmem:[#allocation24 + $0x3c0] sm:$0xff]  ;;  %v9430_v37 = vld [vmem:[#allocation24 + $0x3e8] sm:$0xff] }
 0x794   :  { %12893 = vmatpush1.bf16.msra.mxu0 %v12892_v57  ;;  %8782 = vmatprep.mubr.f32.mxu0 %v13761_v5  ;;  %v12924_v57 = vpack.c.bf16 %v9067_v33, %v9065_v4 }
 0x795   :  { %12895 = vmatprep.subr.bf16.mxu0 %v12894_v36  ;;  %v12926_v36 = vpack.c.bf16 %v9072_v13, %v9070_v49  ;;  %v9427_v49 = vld [vmem:[#allocation24 + $0x3d0] sm:$0xff]  ;;  %v9331_v13 = vrot.slane %v18741_v54, 5 }
 0x798   :  { %12897 = vmatpush1.bf16.msra.mxu0 %v12896_v58  ;;  %v12928_v58 = vpack.c.bf16 %v9071_v34, %v9069_v11  ;;  %v12956_v11 = vpack.c.bf16 %v9427_v49, %v9425_v28  ;;  %v9785_v28 = vld [vmem:[#allocation24 + $0x4d0] sm:$0xff] }
 0x799   :  { %12899 = vmatprep.subr.bf16.mxu0 %v12898_v44  ;;  %v12930_v44 = vpack.c.bf16 %v9158_v50, %v9156_v12  ;;  %v9431_v12 = vld [vmem:[#allocation24 + $0x3f0] sm:$0xff] }
 0x79b   :  { %11848 = vmatmul.mubr.msk.f32.vlgmr.msra.gmra.mrb[84].mxu0 %vm3787_vm8, %v8705_v38  ;;  %v9063_v38 = vsel %vm8080_vm10, %v9059_v53, %v9061_v26  ;;  %v9514_v26 = vld [vmem:[#allocation24 + $0x400] sm:$0xff]  ;;  %v9519_v53 = vld [vmem:[#allocation24 + $0x428] sm:$0xff] }
 0x79c   :  { %12901 = vmatpush1.bf16.msra.mxu0 %v12900_v23  ;;  %8871 = vmatprep.mubr.f32.mxu0 %v13761_v5  ;;  %v12932_v23 = vpack.c.bf16 %v9157_v39, %v9155_v46 }
 0x79d   :  { %12903 = vmatprep.subr.bf16.mxu0 %v12902_v14  ;;  %v12934_v14 = vpack.c.bf16 %v9162_v30, %v9160_v43  ;;  %v9516_v43 = vld [vmem:[#allocation24 + $0x410] sm:$0xff]  ;;  %v9421_v30 = vrot.slane %v18741_v54, 6 }
 0x7a0   :  { %12905 = vmatpush1.bf16.msra.mxu0 %v12904_v59  ;;  %v12936_v59 = vpack.c.bf16 %v9161_v27, %v9159_v52  ;;  %v12964_v52 = vpack.c.bf16 %v9516_v43, %v9514_v26  ;;  %v9875_v26 = vld [vmem:[#allocation24 + $0x510] sm:$0xff] }
 0x7a1   :  { %12907 = vmatprep.subr.bf16.mxu0 %v12906_v61  ;;  %v12938_v61 = vpack.c.bf16 %v9248_v32, %v9246_v1  ;;  %v9520_v1 = vld [vmem:[#allocation24 + $0x430] sm:$0xff] }
 0x7a3   :  { %11849 = vmatmul.mubr.msk.f32.vlgmr.msra.gmra.mrb[84].mxu0 %vm3787_vm8, %v8794_v60  ;;  %v9251_v60 = vld [vmem:[#allocation24 + $0x370] sm:$0xff] }
 0x7a4   :  { %12909 = vmatpush1.bf16.msra.mxu0 %v12908_v9  ;;  %8960 = vmatprep.mubr.f32.mxu0 %v13761_v5  ;;  %v9149_v9 = vrot.slane %v18556_v15, 4 }
 0x7a5   :  { %12911 = vmatprep.subr.bf16.mxu0 %v12910_v55  ;;  %v12940_v55 = vpack.c.bf16 %v9247_v18, %v9245_v19  ;;  %v18783_v19 = vld [vmem:[#allocation3 + $0x20] ss:$2 sm:$0xff] }
 0x7a6   :  { %v9153_v48 = vsel %vm8080_vm10, %v9149_v9, %v9151_v8  ;;  %v9605_v8 = vld [vmem:[#allocation24 + $0x450] sm:$0xff]  ;;  %v9510_v31 = vrot.slane %v18783_v19, 7  ;;  %v9610_v9 = vld [vmem:[#allocation24 + $0x478] sm:$0xff]  ;;  %v9689_v49 = vrot.slane %v18783_v19, 1  ;;  %v9779_v43 = vrot.slane %v18783_v19, 2 }
 0x7a8   :  { %12913 = vmatpush1.bf16.msra.mxu0 %v12912_v3  ;;  %v9338_v3 = vld [vmem:[#allocation24 + $0x398] sm:$0xff] }
 0x7a9   :  { %12915 = vmatprep.subr.bf16.mxu0 %v12914_v35  ;;  %v12944_v35 = vpack.c.bf16 %v9251_v60, %v9249_v0  ;;  %v12946_v16 = vpack.c.bf16 %v9338_v3, %v9336_v47  ;;  %v9607_v0 = vld [vmem:[#allocation24 + $0x460] sm:$0xff]  ;;  %v9609_v60 = vld [vmem:[#allocation24 + $0x470] sm:$0xff]  ;;  %v9694_v47 = vld [vmem:[#allocation24 + $0x488] sm:$0xff] }
 0x7aa   :  { %v9696_v3 = vld [vmem:[#allocation24 + $0x498] sm:$0xff] }
 0x7ab   :  { %11850 = vmatmul.mubr.msk.f32.vlgmr.msra.gmra.mrb[84].mxu0 %vm3787_vm8, %v8883_v51  ;;  %v9339_v51 = vld [vmem:[#allocation24 + $0x3a0] sm:$0xff] }
 0x7ac   :  { %12917 = vmatpush1.bf16.msra.mxu0 %v12916_v56  ;;  %9050 = vmatprep.mubr.f32.mxu0 %v13761_v5  ;;  %v9342_v56 = vld [vmem:[#allocation24 + $0x3b8] sm:$0xff]  ;;  %v12952_v4 = vpack.c.bf16 %v9341_v63, %v9339_v51  ;;  %v9699_v51 = vld [vmem:[#allocation24 + $0x4b0] sm:$0xff] }
 0x7ad   :  { %12919 = vmatprep.subr.bf16.mxu0 %v12918_v24  ;;  %v9239_v24 = vrot.slane %v18556_v15, 5  ;;  %v12950_v62 = vpack.c.bf16 %v9342_v56, %v9340_v29  ;;  %v9700_v29 = vld [vmem:[#allocation24 + $0x4b8] sm:$0xff]  ;;  %v9599_v56 = vrot.slane %v18564_v22, 1 }
 0x7af   :  { %v9243_v42 = vsel %vm8080_vm10, %v9239_v24, %v9241_v40  ;;  %v9698_v40 = vld [vmem:[#allocation24 + $0x4a8] sm:$0xff]  ;;  %v12980_v24 = vpack.c.bf16 %v9695_v20, %v9693_v45  ;;  %v9601_v63 = vsel %vm8080_vm10, %v9599_v56, %v18783_v19  ;;  %v283_v45 = vld [vmem:[%s19017_s15 + $0x80] sm:$0xff]  ;;  %v284_v20 = vld [vmem:[%s19017_s15 + $0x88] sm:$0xff] }
 0x7b0   :  { %12921 = vmatpush1.bf16.msra.mxu0 %v12920_v41  ;;  %v9426_v41 = vld [vmem:[#allocation24 + $0x3c8] sm:$0xff]  ;;  %v13130_v56 = vpack.c.bf16 %v284_v20, %v283_v45 }
 0x7b1   :  { %12923 = vmatprep.subr.bf16.mxu0 %v12922_v7  ;;  %v9428_v7 = vld [vmem:[#allocation24 + $0x3d8] sm:$0xff] }
 0x7b2   :  { %v12954_v33 = vpack.c.bf16 %v9428_v7, %v9426_v41  ;;  %v9786_v41 = vld [vmem:[#allocation24 + $0x4d8] sm:$0xff]  ;;  %13131 = vmatprep.subr.bf16.mxu1 %v13130_v56  ;;  %v278_v56 = vld [vmem:[%s19017_s15 + $0x58] sm:$0xff] }
 0x7b3   :  { %11851 = vmatmul.mubr.msk.f32.vlgmr.msra.gmra.mrb[84].mxu0 %vm3787_vm8, %v8973_v6  ;;  %v9429_v6 = vld [vmem:[#allocation24 + $0x3e0] sm:$0xff] }
 0x7b4   :  { %12925 = vmatpush1.bf16.msra.mxu0 %v12924_v57  ;;  %9140 = vmatprep.mubr.f32.mxu0 %v13761_v5  ;;  %v9432_v57 = vld [vmem:[#allocation24 + $0x3f8] sm:$0xff]  ;;  %v12960_v46 = vpack.c.bf16 %v9431_v12, %v9429_v6  ;;  %v9789_v6 = vld [vmem:[#allocation24 + $0x4f0] sm:$0xff] }
 0x7b5   :  { %12927 = vmatprep.subr.bf16.mxu0 %v12926_v36  ;;  %v9329_v36 = vrot.slane %v18556_v15, 6  ;;  %v12958_v34 = vpack.c.bf16 %v9432_v57, %v9430_v37  ;;  %v9790_v37 = vld [vmem:[#allocation24 + $0x4f8] sm:$0xff]  ;;  %v9687_v57 = vrot.slane %v18564_v22, 2 }
 0x7b7   :  { %v9333_v50 = vsel %vm8080_vm10, %v9329_v36, %v9331_v13  ;;  %v9788_v13 = vld [vmem:[#allocation24 + $0x4e8] sm:$0xff]  ;;  %v9691_v12 = vsel %vm8080_vm10, %v9687_v57, %v9689_v49  ;;  %v287_v49 = vld [vmem:[%s19017_s15 + $0xa0] sm:$0xff]  ;;  %v9957_v57 = vrot.slane %v18564_v22, 5 }
 0x7b8   :  { %12929 = vmatpush1.bf16.msra.mxu0 %v12928_v58  ;;  %v9515_v58 = vld [vmem:[#allocation24 + $0x408] sm:$0xff] }
 0x7b9   :  { %12931 = vmatprep.subr.bf16.mxu0 %v12930_v44  ;;  %v9517_v44 = vld [vmem:[#allocation24 + $0x418] sm:$0xff] }
 0x7ba   :  { %v12962_v39 = vpack.c.bf16 %v9517_v44, %v9515_v58  ;;  %v9876_v58 = vld [vmem:[#allocation24 + $0x518] sm:$0xff] }
 0x7bb   :  { %11852 = vmatmul.mubr.msk.f32.vlgmr.msra.gmra.mrb[84].mxu0 %vm3787_vm8, %v9063_v38  ;;  %v9518_v38 = vld [vmem:[#allocation24 + $0x420] sm:$0xff] }
 0x7bc   :  { %12933 = vmatpush1.bf16.msra.mxu0 %v12932_v23  ;;  %9230 = vmatprep.mubr.f32.mxu0 %v13761_v5  ;;  %v9521_v23 = vld [vmem:[#allocation24 + $0x438] sm:$0xff]  ;;  %v12968_v54 = vpack.c.bf16 %v9520_v1, %v9518_v38  ;;  %v9879_v38 = vld [vmem:[#allocation24 + $0x530] sm:$0xff] }
 0x7bd   :  { %12935 = vmatprep.subr.bf16.mxu0 %v12934_v14  ;;  %v9419_v14 = vrot.slane %v18556_v15, 7  ;;  %v12966_v27 = vpack.c.bf16 %v9521_v23, %v9519_v53  ;;  %v9603_v15 = vld [vmem:[#allocation24 + $0x440] sm:$0xff]  ;;  %v9880_v53 = vld [vmem:[#allocation24 + $0x538] sm:$0xff]  ;;  %v9777_v23 = vrot.slane %v18564_v22, 3 }
 0x7bf   :  { %v9423_v32 = vsel %vm8080_vm10, %v9419_v14, %v9421_v30  ;;  %v9878_v30 = vld [vmem:[#allocation24 + $0x528] sm:$0xff]  ;;  %v9781_v1 = vsel %vm8080_vm10, %v9777_v23, %v9779_v43  ;;  %v10146_v43 = vld [vmem:[#allocation24 + $0x5d8] sm:$0xff] }
 0x7c0   :  { %12937 = vmatpush1.bf16.msra.mxu0 %v12936_v59  ;;  %v9604_v59 = vld [vmem:[#allocation24 + $0x448] sm:$0xff] }
 0x7c1   :  { %12939 = vmatprep.subr.bf16.mxu0 %v12938_v61  ;;  %v9606_v61 = vld [vmem:[#allocation24 + $0x458] sm:$0xff] }
 0x7c2   :  { %v12970_v18 = vpack.c.bf16 %v9606_v61, %v9604_v59  ;;  %v9966_v59 = vld [vmem:[#allocation24 + $0x558] sm:$0xff] }
 0x7c3   :  { %11853 = vmatmul.mubr.msk.f32.vlgmr.msra.gmra.mrb[84].mxu0 %vm3787_vm8, %v9153_v48  ;;  %v9512_v48 = vsel %vm8080_vm10, %v18564_v22, %v9510_v31  ;;  %v9968_v31 = vld [vmem:[#allocation24 + $0x568] sm:$0xff] }
 0x7c4   :  { %12941 = vmatpush1.bf16.msra.mxu0 %v12940_v55  ;;  %9320 = vmatprep.mubr.f32.mxu0 %v13761_v5  ;;  %v12972_v55 = vpack.c.bf16 %v9605_v8, %v9603_v15  ;;  %v9965_v15 = vld [vmem:[#allocation24 + $0x550] sm:$0xff]  ;;  %v9869_v8 = vrot.slane %v18783_v19, 3 }
 0x7c5   :  { %12943 = vmatprep.subr.bf16.mxu0 %v12942_v17  ;;  %v12974_v17 = vpack.c.bf16 %v9610_v9, %v9608_v25  ;;  %v9970_v25 = vld [vmem:[#allocation24 + $0x578] sm:$0xff]  ;;  %v9867_v9 = vrot.slane %v18564_v22, 4 }
 0x7c8   :  { %12945 = vmatpush1.bf16.msra.mxu0 %v12944_v35  ;;  %v12976_v35 = vpack.c.bf16 %v9609_v60, %v9607_v0  ;;  %v9967_v0 = vld [vmem:[#allocation24 + $0x560] sm:$0xff]  ;;  %v9969_v60 = vld [vmem:[#allocation24 + $0x570] sm:$0xff] }
 0x7c9   :  { %12947 = vmatprep.subr.bf16.mxu0 %v12946_v16  ;;  %v12978_v16 = vpack.c.bf16 %v9696_v3, %v9694_v47  ;;  %v10054_v47 = vld [vmem:[#allocation24 + $0x588] sm:$0xff]  ;;  %v10056_v3 = vld [vmem:[#allocation24 + $0x598] sm:$0xff] }
 0x7cb   :  { %11854 = vmatmul.mubr.msk.f32.vlgmr.msra.gmra.mrb[84].mxu0 %vm3787_vm8, %v9243_v42  ;;  %v9784_v42 = vld [vmem:[#allocation24 + $0x4c8] sm:$0xff] }
 0x7cc   :  { %12949 = vmatpush1.bf16.msra.mxu0 %v12948_v21  ;;  %9410 = vmatprep.mubr.f32.mxu0 %v13761_v5  ;;  %v12982_v21 = vpack.c.bf16 %v9700_v29, %v9698_v40  ;;  %v267_v40 = vld [vmem:[%s19017_s15] sm:$0xff]  ;;  %v13008_v29 = vpack.c.bf16 %v9969_v60, %v9967_v0 }
 0x7cd   :  { %12951 = vmatprep.subr.bf16.mxu0 %v12950_v62  ;;  %v9697_v62 = vld [vmem:[#allocation24 + $0x4a0] sm:$0xff]  ;;  %v10149_v0 = vld [vmem:[#allocation24 + $0x5f0] sm:$0xff] }
 0x7ce   :  { %v12984_v7 = vpack.c.bf16 %v9699_v51, %v9697_v62  ;;  %v286_v62 = vld [vmem:[%s19017_s15 + $0x98] sm:$0xff]  ;;  %v13010_v51 = vpack.c.bf16 %v10056_v3, %v10054_v47 }
 0x7cf   :  { %v294_v47 = vld [vmem:[%s19017_s15 + $0xd8] sm:$0xff] }
 0x7d0   :  { %12953 = vmatpush1.bf16.msra.mxu0 %v12952_v4  ;;  %v12986_v4 = vpack.c.bf16 %v9786_v41, %v9784_v42 }
 0x7d1   :  { %12955 = vmatprep.subr.bf16.mxu0 %v12954_v33  ;;  %v9783_v33 = vld [vmem:[#allocation24 + $0x4c0] sm:$0xff] }
 0x7d2   :  { %v12988_v36 = vpack.c.bf16 %v9785_v28, %v9783_v33  ;;  %v9959_v33 = vrot.slane %v18783_v19, 4  ;;  %v10060_v28 = vld [vmem:[#allocation24 + $0x5b8] sm:$0xff] }
 0x7d3   :  { %11855 = vmatmul.mubr.msk.f32.vlgmr.msra.gmra.mrb[84].mxu0 %vm3787_vm8, %v9333_v50  ;;  %v9874_v50 = vld [vmem:[#allocation24 + $0x508] sm:$0xff] }
 0x7d4   :  { %12957 = vmatpush1.bf16.msra.mxu0 %v12956_v11  ;;  %9500 = vmatprep.mubr.f32.mxu0 %v13761_v5  ;;  %v12990_v11 = vpack.c.bf16 %v9790_v37, %v9788_v13  ;;  %v288_v13 = vld [vmem:[%s19017_s15 + $0xa8] sm:$0xff] }
 0x7d5   :  { %12959 = vmatprep.subr.bf16.mxu0 %v12958_v34  ;;  %v9787_v34 = vld [vmem:[#allocation24 + $0x4e0] sm:$0xff] }
 0x7d6   :  { %v12992_v44 = vpack.c.bf16 %v9789_v6, %v9787_v34  ;;  %v271_v34 = vld [vmem:[%s19017_s15 + $0x20] sm:$0xff]  ;;  %v272_v6 = vld [vmem:[%s19017_s15 + $0x28] sm:$0xff] }
 0x7d8   :  { %12961 = vmatpush1.bf16.msra.mxu0 %v12960_v46  ;;  %v12994_v46 = vpack.c.bf16 %v9876_v58, %v9874_v50  ;;  %v10059_v50 = vld [vmem:[#allocation24 + $0x5b0] sm:$0xff]  ;;  %v13138_v58 = vpack.c.bf16 %v288_v13, %v287_v49  ;;  %v280_v49 = vld [vmem:[%s19017_s15 + $0x68] sm:$0xff] }
 0x7d9   :  { %12963 = vmatprep.subr.bf16.mxu0 %v12962_v39  ;;  %v9873_v39 = vld [vmem:[#allocation24 + $0x500] sm:$0xff] }
 0x7da   :  { %v12996_v14 = vpack.c.bf16 %v9875_v26, %v9873_v39  ;;  %v9961_v39 = vsel %vm8080_vm10, %v9957_v57, %v9959_v33  ;;  %v10144_v26 = vld [vmem:[#allocation24 + $0x5c8] sm:$0xff]  ;;  %v10137_v33 = vrot.slane %v18564_v22, 7  ;;  %v10238_v57 = vld [vmem:[#allocation24 + $0x630] sm:$0xff] }
 0x7db   :  { %11856 = vmatmul.mubr.msk.f32.vlgmr.msra.gmra.mrb[84].mxu0 %vm3787_vm8, %v9423_v32  ;;  %v9964_v32 = vld [vmem:[#allocation24 + $0x548] sm:$0xff] }
 0x7dc   :  { %12965 = vmatpush1.bf16.msra.mxu0 %v12964_v52  ;;  %9589 = vmatprep.mubr.f32.mxu0 %v13761_v5  ;;  %v12998_v52 = vpack.c.bf16 %v9880_v53, %v9878_v30  ;;  %v13140_v30 = vpack.c.bf16 %v272_v6, %v271_v34  ;;  %v10322_v34 = vld [vmem:[#allocation24 + $0x648] sm:$0xff]  ;;  %v10324_v6 = vld [vmem:[#allocation24 + $0x658] sm:$0xff] }
 0x7dd   :  { %12967 = vmatprep.subr.bf16.mxu0 %v12966_v27  ;;  %v9877_v27 = vld [vmem:[#allocation24 + $0x520] sm:$0xff] }
 0x7de   :  { %v13000_v61 = vpack.c.bf16 %v9879_v38, %v9877_v27  ;;  %v13018_v27 = vpack.c.bf16 %v10146_v43, %v10144_v26  ;;  %v10143_v38 = vld [vmem:[#allocation24 + $0x5c0] sm:$0xff]  ;;  %v10326_v26 = vld [vmem:[#allocation24 + $0x668] sm:$0xff]  ;;  %v10328_v43 = vld [vmem:[#allocation24 + $0x678] sm:$0xff] }
 0x7e0   :  { %12969 = vmatpush1.bf16.msra.mxu0 %v12968_v54  ;;  %v13002_v54 = vpack.c.bf16 %v9966_v59, %v9964_v32  ;;  %v10148_v32 = vld [vmem:[#allocation24 + $0x5e8] sm:$0xff]  ;;  %v10049_v59 = vrot.slane %v18783_v19, 5 }
 0x7e1   :  { %12971 = vmatprep.subr.bf16.mxu0 %v12970_v18  ;;  %v9963_v18 = vld [vmem:[#allocation24 + $0x540] sm:$0xff] }
 0x7e3   :  { %11857 = vmatmul.mubr.msk.f32.vlgmr.msra.gmra.mrb[84].mxu0 %vm3787_vm8, %v9512_v48  ;;  %v9871_v48 = vsel %vm8080_vm10, %v9867_v9, %v9869_v8  ;;  %v10047_v8 = vrot.slane %v18564_v22, 6  ;;  %v275_v9 = vld [vmem:[%s19017_s15 + $0x40] sm:$0xff]  ;;  %v18909_v22 = vld [vmem:[#allocation3 + $0x30] ss:$2 sm:$0xff] }
 0x7e4   :  { %12973 = vmatpush1.bf16.msra.mxu0 %v12972_v55  ;;  %9678 = vmatprep.mubr.f32.mxu0 %v13761_v5  ;;  %v13004_v55 = vpack.c.bf16 %v9965_v15, %v9963_v18  ;;  %v292_v18 = vld [vmem:[%s19017_s15 + $0xc8] sm:$0xff] }
 0x7e5   :  { %12975 = vmatprep.subr.bf16.mxu0 %v12974_v17  ;;  %v13006_v17 = vpack.c.bf16 %v9970_v25, %v9968_v31  ;;  %v10147_v25 = vld [vmem:[#allocation24 + $0x5e0] sm:$0xff]  ;;  %v10051_v3 = vsel %vm8080_vm10, %v10047_v8, %v10049_v59 }
 0x7e6   :  { %v13024_v20 = vpack.c.bf16 %v10149_v0, %v10147_v25  ;;  %v10411_v59 = vld [vmem:[#allocation24 + $0x680] sm:$0xff]  ;;  %v10504_v0 = vld [vmem:[#allocation24 + $0x6d8] sm:$0xff] }
 0x7e7   :  { %v10415_v25 = vld [vmem:[#allocation24 + $0x6a0] sm:$0xff] }
 0x7e8   :  { %12977 = vmatpush1.bf16.msra.mxu0 %v12976_v35  ;;  %v10053_v35 = vld [vmem:[#allocation24 + $0x580] sm:$0xff] }
 0x7e9   :  { %12979 = vmatprep.subr.bf16.mxu0 %v12978_v16  ;;  %v10055_v16 = vld [vmem:[#allocation24 + $0x590] sm:$0xff] }
 0x7eb   :  { %11858 = vmatmul.mubr.msk.f32.vlgmr.msra.gmra.mrb[84].mxu0 %vm3787_vm8, %v9601_v63  ;;  %v10058_v63 = vld [vmem:[#allocation24 + $0x5a8] sm:$0xff] }
 0x7ec   :  { %12981 = vmatpush1.bf16.msra.mxu0 %v12980_v24  ;;  %9768 = vmatprep.mubr.f32.mxu0 %v13761_v5  ;;  %v268_v24 = vld [vmem:[%s19017_s15 + $0x8] sm:$0xff] }
 0x7ed   :  { %12983 = vmatprep.subr.bf16.mxu0 %v12982_v21  ;;  %v285_v21 = vld [vmem:[%s19017_s15 + $0x90] sm:$0xff]  ;;  %v13132_v42 = vpack.c.bf16 %v268_v24, %v267_v40 }
 0x7ee   :  { %v13134_v41 = vpack.c.bf16 %v286_v62, %v285_v21  ;;  %v10232_v21 = vld [vmem:[#allocation24 + $0x600] sm:$0xff]  ;;  %v10234_v62 = vld [vmem:[#allocation24 + $0x610] sm:$0xff] }
 0x7ef   :  { %13133 = vmatpush3.bf16.msra.mxu1 %v13132_v42  ;;  %v10239_v42 = vld [vmem:[#allocation24 + $0x638] sm:$0xff] }
 0x7f0   :  { %12985 = vmatpush1.bf16.msra.mxu0 %v12984_v7  ;;  %v269_v7 = vld [vmem:[%s19017_s15 + $0x10] sm:$0xff]  ;;  %13135 = vmatprep.subr.bf16.mxu1 %v13134_v41  ;;  %v295_v41 = vld [vmem:[%s19017_s15 + $0xe0] sm:$0xff] }
 0x7f1   :  { %12987 = vmatprep.subr.bf16.mxu0 %v12986_v4  ;;  %v270_v4 = vld [vmem:[%s19017_s15 + $0x18] sm:$0xff] }
 0x7f2   :  { %v13136_v37 = vpack.c.bf16 %v270_v4, %v269_v7  ;;  %v296_v7 = vld [vmem:[%s19017_s15 + $0xe8] sm:$0xff] }
 0x7f3   :  { %11859 = vmatmul.mubr.msk.f32.vlgmr.msra.gmra.mrb[84].mxu0 %vm3787_vm8, %v9691_v12  ;;  %v13014_v12 = vpack.c.bf16 %v10060_v28, %v10058_v63  ;;  %v10139_v63 = vrot.slane %v18783_v19, 6  ;;  %v13028_v28 = vpack.c.bf16 %v10234_v62, %v10232_v21  ;;  %v279_v19 = vld [vmem:[%s19017_s15 + $0x60] sm:$0xff]  ;;  %v10592_v62 = vld [vmem:[#allocation24 + $0x708] sm:$0xff] }
 0x7f4   :  { %12989 = vmatpush1.bf16.msra.mxu0 %v12988_v36  ;;  %9858 = vmatprep.mubr.f32.mxu0 %v13761_v5  ;;  %v13012_v36 = vpack.c.bf16 %v10055_v16, %v10053_v35  ;;  %v10233_v35 = vld [vmem:[#allocation24 + $0x608] sm:$0xff]  ;;  %v10235_v16 = vld [vmem:[#allocation24 + $0x618] sm:$0xff] }
 0x7f5   :  { %12991 = vmatprep.subr.bf16.mxu0 %v12990_v11  ;;  %v10057_v11 = vld [vmem:[#allocation24 + $0x5a0] sm:$0xff]  ;;  %13137 = vmatpush3.bf16.msra.mxu1 %v13136_v37  ;;  %v13026_v24 = vpack.c.bf16 %v10235_v16, %v10233_v35  ;;  %v10407_v35 = vrot.slane %v18909_v22, 1  ;;  %v10506_v16 = vld [vmem:[#allocation24 + $0x6e8] sm:$0xff] }
 0x7f6   :  { %v13016_v53 = vpack.c.bf16 %v10059_v50, %v10057_v11  ;;  %13139 = vmatprep.subr.bf16.mxu1 %v13138_v58  ;;  %v10236_v37 = vld [vmem:[#allocation24 + $0x620] sm:$0xff]  ;;  %v10141_v11 = vsel %vm8080_vm10, %v10137_v33, %v10139_v63  ;;  %v13034_v58 = vpack.c.bf16 %v10324_v6, %v10322_v34  ;;  %v10596_v33 = vld [vmem:[#allocation24 + $0x728] sm:$0xff]  ;;  %v10684_v34 = vld [vmem:[#allocation24 + $0x758] sm:$0xff] }
 0x7f7   :  { %v13032_v50 = vpack.c.bf16 %v10238_v57, %v10236_v37  ;;  %v10595_v37 = vld [vmem:[#allocation24 + $0x720] sm:$0xff]  ;;  %v10597_v57 = vld [vmem:[#allocation24 + $0x730] sm:$0xff] }
 0x7f8   :  { %12993 = vmatpush1.bf16.msra.mxu0 %v12992_v44  ;;  %v289_v44 = vld [vmem:[%s19017_s15 + $0xb0] sm:$0xff]  ;;  %v13064_v6 = vpack.c.bf16 %v10597_v57, %v10595_v37  ;;  %v10956_v57 = vld [vmem:[#allocation24 + $0x830] sm:$0xff] }
 0x7f9   :  { %12995 = vmatprep.subr.bf16.mxu0 %v12994_v46  ;;  %v290_v46 = vld [vmem:[%s19017_s15 + $0xb8] sm:$0xff]  ;;  %13141 = vmatpush3.bf16.msra.mxu1 %v13140_v30  ;;  %v10954_v37 = vld [vmem:[#allocation24 + $0x820] sm:$0xff] }
 0x7fa   :  { %v13142_v23 = vpack.c.bf16 %v290_v46, %v289_v44  ;;  %v10321_v44 = vld [vmem:[#allocation24 + $0x640] sm:$0xff]  ;;  %v10323_v46 = vld [vmem:[#allocation24 + $0x650] sm:$0xff] }
 0x7fb   :  { %11860 = vmatmul.mubr.msk.f32.vlgmr.msra.gmra.mrb[84].mxu0 %vm3787_vm8, %v9781_v1  ;;  %v10145_v1 = vld [vmem:[#allocation24 + $0x5d0] sm:$0xff]  ;;  %v13036_v30 = vpack.c.bf16 %v10323_v46, %v10321_v44  ;;  %v10587_v44 = vrot.slane %v18909_v22, 3  ;;  %v10686_v46 = vld [vmem:[#allocation24 + $0x768] sm:$0xff] }
 0x7fc   :  { %12997 = vmatpush1.bf16.msra.mxu0 %v12996_v14  ;;  %9948 = vmatprep.mubr.f32.mxu0 %v13761_v5  ;;  %v273_v14 = vld [vmem:[%s19017_s15 + $0x30] sm:$0xff]  ;;  %v13020_v31 = vpack.c.bf16 %v10145_v1, %v10143_v38  ;;  %v10414_v38 = vld [vmem:[#allocation24 + $0x698] sm:$0xff] }
 0x7fd   :  { %12999 = vmatprep.subr.bf16.mxu0 %v12998_v52  ;;  %v274_v52 = vld [vmem:[%s19017_s15 + $0x38] sm:$0xff]  ;;  %13143 = vmatprep.subr.bf16.mxu1 %v13142_v23  ;;  %v10325_v23 = vld [vmem:[#allocation24 + $0x660] sm:$0xff] }
 0x7fe   :  { %v13144_v15 = vpack.c.bf16 %v274_v52, %v273_v14  ;;  %v10327_v14 = vld [vmem:[#allocation24 + $0x670] sm:$0xff] }
 0x7ff   :  { %v13040_v1 = vpack.c.bf16 %v10327_v14, %v10325_v23  ;;  %v10687_v23 = vld [vmem:[#allocation24 + $0x770] sm:$0xff] }
 0x800   :  { %13001 = vmatpush1.bf16.msra.mxu0 %v13000_v61  ;;  %v10150_v61 = vld [vmem:[#allocation24 + $0x5f8] sm:$0xff]  ;;  %13145 = vmatpush3.bf16.msra.mxu1 %v13144_v15  ;;  %v10317_v15 = vrot.slane %v18578_v10, 1 }
 0x801   :  { %13003 = vmatprep.subr.bf16.mxu0 %v13002_v54  ;;  %v291_v54 = vld [vmem:[%s19017_s15 + $0xc0] sm:$0xff] }
 0x802   :  { %v13146_v60 = vpack.c.bf16 %v292_v18, %v291_v54  ;;  %v10416_v54 = vld [vmem:[#allocation24 + $0x6a8] sm:$0xff]  ;;  %v10418_v18 = vld [vmem:[#allocation24 + $0x6b8] sm:$0xff] }
 0x803   :  { %11861 = vmatmul.mubr.msk.f32.vlgmr.msra.gmra.mrb[84].mxu0 %vm3787_vm8, %v9871_v48  ;;  %v293_v48 = vld [vmem:[%s19017_s15 + $0xd0] sm:$0xff] }
 0x804   :  { %13005 = vmatpush1.bf16.msra.mxu0 %v13004_v55  ;;  %10038 = vmatprep.mubr.f32.mxu0 %v13761_v5  ;;  %v276_v55 = vld [vmem:[%s19017_s15 + $0x48] sm:$0xff]  ;;  %v13150_v40 = vpack.c.bf16 %v294_v47, %v293_v48 }
 0x805   :  { %13007 = vmatprep.subr.bf16.mxu0 %v13006_v17  ;;  %v13022_v17 = vpack.c.bf16 %v10150_v61, %v10148_v32  ;;  %v13148_v45 = vpack.c.bf16 %v276_v55, %v275_v9  ;;  %13147 = vmatprep.subr.bf16.mxu1 %v13146_v60  ;;  %v10413_v61 = vld [vmem:[#allocation24 + $0x690] sm:$0xff]  ;;  %v10319_v55 = vsel %vm8080_vm10, %v10317_v15, %v18909_v22  ;;  %v10501_v47 = vld [vmem:[#allocation24 + $0x6c0] sm:$0xff]  ;;  %v10675_v15 = vrot.slane %v18578_v10, 5 }
 0x806   :  { %v13044_v8 = vpack.c.bf16 %v10413_v61, %v10411_v59  ;;  %v10417_v9 = vld [vmem:[#allocation24 + $0x6b0] sm:$0xff]  ;;  %v10677_v61 = vrot.slane %v18909_v22, 4 }
 0x807   :  { %13149 = vmatpush3.bf16.msra.mxu1 %v13148_v45  ;;  %v13048_v60 = vpack.c.bf16 %v10417_v9, %v10415_v25  ;;  %v10508_v45 = vld [vmem:[#allocation24 + $0x6f8] sm:$0xff]  ;;  %v10773_v59 = vld [vmem:[#allocation24 + $0x790] sm:$0xff]  ;;  %v10775_v25 = vld [vmem:[#allocation24 + $0x7a0] sm:$0xff] }
 0x808   :  { %13009 = vmatpush1.bf16.msra.mxu0 %v13008_v29  ;;  %v277_v29 = vld [vmem:[%s19017_s15 + $0x50] sm:$0xff]  ;;  %13151 = vmatprep.subr.bf16.mxu1 %v13150_v40  ;;  %v10777_v9 = vld [vmem:[#allocation24 + $0x7b0] sm:$0xff] }
 0x809   :  { %13011 = vmatprep.subr.bf16.mxu0 %v13010_v51  ;;  %v10237_v51 = vld [vmem:[#allocation24 + $0x628] sm:$0xff]  ;;  %v13152_v4 = vpack.c.bf16 %v278_v56, %v277_v29  ;;  %v13054_v29 = vpack.c.bf16 %v10508_v45, %v10506_v16  ;;  %v10505_v56 = vld [vmem:[#allocation24 + $0x6e0] sm:$0xff]  ;;  %v10868_v45 = vld [vmem:[#allocation24 + $0x7f8] sm:$0xff] }
 0x80a   :  { %v13030_v13 = vpack.c.bf16 %v10239_v42, %v10237_v51  ;;  %v10594_v51 = vld [vmem:[#allocation24 + $0x718] sm:$0xff]  ;;  %v10866_v16 = vld [vmem:[#allocation24 + $0x7e8] sm:$0xff] }
 0x80b   :  { %11862 = vmatmul.mubr.msk.f32.vlgmr.msra.gmra.mrb[84].mxu0 %vm3787_vm8, %v9961_v39  ;;  %13153 = vmatpush3.bf16.msra.mxu1 %v13152_v4  ;;  %v10228_v39 = vrot.slane %v18909_v22, 7  ;;  %v13058_v42 = vpack.c.bf16 %v10594_v51, %v10592_v62  ;;  %v10497_v4 = vrot.slane %v18909_v22, 2  ;;  %v10951_v62 = vld [vmem:[#allocation24 + $0x808] sm:$0xff]  ;;  %v10953_v51 = vld [vmem:[#allocation24 + $0x818] sm:$0xff] }
 0x80c   :  { %13013 = vmatpush1.bf16.msra.mxu0 %v13012_v36  ;;  %10128 = vmatprep.mubr.f32.mxu0 %v13761_v5  ;;  %v13154_v36 = vpack.c.bf16 %v296_v7, %v295_v41  ;;  %v10591_v41 = vld [vmem:[#allocation24 + $0x700] sm:$0xff]  ;;  %v10593_v7 = vld [vmem:[#allocation24 + $0x710] sm:$0xff] }
 0x80d   :  { %13015 = vmatprep.subr.bf16.mxu0 %v13014_v12  ;;  %v13156_v12 = vpack.c.bf16 %v280_v49, %v279_v19  ;;  %v10230_v52 = vsel %vm8080_vm10, %v18578_v10, %v10228_v39  ;;  %v10495_v19 = vrot.slane %v18578_v10, 3  ;;  %v13060_v49 = vpack.c.bf16 %v10593_v7, %v10591_v41  ;;  %v10688_v39 = vld [vmem:[#allocation24 + $0x778] sm:$0xff]  ;;  %v10950_v41 = vld [vmem:[#allocation24 + $0x800] sm:$0xff]  ;;  %v10952_v7 = vld [vmem:[#allocation24 + $0x810] sm:$0xff] }
 0x80e   :  { %13155 = vmatprep.subr.bf16.mxu1 %v13154_v36 }
 0x80f   :  { %13157 = vmatpush3.bf16.msra.mxu1 %v13156_v12  ;;  %v10499_v36 = vsel %vm8080_vm10, %v10495_v19, %v10497_v4  ;;  %v10857_v4 = vrot.slane %v18909_v22, 6  ;;  %v10855_v19 = vrot.slane %v18578_v10, 7 }
 0x810   :  { %13017 = vmatpush1.bf16.msra.mxu0 %v13016_v53  ;;  %v13038_v53 = vpack.c.bf16 %v10328_v43, %v10326_v26  ;;  %v10585_v26 = vrot.slane %v18578_v10, 4 }
 0x811   :  { %13019 = vmatprep.subr.bf16.mxu0 %v13018_v27  ;;  %v10412_v27 = vld [vmem:[#allocation24 + $0x688] sm:$0xff] }
 0x812   :  { %v13042_v32 = vpack.c.bf16 %v10414_v38, %v10412_v27  ;;  %v10589_v14 = vsel %vm8080_vm10, %v10585_v26, %v10587_v44  ;;  %v10774_v27 = vld [vmem:[#allocation24 + $0x798] sm:$0xff]  ;;  %v11044_v44 = vld [vmem:[#allocation24 + $0x868] sm:$0xff] }
 0x813   :  { %11863 = vmatmul.mubr.msk.f32.vlgmr.msra.gmra.mrb[84].mxu0 %vm3787_vm8, %v10051_v3  ;;  %v10503_v3 = vld [vmem:[#allocation24 + $0x6d0] sm:$0xff] }
 0x814   :  { %13021 = vmatpush1.bf16.msra.mxu0 %v13020_v31  ;;  %10218 = vmatprep.mubr.f32.mxu0 %v13761_v5  ;;  %v13046_v31 = vpack.c.bf16 %v10418_v18, %v10416_v54  ;;  %v13052_v40 = vpack.c.bf16 %v10503_v3, %v10501_v47  ;;  %v10776_v54 = vld [vmem:[#allocation24 + $0x7a8] sm:$0xff]  ;;  %v10778_v18 = vld [vmem:[#allocation24 + $0x7b8] sm:$0xff]  ;;  %v10861_v47 = vld [vmem:[#allocation24 + $0x7c0] sm:$0xff] }
 0x815   :  { %13023 = vmatprep.subr.bf16.mxu0 %v13022_v17  ;;  %v10502_v17 = vld [vmem:[#allocation24 + $0x6c8] sm:$0xff]  ;;  %v10863_v3 = vld [vmem:[#allocation24 + $0x7d0] sm:$0xff] }
 0x816   :  { %v13050_v48 = vpack.c.bf16 %v10504_v0, %v10502_v17  ;;  %v10862_v17 = vld [vmem:[#allocation24 + $0x7c8] sm:$0xff]  ;;  %v10864_v0 = vld [vmem:[#allocation24 + $0x7d8] sm:$0xff] }
 0x818   :  { %13025 = vmatpush1.bf16.msra.mxu0 %v13024_v20  ;;  %v10405_v20 = vrot.slane %v18578_v10, 2 }
 0x819   :  { %13027 = vmatprep.subr.bf16.mxu0 %v13026_v24  ;;  %v10507_v24 = vld [vmem:[#allocation24 + $0x6f0] sm:$0xff] }
 0x81a   :  { %v10409_v21 = vsel %vm8080_vm10, %v10405_v20, %v10407_v35  ;;  %v13056_v63 = vpack.c.bf16 %v10507_v24, %v10505_v56  ;;  %v10767_v35 = vrot.slane %v18909_v22, 5  ;;  %v10765_v20 = vrot.slane %v18578_v10, 6  ;;  %v10865_v56 = vld [vmem:[#allocation24 + $0x7e0] sm:$0xff]  ;;  %v10867_v24 = vld [vmem:[#allocation24 + $0x7f0] sm:$0xff] }
 0x81b   :  { %11864 = vmatmul.mubr.msk.f32.vlgmr.msra.gmra.mrb[84].mxu0 %vm3787_vm8, %v10141_v11  ;;  %v10682_v11 = vld [vmem:[#allocation24 + $0x748] sm:$0xff]  ;;  %v13096_v22 = vpack.c.bf16 %v10956_v57, %v10954_v37  ;;  %v11039_v10 = vld [vmem:[#allocation24 + $0x840] sm:$0xff] }
 0x81c   :  { %13029 = vmatpush1.bf16.msra.mxu0 %v13028_v28  ;;  %10307 = vmatprep.mubr.f32.mxu0 %v13761_v5  ;;  %v10598_v28 = vld [vmem:[#allocation24 + $0x738] sm:$0xff]  ;;  %v13066_v12 = vpack.c.bf16 %v10684_v34, %v10682_v11  ;;  %v11040_v11 = vld [vmem:[#allocation24 + $0x848] sm:$0xff] }
 0x81d   :  { %13031 = vmatprep.subr.bf16.mxu0 %v13030_v13  ;;  %v13062_v13 = vpack.c.bf16 %v10598_v28, %v10596_v33  ;;  %v10955_v33 = vld [vmem:[#allocation24 + $0x828] sm:$0xff]  ;;  %v10957_v28 = vld [vmem:[#allocation24 + $0x838] sm:$0xff] }
 0x81e   :  { %v11042_v34 = vld [vmem:[#allocation24 + $0x858] sm:$0xff] }
 0x820   :  { %13033 = vmatpush1.bf16.msra.mxu0 %v13032_v50  ;;  %v10681_v50 = vld [vmem:[#allocation24 + $0x740] sm:$0xff] }
 0x821   :  { %13035 = vmatprep.subr.bf16.mxu0 %v13034_v58  ;;  %v10683_v58 = vld [vmem:[#allocation24 + $0x750] sm:$0xff] }
 0x822   :  { %v13068_v43 = vpack.c.bf16 %v10683_v58, %v10681_v50  ;;  %v11041_v50 = vld [vmem:[#allocation24 + $0x850] sm:$0xff] }
 0x823   :  { %11865 = vmatmul.mubr.msk.f32.vlgmr.msra.gmra.mrb[84].mxu0 %vm3787_vm8, %v10230_v52  ;;  %v10772_v52 = vld [vmem:[#allocation24 + $0x788] sm:$0xff] }
 0x824   :  { %13037 = vmatpush1.bf16.msra.mxu0 %v13036_v30  ;;  %10396 = vmatprep.mubr.f32.mxu0 %v13761_v5  ;;  %v13070_v30 = vpack.c.bf16 %v10688_v39, %v10686_v46  ;;  %v11046_v46 = vld [vmem:[#allocation24 + $0x878] sm:$0xff]  ;;  %v13100_v39 = vpack.c.bf16 %v11041_v50, %v11039_v10  ;;  %v11394_v10 = vlaneseq }
 0x825   :  { %13039 = vmatprep.subr.bf16.mxu0 %v13038_v53  ;;  %v10685_v53 = vld [vmem:[#allocation24 + $0x760] sm:$0xff]  ;;  %v13102_v26 = vpack.c.bf16 %v11046_v46, %v11044_v44 }
 0x826   :  { %v13072_v38 = vpack.c.bf16 %v10687_v23, %v10685_v53  ;;  %v11130_v23 = vld [vmem:[#allocation24 + $0x888] sm:$0xff]  ;;  %v11395_v50 = vshrl.u32 %v11394_v10, 7  ;;  %v266_v44 = vld [vmem:[#allocation25] sm:$0x3] }
 0x828   :  { %13041 = vmatpush1.bf16.msra.mxu0 %v13040_v1  ;;  %v13074_v1 = vpack.c.bf16 %v10774_v27, %v10772_v52  ;;  %v11396_v46 = vsub.s32 0, %v11395_v50 }
 0x829   :  { %13043 = vmatprep.subr.bf16.mxu0 %v13042_v32  ;;  %v10771_v32 = vld [vmem:[#allocation24 + $0x780] sm:$0xff] }
 0x82b   :  { %11866 = vmatmul.mubr.msk.f32.vlgmr.msra.gmra.mrb[84].mxu0 %vm3787_vm8, %v10319_v55  ;;  %v10679_v55 = vsel %vm8080_vm10, %v10675_v15, %v10677_v61  ;;  %v11035_v61 = vrot.slane %v18593_v2, 1  ;;  %v11133_v15 = vld [vmem:[#allocation24 + $0x8a0] sm:$0xff] }
 0x82c   :  { %13045 = vmatpush1.bf16.msra.mxu0 %v13044_v8  ;;  %10486 = vmatprep.mubr.f32.mxu0 %v13761_v5  ;;  %v13076_v8 = vpack.c.bf16 %v10773_v59, %v10771_v32  ;;  %v11134_v32 = vld [vmem:[#allocation24 + $0x8a8] sm:$0xff]  ;;  %v11136_v59 = vld [vmem:[#allocation24 + $0x8b8] sm:$0xff] }
 0x82d   :  { %13047 = vmatprep.subr.bf16.mxu0 %v13046_v31  ;;  %v13078_v31 = vpack.c.bf16 %v10778_v18, %v10776_v54  ;;  %v13110_v18 = vpack.c.bf16 %v11136_v59, %v11134_v32 }
 0x830   :  { %13049 = vmatpush1.bf16.msra.mxu0 %v13048_v60  ;;  %v13080_v60 = vpack.c.bf16 %v10777_v9, %v10775_v25  ;;  %v11220_v25 = vld [vmem:[#allocation24 + $0x8c8] sm:$0xff]  ;;  %v11222_v9 = vld [vmem:[#allocation24 + $0x8d8] sm:$0xff] }
 0x831   :  { %13051 = vmatprep.subr.bf16.mxu0 %v13050_v48  ;;  %v13082_v48 = vpack.c.bf16 %v10864_v0, %v10862_v17  ;;  %v13114_v17 = vpack.c.bf16 %v11222_v9, %v11220_v25  ;;  %v11219_v0 = vld [vmem:[#allocation24 + $0x8c0] sm:$0xff] }
 0x833   :  { %11867 = vmatmul.mubr.msk.f32.vlgmr.msra.gmra.mrb[84].mxu0 %vm3787_vm8, %v10409_v21  ;;  %v10769_v21 = vsel %vm8080_vm10, %v10765_v20, %v10767_v35  ;;  %v11123_v35 = vrot.slane %v18593_v2, 2  ;;  %v11223_v20 = vld [vmem:[#allocation24 + $0x8e0] sm:$0xff] }
 0x834   :  { %13053 = vmatpush1.bf16.msra.mxu0 %v13052_v40  ;;  %10576 = vmatprep.mubr.f32.mxu0 %v13761_v5  ;;  %v13084_v40 = vpack.c.bf16 %v10863_v3, %v10861_v47  ;;  %v11224_v47 = vld [vmem:[#allocation24 + $0x8e8] sm:$0xff]  ;;  %v11226_v3 = vld [vmem:[#allocation24 + $0x8f8] sm:$0xff] }
 0x835   :  { %13055 = vmatprep.subr.bf16.mxu0 %v13054_v29  ;;  %v13086_v29 = vpack.c.bf16 %v10868_v45, %v10866_v16  ;;  %v13118_v45 = vpack.c.bf16 %v11226_v3, %v11224_v47 }
 0x838   :  { %13057 = vmatpush1.bf16.msra.mxu0 %v13056_v63  ;;  %v13088_v63 = vpack.c.bf16 %v10867_v24, %v10865_v56  ;;  %v11310_v56 = vld [vmem:[#allocation24 + $0x908] sm:$0xff]  ;;  %v11312_v24 = vld [vmem:[#allocation24 + $0x918] sm:$0xff] }
 0x839   :  { %13059 = vmatprep.subr.bf16.mxu0 %v13058_v42  ;;  %v13090_v42 = vpack.c.bf16 %v10953_v51, %v10951_v62  ;;  %v13122_v62 = vpack.c.bf16 %v11312_v24, %v11310_v56  ;;  %v11309_v51 = vld [vmem:[#allocation24 + $0x900] sm:$0xff] }
 0x83b   :  { %11868 = vmatmul.mubr.msk.f32.vlgmr.msra.gmra.mrb[84].mxu0 %vm3787_vm8, %v10499_v36  ;;  %v10859_v36 = vsel %vm8080_vm10, %v10855_v19, %v10857_v4  ;;  %v11213_v4 = vrot.slane %v18593_v2, 3  ;;  %v11313_v19 = vld [vmem:[#allocation24 + $0x920] sm:$0xff] }
 0x83c   :  { %13061 = vmatpush1.bf16.msra.mxu0 %v13060_v49  ;;  %10666 = vmatprep.mubr.f32.mxu0 %v13761_v5  ;;  %v13092_v49 = vpack.c.bf16 %v10952_v7, %v10950_v41  ;;  %v11314_v41 = vld [vmem:[#allocation24 + $0x928] sm:$0xff]  ;;  %v11316_v7 = vld [vmem:[#allocation24 + $0x938] sm:$0xff] }
 0x83d   :  { %13063 = vmatprep.subr.bf16.mxu0 %v13062_v13  ;;  %v13094_v13 = vpack.c.bf16 %v10957_v28, %v10955_v33  ;;  %v13126_v28 = vpack.c.bf16 %v11316_v7, %v11314_v41 }
 0x840   :  { %13065 = vmatpush1.bf16.msra.mxu0 %v13064_v6  ;;  %v18951_v6 = vld [vmem:[#allocation3 + $0x40] ss:$2 sm:$0x1f] }
 0x841   :  { %13067 = vmatprep.subr.bf16.mxu0 %v13066_v12  ;;  %v13098_v12 = vpack.c.bf16 %v11042_v34, %v11040_v11  ;;  %v10946_v58 = vrot.slane %v18951_v6, 7  ;;  %v11305_v57 = vrot.slane %v18951_v6, 3  ;;  %v297_v34 = vld [vmem:[%s19017_s15 + $0xf0] sm:$0xff] }
 0x843   :  { %11869 = vmatmul.mubr.msk.f32.vlgmr.msra.gmra.mrb[84].mxu0 %vm3787_vm8, %v10589_v14  ;;  %v10948_v53 = vsel %vm8080_vm10, %v18593_v2, %v10946_v58  ;;  %v11132_v14 = vld [vmem:[#allocation24 + $0x898] sm:$0xff]  ;;  %v11400_v58 = vsub.s32 1, %v11395_v50 }
 0x844   :  { %13069 = vmatpush1.bf16.msra.mxu0 %v13068_v43  ;;  %10756 = vmatprep.mubr.f32.mxu0 %v13761_v5  ;;  %v11043_v43 = vld [vmem:[#allocation24 + $0x860] sm:$0xff]  ;;  %v13106_v27 = vpack.c.bf16 %v11132_v14, %v11130_v23 }
 0x845   :  { %13071 = vmatprep.subr.bf16.mxu0 %v13070_v30  ;;  %v11045_v30 = vld [vmem:[#allocation24 + $0x870] sm:$0xff] }
 0x846   :  { %v13104_v52 = vpack.c.bf16 %v11045_v30, %v11043_v43 }
 0x848   :  { %13073 = vmatpush1.bf16.msra.mxu0 %v13072_v38  ;;  %v11129_v38 = vld [vmem:[#allocation24 + $0x880] sm:$0xff] }
 0x849   :  { %13075 = vmatprep.subr.bf16.mxu0 %v13074_v1  ;;  %v11131_v1 = vld [vmem:[#allocation24 + $0x890] sm:$0xff] }
 0x84a   :  { %v13108_v54 = vpack.c.bf16 %v11131_v1, %v11129_v38 }
 0x84b   :  { %11870 = vmatmul.mubr.msk.f32.vlgmr.msra.gmra.mrb[84].mxu0 %vm3787_vm8, %v10679_v55 }
 0x84c   :  { %13077 = vmatpush1.bf16.msra.mxu0 %v13076_v8  ;;  %10846 = vmatprep.mubr.f32.mxu0 %v13761_v5  ;;  %v11135_v8 = vld [vmem:[#allocation24 + $0x8b0] sm:$0xff] }
 0x84d   :  { %13079 = vmatprep.subr.bf16.mxu0 %v13078_v31  ;;  %v11037_v31 = vsel %vm8080_vm10, %v11035_v61, %v18951_v6  ;;  %v13112_v55 = vpack.c.bf16 %v11135_v8, %v11133_v15 }
 0x850   :  { %13081 = vmatpush1.bf16.msra.mxu0 %v13080_v60  ;;  %v11221_v60 = vld [vmem:[#allocation24 + $0x8d0] sm:$0xff] }
 0x851   :  { %13083 = vmatprep.subr.bf16.mxu0 %v13082_v48  ;;  %v11125_v48 = vrot.slane %v18951_v6, 1  ;;  %v13116_v16 = vpack.c.bf16 %v11221_v60, %v11219_v0 }
 0x853   :  { %11871 = vmatmul.mubr.msk.f32.vlgmr.msra.gmra.mrb[84].mxu0 %vm3787_vm8, %v10769_v21 }
 0x854   :  { %13085 = vmatpush1.bf16.msra.mxu0 %v13084_v40  ;;  %10936 = vmatprep.mubr.f32.mxu0 %v13761_v5  ;;  %v11225_v40 = vld [vmem:[#allocation24 + $0x8f0] sm:$0xff] }
 0x855   :  { %13087 = vmatprep.subr.bf16.mxu0 %v13086_v29  ;;  %v11127_v29 = vsel %vm8080_vm10, %v11123_v35, %v11125_v48  ;;  %v13120_v21 = vpack.c.bf16 %v11225_v40, %v11223_v20 }
 0x858   :  { %13089 = vmatpush1.bf16.msra.mxu0 %v13088_v63  ;;  %v11311_v63 = vld [vmem:[#allocation24 + $0x910] sm:$0xff] }
 0x859   :  { %13091 = vmatprep.subr.bf16.mxu0 %v13090_v42  ;;  %v11215_v42 = vrot.slane %v18951_v6, 2  ;;  %v13124_v33 = vpack.c.bf16 %v11311_v63, %v11309_v51 }
 0x85b   :  { %11872 = vmatmul.mubr.msk.f32.vlgmr.msra.gmra.mrb[84].mxu0 %vm3787_vm8, %v10859_v36  ;;  %v11303_v36 = vrot.slane %v18593_v2, 4  ;;  %v282_v2 = vld [vmem:[%s19017_s15 + $0x78] sm:$0xff] }
 0x85c   :  { %13093 = vmatpush1.bf16.msra.mxu0 %v13092_v49  ;;  %11025 = vmatprep.mubr.f32.mxu0 %v13761_v5  ;;  %v11315_v49 = vld [vmem:[#allocation24 + $0x930] sm:$0xff] }
 0x85d   :  { %13095 = vmatprep.subr.bf16.mxu0 %v13094_v13  ;;  %v11217_v13 = vsel %vm8080_vm10, %v11213_v4, %v11215_v42  ;;  %v13128_v37 = vpack.c.bf16 %v11315_v49, %v11313_v19  ;;  %v11307_v11 = vsel %vm8080_vm10, %v11303_v36, %v11305_v57 }
 0x860   :  { %13097 = vmatpush1.bf16.msra.mxu0 %v13096_v22  ;;  %v298_v22 = vld [vmem:[%s19017_s15 + $0xf8] sm:$0xff] }
 0x861   :  { %13099 = vmatprep.subr.bf16.mxu0 %v13098_v12  ;;  %v13158_v6 = vpack.c.bf16 %v298_v22, %v297_v34 }
 0x863   :  { %11873 = vmatmul.mubr.msk.f32.vlgmr.msra.gmra.mrb[84].mxu0 %vm3787_vm8, %v10948_v53  ;;  %13159 = vmatprep.subr.bf16.mxu1 %v13158_v6 }
 0x864   :  { %13101 = vmatpush1.bf16.msra.mxu0 %v13100_v39  ;;  %11114 = vmatprep.mubr.f32.mxu0 %v13761_v5  ;;  %v11401_v39 = vrot.slane %v266_v44, %v11400_v58 }
 0x865   :  { %13103 = vmatprep.subr.bf16.mxu0 %v13102_v26  ;;  %v11397_v26 = vrot.slane %v266_v44, %v11396_v46 }
 0x868   :  { %13105 = vmatpush1.bf16.msra.mxu0 %v13104_v52  ;;  %v11878_v52 = vld [vmem:[#allocation27] ss:$0 sm:$0xff] }
 0x869   :  { %13107 = vmatprep.subr.bf16.mxu0 %v13106_v27 }
 0x86b   :  { %11874 = vmatmul.mubr.msk.f32.vlgmr.msra.gmra.mrb[84].mxu0 %vm3787_vm8, %v11037_v31 }
 0x86c   :  { %13109 = vmatpush1.bf16.msra.mxu0 %v13108_v54  ;;  %11204 = vmatprep.mubr.f32.mxu0 %v13761_v5 }
 0x86d   :  { %13111 = vmatprep.subr.bf16.mxu0 %v13110_v18 }
 0x870   :  { %13113 = vmatpush1.bf16.msra.mxu0 %v13112_v55 }
 0x871   :  { %13115 = vmatprep.subr.bf16.mxu0 %v13114_v17 }
 0x873   :  { %11875 = vmatmul.mubr.msk.f32.vlgmr.msra.gmra.mrb[84].mxu0 %vm3787_vm8, %v11127_v29 }
 0x874   :  { %13117 = vmatpush1.bf16.msra.mxu0 %v13116_v16  ;;  %11294 = vmatprep.mubr.f32.mxu0 %v13761_v5 }
 0x875   :  { %13119 = vmatprep.subr.bf16.mxu0 %v13118_v45 }
 0x878   :  { %13121 = vmatpush1.bf16.msra.mxu0 %v13120_v21 }
 0x879   :  { %13123 = vmatprep.subr.bf16.mxu0 %v13122_v62 }
 0x87b   :  { %11876 = vmatmul.mubr.msk.f32.vlgmr.msra.gmra.mrb[84].mxu0 %vm3787_vm8, %v11217_v13 }
 0x87c   :  { %13125 = vmatpush1.bf16.msra.mxu0 %v13124_v33  ;;  %11384 = vmatprep.mubr.f32.mxu0 %v13761_v5  ;;  %v281_v5 = vld [vmem:[%s19017_s15 + $0x70] sm:$0xff]  ;;  %s13762_s15 = smov [#allocation28]  }
 0x87d   :  { %13127 = vmatprep.subr.bf16.mxu0 %v13126_v28  ;;  %v13160_v12 = vpack.c.bf16 %v282_v2, %v281_v5  ;;  %s11490_s22 = sshll.u32 %s13762_s15, 4  ;;  %s11491_s22 = int_to_ptr.vmem [resolvable:$true] %s11490_s22 }
 0x87e   :  { %s13699_s1 = scalar_lea.vmem %s11491_s22, 32  ;;  %p13704_p9 = scmp.lt.s32.totalorder %s11491_s22, %s11491_s22 }
 0x87f   :  { %13161 = vmatpush3.bf16.msra.mxu1 %v13160_v12  ;;  %p13700_p8 = scmp.ne.s32.totalorder %s11491_s22, %s13699_s1  ;;  %p13705_p10 = scmp.lt.s32.totalorder %s13699_s1, %s13699_s1 }
 0x880   :  { %13129 = vmatpush1.bf16.msra.mxu0 %v13128_v37 }
 0x881   :  { %p13706_p11 = por %p13705_p10, %p13704_p9 }
 0x883   :  { %11877 = vmatmul.mubr.msk.f32.vlgmr.msra.gmra.mrb[84].mxu0 %vm3787_vm8, %v11307_v11  ;;  %p13707_p12 = pnand %p13706_p11, %p13700_p8 }
 0x956   :  { %v11386_v43 = vpop.f32.mrb[84].mxu0 }
 0x957   :  { %v11388_v30 = vpop.f32.mrb[85].mxu0  ;;  %v11404_v23 = vadd.f32 %v11397_v26, %v11386_v43 }
 0x958   :  { %v11405_v53 = vadd.f32 %v11401_v39, %v11388_v30 }
 0x95a   :  { %11476 = vmatprep.mubr.f32.mxu1 %v11405_v53 }
 0x95b   :  { %11477 = vmatmul.mubr.f32.vlgmr.msra.gmra.mrb[190].mxu1 %v11404_v23 }
 0xa2e   :  { %v12203_v14 = vpop.f32.mrb[190].mxu1 }
 0xa2f   :  { %v12204_v27 = vpop.f32.mrb[191].mxu1 }
 0xa30   :  { %v12205_v38 = vadd.f32 %v12204_v27, %v12203_v14 }
 0xa32   :  { %v11479_v1 = vadd.f32 %v12205_v38, %v11878_v52 }
 0xa34   :  { %11483 = vst.msk [vmem:[#allocation28] sm:$0x3] %vm11482_vm11, %v11479_v1 }
 0xa35   :  { %13710 = shalt.err (!%p13707_p12)
}
 0xa36   :  { %s13711_s25 = scalar_lea.hbm %s19019_s17, 32 }
 0xa37   :  { %p13712_p13 = scmp.ne.s32.totalorder %s19019_s17, %s13711_s25  ;;  %p13715_p0 = scmp.lt.u32.totalorder %s13711_s25, %s19019_s17 }
 0xa39   :  { %p13717_p1 = pnand %p13715_p0, %p13712_p13 }
 0xa3b   :  { %13720 = shalt.err (!%p13717_p1)
}
 0xa3c   :  { %11493 = dma.vmem_to_hbm [thread:$0]  %s11491_s22, 32, %s19019_s17, [#allocation6]  }
 0xa3d   :  { %13737 = dma.done.wait [#allocation6], 32  }
 0xa3e   :  { %13738 = vsyncadd [#allocation6], 4294967264 }
 0xa3f   :  { %11497 = vsyncpa [#allocation5], 1 }
 0xa40   :  { %11498 = vsyncpa [#allocation8], 1 }
 0xa41   :  { %11499 = vsyncpa [#allocation11], 1 }
 0xa42   :  { %11500 = vsyncpa [#allocation14], 1 }
 0xa43   :  { %11501 = vsyncpa [#allocation17], 1 }
 0xa44   :  { %11502 = vsyncpa [#allocation20], 1 }
 0xa45   :  { %11503 = vsyncpa [#allocation23], 1 }
 0xa46   :  { %11504 = vsyncpa [#allocation26], 1 }
 0xa47   :  { %11505 = vsyncpa [#allocation6], 1 }

</bundles_post_ra>
